<compile_context>
chip_gen: v7x
topology: tpu7x:2x2x1
jax: 0.10.0
libtpu: 0.0.40
codegen_flags: <defaults>
</compile_context>

<pallas_src>
import functools

import numpy as np
import jax
import jax.numpy as jnp
from jax.experimental import pallas as pl
from jax.experimental.pallas import tpu as pltpu


# ----------------------------------------------------------------------------
# Helpers
# ----------------------------------------------------------------------------
def _full_spec(shape):
    """Whole-array VMEM block (no grid)."""
    zeros = (0,) * len(shape)
    return pl.BlockSpec(shape, lambda *_: zeros)


# ----------------------------------------------------------------------------
# Kernel A: conv1 + conv2 + conv3, fully VMEM resident.
#
# Activations are kept as (channels, flat_positions) so spatial positions sit
# on the lane axis. Stride handling: for conv tap (kh, kw), the needed input
# columns are selected with a 0/1 matrix built from a 2-D iota compared with a
# tiny precomputed (1, P_out) "base index" vector -> pure MXU matmuls, no
# strided slices, no gathers, no reshapes of unaligned minor dims.
# ----------------------------------------------------------------------------
def _conv_stack_kernel(p1_ref, w1_ref, b1_ref, w2_ref, b2_ref, w3_ref, b3_ref,
                       base2_ref, base3_ref, o_ref, *, w_in2, k2, w_in3, k3):
    f32 = jnp.float32

    # ---- conv1: (OC1, C*K*K) @ (C*K*K, P1); /255 folded into the result ----
    a1 = jnp.dot(w1_ref[...], p1_ref[...], preferred_element_type=f32)
    a1 = jnp.maximum(a1 * f32(1.0 / 255.0) + b1_ref[...], 0.0)       # (OC1, P1)

    p1_n = p1_ref.shape[1]
    p2_n = base2_ref.shape[1]
    p3_n = base3_ref.shape[1]
    oc2 = w2_ref.shape[1]
    oc3 = w3_ref.shape[1]

    # ---- conv2 (k2 x k2, strided) via per-tap selection matmuls ------------
    q2 = jax.lax.broadcasted_iota(jnp.int32, (p1_n, p2_n), 0)
    base2 = base2_ref[...]                                            # (1, P2)
    acc2 = jnp.zeros((oc2, p2_n), f32)
    for t in range(k2 * k2):
        kh, kw = t // k2, t % k2
        sel = jnp.where(q2 == base2 + (kh * w_in2 + kw), f32(1.0), f32(0.0))
        slab = jnp.dot(a1, sel, preferred_element_type=f32)           # (OC1, P2)
        acc2 = acc2 + jnp.dot(w2_ref[t], slab, preferred_element_type=f32)
    a2 = jnp.maximum(acc2 + b2_ref[...], 0.0)                         # (OC2, P2)

    # ---- conv3 (k3 x k3, stride 1) -----------------------------------------
    q3 = jax.lax.broadcasted_iota(jnp.int32, (p2_n, p3_n), 0)
    base3 = base3_ref[...]                                            # (1, P3)
    acc3 = jnp.zeros((oc3, p3_n), f32)
    for t in range(k3 * k3):
        kh, kw = t // k3, t % k3
        sel = jnp.where(q3 == base3 + (kh * w_in3 + kw), f32(1.0), f32(0.0))
        slab = jnp.dot(a2, sel, preferred_element_type=f32)           # (OC2, P3)
        acc3 = acc3 + jnp.dot(w3_ref[t], slab, preferred_element_type=f32)
    o_ref[...] = jnp.maximum(acc3 + b3_ref[...], 0.0)                 # (OC3, P3)


def _conv_stack(p1, w1m, b1, w2r, b2, w3r, b3, base2, base3,
                *, w_in2, k2, w_in3, k3):
    oc3 = w3r.shape[1]
    p3 = base3.shape[1]
    kernel = functools.partial(_conv_stack_kernel,
                               w_in2=w_in2, k2=k2, w_in3=w_in3, k3=k3)
    args = (p1, w1m, b1, w2r, b2, w3r, b3, base2, base3)
    flops = 2 * (w1m.shape[0] * w1m.shape[1] * p1.shape[1]
                 + k2 * k2 * (w1m.shape[0] * p1.shape[1] * base2.shape[1]
                              + w2r.shape[1] * w2r.shape[2] * base2.shape[1])
                 + k3 * k3 * (w2r.shape[1] * base2.shape[1] * p3
                              + w3r.shape[1] * w3r.shape[2] * p3))
    bytes_accessed = (sum(int(np.prod(a.shape)) * a.dtype.itemsize for a in args)
                      + oc3 * p3 * 4)
    return pl.pallas_call(
        kernel,
        out_shape=jax.ShapeDtypeStruct((oc3, p3), jnp.float32),
        in_specs=[_full_spec(a.shape) for a in args],
        out_specs=_full_spec((oc3, p3)),
        cost_estimate=pl.CostEstimate(flops=flops, transcendentals=0,
                                      bytes_accessed=bytes_accessed),
        compiler_params=pltpu.CompilerParams(vmem_limit_bytes=32 * 1024 * 1024),
    )(*args)


# ----------------------------------------------------------------------------
# Kernel B: fused fc4 (bf16 weights, f32 accumulate) + ReLU + fc5.
# ----------------------------------------------------------------------------
def _fc_head_kernel(x_ref, w4_ref, b4_ref, w5_ref, b5_ref, o_ref):
    x = x_ref[...].astype(jnp.bfloat16)                               # (1, 3136)
    h = jnp.dot(x, w4_ref[...], preferred_element_type=jnp.float32) + b4_ref[...]
    h = jnp.maximum(h, 0.0)                                           # (1, 512)
    o_ref[...] = (jnp.dot(h, w5_ref[...], preferred_element_type=jnp.float32)
                  + b5_ref[...])                                      # (1, N)


def _fc_head(flat, w4, b4, w5, b5):
    n_out = w5.shape[1]
    args = (flat, w4, b4.reshape(1, -1), w5, b5.reshape(1, -1))
    flops = 2 * (w4.shape[0] * w4.shape[1] + w5.shape[0] * w5.shape[1])
    bytes_accessed = (sum(int(np.prod(a.shape)) * a.dtype.itemsize for a in args)
                      + n_out * 4)
    return pl.pallas_call(
        _fc_head_kernel,
        out_shape=jax.ShapeDtypeStruct((1, n_out), jnp.float32),
        in_specs=[_full_spec(a.shape) for a in args],
        out_specs=_full_spec((1, n_out)),
        cost_estimate=pl.CostEstimate(flops=flops, transcendentals=0,
                                      bytes_accessed=bytes_accessed),
        compiler_params=pltpu.CompilerParams(vmem_limit_bytes=32 * 1024 * 1024),
    )(*args)


# ----------------------------------------------------------------------------
# QNetwork parameters + forward
# ----------------------------------------------------------------------------
def init_params(key, input_size, hidden_size, output_size):
    ks = jax.random.split(key, 10)

    def u(k, shape, fan_in):
        bound = 1.0 / float(np.sqrt(fan_in))
        return jax.random.uniform(k, shape, jnp.float32, -bound, bound)

    return {
        "w1": u(ks[0], (hidden_size, input_size, 8, 8), input_size * 64),
        "b1": u(ks[1], (hidden_size,), input_size * 64),
        "w2": u(ks[2], (64, hidden_size, 4, 4), hidden_size * 16),
        "b2": u(ks[3], (64,), hidden_size * 16),
        "w3": u(ks[4], (64, 64, 3, 3), 64 * 9),
        "b3": u(ks[5], (64,), 64 * 9),
        # fc weights stored pre-transposed as (K, N); w4 in bf16 (weight-DMA
        # bound at batch=1, MXU-native on all TPU generations).
        "w4": u(ks[6], (7 * 7 * 64, 512), 7 * 7 * 64).astype(jnp.bfloat16),
        "b4": u(ks[7], (512,), 7 * 7 * 64),
        "w5": u(ks[8], (512, output_size), 512),
        "b5": u(ks[9], (output_size,), 512),
    }


def qnetwork_forward(params, obs):
    """obs: (C, 84, 84) raw pixels (0..255).  Returns (1, output_size) f32."""
    x = obs.astype(jnp.float32)
    C, H, W = x.shape
    w1, w2, w3 = params["w1"], params["w2"], params["w3"]
    hid = w1.shape[0]

    k1, s1 = w1.shape[2], 4
    k2, s2 = w2.shape[2], 2
    k3, s3 = w3.shape[2], 1
    oh1, ow1 = (H - k1) // s1 + 1, (W - k1) // s1 + 1
    oh2, ow2 = (oh1 - k2) // s2 + 1, (ow1 - k2) // s2 + 1
    oh3, ow3 = (oh2 - k3) // s3 + 1, (ow2 - k3) // s3 + 1

    # conv1 im2col patches, (C*k1*k1, oh1*ow1), built with strided slices only
    # (no XLA gather), rows ordered (c, kh, kw) to match w1.reshape(OC, -1).
    cols = []
    for i in range(k1):
        for j in range(k1):
            sl = jax.lax.slice(
                x, (0, i, j),
                (C, i + s1 * (oh1 - 1) + 1, j + s1 * (ow1 - 1) + 1),
                (1, s1, s1))                                   # (C, oh1, ow1)
            cols.append(sl.reshape(C, oh1 * ow1))
    p1 = jnp.stack(cols, axis=1).reshape(C * k1 * k1, oh1 * ow1)

    w1m = w1.reshape(hid, C * k1 * k1)
    w2r = jnp.transpose(w2, (2, 3, 0, 1)).reshape(k2 * k2, w2.shape[0], hid)
    w3r = jnp.transpose(w3, (2, 3, 0, 1)).reshape(k3 * k3, w3.shape[0], w3.shape[1])

    # Per-output-position flat source index bases (tap offset added in-kernel).
    i2, j2 = np.arange(oh2)[:, None], np.arange(ow2)[None, :]
    base2 = (s2 * ow1 * i2 + s2 * j2).reshape(1, oh2 * ow2).astype(np.int32)
    i3, j3 = np.arange(oh3)[:, None], np.arange(ow3)[None, :]
    base3 = (s3 * ow2 * i3 + s3 * j3).reshape(1, oh3 * ow3).astype(np.int32)

    a3 = _conv_stack(p1, w1m, params["b1"].reshape(hid, 1),
                     w2r, params["b2"].reshape(-1, 1),
                     w3r, params["b3"].reshape(-1, 1),
                     base2, base3, w_in2=ow1, k2=k2, w_in3=ow2, k3=k3)

    flat = a3.reshape(1, -1)          # channel-major flatten == torch reshape
    assert flat.shape[1] == params["w4"].shape[0], (flat.shape, params["w4"].shape)
    return _fc_head(flat, params["w4"], params["b4"], params["w5"], params["b5"])


# ----------------------------------------------------------------------------
# Pure-JAX reference (lax.conv, HIGHEST precision) for correctness checking.
# ----------------------------------------------------------------------------
def reference_forward(params, obs):
    x = obs.astype(jnp.float32)[None] / 255.0  # (1, C, H, W)
    dn = jax.lax.conv_dimension_numbers(x.shape, params["w1"].shape,
                                        ("NCHW", "OIHW", "NCHW"))

    def conv(x, w, b, s):
        y = jax.lax.conv_general_dilated(
            x, w, (s, s), "VALID", dimension_numbers=dn,
            precision=jax.lax.Precision.HIGHEST)
        return jax.nn.relu(y + b[None, :, None, None])

    x = conv(x, params["w1"], params["b1"], 4)
    x = conv(x, params["w2"], params["b2"], 2)
    x = conv(x, params["w3"], params["b3"], 1)
    flat = x.reshape(1, -1)
    h = jax.nn.relu(
        jnp.dot(flat, params["w4"].astype(jnp.float32),
                precision=jax.lax.Precision.HIGHEST) + params["b4"])
    return (jnp.dot(h, params["w5"], precision=jax.lax.Precision.HIGHEST)
            + params["b5"])


if __name__ == "__main__":
    # 4 stacked Atari frames, 4 actions. Spatial must be 84x84 because the
    # module hard-codes fc4 = Linear(7*7*64, 512).
    input_size, hidden_size, output_size = 4, 32, 4
    key = jax.random.PRNGKey(0)
    pkey, okey = jax.random.split(key)

    params = init_params(pkey, input_size, hidden_size, output_size)
    obs = jax.random.randint(okey, (input_size, 84, 84), 0, 256, jnp.int32)
    obs = obs.astype(jnp.float32)

    q = jax.jit(qnetwork_forward)(params, obs)
    q = jax.block_until_ready(q)
    assert q.shape == (1, output_size), q.shape
    assert bool(jnp.all(jnp.isfinite(q)))

    q_ref = reference_forward(params, obs)
    assert jnp.allclose(q, q_ref, atol=2e-2, rtol=2e-2), (q, q_ref)

    print("KERNEL_OK")
</pallas_src>

<mosaic_0001>
module attributes {stable_mosaic.version = 11 : i64} {
  func.func @_fc_head_kernel(%arg0: memref<1x3136xf32, #tpu.memory_space<vmem>>, %arg1: memref<3136x512xbf16, #tpu.memory_space<vmem>>, %arg2: memref<1x512xf32, #tpu.memory_space<vmem>>, %arg3: memref<512x4xf32, #tpu.memory_space<vmem>>, %arg4: memref<1x4xf32, #tpu.memory_space<vmem>>, %arg5: memref<1x4xf32, #tpu.memory_space<vmem>>) attributes {dimension_semantics = [], scalar_prefetch = 0 : i64, scratch_operands = 0 : i64, tpu.core_type = #tpu.core_type<tc>} {
    %c0 = arith.constant 0 : index
    %c0_0 = arith.constant 0 : index
    %0 = vector.load %arg0[%c0, %c0_0] : memref<1x3136xf32, #tpu.memory_space<vmem>>, vector<1x3136xf32>
    %1 = arith.truncf %0 : vector<1x3136xf32> to vector<1x3136xbf16>
    %c0_1 = arith.constant 0 : index
    %c0_2 = arith.constant 0 : index
    %2 = vector.load %arg1[%c0_1, %c0_2] : memref<3136x512xbf16, #tpu.memory_space<vmem>>, vector<3136x512xbf16>
    %cst = arith.constant dense<0.000000e+00> : vector<1x512xf32>
    %3 = tpu.matmul %1, %2, %cst {dimension_numbers = #tpu.dot_dimension_numbers<[1], [0], [0], [1], [0, 0, 1, 1], [], []>} : vector<1x3136xbf16>, vector<3136x512xbf16>, vector<1x512xf32> -> vector<1x512xf32>
    %c0_3 = arith.constant 0 : index
    %c0_4 = arith.constant 0 : index
    %4 = vector.load %arg2[%c0_3, %c0_4] : memref<1x512xf32, #tpu.memory_space<vmem>>, vector<1x512xf32>
    %5 = arith.addf %3, %4 : vector<1x512xf32>
    %cst_5 = arith.constant 0.000000e+00 : f32
    %6 = vector.broadcast %cst_5 : f32 to vector<1x512xf32>
    %7 = arith.maximumf %5, %6 : vector<1x512xf32>
    %c0_6 = arith.constant 0 : index
    %c0_7 = arith.constant 0 : index
    %8 = vector.load %arg3[%c0_6, %c0_7] : memref<512x4xf32, #tpu.memory_space<vmem>>, vector<512x4xf32>
    %cst_8 = arith.constant dense<0.000000e+00> : vector<1x4xf32>
    %9 = tpu.matmul %7, %8, %cst_8 {dimension_numbers = #tpu.dot_dimension_numbers<[1], [0], [0], [1], [0, 0, 1, 1], [], []>} : vector<1x512xf32>, vector<512x4xf32>, vector<1x4xf32> -> vector<1x4xf32>
    %c0_9 = arith.constant 0 : index
    %c0_10 = arith.constant 0 : index
    %10 = vector.load %arg4[%c0_9, %c0_10] : memref<1x4xf32, #tpu.memory_space<vmem>>, vector<1x4xf32>
    %11 = arith.addf %9, %10 : vector<1x4xf32>
    %c0_11 = arith.constant 0 : index
    %c0_12 = arith.constant 0 : index
    %12 = vector.load %arg5[%c0_11, %c0_12] : memref<1x4xf32, #tpu.memory_space<vmem>>, vector<1x4xf32>
    tpu.vector_store %arg5[%c0_11, %c0_12], %11 {strides = array<i32>} : memref<1x4xf32, #tpu.memory_space<vmem>>, vector<1x4xf32>,
    return
  }
}

module attributes {stable_mosaic.version = 11 : i64} {
  func.func @_conv_stack_kernel(%arg0: memref<256x400xf32, #tpu.memory_space<vmem>>, %arg1: memref<32x256xf32, #tpu.memory_space<vmem>>, %arg2: memref<32x1xf32, #tpu.memory_space<vmem>>, %arg3: memref<16x64x32xf32, #tpu.memory_space<vmem>>, %arg4: memref<64x1xf32, #tpu.memory_space<vmem>>, %arg5: memref<9x64x64xf32, #tpu.memory_space<vmem>>, %arg6: memref<64x1xf32, #tpu.memory_space<vmem>>, %arg7: memref<1x81xi32, #tpu.memory_space<vmem>>, %arg8: memref<1x49xi32, #tpu.memory_space<vmem>>, %arg9: memref<64x49xf32, #tpu.memory_space<vmem>>) attributes {dimension_semantics = [], scalar_prefetch = 0 : i64, scratch_operands = 0 : i64, tpu.core_type = #tpu.core_type<tc>} {
    %c0 = arith.constant 0 : index
    %c0_0 = arith.constant 0 : index
    %0 = vector.load %arg1[%c0, %c0_0] : memref<32x256xf32, #tpu.memory_space<vmem>>, vector<32x256xf32>
    %c0_1 = arith.constant 0 : index
    %c0_2 = arith.constant 0 : index
    %1 = vector.load %arg0[%c0_1, %c0_2] : memref<256x400xf32, #tpu.memory_space<vmem>>, vector<256x400xf32>
    %cst = arith.constant dense<0.000000e+00> : vector<32x400xf32>
    %2 = tpu.matmul %0, %1, %cst {dimension_numbers = #tpu.dot_dimension_numbers<[1], [0], [0], [1], [0, 0, 1, 1], [], []>} : vector<32x256xf32>, vector<256x400xf32>, vector<32x400xf32> -> vector<32x400xf32>
    %cst_3 = arith.constant 0.00392156886 : f32
    %3 = vector.broadcast %cst_3 : f32 to vector<32x400xf32>
    %4 = arith.mulf %2, %3 : vector<32x400xf32>
    %c0_4 = arith.constant 0 : index
    %c0_5 = arith.constant 0 : index
    %5 = vector.load %arg2[%c0_4, %c0_5] : memref<32x1xf32, #tpu.memory_space<vmem>>, vector<32x1xf32>
    %6 = vector.broadcast %5 : vector<32x1xf32> to vector<32x400xf32>
    %7 = arith.addf %4, %6 : vector<32x400xf32>
    %cst_6 = arith.constant 0.000000e+00 : f32
    %8 = vector.broadcast %cst_6 : f32 to vector<32x400xf32>
    %9 = arith.maximumf %7, %8 : vector<32x400xf32>
    %10 = tpu.iota {dimensions = array<i32: 0>} : vector<400x81xi32>
    %c0_7 = arith.constant 0 : index
    %c0_8 = arith.constant 0 : index
    %11 = vector.load %arg7[%c0_7, %c0_8] : memref<1x81xi32, #tpu.memory_space<vmem>>, vector<1x81xi32>
    %cst_9 = arith.constant 0.000000e+00 : f32
    %12 = vector.broadcast %cst_9 : f32 to vector<64x81xf32>
    %c0_i32 = arith.constant 0 : i32
    %13 = vector.broadcast %c0_i32 : i32 to vector<1x81xi32>
    %14 = arith.addi %11, %13 : vector<1x81xi32>
    %15 = vector.broadcast %14 : vector<1x81xi32> to vector<400x81xi32>
    %16 = arith.cmpi eq, %10, %15 : vector<400x81xi32>
    %cst_10 = arith.constant 1.000000e+00 : f32
    %cst_11 = arith.constant 0.000000e+00 : f32
    %17 = vector.broadcast %cst_10 : f32 to vector<400x81xf32>
    %18 = vector.broadcast %cst_11 : f32 to vector<400x81xf32>
    %19 = arith.select %16, %17, %18 : vector<400x81xi1>, vector<400x81xf32>
    %cst_12 = arith.constant dense<0.000000e+00> : vector<32x81xf32>
    %20 = tpu.matmul %9, %19, %cst_12 {dimension_numbers = #tpu.dot_dimension_numbers<[1], [0], [0], [1], [0, 0, 1, 1], [], []>} : vector<32x400xf32>, vector<400x81xf32>, vector<32x81xf32> -> vector<32x81xf32>
    %c0_13 = arith.constant 0 : index
    %c0_14 = arith.constant 0 : index
    %c0_15 = arith.constant 0 : index
    %21 = vector.load %arg3[%c0_13, %c0_14, %c0_15] : memref<16x64x32xf32, #tpu.memory_space<vmem>>, vector<1x64x32xf32>
    %22 = vector.shape_cast %21 : vector<1x64x32xf32> to vector<64x32xf32>
    %cst_16 = arith.constant dense<0.000000e+00> : vector<64x81xf32>
    %23 = tpu.matmul %22, %20, %cst_16 {dimension_numbers = #tpu.dot_dimension_numbers<[1], [0], [0], [1], [0, 0, 1, 1], [], []>} : vector<64x32xf32>, vector<32x81xf32>, vector<64x81xf32> -> vector<64x81xf32>
    %24 = arith.addf %12, %23 : vector<64x81xf32>
    %c1_i32 = arith.constant 1 : i32
    %25 = vector.broadcast %c1_i32 : i32 to vector<1x81xi32>
    %26 = arith.addi %11, %25 : vector<1x81xi32>
    %27 = vector.broadcast %26 : vector<1x81xi32> to vector<400x81xi32>
    %28 = arith.cmpi eq, %10, %27 : vector<400x81xi32>
    %cst_17 = arith.constant 1.000000e+00 : f32
    %cst_18 = arith.constant 0.000000e+00 : f32
    %29 = vector.broadcast %cst_17 : f32 to vector<400x81xf32>
    %30 = vector.broadcast %cst_18 : f32 to vector<400x81xf32>
    %31 = arith.select %28, %29, %30 : vector<400x81xi1>, vector<400x81xf32>
    %cst_19 = arith.constant dense<0.000000e+00> : vector<32x81xf32>
    %32 = tpu.matmul %9, %31, %cst_19 {dimension_numbers = #tpu.dot_dimension_numbers<[1], [0], [0], [1], [0, 0, 1, 1], [], []>} : vector<32x400xf32>, vector<400x81xf32>, vector<32x81xf32> -> vector<32x81xf32>
    %c1 = arith.constant 1 : index
    %c0_20 = arith.constant 0 : index
    %c0_21 = arith.constant 0 : index
    %33 = vector.load %arg3[%c1, %c0_20, %c0_21] : memref<16x64x32xf32, #tpu.memory_space<vmem>>, vector<1x64x32xf32>
    %34 = vector.shape_cast %33 : vector<1x64x32xf32> to vector<64x32xf32>
    %cst_22 = arith.constant dense<0.000000e+00> : vector<64x81xf32>
    %35 = tpu.matmul %34, %32, %cst_22 {dimension_numbers = #tpu.dot_dimension_numbers<[1], [0], [0], [1], [0, 0, 1, 1], [], []>} : vector<64x32xf32>, vector<32x81xf32>, vector<64x81xf32> -> vector<64x81xf32>
    %36 = arith.addf %24, %35 : vector<64x81xf32>
    %c2_i32 = arith.constant 2 : i32
    %37 = vector.broadcast %c2_i32 : i32 to vector<1x81xi32>
    %38 = arith.addi %11, %37 : vector<1x81xi32>
    %39 = vector.broadcast %38 : vector<1x81xi32> to vector<400x81xi32>
    %40 = arith.cmpi eq, %10, %39 : vector<400x81xi32>
    %cst_23 = arith.constant 1.000000e+00 : f32
    %cst_24 = arith.constant 0.000000e+00 : f32
    %41 = vector.broadcast %cst_23 : f32 to vector<400x81xf32>
    %42 = vector.broadcast %cst_24 : f32 to vector<400x81xf32>
    %43 = arith.select %40, %41, %42 : vector<400x81xi1>, vector<400x81xf32>
    %cst_25 = arith.constant dense<0.000000e+00> : vector<32x81xf32>
    %44 = tpu.matmul %9, %43, %cst_25 {dimension_numbers = #tpu.dot_dimension_numbers<[1], [0], [0], [1], [0, 0, 1, 1], [], []>} : vector<32x400xf32>, vector<400x81xf32>, vector<32x81xf32> -> vector<32x81xf32>
    %c2 = arith.constant 2 : index
    %c0_26 = arith.constant 0 : index
    %c0_27 = arith.constant 0 : index
    %45 = vector.load %arg3[%c2, %c0_26, %c0_27] : memref<16x64x32xf32, #tpu.memory_space<vmem>>, vector<1x64x32xf32>
    %46 = vector.shape_cast %45 : vector<1x64x32xf32> to vector<64x32xf32>
    %cst_28 = arith.constant dense<0.000000e+00> : vector<64x81xf32>
    %47 = tpu.matmul %46, %44, %cst_28 {dimension_numbers = #tpu.dot_dimension_numbers<[1], [0], [0], [1], [0, 0, 1, 1], [], []>} : vector<64x32xf32>, vector<32x81xf32>, vector<64x81xf32> -> vector<64x81xf32>
    %48 = arith.addf %36, %47 : vector<64x81xf32>
    %c3_i32 = arith.constant 3 : i32
    %49 = vector.broadcast %c3_i32 : i32 to vector<1x81xi32>
    %50 = arith.addi %11, %49 : vector<1x81xi32>
    %51 = vector.broadcast %50 : vector<1x81xi32> to vector<400x81xi32>
    %52 = arith.cmpi eq, %10, %51 : vector<400x81xi32>
    %cst_29 = arith.constant 1.000000e+00 : f32
    %cst_30 = arith.constant 0.000000e+00 : f32
    %53 = vector.broadcast %cst_29 : f32 to vector<400x81xf32>
    %54 = vector.broadcast %cst_30 : f32 to vector<400x81xf32>
    %55 = arith.select %52, %53, %54 : vector<400x81xi1>, vector<400x81xf32>
    %cst_31 = arith.constant dense<0.000000e+00> : vector<32x81xf32>
    %56 = tpu.matmul %9, %55, %cst_31 {dimension_numbers = #tpu.dot_dimension_numbers<[1], [0], [0], [1], [0, 0, 1, 1], [], []>} : vector<32x400xf32>, vector<400x81xf32>, vector<32x81xf32> -> vector<32x81xf32>
    %c3 = arith.constant 3 : index
    %c0_32 = arith.constant 0 : index
    %c0_33 = arith.constant 0 : index
    %57 = vector.load %arg3[%c3, %c0_32, %c0_33] : memref<16x64x32xf32, #tpu.memory_space<vmem>>, vector<1x64x32xf32>
    %58 = vector.shape_cast %57 : vector<1x64x32xf32> to vector<64x32xf32>
    %cst_34 = arith.constant dense<0.000000e+00> : vector<64x81xf32>
    %59 = tpu.matmul %58, %56, %cst_34 {dimension_numbers = #tpu.dot_dimension_numbers<[1], [0], [0], [1], [0, 0, 1, 1], [], []>} : vector<64x32xf32>, vector<32x81xf32>, vector<64x81xf32> -> vector<64x81xf32>
    %60 = arith.addf %48, %59 : vector<64x81xf32>
    %c20_i32 = arith.constant 20 : i32
    %61 = vector.broadcast %c20_i32 : i32 to vector<1x81xi32>
    %62 = arith.addi %11, %61 : vector<1x81xi32>
    %63 = vector.broadcast %62 : vector<1x81xi32> to vector<400x81xi32>
    %64 = arith.cmpi eq, %10, %63 : vector<400x81xi32>
    %cst_35 = arith.constant 1.000000e+00 : f32
    %cst_36 = arith.constant 0.000000e+00 : f32
    %65 = vector.broadcast %cst_35 : f32 to vector<400x81xf32>
    %66 = vector.broadcast %cst_36 : f32 to vector<400x81xf32>
    %67 = arith.select %64, %65, %66 : vector<400x81xi1>, vector<400x81xf32>
    %cst_37 = arith.constant dense<0.000000e+00> : vector<32x81xf32>
    %68 = tpu.matmul %9, %67, %cst_37 {dimension_numbers = #tpu.dot_dimension_numbers<[1], [0], [0], [1], [0, 0, 1, 1], [], []>} : vector<32x400xf32>, vector<400x81xf32>, vector<32x81xf32> -> vector<32x81xf32>
    %c4 = arith.constant 4 : index
    %c0_38 = arith.constant 0 : index
    %c0_39 = arith.constant 0 : index
    %69 = vector.load %arg3[%c4, %c0_38, %c0_39] : memref<16x64x32xf32, #tpu.memory_space<vmem>>, vector<1x64x32xf32>
    %70 = vector.shape_cast %69 : vector<1x64x32xf32> to vector<64x32xf32>
    %cst_40 = arith.constant dense<0.000000e+00> : vector<64x81xf32>
    %71 = tpu.matmul %70, %68, %cst_40 {dimension_numbers = #tpu.dot_dimension_numbers<[1], [0], [0], [1], [0, 0, 1, 1], [], []>} : vector<64x32xf32>, vector<32x81xf32>, vector<64x81xf32> -> vector<64x81xf32>
    %72 = arith.addf %60, %71 : vector<64x81xf32>
    %c21_i32 = arith.constant 21 : i32
    %73 = vector.broadcast %c21_i32 : i32 to vector<1x81xi32>
    %74 = arith.addi %11, %73 : vector<1x81xi32>
    %75 = vector.broadcast %74 : vector<1x81xi32> to vector<400x81xi32>
    %76 = arith.cmpi eq, %10, %75 : vector<400x81xi32>
    %cst_41 = arith.constant 1.000000e+00 : f32
    %cst_42 = arith.constant 0.000000e+00 : f32
    %77 = vector.broadcast %cst_41 : f32 to vector<400x81xf32>
    %78 = vector.broadcast %cst_42 : f32 to vector<400x81xf32>
    %79 = arith.select %76, %77, %78 : vector<400x81xi1>, vector<400x81xf32>
    %cst_43 = arith.constant dense<0.000000e+00> : vector<32x81xf32>
    %80 = tpu.matmul %9, %79, %cst_43 {dimension_numbers = #tpu.dot_dimension_numbers<[1], [0], [0], [1], [0, 0, 1, 1], [], []>} : vector<32x400xf32>, vector<400x81xf32>, vector<32x81xf32> -> vector<32x81xf32>
    %c5 = arith.constant 5 : index
    %c0_44 = arith.constant 0 : index
    %c0_45 = arith.constant 0 : index
    %81 = vector.load %arg3[%c5, %c0_44, %c0_45] : memref<16x64x32xf32, #tpu.memory_space<vmem>>, vector<1x64x32xf32>
    %82 = vector.shape_cast %81 : vector<1x64x32xf32> to vector<64x32xf32>
    %cst_46 = arith.constant dense<0.000000e+00> : vector<64x81xf32>
    %83 = tpu.matmul %82, %80, %cst_46 {dimension_numbers = #tpu.dot_dimension_numbers<[1], [0], [0], [1], [0, 0, 1, 1], [], []>} : vector<64x32xf32>, vector<32x81xf32>, vector<64x81xf32> -> vector<64x81xf32>
    %84 = arith.addf %72, %83 : vector<64x81xf32>
    %c22_i32 = arith.constant 22 : i32
    %85 = vector.broadcast %c22_i32 : i32 to vector<1x81xi32>
    %86 = arith.addi %11, %85 : vector<1x81xi32>
    %87 = vector.broadcast %86 : vector<1x81xi32> to vector<400x81xi32>
    %88 = arith.cmpi eq, %10, %87 : vector<400x81xi32>
    %cst_47 = arith.constant 1.000000e+00 : f32
    %cst_48 = arith.constant 0.000000e+00 : f32
    %89 = vector.broadcast %cst_47 : f32 to vector<400x81xf32>
    %90 = vector.broadcast %cst_48 : f32 to vector<400x81xf32>
    %91 = arith.select %88, %89, %90 : vector<400x81xi1>, vector<400x81xf32>
    %cst_49 = arith.constant dense<0.000000e+00> : vector<32x81xf32>
    %92 = tpu.matmul %9, %91, %cst_49 {dimension_numbers = #tpu.dot_dimension_numbers<[1], [0], [0], [1], [0, 0, 1, 1], [], []>} : vector<32x400xf32>, vector<400x81xf32>, vector<32x81xf32> -> vector<32x81xf32>
    %c6 = arith.constant 6 : index
    %c0_50 = arith.constant 0 : index
    %c0_51 = arith.constant 0 : index
    %93 = vector.load %arg3[%c6, %c0_50, %c0_51] : memref<16x64x32xf32, #tpu.memory_space<vmem>>, vector<1x64x32xf32>
    %94 = vector.shape_cast %93 : vector<1x64x32xf32> to vector<64x32xf32>
    %cst_52 = arith.constant dense<0.000000e+00> : vector<64x81xf32>
    %95 = tpu.matmul %94, %92, %cst_52 {dimension_numbers = #tpu.dot_dimension_numbers<[1], [0], [0], [1], [0, 0, 1, 1], [], []>} : vector<64x32xf32>, vector<32x81xf32>, vector<64x81xf32> -> vector<64x81xf32>
    %96 = arith.addf %84, %95 : vector<64x81xf32>
    %c23_i32 = arith.constant 23 : i32
    %97 = vector.broadcast %c23_i32 : i32 to vector<1x81xi32>
    %98 = arith.addi %11, %97 : vector<1x81xi32>
    %99 = vector.broadcast %98 : vector<1x81xi32> to vector<400x81xi32>
    %100 = arith.cmpi eq, %10, %99 : vector<400x81xi32>
    %cst_53 = arith.constant 1.000000e+00 : f32
    %cst_54 = arith.constant 0.000000e+00 : f32
    %101 = vector.broadcast %cst_53 : f32 to vector<400x81xf32>
    %102 = vector.broadcast %cst_54 : f32 to vector<400x81xf32>
    %103 = arith.select %100, %101, %102 : vector<400x81xi1>, vector<400x81xf32>
    %cst_55 = arith.constant dense<0.000000e+00> : vector<32x81xf32>
    %104 = tpu.matmul %9, %103, %cst_55 {dimension_numbers = #tpu.dot_dimension_numbers<[1], [0], [0], [1], [0, 0, 1, 1], [], []>} : vector<32x400xf32>, vector<400x81xf32>, vector<32x81xf32> -> vector<32x81xf32>
    %c7 = arith.constant 7 : index
    %c0_56 = arith.constant 0 : index
    %c0_57 = arith.constant 0 : index
    %105 = vector.load %arg3[%c7, %c0_56, %c0_57] : memref<16x64x32xf32, #tpu.memory_space<vmem>>, vector<1x64x32xf32>
    %106 = vector.shape_cast %105 : vector<1x64x32xf32> to vector<64x32xf32>
    %cst_58 = arith.constant dense<0.000000e+00> : vector<64x81xf32>
    %107 = tpu.matmul %106, %104, %cst_58 {dimension_numbers = #tpu.dot_dimension_numbers<[1], [0], [0], [1], [0, 0, 1, 1], [], []>} : vector<64x32xf32>, vector<32x81xf32>, vector<64x81xf32> -> vector<64x81xf32>
    %108 = arith.addf %96, %107 : vector<64x81xf32>
    %c40_i32 = arith.constant 40 : i32
    %109 = vector.broadcast %c40_i32 : i32 to vector<1x81xi32>
    %110 = arith.addi %11, %109 : vector<1x81xi32>
    %111 = vector.broadcast %110 : vector<1x81xi32> to vector<400x81xi32>
    %112 = arith.cmpi eq, %10, %111 : vector<400x81xi32>
    %cst_59 = arith.constant 1.000000e+00 : f32
    %cst_60 = arith.constant 0.000000e+00 : f32
    %113 = vector.broadcast %cst_59 : f32 to vector<400x81xf32>
    %114 = vector.broadcast %cst_60 : f32 to vector<400x81xf32>
    %115 = arith.select %112, %113, %114 : vector<400x81xi1>, vector<400x81xf32>
    %cst_61 = arith.constant dense<0.000000e+00> : vector<32x81xf32>
    %116 = tpu.matmul %9, %115, %cst_61 {dimension_numbers = #tpu.dot_dimension_numbers<[1], [0], [0], [1], [0, 0, 1, 1], [], []>} : vector<32x400xf32>, vector<400x81xf32>, vector<32x81xf32> -> vector<32x81xf32>
    %c8 = arith.constant 8 : index
    %c0_62 = arith.constant 0 : index
    %c0_63 = arith.constant 0 : index
    %117 = vector.load %arg3[%c8, %c0_62, %c0_63] : memref<16x64x32xf32, #tpu.memory_space<vmem>>, vector<1x64x32xf32>
    %118 = vector.shape_cast %117 : vector<1x64x32xf32> to vector<64x32xf32>
    %cst_64 = arith.constant dense<0.000000e+00> : vector<64x81xf32>
    %119 = tpu.matmul %118, %116, %cst_64 {dimension_numbers = #tpu.dot_dimension_numbers<[1], [0], [0], [1], [0, 0, 1, 1], [], []>} : vector<64x32xf32>, vector<32x81xf32>, vector<64x81xf32> -> vector<64x81xf32>
    %120 = arith.addf %108, %119 : vector<64x81xf32>
    %c41_i32 = arith.constant 41 : i32
    %121 = vector.broadcast %c41_i32 : i32 to vector<1x81xi32>
    %122 = arith.addi %11, %121 : vector<1x81xi32>
    %123 = vector.broadcast %122 : vector<1x81xi32> to vector<400x81xi32>
    %124 = arith.cmpi eq, %10, %123 : vector<400x81xi32>
    %cst_65 = arith.constant 1.000000e+00 : f32
    %cst_66 = arith.constant 0.000000e+00 : f32
    %125 = vector.broadcast %cst_65 : f32 to vector<400x81xf32>
    %126 = vector.broadcast %cst_66 : f32 to vector<400x81xf32>
    %127 = arith.select %124, %125, %126 : vector<400x81xi1>, vector<400x81xf32>
    %cst_67 = arith.constant dense<0.000000e+00> : vector<32x81xf32>
    %128 = tpu.matmul %9, %127, %cst_67 {dimension_numbers = #tpu.dot_dimension_numbers<[1], [0], [0], [1], [0, 0, 1, 1], [], []>} : vector<32x400xf32>, vector<400x81xf32>, vector<32x81xf32> -> vector<32x81xf32>
    %c9 = arith.constant 9 : index
    %c0_68 = arith.constant 0 : index
    %c0_69 = arith.constant 0 : index
    %129 = vector.load %arg3[%c9, %c0_68, %c0_69] : memref<16x64x32xf32, #tpu.memory_space<vmem>>, vector<1x64x32xf32>
    %130 = vector.shape_cast %129 : vector<1x64x32xf32> to vector<64x32xf32>
    %cst_70 = arith.constant dense<0.000000e+00> : vector<64x81xf32>
    %131 = tpu.matmul %130, %128, %cst_70 {dimension_numbers = #tpu.dot_dimension_numbers<[1], [0], [0], [1], [0, 0, 1, 1], [], []>} : vector<64x32xf32>, vector<32x81xf32>, vector<64x81xf32> -> vector<64x81xf32>
    %132 = arith.addf %120, %131 : vector<64x81xf32>
    %c42_i32 = arith.constant 42 : i32
    %133 = vector.broadcast %c42_i32 : i32 to vector<1x81xi32>
    %134 = arith.addi %11, %133 : vector<1x81xi32>
    %135 = vector.broadcast %134 : vector<1x81xi32> to vector<400x81xi32>
    %136 = arith.cmpi eq, %10, %135 : vector<400x81xi32>
    %cst_71 = arith.constant 1.000000e+00 : f32
    %cst_72 = arith.constant 0.000000e+00 : f32
    %137 = vector.broadcast %cst_71 : f32 to vector<400x81xf32>
    %138 = vector.broadcast %cst_72 : f32 to vector<400x81xf32>
    %139 = arith.select %136, %137, %138 : vector<400x81xi1>, vector<400x81xf32>
    %cst_73 = arith.constant dense<0.000000e+00> : vector<32x81xf32>
    %140 = tpu.matmul %9, %139, %cst_73 {dimension_numbers = #tpu.dot_dimension_numbers<[1], [0], [0], [1], [0, 0, 1, 1], [], []>} : vector<32x400xf32>, vector<400x81xf32>, vector<32x81xf32> -> vector<32x81xf32>
    %c10 = arith.constant 10 : index
    %c0_74 = arith.constant 0 : index
    %c0_75 = arith.constant 0 : index
    %141 = vector.load %arg3[%c10, %c0_74, %c0_75] : memref<16x64x32xf32, #tpu.memory_space<vmem>>, vector<1x64x32xf32>
    %142 = vector.shape_cast %141 : vector<1x64x32xf32> to vector<64x32xf32>
    %cst_76 = arith.constant dense<0.000000e+00> : vector<64x81xf32>
    %143 = tpu.matmul %142, %140, %cst_76 {dimension_numbers = #tpu.dot_dimension_numbers<[1], [0], [0], [1], [0, 0, 1, 1], [], []>} : vector<64x32xf32>, vector<32x81xf32>, vector<64x81xf32> -> vector<64x81xf32>
    %144 = arith.addf %132, %143 : vector<64x81xf32>
    %c43_i32 = arith.constant 43 : i32
    %145 = vector.broadcast %c43_i32 : i32 to vector<1x81xi32>
    %146 = arith.addi %11, %145 : vector<1x81xi32>
    %147 = vector.broadcast %146 : vector<1x81xi32> to vector<400x81xi32>
    %148 = arith.cmpi eq, %10, %147 : vector<400x81xi32>
    %cst_77 = arith.constant 1.000000e+00 : f32
    %cst_78 = arith.constant 0.000000e+00 : f32
    %149 = vector.broadcast %cst_77 : f32 to vector<400x81xf32>
    %150 = vector.broadcast %cst_78 : f32 to vector<400x81xf32>
    %151 = arith.select %148, %149, %150 : vector<400x81xi1>, vector<400x81xf32>
    %cst_79 = arith.constant dense<0.000000e+00> : vector<32x81xf32>
    %152 = tpu.matmul %9, %151, %cst_79 {dimension_numbers = #tpu.dot_dimension_numbers<[1], [0], [0], [1], [0, 0, 1, 1], [], []>} : vector<32x400xf32>, vector<400x81xf32>, vector<32x81xf32> -> vector<32x81xf32>
    %c11 = arith.constant 11 : index
    %c0_80 = arith.constant 0 : index
    %c0_81 = arith.constant 0 : index
    %153 = vector.load %arg3[%c11, %c0_80, %c0_81] : memref<16x64x32xf32, #tpu.memory_space<vmem>>, vector<1x64x32xf32>
    %154 = vector.shape_cast %153 : vector<1x64x32xf32> to vector<64x32xf32>
    %cst_82 = arith.constant dense<0.000000e+00> : vector<64x81xf32>
    %155 = tpu.matmul %154, %152, %cst_82 {dimension_numbers = #tpu.dot_dimension_numbers<[1], [0], [0], [1], [0, 0, 1, 1], [], []>} : vector<64x32xf32>, vector<32x81xf32>, vector<64x81xf32> -> vector<64x81xf32>
    %156 = arith.addf %144, %155 : vector<64x81xf32>
    %c60_i32 = arith.constant 60 : i32
    %157 = vector.broadcast %c60_i32 : i32 to vector<1x81xi32>
    %158 = arith.addi %11, %157 : vector<1x81xi32>
    %159 = vector.broadcast %158 : vector<1x81xi32> to vector<400x81xi32>
    %160 = arith.cmpi eq, %10, %159 : vector<400x81xi32>
    %cst_83 = arith.constant 1.000000e+00 : f32
    %cst_84 = arith.constant 0.000000e+00 : f32
    %161 = vector.broadcast %cst_83 : f32 to vector<400x81xf32>
    %162 = vector.broadcast %cst_84 : f32 to vector<400x81xf32>
    %163 = arith.select %160, %161, %162 : vector<400x81xi1>, vector<400x81xf32>
    %cst_85 = arith.constant dense<0.000000e+00> : vector<32x81xf32>
    %164 = tpu.matmul %9, %163, %cst_85 {dimension_numbers = #tpu.dot_dimension_numbers<[1], [0], [0], [1], [0, 0, 1, 1], [], []>} : vector<32x400xf32>, vector<400x81xf32>, vector<32x81xf32> -> vector<32x81xf32>
    %c12 = arith.constant 12 : index
    %c0_86 = arith.constant 0 : index
    %c0_87 = arith.constant 0 : index
    %165 = vector.load %arg3[%c12, %c0_86, %c0_87] : memref<16x64x32xf32, #tpu.memory_space<vmem>>, vector<1x64x32xf32>
    %166 = vector.shape_cast %165 : vector<1x64x32xf32> to vector<64x32xf32>
    %cst_88 = arith.constant dense<0.000000e+00> : vector<64x81xf32>
    %167 = tpu.matmul %166, %164, %cst_88 {dimension_numbers = #tpu.dot_dimension_numbers<[1], [0], [0], [1], [0, 0, 1, 1], [], []>} : vector<64x32xf32>, vector<32x81xf32>, vector<64x81xf32> -> vector<64x81xf32>
    %168 = arith.addf %156, %167 : vector<64x81xf32>
    %c61_i32 = arith.constant 61 : i32
    %169 = vector.broadcast %c61_i32 : i32 to vector<1x81xi32>
    %170 = arith.addi %11, %169 : vector<1x81xi32>
    %171 = vector.broadcast %170 : vector<1x81xi32> to vector<400x81xi32>
    %172 = arith.cmpi eq, %10, %171 : vector<400x81xi32>
    %cst_89 = arith.constant 1.000000e+00 : f32
    %cst_90 = arith.constant 0.000000e+00 : f32
    %173 = vector.broadcast %cst_89 : f32 to vector<400x81xf32>
    %174 = vector.broadcast %cst_90 : f32 to vector<400x81xf32>
    %175 = arith.select %172, %173, %174 : vector<400x81xi1>, vector<400x81xf32>
    %cst_91 = arith.constant dense<0.000000e+00> : vector<32x81xf32>
    %176 = tpu.matmul %9, %175, %cst_91 {dimension_numbers = #tpu.dot_dimension_numbers<[1], [0], [0], [1], [0, 0, 1, 1], [], []>} : vector<32x400xf32>, vector<400x81xf32>, vector<32x81xf32> -> vector<32x81xf32>
    %c13 = arith.constant 13 : index
    %c0_92 = arith.constant 0 : index
    %c0_93 = arith.constant 0 : index
    %177 = vector.load %arg3[%c13, %c0_92, %c0_93] : memref<16x64x32xf32, #tpu.memory_space<vmem>>, vector<1x64x32xf32>
    %178 = vector.shape_cast %177 : vector<1x64x32xf32> to vector<64x32xf32>
    %cst_94 = arith.constant dense<0.000000e+00> : vector<64x81xf32>
    %179 = tpu.matmul %178, %176, %cst_94 {dimension_numbers = #tpu.dot_dimension_numbers<[1], [0], [0], [1], [0, 0, 1, 1], [], []>} : vector<64x32xf32>, vector<32x81xf32>, vector<64x81xf32> -> vector<64x81xf32>
    %180 = arith.addf %168, %179 : vector<64x81xf32>
    %c62_i32 = arith.constant 62 : i32
    %181 = vector.broadcast %c62_i32 : i32 to vector<1x81xi32>
    %182 = arith.addi %11, %181 : vector<1x81xi32>
    %183 = vector.broadcast %182 : vector<1x81xi32> to vector<400x81xi32>
    %184 = arith.cmpi eq, %10, %183 : vector<400x81xi32>
    %cst_95 = arith.constant 1.000000e+00 : f32
    %cst_96 = arith.constant 0.000000e+00 : f32
    %185 = vector.broadcast %cst_95 : f32 to vector<400x81xf32>
    %186 = vector.broadcast %cst_96 : f32 to vector<400x81xf32>
    %187 = arith.select %184, %185, %186 : vector<400x81xi1>, vector<400x81xf32>
    %cst_97 = arith.constant dense<0.000000e+00> : vector<32x81xf32>
    %188 = tpu.matmul %9, %187, %cst_97 {dimension_numbers = #tpu.dot_dimension_numbers<[1], [0], [0], [1], [0, 0, 1, 1], [], []>} : vector<32x400xf32>, vector<400x81xf32>, vector<32x81xf32> -> vector<32x81xf32>
    %c14 = arith.constant 14 : index
    %c0_98 = arith.constant 0 : index
    %c0_99 = arith.constant 0 : index
    %189 = vector.load %arg3[%c14, %c0_98, %c0_99] : memref<16x64x32xf32, #tpu.memory_space<vmem>>, vector<1x64x32xf32>
    %190 = vector.shape_cast %189 : vector<1x64x32xf32> to vector<64x32xf32>
    %cst_100 = arith.constant dense<0.000000e+00> : vector<64x81xf32>
    %191 = tpu.matmul %190, %188, %cst_100 {dimension_numbers = #tpu.dot_dimension_numbers<[1], [0], [0], [1], [0, 0, 1, 1], [], []>} : vector<64x32xf32>, vector<32x81xf32>, vector<64x81xf32> -> vector<64x81xf32>
    %192 = arith.addf %180, %191 : vector<64x81xf32>
    %c63_i32 = arith.constant 63 : i32
    %193 = vector.broadcast %c63_i32 : i32 to vector<1x81xi32>
    %194 = arith.addi %11, %193 : vector<1x81xi32>
    %195 = vector.broadcast %194 : vector<1x81xi32> to vector<400x81xi32>
    %196 = arith.cmpi eq, %10, %195 : vector<400x81xi32>
    %cst_101 = arith.constant 1.000000e+00 : f32
    %cst_102 = arith.constant 0.000000e+00 : f32
    %197 = vector.broadcast %cst_101 : f32 to vector<400x81xf32>
    %198 = vector.broadcast %cst_102 : f32 to vector<400x81xf32>
    %199 = arith.select %196, %197, %198 : vector<400x81xi1>, vector<400x81xf32>
    %cst_103 = arith.constant dense<0.000000e+00> : vector<32x81xf32>
    %200 = tpu.matmul %9, %199, %cst_103 {dimension_numbers = #tpu.dot_dimension_numbers<[1], [0], [0], [1], [0, 0, 1, 1], [], []>} : vector<32x400xf32>, vector<400x81xf32>, vector<32x81xf32> -> vector<32x81xf32>
    %c15 = arith.constant 15 : index
    %c0_104 = arith.constant 0 : index
    %c0_105 = arith.constant 0 : index
    %201 = vector.load %arg3[%c15, %c0_104, %c0_105] : memref<16x64x32xf32, #tpu.memory_space<vmem>>, vector<1x64x32xf32>
    %202 = vector.shape_cast %201 : vector<1x64x32xf32> to vector<64x32xf32>
    %cst_106 = arith.constant dense<0.000000e+00> : vector<64x81xf32>
    %203 = tpu.matmul %202, %200, %cst_106 {dimension_numbers = #tpu.dot_dimension_numbers<[1], [0], [0], [1], [0, 0, 1, 1], [], []>} : vector<64x32xf32>, vector<32x81xf32>, vector<64x81xf32> -> vector<64x81xf32>
    %204 = arith.addf %192, %203 : vector<64x81xf32>
    %c0_107 = arith.constant 0 : index
    %c0_108 = arith.constant 0 : index
    %205 = vector.load %arg4[%c0_107, %c0_108] : memref<64x1xf32, #tpu.memory_space<vmem>>, vector<64x1xf32>
    %206 = vector.broadcast %205 : vector<64x1xf32> to vector<64x81xf32>
    %207 = arith.addf %204, %206 : vector<64x81xf32>
    %cst_109 = arith.constant 0.000000e+00 : f32
    %208 = vector.broadcast %cst_109 : f32 to vector<64x81xf32>
    %209 = arith.maximumf %207, %208 : vector<64x81xf32>
    %210 = tpu.iota {dimensions = array<i32: 0>} : vector<81x49xi32>
    %c0_110 = arith.constant 0 : index
    %c0_111 = arith.constant 0 : index
    %211 = vector.load %arg8[%c0_110, %c0_111] : memref<1x49xi32, #tpu.memory_space<vmem>>, vector<1x49xi32>
    %cst_112 = arith.constant 0.000000e+00 : f32
    %212 = vector.broadcast %cst_112 : f32 to vector<64x49xf32>
    %c0_i32_113 = arith.constant 0 : i32
    %213 = vector.broadcast %c0_i32_113 : i32 to vector<1x49xi32>
    %214 = arith.addi %211, %213 : vector<1x49xi32>
    %215 = vector.broadcast %214 : vector<1x49xi32> to vector<81x49xi32>
    %216 = arith.cmpi eq, %210, %215 : vector<81x49xi32>
    %cst_114 = arith.constant 1.000000e+00 : f32
    %cst_115 = arith.constant 0.000000e+00 : f32
    %217 = vector.broadcast %cst_114 : f32 to vector<81x49xf32>
    %218 = vector.broadcast %cst_115 : f32 to vector<81x49xf32>
    %219 = arith.select %216, %217, %218 : vector<81x49xi1>, vector<81x49xf32>
    %cst_116 = arith.constant dense<0.000000e+00> : vector<64x49xf32>
    %220 = tpu.matmul %209, %219, %cst_116 {dimension_numbers = #tpu.dot_dimension_numbers<[1], [0], [0], [1], [0, 0, 1, 1], [], []>} : vector<64x81xf32>, vector<81x49xf32>, vector<64x49xf32> -> vector<64x49xf32>
    %c0_117 = arith.constant 0 : index
    %c0_118 = arith.constant 0 : index
    %c0_119 = arith.constant 0 : index
    %221 = vector.load %arg5[%c0_117, %c0_118, %c0_119] : memref<9x64x64xf32, #tpu.memory_space<vmem>>, vector<1x64x64xf32>
    %222 = vector.shape_cast %221 : vector<1x64x64xf32> to vector<64x64xf32>
    %cst_120 = arith.constant dense<0.000000e+00> : vector<64x49xf32>
    %223 = tpu.matmul %222, %220, %cst_120 {dimension_numbers = #tpu.dot_dimension_numbers<[1], [0], [0], [1], [0, 0, 1, 1], [], []>} : vector<64x64xf32>, vector<64x49xf32>, vector<64x49xf32> -> vector<64x49xf32>
    %224 = arith.addf %212, %223 : vector<64x49xf32>
    %c1_i32_121 = arith.constant 1 : i32
    %225 = vector.broadcast %c1_i32_121 : i32 to vector<1x49xi32>
    %226 = arith.addi %211, %225 : vector<1x49xi32>
    %227 = vector.broadcast %226 : vector<1x49xi32> to vector<81x49xi32>
    %228 = arith.cmpi eq, %210, %227 : vector<81x49xi32>
    %cst_122 = arith.constant 1.000000e+00 : f32
    %cst_123 = arith.constant 0.000000e+00 : f32
    %229 = vector.broadcast %cst_122 : f32 to vector<81x49xf32>
    %230 = vector.broadcast %cst_123 : f32 to vector<81x49xf32>
    %231 = arith.select %228, %229, %230 : vector<81x49xi1>, vector<81x49xf32>
    %cst_124 = arith.constant dense<0.000000e+00> : vector<64x49xf32>
    %232 = tpu.matmul %209, %231, %cst_124 {dimension_numbers = #tpu.dot_dimension_numbers<[1], [0], [0], [1], [0, 0, 1, 1], [], []>} : vector<64x81xf32>, vector<81x49xf32>, vector<64x49xf32> -> vector<64x49xf32>
    %c1_125 = arith.constant 1 : index
    %c0_126 = arith.constant 0 : index
    %c0_127 = arith.constant 0 : index
    %233 = vector.load %arg5[%c1_125, %c0_126, %c0_127] : memref<9x64x64xf32, #tpu.memory_space<vmem>>, vector<1x64x64xf32>
    %234 = vector.shape_cast %233 : vector<1x64x64xf32> to vector<64x64xf32>
    %cst_128 = arith.constant dense<0.000000e+00> : vector<64x49xf32>
    %235 = tpu.matmul %234, %232, %cst_128 {dimension_numbers = #tpu.dot_dimension_numbers<[1], [0], [0], [1], [0, 0, 1, 1], [], []>} : vector<64x64xf32>, vector<64x49xf32>, vector<64x49xf32> -> vector<64x49xf32>
    %236 = arith.addf %224, %235 : vector<64x49xf32>
    %c2_i32_129 = arith.constant 2 : i32
    %237 = vector.broadcast %c2_i32_129 : i32 to vector<1x49xi32>
    %238 = arith.addi %211, %237 : vector<1x49xi32>
    %239 = vector.broadcast %238 : vector<1x49xi32> to vector<81x49xi32>
    %240 = arith.cmpi eq, %210, %239 : vector<81x49xi32>
    %cst_130 = arith.constant 1.000000e+00 : f32
    %cst_131 = arith.constant 0.000000e+00 : f32
    %241 = vector.broadcast %cst_130 : f32 to vector<81x49xf32>
    %242 = vector.broadcast %cst_131 : f32 to vector<81x49xf32>
    %243 = arith.select %240, %241, %242 : vector<81x49xi1>, vector<81x49xf32>
    %cst_132 = arith.constant dense<0.000000e+00> : vector<64x49xf32>
    %244 = tpu.matmul %209, %243, %cst_132 {dimension_numbers = #tpu.dot_dimension_numbers<[1], [0], [0], [1], [0, 0, 1, 1], [], []>} : vector<64x81xf32>, vector<81x49xf32>, vector<64x49xf32> -> vector<64x49xf32>
    %c2_133 = arith.constant 2 : index
    %c0_134 = arith.constant 0 : index
    %c0_135 = arith.constant 0 : index
    %245 = vector.load %arg5[%c2_133, %c0_134, %c0_135] : memref<9x64x64xf32, #tpu.memory_space<vmem>>, vector<1x64x64xf32>
    %246 = vector.shape_cast %245 : vector<1x64x64xf32> to vector<64x64xf32>
    %cst_136 = arith.constant dense<0.000000e+00> : vector<64x49xf32>
    %247 = tpu.matmul %246, %244, %cst_136 {dimension_numbers = #tpu.dot_dimension_numbers<[1], [0], [0], [1], [0, 0, 1, 1], [], []>} : vector<64x64xf32>, vector<64x49xf32>, vector<64x49xf32> -> vector<64x49xf32>
    %248 = arith.addf %236, %247 : vector<64x49xf32>
    %c9_i32 = arith.constant 9 : i32
    %249 = vector.broadcast %c9_i32 : i32 to vector<1x49xi32>
    %250 = arith.addi %211, %249 : vector<1x49xi32>
    %251 = vector.broadcast %250 : vector<1x49xi32> to vector<81x49xi32>
    %252 = arith.cmpi eq, %210, %251 : vector<81x49xi32>
    %cst_137 = arith.constant 1.000000e+00 : f32
    %cst_138 = arith.constant 0.000000e+00 : f32
    %253 = vector.broadcast %cst_137 : f32 to vector<81x49xf32>
    %254 = vector.broadcast %cst_138 : f32 to vector<81x49xf32>
    %255 = arith.select %252, %253, %254 : vector<81x49xi1>, vector<81x49xf32>
    %cst_139 = arith.constant dense<0.000000e+00> : vector<64x49xf32>
    %256 = tpu.matmul %209, %255, %cst_139 {dimension_numbers = #tpu.dot_dimension_numbers<[1], [0], [0], [1], [0, 0, 1, 1], [], []>} : vector<64x81xf32>, vector<81x49xf32>, vector<64x49xf32> -> vector<64x49xf32>
    %c3_140 = arith.constant 3 : index
    %c0_141 = arith.constant 0 : index
    %c0_142 = arith.constant 0 : index
    %257 = vector.load %arg5[%c3_140, %c0_141, %c0_142] : memref<9x64x64xf32, #tpu.memory_space<vmem>>, vector<1x64x64xf32>
    %258 = vector.shape_cast %257 : vector<1x64x64xf32> to vector<64x64xf32>
    %cst_143 = arith.constant dense<0.000000e+00> : vector<64x49xf32>
    %259 = tpu.matmul %258, %256, %cst_143 {dimension_numbers = #tpu.dot_dimension_numbers<[1], [0], [0], [1], [0, 0, 1, 1], [], []>} : vector<64x64xf32>, vector<64x49xf32>, vector<64x49xf32> -> vector<64x49xf32>
    %260 = arith.addf %248, %259 : vector<64x49xf32>
    %c10_i32 = arith.constant 10 : i32
    %261 = vector.broadcast %c10_i32 : i32 to vector<1x49xi32>
    %262 = arith.addi %211, %261 : vector<1x49xi32>
    %263 = vector.broadcast %262 : vector<1x49xi32> to vector<81x49xi32>
    %264 = arith.cmpi eq, %210, %263 : vector<81x49xi32>
    %cst_144 = arith.constant 1.000000e+00 : f32
    %cst_145 = arith.constant 0.000000e+00 : f32
    %265 = vector.broadcast %cst_144 : f32 to vector<81x49xf32>
    %266 = vector.broadcast %cst_145 : f32 to vector<81x49xf32>
    %267 = arith.select %264, %265, %266 : vector<81x49xi1>, vector<81x49xf32>
    %cst_146 = arith.constant dense<0.000000e+00> : vector<64x49xf32>
    %268 = tpu.matmul %209, %267, %cst_146 {dimension_numbers = #tpu.dot_dimension_numbers<[1], [0], [0], [1], [0, 0, 1, 1], [], []>} : vector<64x81xf32>, vector<81x49xf32>, vector<64x49xf32> -> vector<64x49xf32>
    %c4_147 = arith.constant 4 : index
    %c0_148 = arith.constant 0 : index
    %c0_149 = arith.constant 0 : index
    %269 = vector.load %arg5[%c4_147, %c0_148, %c0_149] : memref<9x64x64xf32, #tpu.memory_space<vmem>>, vector<1x64x64xf32>
    %270 = vector.shape_cast %269 : vector<1x64x64xf32> to vector<64x64xf32>
    %cst_150 = arith.constant dense<0.000000e+00> : vector<64x49xf32>
    %271 = tpu.matmul %270, %268, %cst_150 {dimension_numbers = #tpu.dot_dimension_numbers<[1], [0], [0], [1], [0, 0, 1, 1], [], []>} : vector<64x64xf32>, vector<64x49xf32>, vector<64x49xf32> -> vector<64x49xf32>
    %272 = arith.addf %260, %271 : vector<64x49xf32>
    %c11_i32 = arith.constant 11 : i32
    %273 = vector.broadcast %c11_i32 : i32 to vector<1x49xi32>
    %274 = arith.addi %211, %273 : vector<1x49xi32>
    %275 = vector.broadcast %274 : vector<1x49xi32> to vector<81x49xi32>
    %276 = arith.cmpi eq, %210, %275 : vector<81x49xi32>
    %cst_151 = arith.constant 1.000000e+00 : f32
    %cst_152 = arith.constant 0.000000e+00 : f32
    %277 = vector.broadcast %cst_151 : f32 to vector<81x49xf32>
    %278 = vector.broadcast %cst_152 : f32 to vector<81x49xf32>
    %279 = arith.select %276, %277, %278 : vector<81x49xi1>, vector<81x49xf32>
    %cst_153 = arith.constant dense<0.000000e+00> : vector<64x49xf32>
    %280 = tpu.matmul %209, %279, %cst_153 {dimension_numbers = #tpu.dot_dimension_numbers<[1], [0], [0], [1], [0, 0, 1, 1], [], []>} : vector<64x81xf32>, vector<81x49xf32>, vector<64x49xf32> -> vector<64x49xf32>
    %c5_154 = arith.constant 5 : index
    %c0_155 = arith.constant 0 : index
    %c0_156 = arith.constant 0 : index
    %281 = vector.load %arg5[%c5_154, %c0_155, %c0_156] : memref<9x64x64xf32, #tpu.memory_space<vmem>>, vector<1x64x64xf32>
    %282 = vector.shape_cast %281 : vector<1x64x64xf32> to vector<64x64xf32>
    %cst_157 = arith.constant dense<0.000000e+00> : vector<64x49xf32>
    %283 = tpu.matmul %282, %280, %cst_157 {dimension_numbers = #tpu.dot_dimension_numbers<[1], [0], [0], [1], [0, 0, 1, 1], [], []>} : vector<64x64xf32>, vector<64x49xf32>, vector<64x49xf32> -> vector<64x49xf32>
    %284 = arith.addf %272, %283 : vector<64x49xf32>
    %c18_i32 = arith.constant 18 : i32
    %285 = vector.broadcast %c18_i32 : i32 to vector<1x49xi32>
    %286 = arith.addi %211, %285 : vector<1x49xi32>
    %287 = vector.broadcast %286 : vector<1x49xi32> to vector<81x49xi32>
    %288 = arith.cmpi eq, %210, %287 : vector<81x49xi32>
    %cst_158 = arith.constant 1.000000e+00 : f32
    %cst_159 = arith.constant 0.000000e+00 : f32
    %289 = vector.broadcast %cst_158 : f32 to vector<81x49xf32>
    %290 = vector.broadcast %cst_159 : f32 to vector<81x49xf32>
    %291 = arith.select %288, %289, %290 : vector<81x49xi1>, vector<81x49xf32>
    %cst_160 = arith.constant dense<0.000000e+00> : vector<64x49xf32>
    %292 = tpu.matmul %209, %291, %cst_160 {dimension_numbers = #tpu.dot_dimension_numbers<[1], [0], [0], [1], [0, 0, 1, 1], [], []>} : vector<64x81xf32>, vector<81x49xf32>, vector<64x49xf32> -> vector<64x49xf32>
    %c6_161 = arith.constant 6 : index
    %c0_162 = arith.constant 0 : index
    %c0_163 = arith.constant 0 : index
    %293 = vector.load %arg5[%c6_161, %c0_162, %c0_163] : memref<9x64x64xf32, #tpu.memory_space<vmem>>, vector<1x64x64xf32>
    %294 = vector.shape_cast %293 : vector<1x64x64xf32> to vector<64x64xf32>
    %cst_164 = arith.constant dense<0.000000e+00> : vector<64x49xf32>
    %295 = tpu.matmul %294, %292, %cst_164 {dimension_numbers = #tpu.dot_dimension_numbers<[1], [0], [0], [1], [0, 0, 1, 1], [], []>} : vector<64x64xf32>, vector<64x49xf32>, vector<64x49xf32> -> vector<64x49xf32>
    %296 = arith.addf %284, %295 : vector<64x49xf32>
    %c19_i32 = arith.constant 19 : i32
    %297 = vector.broadcast %c19_i32 : i32 to vector<1x49xi32>
    %298 = arith.addi %211, %297 : vector<1x49xi32>
    %299 = vector.broadcast %298 : vector<1x49xi32> to vector<81x49xi32>
    %300 = arith.cmpi eq, %210, %299 : vector<81x49xi32>
    %cst_165 = arith.constant 1.000000e+00 : f32
    %cst_166 = arith.constant 0.000000e+00 : f32
    %301 = vector.broadcast %cst_165 : f32 to vector<81x49xf32>
    %302 = vector.broadcast %cst_166 : f32 to vector<81x49xf32>
    %303 = arith.select %300, %301, %302 : vector<81x49xi1>, vector<81x49xf32>
    %cst_167 = arith.constant dense<0.000000e+00> : vector<64x49xf32>
    %304 = tpu.matmul %209, %303, %cst_167 {dimension_numbers = #tpu.dot_dimension_numbers<[1], [0], [0], [1], [0, 0, 1, 1], [], []>} : vector<64x81xf32>, vector<81x49xf32>, vector<64x49xf32> -> vector<64x49xf32>
    %c7_168 = arith.constant 7 : index
    %c0_169 = arith.constant 0 : index
    %c0_170 = arith.constant 0 : index
    %305 = vector.load %arg5[%c7_168, %c0_169, %c0_170] : memref<9x64x64xf32, #tpu.memory_space<vmem>>, vector<1x64x64xf32>
    %306 = vector.shape_cast %305 : vector<1x64x64xf32> to vector<64x64xf32>
    %cst_171 = arith.constant dense<0.000000e+00> : vector<64x49xf32>
    %307 = tpu.matmul %306, %304, %cst_171 {dimension_numbers = #tpu.dot_dimension_numbers<[1], [0], [0], [1], [0, 0, 1, 1], [], []>} : vector<64x64xf32>, vector<64x49xf32>, vector<64x49xf32> -> vector<64x49xf32>
    %308 = arith.addf %296, %307 : vector<64x49xf32>
    %c20_i32_172 = arith.constant 20 : i32
    %309 = vector.broadcast %c20_i32_172 : i32 to vector<1x49xi32>
    %310 = arith.addi %211, %309 : vector<1x49xi32>
    %311 = vector.broadcast %310 : vector<1x49xi32> to vector<81x49xi32>
    %312 = arith.cmpi eq, %210, %311 : vector<81x49xi32>
    %cst_173 = arith.constant 1.000000e+00 : f32
    %cst_174 = arith.constant 0.000000e+00 : f32
    %313 = vector.broadcast %cst_173 : f32 to vector<81x49xf32>
    %314 = vector.broadcast %cst_174 : f32 to vector<81x49xf32>
    %315 = arith.select %312, %313, %314 : vector<81x49xi1>, vector<81x49xf32>
    %cst_175 = arith.constant dense<0.000000e+00> : vector<64x49xf32>
    %316 = tpu.matmul %209, %315, %cst_175 {dimension_numbers = #tpu.dot_dimension_numbers<[1], [0], [0], [1], [0, 0, 1, 1], [], []>} : vector<64x81xf32>, vector<81x49xf32>, vector<64x49xf32> -> vector<64x49xf32>
    %c8_176 = arith.constant 8 : index
    %c0_177 = arith.constant 0 : index
    %c0_178 = arith.constant 0 : index
    %317 = vector.load %arg5[%c8_176, %c0_177, %c0_178] : memref<9x64x64xf32, #tpu.memory_space<vmem>>, vector<1x64x64xf32>
    %318 = vector.shape_cast %317 : vector<1x64x64xf32> to vector<64x64xf32>
    %cst_179 = arith.constant dense<0.000000e+00> : vector<64x49xf32>
    %319 = tpu.matmul %318, %316, %cst_179 {dimension_numbers = #tpu.dot_dimension_numbers<[1], [0], [0], [1], [0, 0, 1, 1], [], []>} : vector<64x64xf32>, vector<64x49xf32>, vector<64x49xf32> -> vector<64x49xf32>
    %320 = arith.addf %308, %319 : vector<64x49xf32>
    %c0_180 = arith.constant 0 : index
    %c0_181 = arith.constant 0 : index
    %321 = vector.load %arg6[%c0_180, %c0_181] : memref<64x1xf32, #tpu.memory_space<vmem>>, vector<64x1xf32>
    %322 = vector.broadcast %321 : vector<64x1xf32> to vector<64x49xf32>
    %323 = arith.addf %320, %322 : vector<64x49xf32>
    %cst_182 = arith.constant 0.000000e+00 : f32
    %324 = vector.broadcast %cst_182 : f32 to vector<64x49xf32>
    %325 = arith.maximumf %323, %324 : vector<64x49xf32>
    %c0_183 = arith.constant 0 : index
    %c0_184 = arith.constant 0 : index
    %326 = vector.load %arg9[%c0_183, %c0_184] : memref<64x49xf32, #tpu.memory_space<vmem>>, vector<64x49xf32>
    tpu.vector_store %arg9[%c0_183, %c0_184], %325 {strides = array<i32>} : memref<64x49xf32, #tpu.memory_space<vmem>>, vector<64x49xf32>,
    return
  }
}

</mosaic_0001>

<bundles_post_ra>
// kernel: qnetwork_forward.3
= control target key start
LH: loop header
LB: loop body
LE: loop exit
PB: predicated region body
PF: predicated region fallthrough
CT: control target
= control target key end

     0   :  { %v30_v36 = vlaneseq  ;;  %s11131_s0 = inlined_call_operand.vmem [shape: f32[1,3136], index: 0, kind: input, shape index: {}]   ;;  %s11132_s1 = inlined_call_operand.vmem [shape: bf16[3136,512], index: 1, kind: input, shape index: {}]   ;;  %s11133_s2 = inlined_call_operand.vmem [shape: f32[1,512], index: 2, kind: input, shape index: {}]   ;;  %s11134_s3 = inlined_call_operand.vmem [shape: f32[512,4], index: 3, kind: input, shape index: {}]   ;;  %s11135_s4 = inlined_call_operand.vmem [shape: f32[1,4], index: 4, kind: input, shape index: {}]   ;;  %s11136_s5 = inlined_call_operand.hbm [shape: f32[1,4], index: 5, kind: output, shape index: {}]  }
   0x1   :  { %v7224_v0 = vld [vmem:[%s11132_s1 + $0x4] ss:$16 sps:$4 sm:$0xff]   ;;  %v7226_v1 = vld [vmem:[%s11132_s1 + $0xc] ss:$16 sps:$4 sm:$0xff]   ;;  %v7228_v2 = vld [vmem:[%s11132_s1] ss:$16 sps:$4 sm:$0xff]  }
   0x2   :  { %4910 = vmatprep.subr.bf16.mxu0 %v7224_v0  ;;  %v7229_v3 = vld [vmem:[%s11132_s1 + $0x8] ss:$16 sps:$4 sm:$0xff]   ;;  %5443 = vmatprep.subr.bf16.mxu1 %v7226_v1  ;;  %v7230_v4 = vld [vmem:[%s11132_s1 + $0x24] ss:$16 sps:$4 sm:$0xff]   ;;  %v7232_v5 = vld [vmem:[%s11132_s1 + $0x2c] ss:$16 sps:$4 sm:$0xff]  }
   0x3   :  { %4911 = vmatpush1.bf16.msra.mxu0 %v7228_v2  ;;  %5444 = vmatpush1.bf16.msra.mxu1 %v7229_v3  ;;  %v7234_v6 = vld [vmem:[%s11132_s1 + $0x20] ss:$16 sps:$4 sm:$0xff]   ;;  %v7235_v7 = vld [vmem:[%s11132_s1 + $0x28] ss:$16 sps:$4 sm:$0xff]   ;;  %v7236_v8 = vld [vmem:[%s11132_s1 + $0x44] ss:$16 sps:$4 sm:$0xff]  }
   0x4   :  { %4912 = vmatprep.subr.bf16.mxu0 %v7230_v4  ;;  %5445 = vmatprep.subr.bf16.mxu1 %v7232_v5  ;;  %v7238_v9 = vld [vmem:[%s11132_s1 + $0x4c] ss:$16 sps:$4 sm:$0xff]   ;;  %v7240_v10 = vld [vmem:[%s11132_s1 + $0x40] ss:$16 sps:$4 sm:$0xff]   ;;  %v7241_v11 = vld [vmem:[%s11132_s1 + $0x48] ss:$16 sps:$4 sm:$0xff]  }
   0x5   :  { %v7242_v12 = vld [vmem:[%s11132_s1 + $0x64] ss:$16 sps:$4 sm:$0xff]   ;;  %v7244_v13 = vld [vmem:[%s11132_s1 + $0x6c] ss:$16 sps:$4 sm:$0xff]   ;;  %v7246_v14 = vld [vmem:[%s11132_s1 + $0x60] ss:$16 sps:$4 sm:$0xff]  }
   0x6   :  { %v7247_v15 = vld [vmem:[%s11132_s1 + $0x68] ss:$16 sps:$4 sm:$0xff]   ;;  %v7248_v16 = vld [vmem:[%s11132_s1 + $0x84] ss:$16 sps:$4 sm:$0xff]   ;;  %v7250_v17 = vld [vmem:[%s11132_s1 + $0x8c] ss:$16 sps:$4 sm:$0xff]  }
   0x7   :  { %4913 = vmatpush1.bf16.msra.mxu0 %v7234_v6  ;;  %5446 = vmatpush1.bf16.msra.mxu1 %v7235_v7  ;;  %v7252_v18 = vld [vmem:[%s11132_s1 + $0x80] ss:$16 sps:$4 sm:$0xff]   ;;  %v7253_v19 = vld [vmem:[%s11132_s1 + $0x88] ss:$16 sps:$4 sm:$0xff]   ;;  %v7254_v20 = vld [vmem:[%s11132_s1 + $0xa4] ss:$16 sps:$4 sm:$0xff]  }
   0x8   :  { %4914 = vmatprep.subr.bf16.mxu0 %v7236_v8  ;;  %5447 = vmatprep.subr.bf16.mxu1 %v7238_v9  ;;  %v7256_v21 = vld [vmem:[%s11132_s1 + $0xac] ss:$16 sps:$4 sm:$0xff]   ;;  %v7258_v22 = vld [vmem:[%s11132_s1 + $0xa0] ss:$16 sps:$4 sm:$0xff]   ;;  %v7259_v23 = vld [vmem:[%s11132_s1 + $0xa8] ss:$16 sps:$4 sm:$0xff]  }
   0x9   :  { %v7260_v24 = vld [vmem:[%s11132_s1 + $0xc4] ss:$16 sps:$4 sm:$0xff]   ;;  %v7262_v25 = vld [vmem:[%s11132_s1 + $0xcc] ss:$16 sps:$4 sm:$0xff]   ;;  %v7264_v26 = vld [vmem:[%s11132_s1 + $0xc0] ss:$16 sps:$4 sm:$0xff]  }
   0xa   :  { %v7265_v27 = vld [vmem:[%s11132_s1 + $0xc8] ss:$16 sps:$4 sm:$0xff]   ;;  %v7266_v28 = vld [vmem:[%s11132_s1 + $0xe4] ss:$16 sps:$4 sm:$0xff]   ;;  %v7268_v29 = vld [vmem:[%s11132_s1 + $0xec] ss:$16 sps:$4 sm:$0xff]  }
   0xb   :  { %4915 = vmatpush1.bf16.msra.mxu0 %v7240_v10  ;;  %5448 = vmatpush1.bf16.msra.mxu1 %v7241_v11  ;;  %v7270_v30 = vld [vmem:[%s11132_s1 + $0xe0] ss:$16 sps:$4 sm:$0xff]   ;;  %v7271_v31 = vld [vmem:[%s11132_s1 + $0xe8] ss:$16 sps:$4 sm:$0xff]   ;;  %v7272_v32 = vld [vmem:[%s11132_s1 + $0x104] ss:$16 sps:$4 sm:$0xff]  }
   0xc   :  { %4916 = vmatprep.subr.bf16.mxu0 %v7242_v12  ;;  %5449 = vmatprep.subr.bf16.mxu1 %v7244_v13  ;;  %v7274_v33 = vld [vmem:[%s11132_s1 + $0x10c] ss:$16 sps:$4 sm:$0xff]   ;;  %v7276_v34 = vld [vmem:[%s11132_s1 + $0x100] ss:$16 sps:$4 sm:$0xff]   ;;  %v7277_v35 = vld [vmem:[%s11132_s1 + $0x108] ss:$16 sps:$4 sm:$0xff]  }
   0xd   :  { %v7278_v37 = vld [vmem:[%s11132_s1 + $0x124] ss:$16 sps:$4 sm:$0xff]   ;;  %v7280_v38 = vld [vmem:[%s11132_s1 + $0x12c] ss:$16 sps:$4 sm:$0xff]   ;;  %v7282_v39 = vld [vmem:[%s11132_s1 + $0x120] ss:$16 sps:$4 sm:$0xff]  }
   0xe   :  { %v8576_v40 = vshrl.u32 %v30_v36, 7  ;;  %v7283_v41 = vld [vmem:[%s11132_s1 + $0x128] ss:$16 sps:$4 sm:$0xff]   ;;  %v7284_v42 = vld [vmem:[%s11132_s1 + $0x144] ss:$16 sps:$4 sm:$0xff]  }
   0xf   :  { %4917 = vmatpush1.bf16.msra.mxu0 %v7246_v14  ;;  %5450 = vmatpush1.bf16.msra.mxu1 %v7247_v15  ;;  %v7286_v43 = vld [vmem:[%s11132_s1 + $0x14c] ss:$16 sps:$4 sm:$0xff]   ;;  %v7288_v44 = vld [vmem:[%s11132_s1 + $0x140] ss:$16 sps:$4 sm:$0xff]   ;;  %v7289_v45 = vld [vmem:[%s11132_s1 + $0x148] ss:$16 sps:$4 sm:$0xff]  }
  0x10   :  { %4918 = vmatprep.subr.bf16.mxu0 %v7248_v16  ;;  %5451 = vmatprep.subr.bf16.mxu1 %v7250_v17  ;;  %v8594_v46 = vsub.s32 1, %v8576_v40  ;;  %v7290_v47 = vld [vmem:[%s11132_s1 + $0x164] ss:$16 sps:$4 sm:$0xff]   ;;  %v7292_v48 = vld [vmem:[%s11132_s1 + $0x16c] ss:$16 sps:$4 sm:$0xff]   ;;  %v8649_v1 = vsub.s32 0, %v8576_v40 }
  0x11   :  { %v8605_v49 = vld [vmem:[%s11131_s0] sm:$0xff]  ;;  %v7295_v52 = vld [vmem:[%s11132_s1 + $0x168] ss:$16 sps:$4 sm:$0xff]   ;;  %v7298_v54 = vld [vmem:[%s11132_s1 + $0x18c] ss:$16 sps:$4 sm:$0xff]   ;;  %v8661_v5 = vsub.s32 3, %v8576_v40 }
  0x12   :  { %v7294_v50 = vld [vmem:[%s11132_s1 + $0x160] ss:$16 sps:$4 sm:$0xff]   ;;  %v37_v51 = vrot.slane %v8605_v49, %v8594_v46  ;;  %v7296_v53 = vld [vmem:[%s11132_s1 + $0x184] ss:$16 sps:$4 sm:$0xff]   ;;  %v7301_v57 = vld [vmem:[%s11132_s1 + $0x188] ss:$16 sps:$4 sm:$0xff]   ;;  %v33_v7 = vrot.slane %v8605_v49, %v8649_v1 }
  0x13   :  { %4919 = vmatpush1.bf16.msra.mxu0 %v7252_v18  ;;  %5452 = vmatpush1.bf16.msra.mxu1 %v7253_v19  ;;  %v7300_v56 = vld [vmem:[%s11132_s1 + $0x180] ss:$16 sps:$4 sm:$0xff]   ;;  %v7302_v58 = vld [vmem:[%s11132_s1 + $0x1a4] ss:$16 sps:$4 sm:$0xff]   ;;  %v7304_v59 = vld [vmem:[%s11132_s1 + $0x1ac] ss:$16 sps:$4 sm:$0xff]   ;;  %v45_v11 = vrot.slane %v8605_v49, %v8661_v5 }
  0x14   :  { %4920 = vmatprep.subr.bf16.mxu0 %v7254_v20  ;;  %5453 = vmatprep.subr.bf16.mxu1 %v7256_v21  ;;  %v156_v55 = vpack.c.bf16 %v37_v51, %v37_v51  ;;  %v7306_v60 = vld [vmem:[%s11132_s1 + $0x1a0] ss:$16 sps:$4 sm:$0xff]   ;;  %v7307_v61 = vld [vmem:[%s11132_s1 + $0x1a8] ss:$16 sps:$4 sm:$0xff]   ;;  %v7308_v62 = vld [vmem:[%s11132_s1 + $0x1c4] ss:$16 sps:$4 sm:$0xff]   ;;  %v155_v13 = vpack.c.bf16 %v33_v7, %v33_v7 }
  0x15   :  { %v7310_v63 = vld [vmem:[%s11132_s1 + $0x1cc] ss:$16 sps:$4 sm:$0xff]   ;;  %v7312_v0 = vld [vmem:[%s11132_s1 + $0x1c0] ss:$16 sps:$4 sm:$0xff]   ;;  %v7313_v2 = vld [vmem:[%s11132_s1 + $0x1c8] ss:$16 sps:$4 sm:$0xff]   ;;  %v158_v17 = vpack.c.bf16 %v45_v11, %v45_v11 }
  0x16   :  { %4942 = vmatprep.mubr.bf16.mxu0 %v156_v55  ;;  %5475 = vmatprep.mubr.bf16.mxu1 %v156_v55  ;;  %v7314_v3 = vld [vmem:[%s11132_s1 + $0x1e4] ss:$16 sps:$4 sm:$0xff]   ;;  %v7316_v4 = vld [vmem:[%s11132_s1 + $0x1ec] ss:$16 sps:$4 sm:$0xff]   ;;  %v7318_v6 = vld [vmem:[%s11132_s1 + $0x1e0] ss:$16 sps:$4 sm:$0xff]  }
  0x17   :  { %4921 = vmatpush1.bf16.msra.mxu0 %v7258_v22  ;;  %5454 = vmatpush1.bf16.msra.mxu1 %v7259_v23  ;;  %v7319_v8 = vld [vmem:[%s11132_s1 + $0x1e8] ss:$16 sps:$4 sm:$0xff]   ;;  %v7322_v9 = vld [vmem:[%s11132_s1 + $0x204] ss:$16 sps:$4 sm:$0xff]   ;;  %v7325_v10 = vld [vmem:[%s11132_s1 + $0x20c] ss:$16 sps:$4 sm:$0xff]  }
  0x18   :  { %4922 = vmatprep.subr.bf16.mxu0 %v7260_v24  ;;  %5455 = vmatprep.subr.bf16.mxu1 %v7262_v25  ;;  %v7320_v12 = vld [vmem:[%s11132_s1 + $0x200] ss:$16 sps:$4 sm:$0xff]   ;;  %v7323_v14 = vld [vmem:[%s11132_s1 + $0x208] ss:$16 sps:$4 sm:$0xff]   ;;  %v7328_v15 = vld [vmem:[%s11132_s1 + $0x224] ss:$16 sps:$4 sm:$0xff]  }
  0x19   :  { %v7331_v16 = vld [vmem:[%s11132_s1 + $0x22c] ss:$16 sps:$4 sm:$0xff]   ;;  %v7326_v18 = vld [vmem:[%s11132_s1 + $0x220] ss:$16 sps:$4 sm:$0xff]   ;;  %v7329_v19 = vld [vmem:[%s11132_s1 + $0x228] ss:$16 sps:$4 sm:$0xff]  }
  0x1a   :  { %v7334_v20 = vld [vmem:[%s11132_s1 + $0x244] ss:$16 sps:$4 sm:$0xff]   ;;  %v7337_v21 = vld [vmem:[%s11132_s1 + $0x24c] ss:$16 sps:$4 sm:$0xff]   ;;  %v7332_v22 = vld [vmem:[%s11132_s1 + $0x240] ss:$16 sps:$4 sm:$0xff]  }
  0x1b   :  { %4923 = vmatpush1.bf16.msra.mxu0 %v7264_v26  ;;  %5456 = vmatpush1.bf16.msra.mxu1 %v7265_v27  ;;  %v7335_v23 = vld [vmem:[%s11132_s1 + $0x248] ss:$16 sps:$4 sm:$0xff]   ;;  %v7340_v24 = vld [vmem:[%s11132_s1 + $0x264] ss:$16 sps:$4 sm:$0xff]   ;;  %v7343_v25 = vld [vmem:[%s11132_s1 + $0x26c] ss:$16 sps:$4 sm:$0xff]  }
  0x1c   :  { %4924 = vmatprep.subr.bf16.mxu0 %v7266_v28  ;;  %5457 = vmatprep.subr.bf16.mxu1 %v7268_v29  ;;  %v7338_v26 = vld [vmem:[%s11132_s1 + $0x260] ss:$16 sps:$4 sm:$0xff]   ;;  %v7341_v27 = vld [vmem:[%s11132_s1 + $0x268] ss:$16 sps:$4 sm:$0xff]   ;;  %v7346_v28 = vld [vmem:[%s11132_s1 + $0x284] ss:$16 sps:$4 sm:$0xff]  }
  0x1d   :  { %v7349_v29 = vld [vmem:[%s11132_s1 + $0x28c] ss:$16 sps:$4 sm:$0xff]   ;;  %v7358_v36 = vld [vmem:[%s11132_s1 + $0x2c4] ss:$16 sps:$4 sm:$0xff]   ;;  %v7398_v7 = vld [vmem:[%s11132_s1 + $0x3a0] ss:$16 sps:$4 sm:$0xff]  }
  0x1e   :  { %v7376_v51 = vld [vmem:[%s11132_s1 + $0x324] ss:$16 sps:$4 sm:$0xff]   ;;  %v7404_v11 = vld [vmem:[%s11132_s1 + $0x3c0] ss:$16 sps:$4 sm:$0xff]  }
  0x1f   :  { %4925 = vmatpush1.bf16.msra.mxu0 %v7270_v30  ;;  %5458 = vmatpush1.bf16.msra.mxu1 %v7271_v31  ;;  %v7344_v30 = vld [vmem:[%s11132_s1 + $0x280] ss:$16 sps:$4 sm:$0xff]   ;;  %v7347_v31 = vld [vmem:[%s11132_s1 + $0x288] ss:$16 sps:$4 sm:$0xff]   ;;  %v7382_v55 = vld [vmem:[%s11132_s1 + $0x344] ss:$16 sps:$4 sm:$0xff]  }
  0x20   :  { %4926 = vmatprep.subr.bf16.mxu0 %v7272_v32  ;;  %5459 = vmatprep.subr.bf16.mxu1 %v7274_v33  ;;  %v7352_v32 = vld [vmem:[%s11132_s1 + $0x2a4] ss:$16 sps:$4 sm:$0xff]   ;;  %v7355_v33 = vld [vmem:[%s11132_s1 + $0x2ac] ss:$16 sps:$4 sm:$0xff]  }
  0x23   :  { %4927 = vmatpush1.bf16.msra.mxu0 %v7276_v34  ;;  %5460 = vmatpush1.bf16.msra.mxu1 %v7277_v35  ;;  %v7350_v34 = vld [vmem:[%s11132_s1 + $0x2a0] ss:$16 sps:$4 sm:$0xff]   ;;  %v7353_v35 = vld [vmem:[%s11132_s1 + $0x2a8] ss:$16 sps:$4 sm:$0xff]  }
  0x24   :  { %4928 = vmatprep.subr.bf16.mxu0 %v7278_v37  ;;  %5461 = vmatprep.subr.bf16.mxu1 %v7280_v38  ;;  %v7361_v37 = vld [vmem:[%s11132_s1 + $0x2cc] ss:$16 sps:$4 sm:$0xff]   ;;  %v7356_v38 = vld [vmem:[%s11132_s1 + $0x2c0] ss:$16 sps:$4 sm:$0xff]  }
  0x27   :  { %4929 = vmatpush1.bf16.msra.mxu0 %v7282_v39  ;;  %5462 = vmatpush1.bf16.msra.mxu1 %v7283_v41  ;;  %v7359_v39 = vld [vmem:[%s11132_s1 + $0x2c8] ss:$16 sps:$4 sm:$0xff]   ;;  %v7364_v41 = vld [vmem:[%s11132_s1 + $0x2e4] ss:$16 sps:$4 sm:$0xff]  }
  0x28   :  { %4930 = vmatprep.subr.bf16.mxu0 %v7284_v42  ;;  %5463 = vmatprep.subr.bf16.mxu1 %v7286_v43  ;;  %v7367_v42 = vld [vmem:[%s11132_s1 + $0x2ec] ss:$16 sps:$4 sm:$0xff]   ;;  %v7362_v43 = vld [vmem:[%s11132_s1 + $0x2e0] ss:$16 sps:$4 sm:$0xff]  }
  0x2b   :  { %4931 = vmatpush1.bf16.msra.mxu0 %v7288_v44  ;;  %5464 = vmatpush1.bf16.msra.mxu1 %v7289_v45  ;;  %v7365_v44 = vld [vmem:[%s11132_s1 + $0x2e8] ss:$16 sps:$4 sm:$0xff]   ;;  %v7370_v45 = vld [vmem:[%s11132_s1 + $0x304] ss:$16 sps:$4 sm:$0xff]  }
  0x2c   :  { %4932 = vmatprep.subr.bf16.mxu0 %v7290_v47  ;;  %5465 = vmatprep.subr.bf16.mxu1 %v7292_v48  ;;  %v7373_v47 = vld [vmem:[%s11132_s1 + $0x30c] ss:$16 sps:$4 sm:$0xff]   ;;  %v7368_v48 = vld [vmem:[%s11132_s1 + $0x300] ss:$16 sps:$4 sm:$0xff]  }
  0x2f   :  { %4933 = vmatpush1.bf16.msra.mxu0 %v7294_v50  ;;  %5466 = vmatpush1.bf16.msra.mxu1 %v7295_v52  ;;  %v7371_v50 = vld [vmem:[%s11132_s1 + $0x308] ss:$16 sps:$4 sm:$0xff]   ;;  %v7379_v52 = vld [vmem:[%s11132_s1 + $0x32c] ss:$16 sps:$4 sm:$0xff]  }
  0x30   :  { %4934 = vmatprep.subr.bf16.mxu0 %v7296_v53  ;;  %5467 = vmatprep.subr.bf16.mxu1 %v7298_v54  ;;  %v7374_v53 = vld [vmem:[%s11132_s1 + $0x320] ss:$16 sps:$4 sm:$0xff]   ;;  %v7377_v54 = vld [vmem:[%s11132_s1 + $0x328] ss:$16 sps:$4 sm:$0xff]  }
  0x33   :  { %4935 = vmatpush1.bf16.msra.mxu0 %v7300_v56  ;;  %5468 = vmatpush1.bf16.msra.mxu1 %v7301_v57  ;;  %v7385_v56 = vld [vmem:[%s11132_s1 + $0x34c] ss:$16 sps:$4 sm:$0xff]   ;;  %v7380_v57 = vld [vmem:[%s11132_s1 + $0x340] ss:$16 sps:$4 sm:$0xff]  }
  0x34   :  { %4936 = vmatprep.subr.bf16.mxu0 %v7302_v58  ;;  %5469 = vmatprep.subr.bf16.mxu1 %v7304_v59  ;;  %v7383_v58 = vld [vmem:[%s11132_s1 + $0x348] ss:$16 sps:$4 sm:$0xff]   ;;  %v7388_v59 = vld [vmem:[%s11132_s1 + $0x364] ss:$16 sps:$4 sm:$0xff]  }
  0x37   :  { %4937 = vmatpush1.bf16.msra.mxu0 %v7306_v60  ;;  %5470 = vmatpush1.bf16.msra.mxu1 %v7307_v61  ;;  %v7391_v60 = vld [vmem:[%s11132_s1 + $0x36c] ss:$16 sps:$4 sm:$0xff]   ;;  %v7386_v61 = vld [vmem:[%s11132_s1 + $0x360] ss:$16 sps:$4 sm:$0xff]  }
  0x38   :  { %4938 = vmatprep.subr.bf16.mxu0 %v7308_v62  ;;  %5471 = vmatprep.subr.bf16.mxu1 %v7310_v63  ;;  %v7389_v62 = vld [vmem:[%s11132_s1 + $0x368] ss:$16 sps:$4 sm:$0xff]   ;;  %v7394_v63 = vld [vmem:[%s11132_s1 + $0x384] ss:$16 sps:$4 sm:$0xff]  }
  0x3b   :  { %4939 = vmatpush1.bf16.msra.mxu0 %v7312_v0  ;;  %5472 = vmatpush1.bf16.msra.mxu1 %v7313_v2  ;;  %v7397_v0 = vld [vmem:[%s11132_s1 + $0x38c] ss:$16 sps:$4 sm:$0xff]   ;;  %v7392_v2 = vld [vmem:[%s11132_s1 + $0x380] ss:$16 sps:$4 sm:$0xff]  }
  0x3c   :  { %4940 = vmatprep.subr.bf16.mxu0 %v7314_v3  ;;  %5473 = vmatprep.subr.bf16.mxu1 %v7316_v4  ;;  %v7395_v3 = vld [vmem:[%s11132_s1 + $0x388] ss:$16 sps:$4 sm:$0xff]   ;;  %v7400_v4 = vld [vmem:[%s11132_s1 + $0x3a4] ss:$16 sps:$4 sm:$0xff]  }
  0x3f   :  { %4941 = vmatpush1.bf16.msra.mxu0 %v7318_v6  ;;  %5474 = vmatpush1.bf16.msra.mxu1 %v7319_v8  ;;  %v7403_v6 = vld [vmem:[%s11132_s1 + $0x3ac] ss:$16 sps:$4 sm:$0xff]   ;;  %v7401_v8 = vld [vmem:[%s11132_s1 + $0x3a8] ss:$16 sps:$4 sm:$0xff]  }
  0x40   :  { %4951 = vmatprep.subr.bf16.mxu0 %v7322_v9  ;;  %5484 = vmatprep.subr.bf16.mxu1 %v7325_v10  ;;  %v7406_v9 = vld [vmem:[%s11132_s1 + $0x3c4] ss:$16 sps:$4 sm:$0xff]   ;;  %v7409_v10 = vld [vmem:[%s11132_s1 + $0x3cc] ss:$16 sps:$4 sm:$0xff]  }
  0x42   :  { %4943 = vmatmul.mubr.bf16.vlgmr.msra.gmra.mrb[0].mxu0 %v155_v13  ;;  %5476 = vmatmul.mubr.bf16.vlgmr.msra.gmra.mrb[0].mxu1 %v155_v13  ;;  %v7407_v13 = vld [vmem:[%s11132_s1 + $0x3c8] ss:$16 sps:$4 sm:$0xff]  }
  0x43   :  { %4952 = vmatpush1.bf16.msra.mxu0 %v7320_v12  ;;  %5485 = vmatpush1.bf16.msra.mxu1 %v7323_v14  ;;  %v8851_v12 = vsub.s32 2, %v8576_v40  ;;  %v7412_v14 = vld [vmem:[%s11132_s1 + $0x3e4] ss:$16 sps:$4 sm:$0xff]  }
  0x44   :  { %4953 = vmatprep.subr.bf16.mxu0 %v7328_v15  ;;  %5486 = vmatprep.subr.bf16.mxu1 %v7331_v16  ;;  %v7415_v15 = vld [vmem:[%s11132_s1 + $0x3ec] ss:$16 sps:$4 sm:$0xff]   ;;  %v8863_v16 = vsub.s32 5, %v8576_v40 }
  0x45   :  { %4983 = vmatprep.mubr.bf16.mxu0 %v158_v17  ;;  %5516 = vmatprep.mubr.bf16.mxu1 %v158_v17  ;;  %v7410_v17 = vld [vmem:[%s11132_s1 + $0x3e0] ss:$16 sps:$4 sm:$0xff]  }
  0x47   :  { %4954 = vmatpush1.bf16.msra.mxu0 %v7326_v18  ;;  %5487 = vmatpush1.bf16.msra.mxu1 %v7329_v19  ;;  %v41_v18 = vrot.slane %v8605_v49, %v8851_v12  ;;  %v7413_v19 = vld [vmem:[%s11132_s1 + $0x3e8] ss:$16 sps:$4 sm:$0xff]  }
  0x48   :  { %4955 = vmatprep.subr.bf16.mxu0 %v7334_v20  ;;  %5488 = vmatprep.subr.bf16.mxu1 %v7337_v21  ;;  %v7418_v20 = vld [vmem:[%s11132_s1 + $0x404] ss:$16 sps:$4 sm:$0xff]   ;;  %v7421_v21 = vld [vmem:[%s11132_s1 + $0x40c] ss:$16 sps:$4 sm:$0xff]  }
  0x4b   :  { %4956 = vmatpush1.bf16.msra.mxu0 %v7332_v22  ;;  %5489 = vmatpush1.bf16.msra.mxu1 %v7335_v23  ;;  %v53_v22 = vrot.slane %v8605_v49, %v8863_v16  ;;  %v7416_v23 = vld [vmem:[%s11132_s1 + $0x400] ss:$16 sps:$4 sm:$0xff]   ;;  %v7427_v49 = vld [vmem:[%s11132_s1 + $0x42c] ss:$16 sps:$4 sm:$0xff]  }
  0x4c   :  { %4957 = vmatprep.subr.bf16.mxu0 %v7340_v24  ;;  %5490 = vmatprep.subr.bf16.mxu1 %v7343_v25  ;;  %v157_v24 = vpack.c.bf16 %v41_v18, %v41_v18  ;;  %v7419_v25 = vld [vmem:[%s11132_s1 + $0x408] ss:$16 sps:$4 sm:$0xff]   ;;  %v7499_v18 = vld [vmem:[%s11132_s1 + $0x5ac] ss:$16 sps:$4 sm:$0xff]  }
  0x4f   :  { %4958 = vmatpush1.bf16.msra.mxu0 %v7338_v26  ;;  %5491 = vmatpush1.bf16.msra.mxu1 %v7341_v27  ;;  %v7424_v26 = vld [vmem:[%s11132_s1 + $0x424] ss:$16 sps:$4 sm:$0xff]   ;;  %v160_v27 = vpack.c.bf16 %v53_v22, %v53_v22  ;;  %v7505_v22 = vld [vmem:[%s11132_s1 + $0x5cc] ss:$16 sps:$4 sm:$0xff]  }
  0x50   :  { %4959 = vmatprep.subr.bf16.mxu0 %v7346_v28  ;;  %5492 = vmatprep.subr.bf16.mxu1 %v7349_v29  ;;  %v7422_v28 = vld [vmem:[%s11132_s1 + $0x420] ss:$16 sps:$4 sm:$0xff]   ;;  %v7425_v29 = vld [vmem:[%s11132_s1 + $0x428] ss:$16 sps:$4 sm:$0xff]  }
  0x53   :  { %4960 = vmatpush1.bf16.msra.mxu0 %v7344_v30  ;;  %5493 = vmatpush1.bf16.msra.mxu1 %v7347_v31  ;;  %v7430_v30 = vld [vmem:[%s11132_s1 + $0x444] ss:$16 sps:$4 sm:$0xff]   ;;  %v7433_v31 = vld [vmem:[%s11132_s1 + $0x44c] ss:$16 sps:$4 sm:$0xff]  }
  0x54   :  { %4961 = vmatprep.subr.bf16.mxu0 %v7352_v32  ;;  %5494 = vmatprep.subr.bf16.mxu1 %v7355_v33  ;;  %v7428_v32 = vld [vmem:[%s11132_s1 + $0x440] ss:$16 sps:$4 sm:$0xff]   ;;  %v7431_v33 = vld [vmem:[%s11132_s1 + $0x448] ss:$16 sps:$4 sm:$0xff]  }
  0x57   :  { %4962 = vmatpush1.bf16.msra.mxu0 %v7350_v34  ;;  %5495 = vmatpush1.bf16.msra.mxu1 %v7353_v35  ;;  %v7436_v34 = vld [vmem:[%s11132_s1 + $0x464] ss:$16 sps:$4 sm:$0xff]   ;;  %v7439_v35 = vld [vmem:[%s11132_s1 + $0x46c] ss:$16 sps:$4 sm:$0xff]  }
  0x58   :  { %4963 = vmatprep.subr.bf16.mxu0 %v7358_v36  ;;  %5496 = vmatprep.subr.bf16.mxu1 %v7361_v37  ;;  %v7434_v36 = vld [vmem:[%s11132_s1 + $0x460] ss:$16 sps:$4 sm:$0xff]   ;;  %v7437_v37 = vld [vmem:[%s11132_s1 + $0x468] ss:$16 sps:$4 sm:$0xff]  }
  0x5b   :  { %4964 = vmatpush1.bf16.msra.mxu0 %v7356_v38  ;;  %5497 = vmatpush1.bf16.msra.mxu1 %v7359_v39  ;;  %v7442_v38 = vld [vmem:[%s11132_s1 + $0x484] ss:$16 sps:$4 sm:$0xff]   ;;  %v7445_v39 = vld [vmem:[%s11132_s1 + $0x48c] ss:$16 sps:$4 sm:$0xff]  }
  0x5c   :  { %4965 = vmatprep.subr.bf16.mxu0 %v7364_v41  ;;  %5498 = vmatprep.subr.bf16.mxu1 %v7367_v42  ;;  %v7440_v41 = vld [vmem:[%s11132_s1 + $0x480] ss:$16 sps:$4 sm:$0xff]   ;;  %v7443_v42 = vld [vmem:[%s11132_s1 + $0x488] ss:$16 sps:$4 sm:$0xff]  }
  0x5f   :  { %4966 = vmatpush1.bf16.msra.mxu0 %v7362_v43  ;;  %5499 = vmatpush1.bf16.msra.mxu1 %v7365_v44  ;;  %v7448_v43 = vld [vmem:[%s11132_s1 + $0x4a4] ss:$16 sps:$4 sm:$0xff]   ;;  %v7451_v44 = vld [vmem:[%s11132_s1 + $0x4ac] ss:$16 sps:$4 sm:$0xff]  }
  0x60   :  { %4967 = vmatprep.subr.bf16.mxu0 %v7370_v45  ;;  %5500 = vmatprep.subr.bf16.mxu1 %v7373_v47  ;;  %v7446_v45 = vld [vmem:[%s11132_s1 + $0x4a0] ss:$16 sps:$4 sm:$0xff]   ;;  %v7449_v47 = vld [vmem:[%s11132_s1 + $0x4a8] ss:$16 sps:$4 sm:$0xff]  }
  0x63   :  { %4968 = vmatpush1.bf16.msra.mxu0 %v7368_v48  ;;  %5501 = vmatpush1.bf16.msra.mxu1 %v7371_v50  ;;  %v7454_v48 = vld [vmem:[%s11132_s1 + $0x4c4] ss:$16 sps:$4 sm:$0xff]   ;;  %v7457_v50 = vld [vmem:[%s11132_s1 + $0x4cc] ss:$16 sps:$4 sm:$0xff]  }
  0x64   :  { %4969 = vmatprep.subr.bf16.mxu0 %v7376_v51  ;;  %5502 = vmatprep.subr.bf16.mxu1 %v7379_v52  ;;  %v7452_v51 = vld [vmem:[%s11132_s1 + $0x4c0] ss:$16 sps:$4 sm:$0xff]   ;;  %v7455_v52 = vld [vmem:[%s11132_s1 + $0x4c8] ss:$16 sps:$4 sm:$0xff]  }
  0x67   :  { %4970 = vmatpush1.bf16.msra.mxu0 %v7374_v53  ;;  %5503 = vmatpush1.bf16.msra.mxu1 %v7377_v54  ;;  %v7460_v53 = vld [vmem:[%s11132_s1 + $0x4e4] ss:$16 sps:$4 sm:$0xff]   ;;  %v7463_v54 = vld [vmem:[%s11132_s1 + $0x4ec] ss:$16 sps:$4 sm:$0xff]  }
  0x68   :  { %4971 = vmatprep.subr.bf16.mxu0 %v7382_v55  ;;  %5504 = vmatprep.subr.bf16.mxu1 %v7385_v56  ;;  %v7458_v55 = vld [vmem:[%s11132_s1 + $0x4e0] ss:$16 sps:$4 sm:$0xff]   ;;  %v7461_v56 = vld [vmem:[%s11132_s1 + $0x4e8] ss:$16 sps:$4 sm:$0xff]  }
  0x6b   :  { %4972 = vmatpush1.bf16.msra.mxu0 %v7380_v57  ;;  %5505 = vmatpush1.bf16.msra.mxu1 %v7383_v58  ;;  %v7466_v57 = vld [vmem:[%s11132_s1 + $0x504] ss:$16 sps:$4 sm:$0xff]   ;;  %v7469_v58 = vld [vmem:[%s11132_s1 + $0x50c] ss:$16 sps:$4 sm:$0xff]  }
  0x6c   :  { %4973 = vmatprep.subr.bf16.mxu0 %v7388_v59  ;;  %5506 = vmatprep.subr.bf16.mxu1 %v7391_v60  ;;  %v7464_v59 = vld [vmem:[%s11132_s1 + $0x500] ss:$16 sps:$4 sm:$0xff]   ;;  %v7467_v60 = vld [vmem:[%s11132_s1 + $0x508] ss:$16 sps:$4 sm:$0xff]  }
  0x6f   :  { %4974 = vmatpush1.bf16.msra.mxu0 %v7386_v61  ;;  %5507 = vmatpush1.bf16.msra.mxu1 %v7389_v62  ;;  %v7472_v61 = vld [vmem:[%s11132_s1 + $0x524] ss:$16 sps:$4 sm:$0xff]   ;;  %v7475_v62 = vld [vmem:[%s11132_s1 + $0x52c] ss:$16 sps:$4 sm:$0xff]  }
  0x70   :  { %4975 = vmatprep.subr.bf16.mxu0 %v7394_v63  ;;  %5508 = vmatprep.subr.bf16.mxu1 %v7397_v0  ;;  %v7470_v63 = vld [vmem:[%s11132_s1 + $0x520] ss:$16 sps:$4 sm:$0xff]   ;;  %v7473_v0 = vld [vmem:[%s11132_s1 + $0x528] ss:$16 sps:$4 sm:$0xff]  }
  0x73   :  { %4976 = vmatpush1.bf16.msra.mxu0 %v7392_v2  ;;  %5509 = vmatpush1.bf16.msra.mxu1 %v7395_v3  ;;  %v7478_v2 = vld [vmem:[%s11132_s1 + $0x544] ss:$16 sps:$4 sm:$0xff]   ;;  %v7481_v3 = vld [vmem:[%s11132_s1 + $0x54c] ss:$16 sps:$4 sm:$0xff]  }
  0x74   :  { %4977 = vmatprep.subr.bf16.mxu0 %v7400_v4  ;;  %5510 = vmatprep.subr.bf16.mxu1 %v7403_v6  ;;  %v7476_v4 = vld [vmem:[%s11132_s1 + $0x540] ss:$16 sps:$4 sm:$0xff]   ;;  %v7479_v6 = vld [vmem:[%s11132_s1 + $0x548] ss:$16 sps:$4 sm:$0xff]  }
  0x77   :  { %4978 = vmatpush1.bf16.msra.mxu0 %v7398_v7  ;;  %5511 = vmatpush1.bf16.msra.mxu1 %v7401_v8  ;;  %v7484_v7 = vld [vmem:[%s11132_s1 + $0x564] ss:$16 sps:$4 sm:$0xff]   ;;  %v7487_v8 = vld [vmem:[%s11132_s1 + $0x56c] ss:$16 sps:$4 sm:$0xff]  }
  0x78   :  { %4979 = vmatprep.subr.bf16.mxu0 %v7406_v9  ;;  %5512 = vmatprep.subr.bf16.mxu1 %v7409_v10  ;;  %v7482_v9 = vld [vmem:[%s11132_s1 + $0x560] ss:$16 sps:$4 sm:$0xff]   ;;  %v7485_v10 = vld [vmem:[%s11132_s1 + $0x568] ss:$16 sps:$4 sm:$0xff]  }
  0x7b   :  { %4980 = vmatpush1.bf16.msra.mxu0 %v7404_v11  ;;  %5513 = vmatpush1.bf16.msra.mxu1 %v7407_v13  ;;  %v7490_v11 = vld [vmem:[%s11132_s1 + $0x584] ss:$16 sps:$4 sm:$0xff]   ;;  %v7493_v13 = vld [vmem:[%s11132_s1 + $0x58c] ss:$16 sps:$4 sm:$0xff]  }
  0x7c   :  { %4981 = vmatprep.subr.bf16.mxu0 %v7412_v14  ;;  %5514 = vmatprep.subr.bf16.mxu1 %v7415_v15  ;;  %v7488_v14 = vld [vmem:[%s11132_s1 + $0x580] ss:$16 sps:$4 sm:$0xff]   ;;  %v7491_v15 = vld [vmem:[%s11132_s1 + $0x588] ss:$16 sps:$4 sm:$0xff]  }
  0x7f   :  { %4982 = vmatpush1.bf16.msra.mxu0 %v7410_v17  ;;  %5515 = vmatpush1.bf16.msra.mxu1 %v7413_v19  ;;  %v7496_v17 = vld [vmem:[%s11132_s1 + $0x5a4] ss:$16 sps:$4 sm:$0xff]   ;;  %v7494_v19 = vld [vmem:[%s11132_s1 + $0x5a0] ss:$16 sps:$4 sm:$0xff]  }
  0x80   :  { %4992 = vmatprep.subr.bf16.mxu0 %v7418_v20  ;;  %5525 = vmatprep.subr.bf16.mxu1 %v7421_v21  ;;  %v7497_v20 = vld [vmem:[%s11132_s1 + $0x5a8] ss:$16 sps:$4 sm:$0xff]   ;;  %v7502_v21 = vld [vmem:[%s11132_s1 + $0x5c4] ss:$16 sps:$4 sm:$0xff]  }
  0x82   :  { %4984 = vmatmul.mubr.bf16.vlgmr.msra.gmra.mrb[0].mxu0 %v157_v24  ;;  %5517 = vmatmul.mubr.bf16.vlgmr.msra.gmra.mrb[0].mxu1 %v157_v24  ;;  %v9053_v24 = vsub.s32 4, %v8576_v40 }
  0x83   :  { %4993 = vmatpush1.bf16.msra.mxu0 %v7416_v23  ;;  %5526 = vmatpush1.bf16.msra.mxu1 %v7419_v25  ;;  %v7500_v23 = vld [vmem:[%s11132_s1 + $0x5c0] ss:$16 sps:$4 sm:$0xff]   ;;  %v7503_v25 = vld [vmem:[%s11132_s1 + $0x5c8] ss:$16 sps:$4 sm:$0xff]  }
  0x84   :  { %4994 = vmatprep.subr.bf16.mxu0 %v7424_v26  ;;  %5527 = vmatprep.subr.bf16.mxu1 %v7427_v49  ;;  %v7508_v26 = vld [vmem:[%s11132_s1 + $0x5e4] ss:$16 sps:$4 sm:$0xff]   ;;  %v7511_v49 = vld [vmem:[%s11132_s1 + $0x5ec] ss:$16 sps:$4 sm:$0xff]  }
  0x85   :  { %5024 = vmatprep.mubr.bf16.mxu0 %v160_v27  ;;  %5557 = vmatprep.mubr.bf16.mxu1 %v160_v27  ;;  %v9065_v27 = vsub.s32 7, %v8576_v40 }
  0x87   :  { %4995 = vmatpush1.bf16.msra.mxu0 %v7422_v28  ;;  %5528 = vmatpush1.bf16.msra.mxu1 %v7425_v29  ;;  %v7506_v28 = vld [vmem:[%s11132_s1 + $0x5e0] ss:$16 sps:$4 sm:$0xff]  }
  0x88   :  { %4996 = vmatprep.subr.bf16.mxu0 %v7430_v30  ;;  %5529 = vmatprep.subr.bf16.mxu1 %v7433_v31  ;;  %v9073_v29 = vld [vmem:[%s11131_s0] sm:$0xff]  ;;  %v7509_v31 = vld [vmem:[%s11132_s1 + $0x5e8] ss:$16 sps:$4 sm:$0xff]  }
  0x89   :  { %v49_v30 = vrot.slane %v9073_v29, %v9053_v24 }
  0x8b   :  { %4997 = vmatpush1.bf16.msra.mxu0 %v7428_v32  ;;  %5530 = vmatpush1.bf16.msra.mxu1 %v7431_v33  ;;  %v7514_v32 = vld [vmem:[%s11132_s1 + $0x604] ss:$16 sps:$4 sm:$0xff]   ;;  %v7517_v33 = vld [vmem:[%s11132_s1 + $0x60c] ss:$16 sps:$4 sm:$0xff]  }
  0x8c   :  { %4998 = vmatprep.subr.bf16.mxu0 %v7436_v34  ;;  %5531 = vmatprep.subr.bf16.mxu1 %v7439_v35  ;;  %v61_v34 = vrot.slane %v9073_v29, %v9065_v27  ;;  %v7512_v35 = vld [vmem:[%s11132_s1 + $0x600] ss:$16 sps:$4 sm:$0xff]  }
  0x8f   :  { %4999 = vmatpush1.bf16.msra.mxu0 %v7434_v36  ;;  %5532 = vmatpush1.bf16.msra.mxu1 %v7437_v37  ;;  %v159_v36 = vpack.c.bf16 %v49_v30, %v49_v30  ;;  %v7515_v37 = vld [vmem:[%s11132_s1 + $0x608] ss:$16 sps:$4 sm:$0xff]   ;;  %v7584_v30 = vld [vmem:[%s11132_s1 + $0x780] ss:$16 sps:$4 sm:$0xff]  }
  0x90   :  { %5000 = vmatprep.subr.bf16.mxu0 %v7442_v38  ;;  %5533 = vmatprep.subr.bf16.mxu1 %v7445_v39  ;;  %v7520_v38 = vld [vmem:[%s11132_s1 + $0x624] ss:$16 sps:$4 sm:$0xff]   ;;  %v7523_v39 = vld [vmem:[%s11132_s1 + $0x62c] ss:$16 sps:$4 sm:$0xff]  }
  0x93   :  { %5001 = vmatpush1.bf16.msra.mxu0 %v7440_v41  ;;  %5534 = vmatpush1.bf16.msra.mxu1 %v7443_v42  ;;  %v162_v41 = vpack.c.bf16 %v61_v34, %v61_v34  ;;  %v7518_v42 = vld [vmem:[%s11132_s1 + $0x620] ss:$16 sps:$4 sm:$0xff]  }
  0x94   :  { %5002 = vmatprep.subr.bf16.mxu0 %v7448_v43  ;;  %5535 = vmatprep.subr.bf16.mxu1 %v7451_v44  ;;  %v7521_v43 = vld [vmem:[%s11132_s1 + $0x628] ss:$16 sps:$4 sm:$0xff]   ;;  %v7526_v44 = vld [vmem:[%s11132_s1 + $0x644] ss:$16 sps:$4 sm:$0xff]   ;;  %v7590_v34 = vld [vmem:[%s11132_s1 + $0x7a0] ss:$16 sps:$4 sm:$0xff]  }
  0x97   :  { %5003 = vmatpush1.bf16.msra.mxu0 %v7446_v45  ;;  %5536 = vmatpush1.bf16.msra.mxu1 %v7449_v47  ;;  %v7529_v45 = vld [vmem:[%s11132_s1 + $0x64c] ss:$16 sps:$4 sm:$0xff]   ;;  %v7524_v47 = vld [vmem:[%s11132_s1 + $0x640] ss:$16 sps:$4 sm:$0xff]  }
  0x98   :  { %5004 = vmatprep.subr.bf16.mxu0 %v7454_v48  ;;  %5537 = vmatprep.subr.bf16.mxu1 %v7457_v50  ;;  %v7527_v48 = vld [vmem:[%s11132_s1 + $0x648] ss:$16 sps:$4 sm:$0xff]   ;;  %v7532_v50 = vld [vmem:[%s11132_s1 + $0x664] ss:$16 sps:$4 sm:$0xff]  }
  0x9b   :  { %5005 = vmatpush1.bf16.msra.mxu0 %v7452_v51  ;;  %5538 = vmatpush1.bf16.msra.mxu1 %v7455_v52  ;;  %v7535_v51 = vld [vmem:[%s11132_s1 + $0x66c] ss:$16 sps:$4 sm:$0xff]   ;;  %v7530_v52 = vld [vmem:[%s11132_s1 + $0x660] ss:$16 sps:$4 sm:$0xff]  }
  0x9c   :  { %5006 = vmatprep.subr.bf16.mxu0 %v7460_v53  ;;  %5539 = vmatprep.subr.bf16.mxu1 %v7463_v54  ;;  %v7533_v53 = vld [vmem:[%s11132_s1 + $0x668] ss:$16 sps:$4 sm:$0xff]   ;;  %v7538_v54 = vld [vmem:[%s11132_s1 + $0x684] ss:$16 sps:$4 sm:$0xff]  }
  0x9f   :  { %5007 = vmatpush1.bf16.msra.mxu0 %v7458_v55  ;;  %5540 = vmatpush1.bf16.msra.mxu1 %v7461_v56  ;;  %v7541_v55 = vld [vmem:[%s11132_s1 + $0x68c] ss:$16 sps:$4 sm:$0xff]   ;;  %v7536_v56 = vld [vmem:[%s11132_s1 + $0x680] ss:$16 sps:$4 sm:$0xff]  }
  0xa0   :  { %5008 = vmatprep.subr.bf16.mxu0 %v7466_v57  ;;  %5541 = vmatprep.subr.bf16.mxu1 %v7469_v58  ;;  %v7539_v57 = vld [vmem:[%s11132_s1 + $0x688] ss:$16 sps:$4 sm:$0xff]   ;;  %v7544_v58 = vld [vmem:[%s11132_s1 + $0x6a4] ss:$16 sps:$4 sm:$0xff]  }
  0xa3   :  { %5009 = vmatpush1.bf16.msra.mxu0 %v7464_v59  ;;  %5542 = vmatpush1.bf16.msra.mxu1 %v7467_v60  ;;  %v7547_v59 = vld [vmem:[%s11132_s1 + $0x6ac] ss:$16 sps:$4 sm:$0xff]   ;;  %v7542_v60 = vld [vmem:[%s11132_s1 + $0x6a0] ss:$16 sps:$4 sm:$0xff]  }
  0xa4   :  { %5010 = vmatprep.subr.bf16.mxu0 %v7472_v61  ;;  %5543 = vmatprep.subr.bf16.mxu1 %v7475_v62  ;;  %v7545_v61 = vld [vmem:[%s11132_s1 + $0x6a8] ss:$16 sps:$4 sm:$0xff]   ;;  %v7550_v62 = vld [vmem:[%s11132_s1 + $0x6c4] ss:$16 sps:$4 sm:$0xff]  }
  0xa7   :  { %5011 = vmatpush1.bf16.msra.mxu0 %v7470_v63  ;;  %5544 = vmatpush1.bf16.msra.mxu1 %v7473_v0  ;;  %v7553_v63 = vld [vmem:[%s11132_s1 + $0x6cc] ss:$16 sps:$4 sm:$0xff]   ;;  %v7548_v0 = vld [vmem:[%s11132_s1 + $0x6c0] ss:$16 sps:$4 sm:$0xff]  }
  0xa8   :  { %5012 = vmatprep.subr.bf16.mxu0 %v7478_v2  ;;  %5545 = vmatprep.subr.bf16.mxu1 %v7481_v3  ;;  %v7551_v2 = vld [vmem:[%s11132_s1 + $0x6c8] ss:$16 sps:$4 sm:$0xff]   ;;  %v7556_v3 = vld [vmem:[%s11132_s1 + $0x6e4] ss:$16 sps:$4 sm:$0xff]  }
  0xab   :  { %5013 = vmatpush1.bf16.msra.mxu0 %v7476_v4  ;;  %5546 = vmatpush1.bf16.msra.mxu1 %v7479_v6  ;;  %v7559_v4 = vld [vmem:[%s11132_s1 + $0x6ec] ss:$16 sps:$4 sm:$0xff]   ;;  %v7554_v6 = vld [vmem:[%s11132_s1 + $0x6e0] ss:$16 sps:$4 sm:$0xff]  }
  0xac   :  { %5014 = vmatprep.subr.bf16.mxu0 %v7484_v7  ;;  %5547 = vmatprep.subr.bf16.mxu1 %v7487_v8  ;;  %v7557_v7 = vld [vmem:[%s11132_s1 + $0x6e8] ss:$16 sps:$4 sm:$0xff]   ;;  %v7562_v8 = vld [vmem:[%s11132_s1 + $0x704] ss:$16 sps:$4 sm:$0xff]  }
  0xaf   :  { %5015 = vmatpush1.bf16.msra.mxu0 %v7482_v9  ;;  %5548 = vmatpush1.bf16.msra.mxu1 %v7485_v10  ;;  %v7565_v9 = vld [vmem:[%s11132_s1 + $0x70c] ss:$16 sps:$4 sm:$0xff]   ;;  %v7560_v10 = vld [vmem:[%s11132_s1 + $0x700] ss:$16 sps:$4 sm:$0xff]  }
  0xb0   :  { %5016 = vmatprep.subr.bf16.mxu0 %v7490_v11  ;;  %5549 = vmatprep.subr.bf16.mxu1 %v7493_v13  ;;  %v7563_v11 = vld [vmem:[%s11132_s1 + $0x708] ss:$16 sps:$4 sm:$0xff]   ;;  %v7568_v13 = vld [vmem:[%s11132_s1 + $0x724] ss:$16 sps:$4 sm:$0xff]  }
  0xb3   :  { %5017 = vmatpush1.bf16.msra.mxu0 %v7488_v14  ;;  %5550 = vmatpush1.bf16.msra.mxu1 %v7491_v15  ;;  %v7571_v14 = vld [vmem:[%s11132_s1 + $0x72c] ss:$16 sps:$4 sm:$0xff]   ;;  %v7566_v15 = vld [vmem:[%s11132_s1 + $0x720] ss:$16 sps:$4 sm:$0xff]  }
  0xb4   :  { %5018 = vmatprep.subr.bf16.mxu0 %v7496_v17  ;;  %5551 = vmatprep.subr.bf16.mxu1 %v7499_v18  ;;  %v7569_v17 = vld [vmem:[%s11132_s1 + $0x728] ss:$16 sps:$4 sm:$0xff]   ;;  %v7574_v18 = vld [vmem:[%s11132_s1 + $0x744] ss:$16 sps:$4 sm:$0xff]  }
  0xb7   :  { %5019 = vmatpush1.bf16.msra.mxu0 %v7494_v19  ;;  %5552 = vmatpush1.bf16.msra.mxu1 %v7497_v20  ;;  %v7577_v19 = vld [vmem:[%s11132_s1 + $0x74c] ss:$16 sps:$4 sm:$0xff]   ;;  %v7572_v20 = vld [vmem:[%s11132_s1 + $0x740] ss:$16 sps:$4 sm:$0xff]  }
  0xb8   :  { %5020 = vmatprep.subr.bf16.mxu0 %v7502_v21  ;;  %5553 = vmatprep.subr.bf16.mxu1 %v7505_v22  ;;  %v7575_v21 = vld [vmem:[%s11132_s1 + $0x748] ss:$16 sps:$4 sm:$0xff]   ;;  %v7580_v22 = vld [vmem:[%s11132_s1 + $0x764] ss:$16 sps:$4 sm:$0xff]  }
  0xbb   :  { %5021 = vmatpush1.bf16.msra.mxu0 %v7500_v23  ;;  %5554 = vmatpush1.bf16.msra.mxu1 %v7503_v25  ;;  %v7583_v23 = vld [vmem:[%s11132_s1 + $0x76c] ss:$16 sps:$4 sm:$0xff]   ;;  %v7578_v25 = vld [vmem:[%s11132_s1 + $0x760] ss:$16 sps:$4 sm:$0xff]  }
  0xbc   :  { %5022 = vmatprep.subr.bf16.mxu0 %v7508_v26  ;;  %5555 = vmatprep.subr.bf16.mxu1 %v7511_v49  ;;  %v7581_v26 = vld [vmem:[%s11132_s1 + $0x768] ss:$16 sps:$4 sm:$0xff]   ;;  %v7586_v49 = vld [vmem:[%s11132_s1 + $0x784] ss:$16 sps:$4 sm:$0xff]  }
  0xbf   :  { %5023 = vmatpush1.bf16.msra.mxu0 %v7506_v28  ;;  %5556 = vmatpush1.bf16.msra.mxu1 %v7509_v31  ;;  %v7589_v28 = vld [vmem:[%s11132_s1 + $0x78c] ss:$16 sps:$4 sm:$0xff]   ;;  %v7587_v31 = vld [vmem:[%s11132_s1 + $0x788] ss:$16 sps:$4 sm:$0xff]  }
  0xc0   :  { %5033 = vmatprep.subr.bf16.mxu0 %v7514_v32  ;;  %5566 = vmatprep.subr.bf16.mxu1 %v7517_v33  ;;  %v7592_v32 = vld [vmem:[%s11132_s1 + $0x7a4] ss:$16 sps:$4 sm:$0xff]   ;;  %v7595_v33 = vld [vmem:[%s11132_s1 + $0x7ac] ss:$16 sps:$4 sm:$0xff]  }
  0xc2   :  { %5025 = vmatmul.mubr.bf16.vlgmr.msra.gmra.mrb[0].mxu0 %v159_v36  ;;  %5558 = vmatmul.mubr.bf16.vlgmr.msra.gmra.mrb[0].mxu1 %v159_v36  ;;  %v7598_v36 = vld [vmem:[%s11132_s1 + $0x7c4] ss:$16 sps:$4 sm:$0xff]  }
  0xc3   :  { %5034 = vmatpush1.bf16.msra.mxu0 %v7512_v35  ;;  %5567 = vmatpush1.bf16.msra.mxu1 %v7515_v37  ;;  %v7593_v35 = vld [vmem:[%s11132_s1 + $0x7a8] ss:$16 sps:$4 sm:$0xff]   ;;  %v7601_v37 = vld [vmem:[%s11132_s1 + $0x7cc] ss:$16 sps:$4 sm:$0xff]  }
  0xc4   :  { %5035 = vmatprep.subr.bf16.mxu0 %v7520_v38  ;;  %5568 = vmatprep.subr.bf16.mxu1 %v7523_v39  ;;  %v9257_v38 = vsub.s32 6, %v8576_v40  ;;  %v7596_v39 = vld [vmem:[%s11132_s1 + $0x7c0] ss:$16 sps:$4 sm:$0xff]   ;;  %v7607_v40 = vld [vmem:[%s11132_s1 + $0x7ec] ss:$16 sps:$4 sm:$0xff]  }
  0xc5   :  { %5065 = vmatprep.mubr.bf16.mxu0 %v162_v41  ;;  %5598 = vmatprep.mubr.bf16.mxu1 %v162_v41  ;;  %v7599_v41 = vld [vmem:[%s11132_s1 + $0x7c8] ss:$16 sps:$4 sm:$0xff]  }
  0xc7   :  { %5036 = vmatpush1.bf16.msra.mxu0 %v7518_v42  ;;  %5569 = vmatpush1.bf16.msra.mxu1 %v7521_v43  ;;  %v7604_v42 = vld [vmem:[%s11132_s1 + $0x7e4] ss:$16 sps:$4 sm:$0xff]   ;;  %v57_v43 = vrot.slane %v9073_v29, %v9257_v38 }
  0xc8   :  { %5037 = vmatprep.subr.bf16.mxu0 %v7526_v44  ;;  %5570 = vmatprep.subr.bf16.mxu1 %v7529_v45  ;;  %v9276_v44 = vld [vmem:[%s11131_s0 + $0x8] sm:$0xff]  ;;  %v7602_v45 = vld [vmem:[%s11132_s1 + $0x7e0] ss:$16 sps:$4 sm:$0xff]   ;;  %v7610_v29 = vld [vmem:[%s11132_s1 + $0x804] ss:$16 sps:$4 sm:$0xff]  }
  0xcb   :  { %5038 = vmatpush1.bf16.msra.mxu0 %v7524_v47  ;;  %5571 = vmatpush1.bf16.msra.mxu1 %v7527_v48  ;;  %v7605_v47 = vld [vmem:[%s11132_s1 + $0x7e8] ss:$16 sps:$4 sm:$0xff]   ;;  %v7613_v48 = vld [vmem:[%s11132_s1 + $0x80c] ss:$16 sps:$4 sm:$0xff]  }
  0xcc   :  { %5039 = vmatprep.subr.bf16.mxu0 %v7532_v50  ;;  %5572 = vmatprep.subr.bf16.mxu1 %v7535_v51  ;;  %v69_v50 = vrot.slane %v9276_v44, %v8594_v46  ;;  %v161_v51 = vpack.c.bf16 %v57_v43, %v57_v43  ;;  %v7685_v43 = vld [vmem:[%s11132_s1 + $0x98c] ss:$16 sps:$4 sm:$0xff]  }
  0xcf   :  { %5040 = vmatpush1.bf16.msra.mxu0 %v7530_v52  ;;  %5573 = vmatpush1.bf16.msra.mxu1 %v7533_v53  ;;  %v7608_v52 = vld [vmem:[%s11132_s1 + $0x800] ss:$16 sps:$4 sm:$0xff]   ;;  %v7611_v53 = vld [vmem:[%s11132_s1 + $0x808] ss:$16 sps:$4 sm:$0xff]  }
  0xd0   :  { %5041 = vmatprep.subr.bf16.mxu0 %v7538_v54  ;;  %5574 = vmatprep.subr.bf16.mxu1 %v7541_v55  ;;  %v7616_v54 = vld [vmem:[%s11132_s1 + $0x824] ss:$16 sps:$4 sm:$0xff]   ;;  %v7619_v55 = vld [vmem:[%s11132_s1 + $0x82c] ss:$16 sps:$4 sm:$0xff]  }
  0xd3   :  { %5042 = vmatpush1.bf16.msra.mxu0 %v7536_v56  ;;  %5575 = vmatpush1.bf16.msra.mxu1 %v7539_v57  ;;  %v164_v56 = vpack.c.bf16 %v69_v50, %v69_v50  ;;  %v7614_v57 = vld [vmem:[%s11132_s1 + $0x820] ss:$16 sps:$4 sm:$0xff]  }
  0xd4   :  { %5043 = vmatprep.subr.bf16.mxu0 %v7544_v58  ;;  %5576 = vmatprep.subr.bf16.mxu1 %v7547_v59  ;;  %v7617_v58 = vld [vmem:[%s11132_s1 + $0x828] ss:$16 sps:$4 sm:$0xff]   ;;  %v7622_v59 = vld [vmem:[%s11132_s1 + $0x844] ss:$16 sps:$4 sm:$0xff]   ;;  %v7686_v50 = vld [vmem:[%s11132_s1 + $0x9a0] ss:$16 sps:$4 sm:$0xff]  }
  0xd7   :  { %5044 = vmatpush1.bf16.msra.mxu0 %v7542_v60  ;;  %5577 = vmatpush1.bf16.msra.mxu1 %v7545_v61  ;;  %v7625_v60 = vld [vmem:[%s11132_s1 + $0x84c] ss:$16 sps:$4 sm:$0xff]   ;;  %v7620_v61 = vld [vmem:[%s11132_s1 + $0x840] ss:$16 sps:$4 sm:$0xff]  }
  0xd8   :  { %5045 = vmatprep.subr.bf16.mxu0 %v7550_v62  ;;  %5578 = vmatprep.subr.bf16.mxu1 %v7553_v63  ;;  %v7623_v62 = vld [vmem:[%s11132_s1 + $0x848] ss:$16 sps:$4 sm:$0xff]   ;;  %v7628_v63 = vld [vmem:[%s11132_s1 + $0x864] ss:$16 sps:$4 sm:$0xff]  }
  0xdb   :  { %5046 = vmatpush1.bf16.msra.mxu0 %v7548_v0  ;;  %5579 = vmatpush1.bf16.msra.mxu1 %v7551_v2  ;;  %v7631_v0 = vld [vmem:[%s11132_s1 + $0x86c] ss:$16 sps:$4 sm:$0xff]   ;;  %v7626_v2 = vld [vmem:[%s11132_s1 + $0x860] ss:$16 sps:$4 sm:$0xff]  }
  0xdc   :  { %5047 = vmatprep.subr.bf16.mxu0 %v7556_v3  ;;  %5580 = vmatprep.subr.bf16.mxu1 %v7559_v4  ;;  %v7629_v3 = vld [vmem:[%s11132_s1 + $0x868] ss:$16 sps:$4 sm:$0xff]   ;;  %v7634_v4 = vld [vmem:[%s11132_s1 + $0x884] ss:$16 sps:$4 sm:$0xff]  }
  0xdf   :  { %5048 = vmatpush1.bf16.msra.mxu0 %v7554_v6  ;;  %5581 = vmatpush1.bf16.msra.mxu1 %v7557_v7  ;;  %v7637_v6 = vld [vmem:[%s11132_s1 + $0x88c] ss:$16 sps:$4 sm:$0xff]   ;;  %v7632_v7 = vld [vmem:[%s11132_s1 + $0x880] ss:$16 sps:$4 sm:$0xff]  }
  0xe0   :  { %5049 = vmatprep.subr.bf16.mxu0 %v7562_v8  ;;  %5582 = vmatprep.subr.bf16.mxu1 %v7565_v9  ;;  %v7635_v8 = vld [vmem:[%s11132_s1 + $0x888] ss:$16 sps:$4 sm:$0xff]   ;;  %v7640_v9 = vld [vmem:[%s11132_s1 + $0x8a4] ss:$16 sps:$4 sm:$0xff]  }
  0xe3   :  { %5050 = vmatpush1.bf16.msra.mxu0 %v7560_v10  ;;  %5583 = vmatpush1.bf16.msra.mxu1 %v7563_v11  ;;  %v7643_v10 = vld [vmem:[%s11132_s1 + $0x8ac] ss:$16 sps:$4 sm:$0xff]   ;;  %v7638_v11 = vld [vmem:[%s11132_s1 + $0x8a0] ss:$16 sps:$4 sm:$0xff]  }
  0xe4   :  { %5051 = vmatprep.subr.bf16.mxu0 %v7568_v13  ;;  %5584 = vmatprep.subr.bf16.mxu1 %v7571_v14  ;;  %v7641_v13 = vld [vmem:[%s11132_s1 + $0x8a8] ss:$16 sps:$4 sm:$0xff]   ;;  %v7646_v14 = vld [vmem:[%s11132_s1 + $0x8c4] ss:$16 sps:$4 sm:$0xff]  }
  0xe7   :  { %5052 = vmatpush1.bf16.msra.mxu0 %v7566_v15  ;;  %5585 = vmatpush1.bf16.msra.mxu1 %v7569_v17  ;;  %v7649_v15 = vld [vmem:[%s11132_s1 + $0x8cc] ss:$16 sps:$4 sm:$0xff]   ;;  %v7644_v17 = vld [vmem:[%s11132_s1 + $0x8c0] ss:$16 sps:$4 sm:$0xff]  }
  0xe8   :  { %5053 = vmatprep.subr.bf16.mxu0 %v7574_v18  ;;  %5586 = vmatprep.subr.bf16.mxu1 %v7577_v19  ;;  %v7647_v18 = vld [vmem:[%s11132_s1 + $0x8c8] ss:$16 sps:$4 sm:$0xff]   ;;  %v7652_v19 = vld [vmem:[%s11132_s1 + $0x8e4] ss:$16 sps:$4 sm:$0xff]  }
  0xeb   :  { %5054 = vmatpush1.bf16.msra.mxu0 %v7572_v20  ;;  %5587 = vmatpush1.bf16.msra.mxu1 %v7575_v21  ;;  %v7655_v20 = vld [vmem:[%s11132_s1 + $0x8ec] ss:$16 sps:$4 sm:$0xff]   ;;  %v7650_v21 = vld [vmem:[%s11132_s1 + $0x8e0] ss:$16 sps:$4 sm:$0xff]  }
  0xec   :  { %5055 = vmatprep.subr.bf16.mxu0 %v7580_v22  ;;  %5588 = vmatprep.subr.bf16.mxu1 %v7583_v23  ;;  %v7653_v22 = vld [vmem:[%s11132_s1 + $0x8e8] ss:$16 sps:$4 sm:$0xff]   ;;  %v7658_v23 = vld [vmem:[%s11132_s1 + $0x904] ss:$16 sps:$4 sm:$0xff]  }
  0xef   :  { %5056 = vmatpush1.bf16.msra.mxu0 %v7578_v25  ;;  %5589 = vmatpush1.bf16.msra.mxu1 %v7581_v26  ;;  %v7661_v25 = vld [vmem:[%s11132_s1 + $0x90c] ss:$16 sps:$4 sm:$0xff]   ;;  %v7656_v26 = vld [vmem:[%s11132_s1 + $0x900] ss:$16 sps:$4 sm:$0xff]  }
  0xf0   :  { %5057 = vmatprep.subr.bf16.mxu0 %v7586_v49  ;;  %5590 = vmatprep.subr.bf16.mxu1 %v7589_v28  ;;  %v7659_v49 = vld [vmem:[%s11132_s1 + $0x908] ss:$16 sps:$4 sm:$0xff]   ;;  %v7664_v28 = vld [vmem:[%s11132_s1 + $0x924] ss:$16 sps:$4 sm:$0xff]  }
  0xf3   :  { %5058 = vmatpush1.bf16.msra.mxu0 %v7584_v30  ;;  %5591 = vmatpush1.bf16.msra.mxu1 %v7587_v31  ;;  %v7667_v30 = vld [vmem:[%s11132_s1 + $0x92c] ss:$16 sps:$4 sm:$0xff]   ;;  %v7662_v31 = vld [vmem:[%s11132_s1 + $0x920] ss:$16 sps:$4 sm:$0xff]  }
  0xf4   :  { %5059 = vmatprep.subr.bf16.mxu0 %v7592_v32  ;;  %5592 = vmatprep.subr.bf16.mxu1 %v7595_v33  ;;  %v7665_v32 = vld [vmem:[%s11132_s1 + $0x928] ss:$16 sps:$4 sm:$0xff]   ;;  %v7670_v33 = vld [vmem:[%s11132_s1 + $0x944] ss:$16 sps:$4 sm:$0xff]  }
  0xf7   :  { %5060 = vmatpush1.bf16.msra.mxu0 %v7590_v34  ;;  %5593 = vmatpush1.bf16.msra.mxu1 %v7593_v35  ;;  %v7673_v34 = vld [vmem:[%s11132_s1 + $0x94c] ss:$16 sps:$4 sm:$0xff]   ;;  %v7668_v35 = vld [vmem:[%s11132_s1 + $0x940] ss:$16 sps:$4 sm:$0xff]  }
  0xf8   :  { %5061 = vmatprep.subr.bf16.mxu0 %v7598_v36  ;;  %5594 = vmatprep.subr.bf16.mxu1 %v7601_v37  ;;  %v7671_v36 = vld [vmem:[%s11132_s1 + $0x948] ss:$16 sps:$4 sm:$0xff]   ;;  %v7676_v37 = vld [vmem:[%s11132_s1 + $0x964] ss:$16 sps:$4 sm:$0xff]  }
  0xfb   :  { %5062 = vmatpush1.bf16.msra.mxu0 %v7596_v39  ;;  %5595 = vmatpush1.bf16.msra.mxu1 %v7599_v41  ;;  %v7679_v39 = vld [vmem:[%s11132_s1 + $0x96c] ss:$16 sps:$4 sm:$0xff]   ;;  %v7674_v41 = vld [vmem:[%s11132_s1 + $0x960] ss:$16 sps:$4 sm:$0xff]  }
  0xfc   :  { %5063 = vmatprep.subr.bf16.mxu0 %v7604_v42  ;;  %5596 = vmatprep.subr.bf16.mxu1 %v7607_v40  ;;  %v7677_v42 = vld [vmem:[%s11132_s1 + $0x968] ss:$16 sps:$4 sm:$0xff]   ;;  %v7682_v40 = vld [vmem:[%s11132_s1 + $0x984] ss:$16 sps:$4 sm:$0xff]  }
  0xff   :  { %5064 = vmatpush1.bf16.msra.mxu0 %v7602_v45  ;;  %5597 = vmatpush1.bf16.msra.mxu1 %v7605_v47  ;;  %v7680_v45 = vld [vmem:[%s11132_s1 + $0x980] ss:$16 sps:$4 sm:$0xff]   ;;  %v7683_v47 = vld [vmem:[%s11132_s1 + $0x988] ss:$16 sps:$4 sm:$0xff]  }
 0x100   :  { %5074 = vmatprep.subr.bf16.mxu0 %v7610_v29  ;;  %5607 = vmatprep.subr.bf16.mxu1 %v7613_v48  ;;  %v7688_v29 = vld [vmem:[%s11132_s1 + $0x9a4] ss:$16 sps:$4 sm:$0xff]   ;;  %v7691_v48 = vld [vmem:[%s11132_s1 + $0x9ac] ss:$16 sps:$4 sm:$0xff]  }
 0x102   :  { %5066 = vmatmul.mubr.bf16.vlgmr.msra.gmra.mrb[0].mxu0 %v161_v51  ;;  %5599 = vmatmul.mubr.bf16.vlgmr.msra.gmra.mrb[0].mxu1 %v161_v51  ;;  %v7689_v51 = vld [vmem:[%s11132_s1 + $0x9a8] ss:$16 sps:$4 sm:$0xff]  }
 0x103   :  { %5075 = vmatpush1.bf16.msra.mxu0 %v7608_v52  ;;  %5608 = vmatpush1.bf16.msra.mxu1 %v7611_v53  ;;  %v7694_v52 = vld [vmem:[%s11132_s1 + $0x9c4] ss:$16 sps:$4 sm:$0xff]   ;;  %v7697_v53 = vld [vmem:[%s11132_s1 + $0x9cc] ss:$16 sps:$4 sm:$0xff]  }
 0x104   :  { %5076 = vmatprep.subr.bf16.mxu0 %v7616_v54  ;;  %5609 = vmatprep.subr.bf16.mxu1 %v7619_v55  ;;  %v7692_v54 = vld [vmem:[%s11132_s1 + $0x9c0] ss:$16 sps:$4 sm:$0xff]   ;;  %v7695_v55 = vld [vmem:[%s11132_s1 + $0x9c8] ss:$16 sps:$4 sm:$0xff]  }
 0x105   :  { %5106 = vmatprep.mubr.bf16.mxu0 %v164_v56  ;;  %5639 = vmatprep.mubr.bf16.mxu1 %v164_v56  ;;  %v7700_v56 = vld [vmem:[%s11132_s1 + $0x9e4] ss:$16 sps:$4 sm:$0xff]  }
 0x107   :  { %5077 = vmatpush1.bf16.msra.mxu0 %v7614_v57  ;;  %5610 = vmatpush1.bf16.msra.mxu1 %v7617_v58  ;;  %v7703_v57 = vld [vmem:[%s11132_s1 + $0x9ec] ss:$16 sps:$4 sm:$0xff]   ;;  %v65_v58 = vrot.slane %v9276_v44, %v8649_v1 }
 0x108   :  { %5078 = vmatprep.subr.bf16.mxu0 %v7622_v59  ;;  %5611 = vmatprep.subr.bf16.mxu1 %v7625_v60  ;;  %v7698_v59 = vld [vmem:[%s11132_s1 + $0x9e0] ss:$16 sps:$4 sm:$0xff]   ;;  %v7701_v60 = vld [vmem:[%s11132_s1 + $0x9e8] ss:$16 sps:$4 sm:$0xff]  }
 0x10b   :  { %5079 = vmatpush1.bf16.msra.mxu0 %v7620_v61  ;;  %5612 = vmatpush1.bf16.msra.mxu1 %v7623_v62  ;;  %v7706_v61 = vld [vmem:[%s11132_s1 + $0xa04] ss:$16 sps:$4 sm:$0xff]   ;;  %v7709_v62 = vld [vmem:[%s11132_s1 + $0xa0c] ss:$16 sps:$4 sm:$0xff]  }
 0x10c   :  { %5080 = vmatprep.subr.bf16.mxu0 %v7628_v63  ;;  %5613 = vmatprep.subr.bf16.mxu1 %v7631_v0  ;;  %v77_v63 = vrot.slane %v9276_v44, %v8661_v5  ;;  %v163_v0 = vpack.c.bf16 %v65_v58, %v65_v58  ;;  %v7715_v44 = vld [vmem:[%s11132_s1 + $0xa2c] ss:$16 sps:$4 sm:$0xff]   ;;  %v7776_v58 = vld [vmem:[%s11132_s1 + $0xb80] ss:$16 sps:$4 sm:$0xff]  }
 0x10f   :  { %5081 = vmatpush1.bf16.msra.mxu0 %v7626_v2  ;;  %5614 = vmatpush1.bf16.msra.mxu1 %v7629_v3  ;;  %v7704_v2 = vld [vmem:[%s11132_s1 + $0xa00] ss:$16 sps:$4 sm:$0xff]   ;;  %v7707_v3 = vld [vmem:[%s11132_s1 + $0xa08] ss:$16 sps:$4 sm:$0xff]  }
 0x110   :  { %5082 = vmatprep.subr.bf16.mxu0 %v7634_v4  ;;  %5615 = vmatprep.subr.bf16.mxu1 %v7637_v6  ;;  %v7712_v4 = vld [vmem:[%s11132_s1 + $0xa24] ss:$16 sps:$4 sm:$0xff]   ;;  %v166_v6 = vpack.c.bf16 %v77_v63, %v77_v63  ;;  %v7785_v63 = vld [vmem:[%s11132_s1 + $0xba8] ss:$16 sps:$4 sm:$0xff]  }
 0x113   :  { %5083 = vmatpush1.bf16.msra.mxu0 %v7632_v7  ;;  %5616 = vmatpush1.bf16.msra.mxu1 %v7635_v8  ;;  %v7710_v7 = vld [vmem:[%s11132_s1 + $0xa20] ss:$16 sps:$4 sm:$0xff]   ;;  %v7713_v8 = vld [vmem:[%s11132_s1 + $0xa28] ss:$16 sps:$4 sm:$0xff]  }
 0x114   :  { %5084 = vmatprep.subr.bf16.mxu0 %v7640_v9  ;;  %5617 = vmatprep.subr.bf16.mxu1 %v7643_v10  ;;  %v7718_v9 = vld [vmem:[%s11132_s1 + $0xa44] ss:$16 sps:$4 sm:$0xff]   ;;  %v7721_v10 = vld [vmem:[%s11132_s1 + $0xa4c] ss:$16 sps:$4 sm:$0xff]  }
 0x117   :  { %5085 = vmatpush1.bf16.msra.mxu0 %v7638_v11  ;;  %5618 = vmatpush1.bf16.msra.mxu1 %v7641_v13  ;;  %v7716_v11 = vld [vmem:[%s11132_s1 + $0xa40] ss:$16 sps:$4 sm:$0xff]   ;;  %v7719_v13 = vld [vmem:[%s11132_s1 + $0xa48] ss:$16 sps:$4 sm:$0xff]  }
 0x118   :  { %5086 = vmatprep.subr.bf16.mxu0 %v7646_v14  ;;  %5619 = vmatprep.subr.bf16.mxu1 %v7649_v15  ;;  %v7724_v14 = vld [vmem:[%s11132_s1 + $0xa64] ss:$16 sps:$4 sm:$0xff]   ;;  %v7727_v15 = vld [vmem:[%s11132_s1 + $0xa6c] ss:$16 sps:$4 sm:$0xff]  }
 0x11b   :  { %5087 = vmatpush1.bf16.msra.mxu0 %v7644_v17  ;;  %5620 = vmatpush1.bf16.msra.mxu1 %v7647_v18  ;;  %v7722_v17 = vld [vmem:[%s11132_s1 + $0xa60] ss:$16 sps:$4 sm:$0xff]   ;;  %v7725_v18 = vld [vmem:[%s11132_s1 + $0xa68] ss:$16 sps:$4 sm:$0xff]  }
 0x11c   :  { %5088 = vmatprep.subr.bf16.mxu0 %v7652_v19  ;;  %5621 = vmatprep.subr.bf16.mxu1 %v7655_v20  ;;  %v7730_v19 = vld [vmem:[%s11132_s1 + $0xa84] ss:$16 sps:$4 sm:$0xff]   ;;  %v7733_v20 = vld [vmem:[%s11132_s1 + $0xa8c] ss:$16 sps:$4 sm:$0xff]  }
 0x11f   :  { %5089 = vmatpush1.bf16.msra.mxu0 %v7650_v21  ;;  %5622 = vmatpush1.bf16.msra.mxu1 %v7653_v22  ;;  %v7728_v21 = vld [vmem:[%s11132_s1 + $0xa80] ss:$16 sps:$4 sm:$0xff]   ;;  %v7731_v22 = vld [vmem:[%s11132_s1 + $0xa88] ss:$16 sps:$4 sm:$0xff]  }
 0x120   :  { %5090 = vmatprep.subr.bf16.mxu0 %v7658_v23  ;;  %5623 = vmatprep.subr.bf16.mxu1 %v7661_v25  ;;  %v7736_v23 = vld [vmem:[%s11132_s1 + $0xaa4] ss:$16 sps:$4 sm:$0xff]   ;;  %v7739_v25 = vld [vmem:[%s11132_s1 + $0xaac] ss:$16 sps:$4 sm:$0xff]  }
 0x123   :  { %5091 = vmatpush1.bf16.msra.mxu0 %v7656_v26  ;;  %5624 = vmatpush1.bf16.msra.mxu1 %v7659_v49  ;;  %v7734_v26 = vld [vmem:[%s11132_s1 + $0xaa0] ss:$16 sps:$4 sm:$0xff]   ;;  %v7737_v49 = vld [vmem:[%s11132_s1 + $0xaa8] ss:$16 sps:$4 sm:$0xff]  }
 0x124   :  { %5092 = vmatprep.subr.bf16.mxu0 %v7664_v28  ;;  %5625 = vmatprep.subr.bf16.mxu1 %v7667_v30  ;;  %v7742_v28 = vld [vmem:[%s11132_s1 + $0xac4] ss:$16 sps:$4 sm:$0xff]   ;;  %v7745_v30 = vld [vmem:[%s11132_s1 + $0xacc] ss:$16 sps:$4 sm:$0xff]  }
 0x127   :  { %5093 = vmatpush1.bf16.msra.mxu0 %v7662_v31  ;;  %5626 = vmatpush1.bf16.msra.mxu1 %v7665_v32  ;;  %v7740_v31 = vld [vmem:[%s11132_s1 + $0xac0] ss:$16 sps:$4 sm:$0xff]   ;;  %v7743_v32 = vld [vmem:[%s11132_s1 + $0xac8] ss:$16 sps:$4 sm:$0xff]  }
 0x128   :  { %5094 = vmatprep.subr.bf16.mxu0 %v7670_v33  ;;  %5627 = vmatprep.subr.bf16.mxu1 %v7673_v34  ;;  %v7748_v33 = vld [vmem:[%s11132_s1 + $0xae4] ss:$16 sps:$4 sm:$0xff]   ;;  %v7751_v34 = vld [vmem:[%s11132_s1 + $0xaec] ss:$16 sps:$4 sm:$0xff]  }
 0x12b   :  { %5095 = vmatpush1.bf16.msra.mxu0 %v7668_v35  ;;  %5628 = vmatpush1.bf16.msra.mxu1 %v7671_v36  ;;  %v7746_v35 = vld [vmem:[%s11132_s1 + $0xae0] ss:$16 sps:$4 sm:$0xff]   ;;  %v7749_v36 = vld [vmem:[%s11132_s1 + $0xae8] ss:$16 sps:$4 sm:$0xff]  }
 0x12c   :  { %5096 = vmatprep.subr.bf16.mxu0 %v7676_v37  ;;  %5629 = vmatprep.subr.bf16.mxu1 %v7679_v39  ;;  %v7754_v37 = vld [vmem:[%s11132_s1 + $0xb04] ss:$16 sps:$4 sm:$0xff]   ;;  %v7757_v39 = vld [vmem:[%s11132_s1 + $0xb0c] ss:$16 sps:$4 sm:$0xff]  }
 0x12f   :  { %5097 = vmatpush1.bf16.msra.mxu0 %v7674_v41  ;;  %5630 = vmatpush1.bf16.msra.mxu1 %v7677_v42  ;;  %v7752_v41 = vld [vmem:[%s11132_s1 + $0xb00] ss:$16 sps:$4 sm:$0xff]   ;;  %v7755_v42 = vld [vmem:[%s11132_s1 + $0xb08] ss:$16 sps:$4 sm:$0xff]  }
 0x130   :  { %5098 = vmatprep.subr.bf16.mxu0 %v7682_v40  ;;  %5631 = vmatprep.subr.bf16.mxu1 %v7685_v43  ;;  %v7760_v40 = vld [vmem:[%s11132_s1 + $0xb24] ss:$16 sps:$4 sm:$0xff]   ;;  %v7763_v43 = vld [vmem:[%s11132_s1 + $0xb2c] ss:$16 sps:$4 sm:$0xff]  }
 0x133   :  { %5099 = vmatpush1.bf16.msra.mxu0 %v7680_v45  ;;  %5632 = vmatpush1.bf16.msra.mxu1 %v7683_v47  ;;  %v7758_v45 = vld [vmem:[%s11132_s1 + $0xb20] ss:$16 sps:$4 sm:$0xff]   ;;  %v7761_v47 = vld [vmem:[%s11132_s1 + $0xb28] ss:$16 sps:$4 sm:$0xff]  }
 0x134   :  { %5100 = vmatprep.subr.bf16.mxu0 %v7688_v29  ;;  %5633 = vmatprep.subr.bf16.mxu1 %v7691_v48  ;;  %v7766_v29 = vld [vmem:[%s11132_s1 + $0xb44] ss:$16 sps:$4 sm:$0xff]   ;;  %v7769_v48 = vld [vmem:[%s11132_s1 + $0xb4c] ss:$16 sps:$4 sm:$0xff]  }
 0x137   :  { %5101 = vmatpush1.bf16.msra.mxu0 %v7686_v50  ;;  %5634 = vmatpush1.bf16.msra.mxu1 %v7689_v51  ;;  %v7764_v50 = vld [vmem:[%s11132_s1 + $0xb40] ss:$16 sps:$4 sm:$0xff]   ;;  %v7767_v51 = vld [vmem:[%s11132_s1 + $0xb48] ss:$16 sps:$4 sm:$0xff]  }
 0x138   :  { %5102 = vmatprep.subr.bf16.mxu0 %v7694_v52  ;;  %5635 = vmatprep.subr.bf16.mxu1 %v7697_v53  ;;  %v7772_v52 = vld [vmem:[%s11132_s1 + $0xb64] ss:$16 sps:$4 sm:$0xff]   ;;  %v7775_v53 = vld [vmem:[%s11132_s1 + $0xb6c] ss:$16 sps:$4 sm:$0xff]  }
 0x13b   :  { %5103 = vmatpush1.bf16.msra.mxu0 %v7692_v54  ;;  %5636 = vmatpush1.bf16.msra.mxu1 %v7695_v55  ;;  %v7770_v54 = vld [vmem:[%s11132_s1 + $0xb60] ss:$16 sps:$4 sm:$0xff]   ;;  %v7773_v55 = vld [vmem:[%s11132_s1 + $0xb68] ss:$16 sps:$4 sm:$0xff]  }
 0x13c   :  { %5104 = vmatprep.subr.bf16.mxu0 %v7700_v56  ;;  %5637 = vmatprep.subr.bf16.mxu1 %v7703_v57  ;;  %v7778_v56 = vld [vmem:[%s11132_s1 + $0xb84] ss:$16 sps:$4 sm:$0xff]   ;;  %v7781_v57 = vld [vmem:[%s11132_s1 + $0xb8c] ss:$16 sps:$4 sm:$0xff]  }
 0x13f   :  { %5105 = vmatpush1.bf16.msra.mxu0 %v7698_v59  ;;  %5638 = vmatpush1.bf16.msra.mxu1 %v7701_v60  ;;  %v7779_v59 = vld [vmem:[%s11132_s1 + $0xb88] ss:$16 sps:$4 sm:$0xff]   ;;  %v7784_v60 = vld [vmem:[%s11132_s1 + $0xba4] ss:$16 sps:$4 sm:$0xff]  }
 0x140   :  { %5115 = vmatprep.subr.bf16.mxu0 %v7706_v61  ;;  %5648 = vmatprep.subr.bf16.mxu1 %v7709_v62  ;;  %v7787_v61 = vld [vmem:[%s11132_s1 + $0xbac] ss:$16 sps:$4 sm:$0xff]   ;;  %v7782_v62 = vld [vmem:[%s11132_s1 + $0xba0] ss:$16 sps:$4 sm:$0xff]  }
 0x142   :  { %5107 = vmatmul.mubr.bf16.vlgmr.msra.gmra.mrb[0].mxu0 %v163_v0  ;;  %5640 = vmatmul.mubr.bf16.vlgmr.msra.gmra.mrb[0].mxu1 %v163_v0  ;;  %v7790_v0 = vld [vmem:[%s11132_s1 + $0xbc4] ss:$16 sps:$4 sm:$0xff]  }
 0x143   :  { %5116 = vmatpush1.bf16.msra.mxu0 %v7704_v2  ;;  %5649 = vmatpush1.bf16.msra.mxu1 %v7707_v3  ;;  %v7793_v2 = vld [vmem:[%s11132_s1 + $0xbcc] ss:$16 sps:$4 sm:$0xff]   ;;  %v7788_v3 = vld [vmem:[%s11132_s1 + $0xbc0] ss:$16 sps:$4 sm:$0xff]  }
 0x144   :  { %5117 = vmatprep.subr.bf16.mxu0 %v7712_v4  ;;  %5650 = vmatprep.subr.bf16.mxu1 %v7715_v44  ;;  %v7791_v4 = vld [vmem:[%s11132_s1 + $0xbc8] ss:$16 sps:$4 sm:$0xff]   ;;  %v7796_v44 = vld [vmem:[%s11132_s1 + $0xbe4] ss:$16 sps:$4 sm:$0xff]  }
 0x145   :  { %5147 = vmatprep.mubr.bf16.mxu0 %v166_v6  ;;  %5680 = vmatprep.mubr.bf16.mxu1 %v166_v6  ;;  %v7799_v6 = vld [vmem:[%s11132_s1 + $0xbec] ss:$16 sps:$4 sm:$0xff]  }
 0x147   :  { %5118 = vmatpush1.bf16.msra.mxu0 %v7710_v7  ;;  %5651 = vmatpush1.bf16.msra.mxu1 %v7713_v8  ;;  %v9671_v7 = vld [vmem:[%s11131_s0 + $0x8] sm:$0xff] }
 0x148   :  { %5119 = vmatprep.subr.bf16.mxu0 %v7718_v9  ;;  %5652 = vmatprep.subr.bf16.mxu1 %v7721_v10  ;;  %v73_v8 = vrot.slane %v9671_v7, %v8851_v12  ;;  %v7794_v9 = vld [vmem:[%s11132_s1 + $0xbe0] ss:$16 sps:$4 sm:$0xff]   ;;  %v7797_v10 = vld [vmem:[%s11132_s1 + $0xbe8] ss:$16 sps:$4 sm:$0xff]  }
 0x14b   :  { %5120 = vmatpush1.bf16.msra.mxu0 %v7716_v11  ;;  %5653 = vmatpush1.bf16.msra.mxu1 %v7719_v13  ;;  %v7802_v11 = vld [vmem:[%s11132_s1 + $0xc04] ss:$16 sps:$4 sm:$0xff]   ;;  %v7805_v13 = vld [vmem:[%s11132_s1 + $0xc0c] ss:$16 sps:$4 sm:$0xff]  }
 0x14c   :  { %5121 = vmatprep.subr.bf16.mxu0 %v7724_v14  ;;  %5654 = vmatprep.subr.bf16.mxu1 %v7727_v15  ;;  %v85_v14 = vrot.slane %v9671_v7, %v8863_v16  ;;  %v165_v15 = vpack.c.bf16 %v73_v8, %v73_v8  ;;  %v7877_v8 = vld [vmem:[%s11132_s1 + $0xd8c] ss:$16 sps:$4 sm:$0xff]  }
 0x14f   :  { %5122 = vmatpush1.bf16.msra.mxu0 %v7722_v17  ;;  %5655 = vmatpush1.bf16.msra.mxu1 %v7725_v18  ;;  %v7800_v17 = vld [vmem:[%s11132_s1 + $0xc00] ss:$16 sps:$4 sm:$0xff]   ;;  %v7803_v18 = vld [vmem:[%s11132_s1 + $0xc08] ss:$16 sps:$4 sm:$0xff]  }
 0x150   :  { %5123 = vmatprep.subr.bf16.mxu0 %v7730_v19  ;;  %5656 = vmatprep.subr.bf16.mxu1 %v7733_v20  ;;  %v7808_v19 = vld [vmem:[%s11132_s1 + $0xc24] ss:$16 sps:$4 sm:$0xff]   ;;  %v7811_v20 = vld [vmem:[%s11132_s1 + $0xc2c] ss:$16 sps:$4 sm:$0xff]  }
 0x153   :  { %5124 = vmatpush1.bf16.msra.mxu0 %v7728_v21  ;;  %5657 = vmatpush1.bf16.msra.mxu1 %v7731_v22  ;;  %v168_v21 = vpack.c.bf16 %v85_v14, %v85_v14  ;;  %v7806_v22 = vld [vmem:[%s11132_s1 + $0xc20] ss:$16 sps:$4 sm:$0xff]  }
 0x154   :  { %5125 = vmatprep.subr.bf16.mxu0 %v7736_v23  ;;  %5658 = vmatprep.subr.bf16.mxu1 %v7739_v25  ;;  %v7809_v23 = vld [vmem:[%s11132_s1 + $0xc28] ss:$16 sps:$4 sm:$0xff]   ;;  %v7814_v25 = vld [vmem:[%s11132_s1 + $0xc44] ss:$16 sps:$4 sm:$0xff]   ;;  %v7878_v14 = vld [vmem:[%s11132_s1 + $0xda0] ss:$16 sps:$4 sm:$0xff]  }
 0x157   :  { %5126 = vmatpush1.bf16.msra.mxu0 %v7734_v26  ;;  %5659 = vmatpush1.bf16.msra.mxu1 %v7737_v49  ;;  %v7817_v26 = vld [vmem:[%s11132_s1 + $0xc4c] ss:$16 sps:$4 sm:$0xff]   ;;  %v7812_v49 = vld [vmem:[%s11132_s1 + $0xc40] ss:$16 sps:$4 sm:$0xff]  }
 0x158   :  { %5127 = vmatprep.subr.bf16.mxu0 %v7742_v28  ;;  %5660 = vmatprep.subr.bf16.mxu1 %v7745_v30  ;;  %v7815_v28 = vld [vmem:[%s11132_s1 + $0xc48] ss:$16 sps:$4 sm:$0xff]   ;;  %v7820_v30 = vld [vmem:[%s11132_s1 + $0xc64] ss:$16 sps:$4 sm:$0xff]  }
 0x15b   :  { %5128 = vmatpush1.bf16.msra.mxu0 %v7740_v31  ;;  %5661 = vmatpush1.bf16.msra.mxu1 %v7743_v32  ;;  %v7823_v31 = vld [vmem:[%s11132_s1 + $0xc6c] ss:$16 sps:$4 sm:$0xff]   ;;  %v7818_v32 = vld [vmem:[%s11132_s1 + $0xc60] ss:$16 sps:$4 sm:$0xff]  }
 0x15c   :  { %5129 = vmatprep.subr.bf16.mxu0 %v7748_v33  ;;  %5662 = vmatprep.subr.bf16.mxu1 %v7751_v34  ;;  %v7821_v33 = vld [vmem:[%s11132_s1 + $0xc68] ss:$16 sps:$4 sm:$0xff]   ;;  %v7826_v34 = vld [vmem:[%s11132_s1 + $0xc84] ss:$16 sps:$4 sm:$0xff]  }
 0x15f   :  { %5130 = vmatpush1.bf16.msra.mxu0 %v7746_v35  ;;  %5663 = vmatpush1.bf16.msra.mxu1 %v7749_v36  ;;  %v7829_v35 = vld [vmem:[%s11132_s1 + $0xc8c] ss:$16 sps:$4 sm:$0xff]   ;;  %v7824_v36 = vld [vmem:[%s11132_s1 + $0xc80] ss:$16 sps:$4 sm:$0xff]  }
 0x160   :  { %5131 = vmatprep.subr.bf16.mxu0 %v7754_v37  ;;  %5664 = vmatprep.subr.bf16.mxu1 %v7757_v39  ;;  %v7827_v37 = vld [vmem:[%s11132_s1 + $0xc88] ss:$16 sps:$4 sm:$0xff]   ;;  %v7832_v39 = vld [vmem:[%s11132_s1 + $0xca4] ss:$16 sps:$4 sm:$0xff]  }
 0x163   :  { %5132 = vmatpush1.bf16.msra.mxu0 %v7752_v41  ;;  %5665 = vmatpush1.bf16.msra.mxu1 %v7755_v42  ;;  %v7835_v41 = vld [vmem:[%s11132_s1 + $0xcac] ss:$16 sps:$4 sm:$0xff]   ;;  %v7830_v42 = vld [vmem:[%s11132_s1 + $0xca0] ss:$16 sps:$4 sm:$0xff]  }
 0x164   :  { %5133 = vmatprep.subr.bf16.mxu0 %v7760_v40  ;;  %5666 = vmatprep.subr.bf16.mxu1 %v7763_v43  ;;  %v7833_v40 = vld [vmem:[%s11132_s1 + $0xca8] ss:$16 sps:$4 sm:$0xff]   ;;  %v7838_v43 = vld [vmem:[%s11132_s1 + $0xcc4] ss:$16 sps:$4 sm:$0xff]  }
 0x167   :  { %5134 = vmatpush1.bf16.msra.mxu0 %v7758_v45  ;;  %5667 = vmatpush1.bf16.msra.mxu1 %v7761_v47  ;;  %v7841_v45 = vld [vmem:[%s11132_s1 + $0xccc] ss:$16 sps:$4 sm:$0xff]   ;;  %v7836_v47 = vld [vmem:[%s11132_s1 + $0xcc0] ss:$16 sps:$4 sm:$0xff]  }
 0x168   :  { %5135 = vmatprep.subr.bf16.mxu0 %v7766_v29  ;;  %5668 = vmatprep.subr.bf16.mxu1 %v7769_v48  ;;  %v7839_v29 = vld [vmem:[%s11132_s1 + $0xcc8] ss:$16 sps:$4 sm:$0xff]   ;;  %v7844_v48 = vld [vmem:[%s11132_s1 + $0xce4] ss:$16 sps:$4 sm:$0xff]  }
 0x16b   :  { %5136 = vmatpush1.bf16.msra.mxu0 %v7764_v50  ;;  %5669 = vmatpush1.bf16.msra.mxu1 %v7767_v51  ;;  %v7847_v50 = vld [vmem:[%s11132_s1 + $0xcec] ss:$16 sps:$4 sm:$0xff]   ;;  %v7842_v51 = vld [vmem:[%s11132_s1 + $0xce0] ss:$16 sps:$4 sm:$0xff]  }
 0x16c   :  { %5137 = vmatprep.subr.bf16.mxu0 %v7772_v52  ;;  %5670 = vmatprep.subr.bf16.mxu1 %v7775_v53  ;;  %v7845_v52 = vld [vmem:[%s11132_s1 + $0xce8] ss:$16 sps:$4 sm:$0xff]   ;;  %v7850_v53 = vld [vmem:[%s11132_s1 + $0xd04] ss:$16 sps:$4 sm:$0xff]  }
 0x16f   :  { %5138 = vmatpush1.bf16.msra.mxu0 %v7770_v54  ;;  %5671 = vmatpush1.bf16.msra.mxu1 %v7773_v55  ;;  %v7853_v54 = vld [vmem:[%s11132_s1 + $0xd0c] ss:$16 sps:$4 sm:$0xff]   ;;  %v7848_v55 = vld [vmem:[%s11132_s1 + $0xd00] ss:$16 sps:$4 sm:$0xff]  }
 0x170   :  { %5139 = vmatprep.subr.bf16.mxu0 %v7778_v56  ;;  %5672 = vmatprep.subr.bf16.mxu1 %v7781_v57  ;;  %v7851_v56 = vld [vmem:[%s11132_s1 + $0xd08] ss:$16 sps:$4 sm:$0xff]   ;;  %v7856_v57 = vld [vmem:[%s11132_s1 + $0xd24] ss:$16 sps:$4 sm:$0xff]  }
 0x173   :  { %5140 = vmatpush1.bf16.msra.mxu0 %v7776_v58  ;;  %5673 = vmatpush1.bf16.msra.mxu1 %v7779_v59  ;;  %v7859_v58 = vld [vmem:[%s11132_s1 + $0xd2c] ss:$16 sps:$4 sm:$0xff]   ;;  %v7854_v59 = vld [vmem:[%s11132_s1 + $0xd20] ss:$16 sps:$4 sm:$0xff]  }
 0x174   :  { %5141 = vmatprep.subr.bf16.mxu0 %v7784_v60  ;;  %5674 = vmatprep.subr.bf16.mxu1 %v7787_v61  ;;  %v7857_v60 = vld [vmem:[%s11132_s1 + $0xd28] ss:$16 sps:$4 sm:$0xff]   ;;  %v7862_v61 = vld [vmem:[%s11132_s1 + $0xd44] ss:$16 sps:$4 sm:$0xff]  }
 0x177   :  { %5142 = vmatpush1.bf16.msra.mxu0 %v7782_v62  ;;  %5675 = vmatpush1.bf16.msra.mxu1 %v7785_v63  ;;  %v7865_v62 = vld [vmem:[%s11132_s1 + $0xd4c] ss:$16 sps:$4 sm:$0xff]   ;;  %v7860_v63 = vld [vmem:[%s11132_s1 + $0xd40] ss:$16 sps:$4 sm:$0xff]  }
 0x178   :  { %5143 = vmatprep.subr.bf16.mxu0 %v7790_v0  ;;  %5676 = vmatprep.subr.bf16.mxu1 %v7793_v2  ;;  %v7863_v0 = vld [vmem:[%s11132_s1 + $0xd48] ss:$16 sps:$4 sm:$0xff]   ;;  %v7868_v2 = vld [vmem:[%s11132_s1 + $0xd64] ss:$16 sps:$4 sm:$0xff]  }
 0x17b   :  { %5144 = vmatpush1.bf16.msra.mxu0 %v7788_v3  ;;  %5677 = vmatpush1.bf16.msra.mxu1 %v7791_v4  ;;  %v7871_v3 = vld [vmem:[%s11132_s1 + $0xd6c] ss:$16 sps:$4 sm:$0xff]   ;;  %v7866_v4 = vld [vmem:[%s11132_s1 + $0xd60] ss:$16 sps:$4 sm:$0xff]  }
 0x17c   :  { %5145 = vmatprep.subr.bf16.mxu0 %v7796_v44  ;;  %5678 = vmatprep.subr.bf16.mxu1 %v7799_v6  ;;  %v7869_v44 = vld [vmem:[%s11132_s1 + $0xd68] ss:$16 sps:$4 sm:$0xff]   ;;  %v7874_v6 = vld [vmem:[%s11132_s1 + $0xd84] ss:$16 sps:$4 sm:$0xff]  }
 0x17f   :  { %5146 = vmatpush1.bf16.msra.mxu0 %v7794_v9  ;;  %5679 = vmatpush1.bf16.msra.mxu1 %v7797_v10  ;;  %v7872_v9 = vld [vmem:[%s11132_s1 + $0xd80] ss:$16 sps:$4 sm:$0xff]   ;;  %v7875_v10 = vld [vmem:[%s11132_s1 + $0xd88] ss:$16 sps:$4 sm:$0xff]  }
 0x180   :  { %5156 = vmatprep.subr.bf16.mxu0 %v7802_v11  ;;  %5689 = vmatprep.subr.bf16.mxu1 %v7805_v13  ;;  %v7880_v11 = vld [vmem:[%s11132_s1 + $0xda4] ss:$16 sps:$4 sm:$0xff]   ;;  %v7883_v13 = vld [vmem:[%s11132_s1 + $0xdac] ss:$16 sps:$4 sm:$0xff]  }
 0x182   :  { %5148 = vmatmul.mubr.bf16.vlgmr.msra.gmra.mrb[0].mxu0 %v165_v15  ;;  %5681 = vmatmul.mubr.bf16.vlgmr.msra.gmra.mrb[0].mxu1 %v165_v15  ;;  %v7881_v15 = vld [vmem:[%s11132_s1 + $0xda8] ss:$16 sps:$4 sm:$0xff]  }
 0x183   :  { %5157 = vmatpush1.bf16.msra.mxu0 %v7800_v17  ;;  %5690 = vmatpush1.bf16.msra.mxu1 %v7803_v18  ;;  %v7886_v17 = vld [vmem:[%s11132_s1 + $0xdc4] ss:$16 sps:$4 sm:$0xff]   ;;  %v7889_v18 = vld [vmem:[%s11132_s1 + $0xdcc] ss:$16 sps:$4 sm:$0xff]  }
 0x184   :  { %5158 = vmatprep.subr.bf16.mxu0 %v7808_v19  ;;  %5691 = vmatprep.subr.bf16.mxu1 %v7811_v20  ;;  %v7884_v19 = vld [vmem:[%s11132_s1 + $0xdc0] ss:$16 sps:$4 sm:$0xff]   ;;  %v7887_v20 = vld [vmem:[%s11132_s1 + $0xdc8] ss:$16 sps:$4 sm:$0xff]  }
 0x185   :  { %5188 = vmatprep.mubr.bf16.mxu0 %v168_v21  ;;  %5721 = vmatprep.mubr.bf16.mxu1 %v168_v21  ;;  %v7892_v21 = vld [vmem:[%s11132_s1 + $0xde4] ss:$16 sps:$4 sm:$0xff]  }
 0x187   :  { %5159 = vmatpush1.bf16.msra.mxu0 %v7806_v22  ;;  %5692 = vmatpush1.bf16.msra.mxu1 %v7809_v23  ;;  %v7895_v22 = vld [vmem:[%s11132_s1 + $0xdec] ss:$16 sps:$4 sm:$0xff]   ;;  %v81_v23 = vrot.slane %v9671_v7, %v9053_v24 }
 0x188   :  { %5160 = vmatprep.subr.bf16.mxu0 %v7814_v25  ;;  %5693 = vmatprep.subr.bf16.mxu1 %v7817_v26  ;;  %v7890_v25 = vld [vmem:[%s11132_s1 + $0xde0] ss:$16 sps:$4 sm:$0xff]   ;;  %v7893_v26 = vld [vmem:[%s11132_s1 + $0xde8] ss:$16 sps:$4 sm:$0xff]  }
 0x18b   :  { %5161 = vmatpush1.bf16.msra.mxu0 %v7812_v49  ;;  %5694 = vmatpush1.bf16.msra.mxu1 %v7815_v28  ;;  %v7898_v49 = vld [vmem:[%s11132_s1 + $0xe04] ss:$16 sps:$4 sm:$0xff]   ;;  %v7901_v28 = vld [vmem:[%s11132_s1 + $0xe0c] ss:$16 sps:$4 sm:$0xff]  }
 0x18c   :  { %5162 = vmatprep.subr.bf16.mxu0 %v7820_v30  ;;  %5695 = vmatprep.subr.bf16.mxu1 %v7823_v31  ;;  %v93_v30 = vrot.slane %v9671_v7, %v9065_v27  ;;  %v167_v31 = vpack.c.bf16 %v81_v23, %v81_v23 }
 0x18f   :  { %5163 = vmatpush1.bf16.msra.mxu0 %v7818_v32  ;;  %5696 = vmatpush1.bf16.msra.mxu1 %v7821_v33  ;;  %v7896_v32 = vld [vmem:[%s11132_s1 + $0xe00] ss:$16 sps:$4 sm:$0xff]   ;;  %v7899_v33 = vld [vmem:[%s11132_s1 + $0xe08] ss:$16 sps:$4 sm:$0xff]  }
 0x190   :  { %5164 = vmatprep.subr.bf16.mxu0 %v7826_v34  ;;  %5697 = vmatprep.subr.bf16.mxu1 %v7829_v35  ;;  %v7904_v34 = vld [vmem:[%s11132_s1 + $0xe24] ss:$16 sps:$4 sm:$0xff]   ;;  %v7907_v35 = vld [vmem:[%s11132_s1 + $0xe2c] ss:$16 sps:$4 sm:$0xff]  }
 0x193   :  { %5165 = vmatpush1.bf16.msra.mxu0 %v7824_v36  ;;  %5698 = vmatpush1.bf16.msra.mxu1 %v7827_v37  ;;  %v170_v36 = vpack.c.bf16 %v93_v30, %v93_v30  ;;  %v7902_v37 = vld [vmem:[%s11132_s1 + $0xe20] ss:$16 sps:$4 sm:$0xff]  }
 0x194   :  { %5166 = vmatprep.subr.bf16.mxu0 %v7832_v39  ;;  %5699 = vmatprep.subr.bf16.mxu1 %v7835_v41  ;;  %v7905_v39 = vld [vmem:[%s11132_s1 + $0xe28] ss:$16 sps:$4 sm:$0xff]   ;;  %v7910_v41 = vld [vmem:[%s11132_s1 + $0xe44] ss:$16 sps:$4 sm:$0xff]  }
 0x197   :  { %5167 = vmatpush1.bf16.msra.mxu0 %v7830_v42  ;;  %5700 = vmatpush1.bf16.msra.mxu1 %v7833_v40  ;;  %v7913_v42 = vld [vmem:[%s11132_s1 + $0xe4c] ss:$16 sps:$4 sm:$0xff]   ;;  %v7908_v40 = vld [vmem:[%s11132_s1 + $0xe40] ss:$16 sps:$4 sm:$0xff]  }
 0x198   :  { %5168 = vmatprep.subr.bf16.mxu0 %v7838_v43  ;;  %5701 = vmatprep.subr.bf16.mxu1 %v7841_v45  ;;  %v7911_v43 = vld [vmem:[%s11132_s1 + $0xe48] ss:$16 sps:$4 sm:$0xff]   ;;  %v7916_v45 = vld [vmem:[%s11132_s1 + $0xe64] ss:$16 sps:$4 sm:$0xff]  }
 0x19b   :  { %5169 = vmatpush1.bf16.msra.mxu0 %v7836_v47  ;;  %5702 = vmatpush1.bf16.msra.mxu1 %v7839_v29  ;;  %v7919_v47 = vld [vmem:[%s11132_s1 + $0xe6c] ss:$16 sps:$4 sm:$0xff]  }
 0x19c   :  { %5170 = vmatprep.subr.bf16.mxu0 %v7844_v48  ;;  %5703 = vmatprep.subr.bf16.mxu1 %v7847_v50 }
 0x19f   :  { %5171 = vmatpush1.bf16.msra.mxu0 %v7842_v51  ;;  %5704 = vmatpush1.bf16.msra.mxu1 %v7845_v52 }
 0x1a0   :  { %5172 = vmatprep.subr.bf16.mxu0 %v7850_v53  ;;  %5705 = vmatprep.subr.bf16.mxu1 %v7853_v54 }
 0x1a3   :  { %5173 = vmatpush1.bf16.msra.mxu0 %v7848_v55  ;;  %5706 = vmatpush1.bf16.msra.mxu1 %v7851_v56 }
 0x1a4   :  { %5174 = vmatprep.subr.bf16.mxu0 %v7856_v57  ;;  %5707 = vmatprep.subr.bf16.mxu1 %v7859_v58 }
 0x1a7   :  { %5175 = vmatpush1.bf16.msra.mxu0 %v7854_v59  ;;  %5708 = vmatpush1.bf16.msra.mxu1 %v7857_v60 }
 0x1a8   :  { %5176 = vmatprep.subr.bf16.mxu0 %v7862_v61  ;;  %5709 = vmatprep.subr.bf16.mxu1 %v7865_v62 }
 0x1ab   :  { %5177 = vmatpush1.bf16.msra.mxu0 %v7860_v63  ;;  %5710 = vmatpush1.bf16.msra.mxu1 %v7863_v0 }
 0x1ac   :  { %5178 = vmatprep.subr.bf16.mxu0 %v7868_v2  ;;  %5711 = vmatprep.subr.bf16.mxu1 %v7871_v3 }
 0x1af   :  { %5179 = vmatpush1.bf16.msra.mxu0 %v7866_v4  ;;  %5712 = vmatpush1.bf16.msra.mxu1 %v7869_v44 }
 0x1b0   :  { %5180 = vmatprep.subr.bf16.mxu0 %v7874_v6  ;;  %5713 = vmatprep.subr.bf16.mxu1 %v7877_v8 }
 0x1b3   :  { %5181 = vmatpush1.bf16.msra.mxu0 %v7872_v9  ;;  %5714 = vmatpush1.bf16.msra.mxu1 %v7875_v10 }
 0x1b4   :  { %5182 = vmatprep.subr.bf16.mxu0 %v7880_v11  ;;  %5715 = vmatprep.subr.bf16.mxu1 %v7883_v13 }
 0x1b7   :  { %5183 = vmatpush1.bf16.msra.mxu0 %v7878_v14  ;;  %5716 = vmatpush1.bf16.msra.mxu1 %v7881_v15 }
 0x1b8   :  { %5184 = vmatprep.subr.bf16.mxu0 %v7886_v17  ;;  %5717 = vmatprep.subr.bf16.mxu1 %v7889_v18 }
 0x1bb   :  { %5185 = vmatpush1.bf16.msra.mxu0 %v7884_v19  ;;  %5718 = vmatpush1.bf16.msra.mxu1 %v7887_v20 }
 0x1bc   :  { %5186 = vmatprep.subr.bf16.mxu0 %v7892_v21  ;;  %5719 = vmatprep.subr.bf16.mxu1 %v7895_v22 }
 0x1bf   :  { %5187 = vmatpush1.bf16.msra.mxu0 %v7890_v25  ;;  %5720 = vmatpush1.bf16.msra.mxu1 %v7893_v26 }
 0x1c0   :  { %5197 = vmatprep.subr.bf16.mxu0 %v7898_v49  ;;  %5730 = vmatprep.subr.bf16.mxu1 %v7901_v28 }
 0x1c2   :  { %5189 = vmatmul.mubr.bf16.vlgmr.msra.gmra.mrb[0].mxu0 %v167_v31  ;;  %5722 = vmatmul.mubr.bf16.vlgmr.msra.gmra.mrb[0].mxu1 %v167_v31 }
 0x1c3   :  { %5198 = vmatpush1.bf16.msra.mxu0 %v7896_v32  ;;  %5731 = vmatpush1.bf16.msra.mxu1 %v7899_v33 }
 0x1c4   :  { %5199 = vmatprep.subr.bf16.mxu0 %v7904_v34  ;;  %5732 = vmatprep.subr.bf16.mxu1 %v7907_v35 }
 0x1c5   :  { %5229 = vmatprep.mubr.bf16.mxu0 %v170_v36  ;;  %5762 = vmatprep.mubr.bf16.mxu1 %v170_v36 }
 0x1c7   :  { %5200 = vmatpush1.bf16.msra.mxu0 %v7902_v37  ;;  %5733 = vmatpush1.bf16.msra.mxu1 %v7905_v39 }
 0x1c8   :  { %5201 = vmatprep.subr.bf16.mxu0 %v7910_v41  ;;  %5734 = vmatprep.subr.bf16.mxu1 %v7913_v42 }
 0x1c9   :  { %10 = vsyncpa [#allocation3], 0  ;;  %v7914_v29 = vld [vmem:[%s11132_s1 + $0xe60] ss:$16 sps:$4 sm:$0xff]   ;;  %v7917_v48 = vld [vmem:[%s11132_s1 + $0xe68] ss:$16 sps:$4 sm:$0xff]   ;;  %v89_v39 = vrot.slane %v9671_v7, %v9257_v38 }
 0x1ca   :  { %v7922_v50 = vld [vmem:[%s11132_s1 + $0xe84] ss:$16 sps:$4 sm:$0xff]   ;;  %v7925_v51 = vld [vmem:[%s11132_s1 + $0xe8c] ss:$16 sps:$4 sm:$0xff]   ;;  %v7920_v52 = vld [vmem:[%s11132_s1 + $0xe80] ss:$16 sps:$4 sm:$0xff]  }
 0x1cb   :  { %5202 = vmatpush1.bf16.msra.mxu0 %v7908_v40  ;;  %5735 = vmatpush1.bf16.msra.mxu1 %v7911_v43  ;;  %v7923_v53 = vld [vmem:[%s11132_s1 + $0xe88] ss:$16 sps:$4 sm:$0xff]   ;;  %v7928_v54 = vld [vmem:[%s11132_s1 + $0xea4] ss:$16 sps:$4 sm:$0xff]   ;;  %v7931_v55 = vld [vmem:[%s11132_s1 + $0xeac] ss:$16 sps:$4 sm:$0xff]  }
 0x1cc   :  { %5203 = vmatprep.subr.bf16.mxu0 %v7916_v45  ;;  %5736 = vmatprep.subr.bf16.mxu1 %v7919_v47  ;;  %v7926_v56 = vld [vmem:[%s11132_s1 + $0xea0] ss:$16 sps:$4 sm:$0xff]   ;;  %v7929_v57 = vld [vmem:[%s11132_s1 + $0xea8] ss:$16 sps:$4 sm:$0xff]   ;;  %v7934_v58 = vld [vmem:[%s11132_s1 + $0xec4] ss:$16 sps:$4 sm:$0xff]   ;;  %v169_v47 = vpack.c.bf16 %v89_v39, %v89_v39 }
 0x1cd   :  { %v7937_v59 = vld [vmem:[%s11132_s1 + $0xecc] ss:$16 sps:$4 sm:$0xff]   ;;  %v7932_v60 = vld [vmem:[%s11132_s1 + $0xec0] ss:$16 sps:$4 sm:$0xff]   ;;  %v7935_v61 = vld [vmem:[%s11132_s1 + $0xec8] ss:$16 sps:$4 sm:$0xff]  }
 0x1ce   :  { %v7940_v62 = vld [vmem:[%s11132_s1 + $0xee4] ss:$16 sps:$4 sm:$0xff]   ;;  %v7943_v63 = vld [vmem:[%s11132_s1 + $0xeec] ss:$16 sps:$4 sm:$0xff]   ;;  %v7938_v0 = vld [vmem:[%s11132_s1 + $0xee0] ss:$16 sps:$4 sm:$0xff]  }
 0x1cf   :  { %5204 = vmatpush1.bf16.msra.mxu0 %v7914_v29  ;;  %5737 = vmatpush1.bf16.msra.mxu1 %v7917_v48  ;;  %v7941_v2 = vld [vmem:[%s11132_s1 + $0xee8] ss:$16 sps:$4 sm:$0xff]   ;;  %v7946_v3 = vld [vmem:[%s11132_s1 + $0xf04] ss:$16 sps:$4 sm:$0xff]   ;;  %v7949_v4 = vld [vmem:[%s11132_s1 + $0xf0c] ss:$16 sps:$4 sm:$0xff]  }
 0x1d0   :  { %5205 = vmatprep.subr.bf16.mxu0 %v7922_v50  ;;  %5738 = vmatprep.subr.bf16.mxu1 %v7925_v51  ;;  %v7944_v44 = vld [vmem:[%s11132_s1 + $0xf00] ss:$16 sps:$4 sm:$0xff]   ;;  %v7947_v6 = vld [vmem:[%s11132_s1 + $0xf08] ss:$16 sps:$4 sm:$0xff]   ;;  %v7952_v8 = vld [vmem:[%s11132_s1 + $0xf24] ss:$16 sps:$4 sm:$0xff]  }
 0x1d1   :  { %v7955_v9 = vld [vmem:[%s11132_s1 + $0xf2c] ss:$16 sps:$4 sm:$0xff]   ;;  %v7950_v10 = vld [vmem:[%s11132_s1 + $0xf20] ss:$16 sps:$4 sm:$0xff]   ;;  %v7953_v11 = vld [vmem:[%s11132_s1 + $0xf28] ss:$16 sps:$4 sm:$0xff]  }
 0x1d2   :  { %v7958_v13 = vld [vmem:[%s11132_s1 + $0xf44] ss:$16 sps:$4 sm:$0xff]   ;;  %v7961_v14 = vld [vmem:[%s11132_s1 + $0xf4c] ss:$16 sps:$4 sm:$0xff]   ;;  %v7956_v15 = vld [vmem:[%s11132_s1 + $0xf40] ss:$16 sps:$4 sm:$0xff]  }
 0x1d3   :  { %5206 = vmatpush1.bf16.msra.mxu0 %v7920_v52  ;;  %5739 = vmatpush1.bf16.msra.mxu1 %v7923_v53  ;;  %v7959_v17 = vld [vmem:[%s11132_s1 + $0xf48] ss:$16 sps:$4 sm:$0xff]   ;;  %v7964_v18 = vld [vmem:[%s11132_s1 + $0xf64] ss:$16 sps:$4 sm:$0xff]   ;;  %v7967_v19 = vld [vmem:[%s11132_s1 + $0xf6c] ss:$16 sps:$4 sm:$0xff]  }
 0x1d4   :  { %5207 = vmatprep.subr.bf16.mxu0 %v7928_v54  ;;  %5740 = vmatprep.subr.bf16.mxu1 %v7931_v55  ;;  %v7962_v20 = vld [vmem:[%s11132_s1 + $0xf60] ss:$16 sps:$4 sm:$0xff]   ;;  %v7965_v21 = vld [vmem:[%s11132_s1 + $0xf68] ss:$16 sps:$4 sm:$0xff]   ;;  %v7970_v22 = vld [vmem:[%s11132_s1 + $0xf84] ss:$16 sps:$4 sm:$0xff]  }
 0x1d5   :  { %v7973_v23 = vld [vmem:[%s11132_s1 + $0xf8c] ss:$16 sps:$4 sm:$0xff]   ;;  %v7968_v25 = vld [vmem:[%s11132_s1 + $0xf80] ss:$16 sps:$4 sm:$0xff]   ;;  %v7971_v26 = vld [vmem:[%s11132_s1 + $0xf88] ss:$16 sps:$4 sm:$0xff]  }
 0x1d6   :  { %v7976_v49 = vld [vmem:[%s11132_s1 + $0xfa4] ss:$16 sps:$4 sm:$0xff]   ;;  %v7979_v28 = vld [vmem:[%s11132_s1 + $0xfac] ss:$16 sps:$4 sm:$0xff]   ;;  %v7974_v30 = vld [vmem:[%s11132_s1 + $0xfa0] ss:$16 sps:$4 sm:$0xff]  }
 0x1d7   :  { %5208 = vmatpush1.bf16.msra.mxu0 %v7926_v56  ;;  %5741 = vmatpush1.bf16.msra.mxu1 %v7929_v57  ;;  %v7977_v31 = vld [vmem:[%s11132_s1 + $0xfa8] ss:$16 sps:$4 sm:$0xff]   ;;  %v7982_v32 = vld [vmem:[%s11132_s1 + $0xfc4] ss:$16 sps:$4 sm:$0xff]   ;;  %v7985_v33 = vld [vmem:[%s11132_s1 + $0xfcc] ss:$16 sps:$4 sm:$0xff]  }
 0x1d8   :  { %5209 = vmatprep.subr.bf16.mxu0 %v7934_v58  ;;  %5742 = vmatprep.subr.bf16.mxu1 %v7937_v59  ;;  %v7980_v34 = vld [vmem:[%s11132_s1 + $0xfc0] ss:$16 sps:$4 sm:$0xff]   ;;  %v7983_v35 = vld [vmem:[%s11132_s1 + $0xfc8] ss:$16 sps:$4 sm:$0xff]   ;;  %v7988_v36 = vld [vmem:[%s11132_s1 + $0xfe4] ss:$16 sps:$4 sm:$0xff]  }
 0x1d9   :  { %v7991_v37 = vld [vmem:[%s11132_s1 + $0xfec] ss:$16 sps:$4 sm:$0xff]   ;;  %v10070_v41 = vld [vmem:[%s11131_s0 + $0x10] sm:$0xff]  ;;  %v7989_v40 = vld [vmem:[%s11132_s1 + $0xfe8] ss:$16 sps:$4 sm:$0xff]   ;;  %vm4906_vm0 = vcmask 523264  }
 0x1da   :  { %v7986_v42 = vld [vmem:[%s11132_s1 + $0xfe0] ss:$16 sps:$4 sm:$0xff]   ;;  %v7994_v7 = vld [vmem:[%s11132_s1 + $0x1004] ss:$16 sps:$4 sm:$0xff]   ;;  %v7997_v43 = vld [vmem:[%s11132_s1 + $0x100c] ss:$16 sps:$4 sm:$0xff]   ;;  %v101_v45 = vrot.slane %v10070_v41, %v8594_v46 }
 0x1db   :  { %5210 = vmatpush1.bf16.msra.mxu0 %v7932_v60  ;;  %5743 = vmatpush1.bf16.msra.mxu1 %v7935_v61  ;;  %v7992_v29 = vld [vmem:[%s11132_s1 + $0x1000] ss:$16 sps:$4 sm:$0xff]   ;;  %v7995_v48 = vld [vmem:[%s11132_s1 + $0x1008] ss:$16 sps:$4 sm:$0xff]   ;;  %v8000_v50 = vld [vmem:[%s11132_s1 + $0x1024] ss:$16 sps:$4 sm:$0xff]  }
 0x1dc   :  { %5211 = vmatprep.subr.bf16.mxu0 %v7940_v62  ;;  %5744 = vmatprep.subr.bf16.mxu1 %v7943_v63  ;;  %v8003_v51 = vld [vmem:[%s11132_s1 + $0x102c] ss:$16 sps:$4 sm:$0xff]   ;;  %v172_v52 = vpack.c.bf16 %v101_v45, %v101_v45  ;;  %v7998_v53 = vld [vmem:[%s11132_s1 + $0x1020] ss:$16 sps:$4 sm:$0xff]   ;;  %v8001_v54 = vld [vmem:[%s11132_s1 + $0x1028] ss:$16 sps:$4 sm:$0xff]  }
 0x1dd   :  { %v8006_v55 = vld [vmem:[%s11132_s1 + $0x1044] ss:$16 sps:$4 sm:$0xff]   ;;  %v8009_v56 = vld [vmem:[%s11132_s1 + $0x104c] ss:$16 sps:$4 sm:$0xff]   ;;  %v8004_v57 = vld [vmem:[%s11132_s1 + $0x1040] ss:$16 sps:$4 sm:$0xff]  }
 0x1de   :  { %v8007_v58 = vld [vmem:[%s11132_s1 + $0x1048] ss:$16 sps:$4 sm:$0xff]   ;;  %v8012_v59 = vld [vmem:[%s11132_s1 + $0x1064] ss:$16 sps:$4 sm:$0xff]   ;;  %v8015_v60 = vld [vmem:[%s11132_s1 + $0x106c] ss:$16 sps:$4 sm:$0xff]  }
 0x1df   :  { %5212 = vmatpush1.bf16.msra.mxu0 %v7938_v0  ;;  %5745 = vmatpush1.bf16.msra.mxu1 %v7941_v2  ;;  %v8010_v61 = vld [vmem:[%s11132_s1 + $0x1060] ss:$16 sps:$4 sm:$0xff]   ;;  %v8013_v62 = vld [vmem:[%s11132_s1 + $0x1068] ss:$16 sps:$4 sm:$0xff]   ;;  %v8018_v63 = vld [vmem:[%s11132_s1 + $0x1084] ss:$16 sps:$4 sm:$0xff]  }
 0x1e0   :  { %5213 = vmatprep.subr.bf16.mxu0 %v7946_v3  ;;  %5746 = vmatprep.subr.bf16.mxu1 %v7949_v4  ;;  %v8021_v0 = vld [vmem:[%s11132_s1 + $0x108c] ss:$16 sps:$4 sm:$0xff]   ;;  %v8016_v2 = vld [vmem:[%s11132_s1 + $0x1080] ss:$16 sps:$4 sm:$0xff]   ;;  %v8019_v3 = vld [vmem:[%s11132_s1 + $0x1088] ss:$16 sps:$4 sm:$0xff]  }
 0x1e1   :  { %v8024_v4 = vld [vmem:[%s11132_s1 + $0x10a4] ss:$16 sps:$4 sm:$0xff]   ;;  %v8069_v39 = vld [vmem:[%s11132_s1 + $0x118c] ss:$16 sps:$4 sm:$0xff]   ;;  %v8070_v45 = vld [vmem:[%s11132_s1 + $0x11a0] ss:$16 sps:$4 sm:$0xff]  }
 0x1e2   :  { %s8428_s20 = smov [#allocation2]   ;;  %vm6185_vm1 = vcmask 24576  }
 0x1e3   :  { %5214 = vmatpush1.bf16.msra.mxu0 %v7944_v44  ;;  %5747 = vmatpush1.bf16.msra.mxu1 %v7947_v6  ;;  %v8027_v44 = vld [vmem:[%s11132_s1 + $0x10ac] ss:$16 sps:$4 sm:$0xff]   ;;  %v8022_v6 = vld [vmem:[%s11132_s1 + $0x10a0] ss:$16 sps:$4 sm:$0xff]   ;;  %s6193_s21 = sshll.u32 %s8428_s20, 4  ;;  %s6194_s21 = int_to_ptr.vmem [resolvable:$true] %s6193_s21 }
 0x1e4   :  { %5215 = vmatprep.subr.bf16.mxu0 %v7952_v8  ;;  %5748 = vmatprep.subr.bf16.mxu1 %v7955_v9  ;;  %v8025_v8 = vld [vmem:[%s11132_s1 + $0x10a8] ss:$16 sps:$4 sm:$0xff]   ;;  %v8030_v9 = vld [vmem:[%s11132_s1 + $0x10c4] ss:$16 sps:$4 sm:$0xff]   ;;  %s8403_s22 = scalar_lea.vmem %s6194_s21, 16  ;;  %s8407_s23 = scalar_lea.vmem %s6194_s21, 32 }
 0x1e5   :  { %p8404_p0 = scmp.ne.s32.totalorder %s6194_s21, %s8403_s22  ;;  %p8408_p1 = scmp.lt.s32.totalorder %s6194_s21, %s6194_s21 }
 0x1e6   :  { %p8409_p2 = scmp.lt.s32.totalorder %s8407_s23, %s8403_s22 }
 0x1e7   :  { %5216 = vmatpush1.bf16.msra.mxu0 %v7950_v10  ;;  %5749 = vmatpush1.bf16.msra.mxu1 %v7953_v11  ;;  %v8033_v10 = vld [vmem:[%s11132_s1 + $0x10cc] ss:$16 sps:$4 sm:$0xff]   ;;  %v8028_v11 = vld [vmem:[%s11132_s1 + $0x10c0] ss:$16 sps:$4 sm:$0xff]  }
 0x1e8   :  { %5217 = vmatprep.subr.bf16.mxu0 %v7958_v13  ;;  %5750 = vmatprep.subr.bf16.mxu1 %v7961_v14  ;;  %v8031_v13 = vld [vmem:[%s11132_s1 + $0x10c8] ss:$16 sps:$4 sm:$0xff]   ;;  %v8036_v14 = vld [vmem:[%s11132_s1 + $0x10e4] ss:$16 sps:$4 sm:$0xff]   ;;  %p8410_p3 = por %p8409_p2, %p8408_p1 }
 0x1ea   :  { %p8411_p4 = pnand %p8410_p3, %p8404_p0 }
 0x1eb   :  { %5218 = vmatpush1.bf16.msra.mxu0 %v7956_v15  ;;  %5751 = vmatpush1.bf16.msra.mxu1 %v7959_v17  ;;  %v8039_v15 = vld [vmem:[%s11132_s1 + $0x10ec] ss:$16 sps:$4 sm:$0xff]   ;;  %v8034_v17 = vld [vmem:[%s11132_s1 + $0x10e0] ss:$16 sps:$4 sm:$0xff]  }
 0x1ec   :  { %5219 = vmatprep.subr.bf16.mxu0 %v7964_v18  ;;  %5752 = vmatprep.subr.bf16.mxu1 %v7967_v19  ;;  %v8037_v18 = vld [vmem:[%s11132_s1 + $0x10e8] ss:$16 sps:$4 sm:$0xff]   ;;  %v8042_v19 = vld [vmem:[%s11132_s1 + $0x1104] ss:$16 sps:$4 sm:$0xff]  }
 0x1ef   :  { %5220 = vmatpush1.bf16.msra.mxu0 %v7962_v20  ;;  %5753 = vmatpush1.bf16.msra.mxu1 %v7965_v21  ;;  %v8045_v20 = vld [vmem:[%s11132_s1 + $0x110c] ss:$16 sps:$4 sm:$0xff]   ;;  %v8040_v21 = vld [vmem:[%s11132_s1 + $0x1100] ss:$16 sps:$4 sm:$0xff]  }
 0x1f0   :  { %5221 = vmatprep.subr.bf16.mxu0 %v7970_v22  ;;  %5754 = vmatprep.subr.bf16.mxu1 %v7973_v23  ;;  %v8043_v22 = vld [vmem:[%s11132_s1 + $0x1108] ss:$16 sps:$4 sm:$0xff]   ;;  %v8048_v23 = vld [vmem:[%s11132_s1 + $0x1124] ss:$16 sps:$4 sm:$0xff]  }
 0x1f3   :  { %5222 = vmatpush1.bf16.msra.mxu0 %v7968_v25  ;;  %5755 = vmatpush1.bf16.msra.mxu1 %v7971_v26  ;;  %v8051_v25 = vld [vmem:[%s11132_s1 + $0x112c] ss:$16 sps:$4 sm:$0xff]   ;;  %v8046_v26 = vld [vmem:[%s11132_s1 + $0x1120] ss:$16 sps:$4 sm:$0xff]  }
 0x1f4   :  { %5223 = vmatprep.subr.bf16.mxu0 %v7976_v49  ;;  %5756 = vmatprep.subr.bf16.mxu1 %v7979_v28  ;;  %v8049_v49 = vld [vmem:[%s11132_s1 + $0x1128] ss:$16 sps:$4 sm:$0xff]   ;;  %v8054_v28 = vld [vmem:[%s11132_s1 + $0x1144] ss:$16 sps:$4 sm:$0xff]  }
 0x1f7   :  { %5224 = vmatpush1.bf16.msra.mxu0 %v7974_v30  ;;  %5757 = vmatpush1.bf16.msra.mxu1 %v7977_v31  ;;  %v8057_v30 = vld [vmem:[%s11132_s1 + $0x114c] ss:$16 sps:$4 sm:$0xff]   ;;  %v8052_v31 = vld [vmem:[%s11132_s1 + $0x1140] ss:$16 sps:$4 sm:$0xff]  }
 0x1f8   :  { %5225 = vmatprep.subr.bf16.mxu0 %v7982_v32  ;;  %5758 = vmatprep.subr.bf16.mxu1 %v7985_v33  ;;  %v8055_v32 = vld [vmem:[%s11132_s1 + $0x1148] ss:$16 sps:$4 sm:$0xff]   ;;  %v8060_v33 = vld [vmem:[%s11132_s1 + $0x1164] ss:$16 sps:$4 sm:$0xff]  }
 0x1fb   :  { %5226 = vmatpush1.bf16.msra.mxu0 %v7980_v34  ;;  %5759 = vmatpush1.bf16.msra.mxu1 %v7983_v35  ;;  %v8063_v34 = vld [vmem:[%s11132_s1 + $0x116c] ss:$16 sps:$4 sm:$0xff]   ;;  %v8058_v35 = vld [vmem:[%s11132_s1 + $0x1160] ss:$16 sps:$4 sm:$0xff]  }
 0x1fc   :  { %5227 = vmatprep.subr.bf16.mxu0 %v7988_v36  ;;  %5760 = vmatprep.subr.bf16.mxu1 %v7991_v37  ;;  %v8061_v36 = vld [vmem:[%s11132_s1 + $0x1168] ss:$16 sps:$4 sm:$0xff]   ;;  %v8066_v37 = vld [vmem:[%s11132_s1 + $0x1184] ss:$16 sps:$4 sm:$0xff]  }
 0x1ff   :  { %5228 = vmatpush1.bf16.msra.mxu0 %v7986_v42  ;;  %5761 = vmatpush1.bf16.msra.mxu1 %v7989_v40  ;;  %v8064_v42 = vld [vmem:[%s11132_s1 + $0x1180] ss:$16 sps:$4 sm:$0xff]   ;;  %v8067_v40 = vld [vmem:[%s11132_s1 + $0x1188] ss:$16 sps:$4 sm:$0xff]  }
 0x200   :  { %5238 = vmatprep.subr.bf16.mxu0 %v7994_v7  ;;  %5771 = vmatprep.subr.bf16.mxu1 %v7997_v43  ;;  %v8072_v7 = vld [vmem:[%s11132_s1 + $0x11a4] ss:$16 sps:$4 sm:$0xff]   ;;  %v8075_v43 = vld [vmem:[%s11132_s1 + $0x11ac] ss:$16 sps:$4 sm:$0xff]  }
 0x202   :  { %5230 = vmatmul.mubr.bf16.vlgmr.msra.gmra.mrb[0].mxu0 %v169_v47  ;;  %5763 = vmatmul.mubr.bf16.vlgmr.msra.gmra.mrb[0].mxu1 %v169_v47  ;;  %v8073_v47 = vld [vmem:[%s11132_s1 + $0x11a8] ss:$16 sps:$4 sm:$0xff]  }
 0x203   :  { %5239 = vmatpush1.bf16.msra.mxu0 %v7992_v29  ;;  %5772 = vmatpush1.bf16.msra.mxu1 %v7995_v48  ;;  %v8078_v29 = vld [vmem:[%s11132_s1 + $0x11c4] ss:$16 sps:$4 sm:$0xff]   ;;  %v8081_v48 = vld [vmem:[%s11132_s1 + $0x11cc] ss:$16 sps:$4 sm:$0xff]  }
 0x204   :  { %5240 = vmatprep.subr.bf16.mxu0 %v8000_v50  ;;  %5773 = vmatprep.subr.bf16.mxu1 %v8003_v51  ;;  %v8076_v50 = vld [vmem:[%s11132_s1 + $0x11c0] ss:$16 sps:$4 sm:$0xff]   ;;  %v8079_v51 = vld [vmem:[%s11132_s1 + $0x11c8] ss:$16 sps:$4 sm:$0xff]  }
 0x205   :  { %5270 = vmatprep.mubr.bf16.mxu0 %v172_v52  ;;  %5803 = vmatprep.mubr.bf16.mxu1 %v172_v52  ;;  %v8084_v52 = vld [vmem:[%s11132_s1 + $0x11e4] ss:$16 sps:$4 sm:$0xff]  }
 0x207   :  { %5241 = vmatpush1.bf16.msra.mxu0 %v7998_v53  ;;  %5774 = vmatpush1.bf16.msra.mxu1 %v8001_v54  ;;  %v8087_v53 = vld [vmem:[%s11132_s1 + $0x11ec] ss:$16 sps:$4 sm:$0xff]   ;;  %v97_v54 = vrot.slane %v10070_v41, %v8649_v1 }
 0x208   :  { %5242 = vmatprep.subr.bf16.mxu0 %v8006_v55  ;;  %5775 = vmatprep.subr.bf16.mxu1 %v8009_v56  ;;  %v8082_v55 = vld [vmem:[%s11132_s1 + $0x11e0] ss:$16 sps:$4 sm:$0xff]   ;;  %v8085_v56 = vld [vmem:[%s11132_s1 + $0x11e8] ss:$16 sps:$4 sm:$0xff]  }
 0x20b   :  { %5243 = vmatpush1.bf16.msra.mxu0 %v8004_v57  ;;  %5776 = vmatpush1.bf16.msra.mxu1 %v8007_v58  ;;  %v8090_v57 = vld [vmem:[%s11132_s1 + $0x1204] ss:$16 sps:$4 sm:$0xff]   ;;  %v8093_v58 = vld [vmem:[%s11132_s1 + $0x120c] ss:$16 sps:$4 sm:$0xff]  }
 0x20c   :  { %5244 = vmatprep.subr.bf16.mxu0 %v8012_v59  ;;  %5777 = vmatprep.subr.bf16.mxu1 %v8015_v60  ;;  %v109_v59 = vrot.slane %v10070_v41, %v8661_v5  ;;  %v171_v60 = vpack.c.bf16 %v97_v54, %v97_v54  ;;  %v8165_v54 = vld [vmem:[%s11132_s1 + $0x138c] ss:$16 sps:$4 sm:$0xff]  }
 0x20f   :  { %5245 = vmatpush1.bf16.msra.mxu0 %v8010_v61  ;;  %5778 = vmatpush1.bf16.msra.mxu1 %v8013_v62  ;;  %v8088_v61 = vld [vmem:[%s11132_s1 + $0x1200] ss:$16 sps:$4 sm:$0xff]   ;;  %v8091_v62 = vld [vmem:[%s11132_s1 + $0x1208] ss:$16 sps:$4 sm:$0xff]  }
 0x210   :  { %5246 = vmatprep.subr.bf16.mxu0 %v8018_v63  ;;  %5779 = vmatprep.subr.bf16.mxu1 %v8021_v0  ;;  %v8096_v63 = vld [vmem:[%s11132_s1 + $0x1224] ss:$16 sps:$4 sm:$0xff]   ;;  %v8099_v0 = vld [vmem:[%s11132_s1 + $0x122c] ss:$16 sps:$4 sm:$0xff]  }
 0x213   :  { %5247 = vmatpush1.bf16.msra.mxu0 %v8016_v2  ;;  %5780 = vmatpush1.bf16.msra.mxu1 %v8019_v3  ;;  %v174_v2 = vpack.c.bf16 %v109_v59, %v109_v59  ;;  %v8094_v3 = vld [vmem:[%s11132_s1 + $0x1220] ss:$16 sps:$4 sm:$0xff]  }
 0x214   :  { %5248 = vmatprep.subr.bf16.mxu0 %v8024_v4  ;;  %5781 = vmatprep.subr.bf16.mxu1 %v8027_v44  ;;  %v8097_v4 = vld [vmem:[%s11132_s1 + $0x1228] ss:$16 sps:$4 sm:$0xff]   ;;  %v8102_v44 = vld [vmem:[%s11132_s1 + $0x1244] ss:$16 sps:$4 sm:$0xff]   ;;  %v8166_v59 = vld [vmem:[%s11132_s1 + $0x13a0] ss:$16 sps:$4 sm:$0xff]  }
 0x217   :  { %5249 = vmatpush1.bf16.msra.mxu0 %v8022_v6  ;;  %5782 = vmatpush1.bf16.msra.mxu1 %v8025_v8  ;;  %v8105_v6 = vld [vmem:[%s11132_s1 + $0x124c] ss:$16 sps:$4 sm:$0xff]   ;;  %v8100_v8 = vld [vmem:[%s11132_s1 + $0x1240] ss:$16 sps:$4 sm:$0xff]  }
 0x218   :  { %5250 = vmatprep.subr.bf16.mxu0 %v8030_v9  ;;  %5783 = vmatprep.subr.bf16.mxu1 %v8033_v10  ;;  %v8103_v9 = vld [vmem:[%s11132_s1 + $0x1248] ss:$16 sps:$4 sm:$0xff]   ;;  %v8108_v10 = vld [vmem:[%s11132_s1 + $0x1264] ss:$16 sps:$4 sm:$0xff]  }
 0x21b   :  { %5251 = vmatpush1.bf16.msra.mxu0 %v8028_v11  ;;  %5784 = vmatpush1.bf16.msra.mxu1 %v8031_v13  ;;  %v8111_v11 = vld [vmem:[%s11132_s1 + $0x126c] ss:$16 sps:$4 sm:$0xff]   ;;  %v8106_v13 = vld [vmem:[%s11132_s1 + $0x1260] ss:$16 sps:$4 sm:$0xff]  }
 0x21c   :  { %5252 = vmatprep.subr.bf16.mxu0 %v8036_v14  ;;  %5785 = vmatprep.subr.bf16.mxu1 %v8039_v15  ;;  %v8109_v14 = vld [vmem:[%s11132_s1 + $0x1268] ss:$16 sps:$4 sm:$0xff]   ;;  %v8114_v15 = vld [vmem:[%s11132_s1 + $0x1284] ss:$16 sps:$4 sm:$0xff]  }
 0x21f   :  { %5253 = vmatpush1.bf16.msra.mxu0 %v8034_v17  ;;  %5786 = vmatpush1.bf16.msra.mxu1 %v8037_v18  ;;  %v8117_v17 = vld [vmem:[%s11132_s1 + $0x128c] ss:$16 sps:$4 sm:$0xff]   ;;  %v8112_v18 = vld [vmem:[%s11132_s1 + $0x1280] ss:$16 sps:$4 sm:$0xff]  }
 0x220   :  { %5254 = vmatprep.subr.bf16.mxu0 %v8042_v19  ;;  %5787 = vmatprep.subr.bf16.mxu1 %v8045_v20  ;;  %v8115_v19 = vld [vmem:[%s11132_s1 + $0x1288] ss:$16 sps:$4 sm:$0xff]   ;;  %v8120_v20 = vld [vmem:[%s11132_s1 + $0x12a4] ss:$16 sps:$4 sm:$0xff]  }
 0x223   :  { %5255 = vmatpush1.bf16.msra.mxu0 %v8040_v21  ;;  %5788 = vmatpush1.bf16.msra.mxu1 %v8043_v22  ;;  %v8123_v21 = vld [vmem:[%s11132_s1 + $0x12ac] ss:$16 sps:$4 sm:$0xff]   ;;  %v8118_v22 = vld [vmem:[%s11132_s1 + $0x12a0] ss:$16 sps:$4 sm:$0xff]  }
 0x224   :  { %5256 = vmatprep.subr.bf16.mxu0 %v8048_v23  ;;  %5789 = vmatprep.subr.bf16.mxu1 %v8051_v25  ;;  %v8121_v23 = vld [vmem:[%s11132_s1 + $0x12a8] ss:$16 sps:$4 sm:$0xff]   ;;  %v8126_v25 = vld [vmem:[%s11132_s1 + $0x12c4] ss:$16 sps:$4 sm:$0xff]  }
 0x227   :  { %5257 = vmatpush1.bf16.msra.mxu0 %v8046_v26  ;;  %5790 = vmatpush1.bf16.msra.mxu1 %v8049_v49  ;;  %v8129_v26 = vld [vmem:[%s11132_s1 + $0x12cc] ss:$16 sps:$4 sm:$0xff]   ;;  %v8124_v49 = vld [vmem:[%s11132_s1 + $0x12c0] ss:$16 sps:$4 sm:$0xff]  }
 0x228   :  { %5258 = vmatprep.subr.bf16.mxu0 %v8054_v28  ;;  %5791 = vmatprep.subr.bf16.mxu1 %v8057_v30  ;;  %v8127_v28 = vld [vmem:[%s11132_s1 + $0x12c8] ss:$16 sps:$4 sm:$0xff]   ;;  %v8132_v30 = vld [vmem:[%s11132_s1 + $0x12e4] ss:$16 sps:$4 sm:$0xff]  }
 0x22b   :  { %5259 = vmatpush1.bf16.msra.mxu0 %v8052_v31  ;;  %5792 = vmatpush1.bf16.msra.mxu1 %v8055_v32  ;;  %v8135_v31 = vld [vmem:[%s11132_s1 + $0x12ec] ss:$16 sps:$4 sm:$0xff]   ;;  %v8130_v32 = vld [vmem:[%s11132_s1 + $0x12e0] ss:$16 sps:$4 sm:$0xff]  }
 0x22c   :  { %5260 = vmatprep.subr.bf16.mxu0 %v8060_v33  ;;  %5793 = vmatprep.subr.bf16.mxu1 %v8063_v34  ;;  %v8133_v33 = vld [vmem:[%s11132_s1 + $0x12e8] ss:$16 sps:$4 sm:$0xff]   ;;  %v8138_v34 = vld [vmem:[%s11132_s1 + $0x1304] ss:$16 sps:$4 sm:$0xff]  }
 0x22f   :  { %5261 = vmatpush1.bf16.msra.mxu0 %v8058_v35  ;;  %5794 = vmatpush1.bf16.msra.mxu1 %v8061_v36  ;;  %v8141_v35 = vld [vmem:[%s11132_s1 + $0x130c] ss:$16 sps:$4 sm:$0xff]   ;;  %v8136_v36 = vld [vmem:[%s11132_s1 + $0x1300] ss:$16 sps:$4 sm:$0xff]  }
 0x230   :  { %5262 = vmatprep.subr.bf16.mxu0 %v8066_v37  ;;  %5795 = vmatprep.subr.bf16.mxu1 %v8069_v39  ;;  %v8139_v37 = vld [vmem:[%s11132_s1 + $0x1308] ss:$16 sps:$4 sm:$0xff]   ;;  %v8144_v39 = vld [vmem:[%s11132_s1 + $0x1324] ss:$16 sps:$4 sm:$0xff]  }
 0x233   :  { %5263 = vmatpush1.bf16.msra.mxu0 %v8064_v42  ;;  %5796 = vmatpush1.bf16.msra.mxu1 %v8067_v40  ;;  %v8147_v42 = vld [vmem:[%s11132_s1 + $0x132c] ss:$16 sps:$4 sm:$0xff]   ;;  %v8142_v40 = vld [vmem:[%s11132_s1 + $0x1320] ss:$16 sps:$4 sm:$0xff]  }
 0x234   :  { %5264 = vmatprep.subr.bf16.mxu0 %v8072_v7  ;;  %5797 = vmatprep.subr.bf16.mxu1 %v8075_v43  ;;  %v8145_v7 = vld [vmem:[%s11132_s1 + $0x1328] ss:$16 sps:$4 sm:$0xff]   ;;  %v8150_v43 = vld [vmem:[%s11132_s1 + $0x1344] ss:$16 sps:$4 sm:$0xff]  }
 0x237   :  { %5265 = vmatpush1.bf16.msra.mxu0 %v8070_v45  ;;  %5798 = vmatpush1.bf16.msra.mxu1 %v8073_v47  ;;  %v8153_v45 = vld [vmem:[%s11132_s1 + $0x134c] ss:$16 sps:$4 sm:$0xff]   ;;  %v8148_v47 = vld [vmem:[%s11132_s1 + $0x1340] ss:$16 sps:$4 sm:$0xff]  }
 0x238   :  { %5266 = vmatprep.subr.bf16.mxu0 %v8078_v29  ;;  %5799 = vmatprep.subr.bf16.mxu1 %v8081_v48  ;;  %v8151_v29 = vld [vmem:[%s11132_s1 + $0x1348] ss:$16 sps:$4 sm:$0xff]   ;;  %v8156_v48 = vld [vmem:[%s11132_s1 + $0x1364] ss:$16 sps:$4 sm:$0xff]  }
 0x23b   :  { %5267 = vmatpush1.bf16.msra.mxu0 %v8076_v50  ;;  %5800 = vmatpush1.bf16.msra.mxu1 %v8079_v51  ;;  %v8159_v50 = vld [vmem:[%s11132_s1 + $0x136c] ss:$16 sps:$4 sm:$0xff]   ;;  %v8154_v51 = vld [vmem:[%s11132_s1 + $0x1360] ss:$16 sps:$4 sm:$0xff]  }
 0x23c   :  { %5268 = vmatprep.subr.bf16.mxu0 %v8084_v52  ;;  %5801 = vmatprep.subr.bf16.mxu1 %v8087_v53  ;;  %v8157_v52 = vld [vmem:[%s11132_s1 + $0x1368] ss:$16 sps:$4 sm:$0xff]   ;;  %v8162_v53 = vld [vmem:[%s11132_s1 + $0x1384] ss:$16 sps:$4 sm:$0xff]  }
 0x23f   :  { %5269 = vmatpush1.bf16.msra.mxu0 %v8082_v55  ;;  %5802 = vmatpush1.bf16.msra.mxu1 %v8085_v56  ;;  %v8160_v55 = vld [vmem:[%s11132_s1 + $0x1380] ss:$16 sps:$4 sm:$0xff]   ;;  %v8163_v56 = vld [vmem:[%s11132_s1 + $0x1388] ss:$16 sps:$4 sm:$0xff]  }
 0x240   :  { %5279 = vmatprep.subr.bf16.mxu0 %v8090_v57  ;;  %5812 = vmatprep.subr.bf16.mxu1 %v8093_v58  ;;  %v8168_v57 = vld [vmem:[%s11132_s1 + $0x13a4] ss:$16 sps:$4 sm:$0xff]   ;;  %v8171_v58 = vld [vmem:[%s11132_s1 + $0x13ac] ss:$16 sps:$4 sm:$0xff]  }
 0x242   :  { %5271 = vmatmul.mubr.bf16.vlgmr.msra.gmra.mrb[0].mxu0 %v171_v60  ;;  %5804 = vmatmul.mubr.bf16.vlgmr.msra.gmra.mrb[0].mxu1 %v171_v60  ;;  %v8169_v60 = vld [vmem:[%s11132_s1 + $0x13a8] ss:$16 sps:$4 sm:$0xff]  }
 0x243   :  { %5280 = vmatpush1.bf16.msra.mxu0 %v8088_v61  ;;  %5813 = vmatpush1.bf16.msra.mxu1 %v8091_v62  ;;  %v8174_v61 = vld [vmem:[%s11132_s1 + $0x13c4] ss:$16 sps:$4 sm:$0xff]   ;;  %v8177_v62 = vld [vmem:[%s11132_s1 + $0x13cc] ss:$16 sps:$4 sm:$0xff]  }
 0x244   :  { %5281 = vmatprep.subr.bf16.mxu0 %v8096_v63  ;;  %5814 = vmatprep.subr.bf16.mxu1 %v8099_v0  ;;  %v8172_v63 = vld [vmem:[%s11132_s1 + $0x13c0] ss:$16 sps:$4 sm:$0xff]   ;;  %v8175_v0 = vld [vmem:[%s11132_s1 + $0x13c8] ss:$16 sps:$4 sm:$0xff]  }
 0x245   :  { %5311 = vmatprep.mubr.bf16.mxu0 %v174_v2  ;;  %5844 = vmatprep.mubr.bf16.mxu1 %v174_v2  ;;  %v8180_v2 = vld [vmem:[%s11132_s1 + $0x13e4] ss:$16 sps:$4 sm:$0xff]  }
 0x247   :  { %5282 = vmatpush1.bf16.msra.mxu0 %v8094_v3  ;;  %5815 = vmatpush1.bf16.msra.mxu1 %v8097_v4  ;;  %v8183_v3 = vld [vmem:[%s11132_s1 + $0x13ec] ss:$16 sps:$4 sm:$0xff]   ;;  %v105_v4 = vrot.slane %v10070_v41, %v8851_v12 }
 0x248   :  { %5283 = vmatprep.subr.bf16.mxu0 %v8102_v44  ;;  %5816 = vmatprep.subr.bf16.mxu1 %v8105_v6  ;;  %v8178_v44 = vld [vmem:[%s11132_s1 + $0x13e0] ss:$16 sps:$4 sm:$0xff]   ;;  %v8181_v6 = vld [vmem:[%s11132_s1 + $0x13e8] ss:$16 sps:$4 sm:$0xff]  }
 0x24b   :  { %5284 = vmatpush1.bf16.msra.mxu0 %v8100_v8  ;;  %5817 = vmatpush1.bf16.msra.mxu1 %v8103_v9  ;;  %v8186_v8 = vld [vmem:[%s11132_s1 + $0x1404] ss:$16 sps:$4 sm:$0xff]   ;;  %v8189_v9 = vld [vmem:[%s11132_s1 + $0x140c] ss:$16 sps:$4 sm:$0xff]  }
 0x24c   :  { %5285 = vmatprep.subr.bf16.mxu0 %v8108_v10  ;;  %5818 = vmatprep.subr.bf16.mxu1 %v8111_v11  ;;  %v117_v10 = vrot.slane %v10070_v41, %v8863_v16  ;;  %v173_v11 = vpack.c.bf16 %v105_v4, %v105_v4  ;;  %v8195_v16 = vld [vmem:[%s11132_s1 + $0x142c] ss:$16 sps:$4 sm:$0xff]   ;;  %v8256_v4 = vld [vmem:[%s11132_s1 + $0x1580] ss:$16 sps:$4 sm:$0xff]  }
 0x24f   :  { %5286 = vmatpush1.bf16.msra.mxu0 %v8106_v13  ;;  %5819 = vmatpush1.bf16.msra.mxu1 %v8109_v14  ;;  %v8184_v13 = vld [vmem:[%s11132_s1 + $0x1400] ss:$16 sps:$4 sm:$0xff]   ;;  %v8187_v14 = vld [vmem:[%s11132_s1 + $0x1408] ss:$16 sps:$4 sm:$0xff]  }
 0x250   :  { %5287 = vmatprep.subr.bf16.mxu0 %v8114_v15  ;;  %5820 = vmatprep.subr.bf16.mxu1 %v8117_v17  ;;  %v8192_v15 = vld [vmem:[%s11132_s1 + $0x1424] ss:$16 sps:$4 sm:$0xff]   ;;  %v176_v17 = vpack.c.bf16 %v117_v10, %v117_v10  ;;  %v8265_v10 = vld [vmem:[%s11132_s1 + $0x15a8] ss:$16 sps:$4 sm:$0xff]  }
 0x253   :  { %5288 = vmatpush1.bf16.msra.mxu0 %v8112_v18  ;;  %5821 = vmatpush1.bf16.msra.mxu1 %v8115_v19  ;;  %v8190_v18 = vld [vmem:[%s11132_s1 + $0x1420] ss:$16 sps:$4 sm:$0xff]   ;;  %v8193_v19 = vld [vmem:[%s11132_s1 + $0x1428] ss:$16 sps:$4 sm:$0xff]  }
 0x254   :  { %5289 = vmatprep.subr.bf16.mxu0 %v8120_v20  ;;  %5822 = vmatprep.subr.bf16.mxu1 %v8123_v21  ;;  %v8198_v20 = vld [vmem:[%s11132_s1 + $0x1444] ss:$16 sps:$4 sm:$0xff]   ;;  %v8201_v21 = vld [vmem:[%s11132_s1 + $0x144c] ss:$16 sps:$4 sm:$0xff]  }
 0x257   :  { %5290 = vmatpush1.bf16.msra.mxu0 %v8118_v22  ;;  %5823 = vmatpush1.bf16.msra.mxu1 %v8121_v23  ;;  %v8196_v22 = vld [vmem:[%s11132_s1 + $0x1440] ss:$16 sps:$4 sm:$0xff]   ;;  %v8199_v23 = vld [vmem:[%s11132_s1 + $0x1448] ss:$16 sps:$4 sm:$0xff]  }
 0x258   :  { %5291 = vmatprep.subr.bf16.mxu0 %v8126_v25  ;;  %5824 = vmatprep.subr.bf16.mxu1 %v8129_v26  ;;  %v8204_v25 = vld [vmem:[%s11132_s1 + $0x1464] ss:$16 sps:$4 sm:$0xff]   ;;  %v8207_v26 = vld [vmem:[%s11132_s1 + $0x146c] ss:$16 sps:$4 sm:$0xff]  }
 0x25b   :  { %5292 = vmatpush1.bf16.msra.mxu0 %v8124_v49  ;;  %5825 = vmatpush1.bf16.msra.mxu1 %v8127_v28  ;;  %v8202_v49 = vld [vmem:[%s11132_s1 + $0x1460] ss:$16 sps:$4 sm:$0xff]   ;;  %v8205_v28 = vld [vmem:[%s11132_s1 + $0x1468] ss:$16 sps:$4 sm:$0xff]  }
 0x25c   :  { %5293 = vmatprep.subr.bf16.mxu0 %v8132_v30  ;;  %5826 = vmatprep.subr.bf16.mxu1 %v8135_v31  ;;  %v8210_v30 = vld [vmem:[%s11132_s1 + $0x1484] ss:$16 sps:$4 sm:$0xff]   ;;  %v8213_v31 = vld [vmem:[%s11132_s1 + $0x148c] ss:$16 sps:$4 sm:$0xff]  }
 0x25f   :  { %5294 = vmatpush1.bf16.msra.mxu0 %v8130_v32  ;;  %5827 = vmatpush1.bf16.msra.mxu1 %v8133_v33  ;;  %v8208_v32 = vld [vmem:[%s11132_s1 + $0x1480] ss:$16 sps:$4 sm:$0xff]   ;;  %v8211_v33 = vld [vmem:[%s11132_s1 + $0x1488] ss:$16 sps:$4 sm:$0xff]  }
 0x260   :  { %5295 = vmatprep.subr.bf16.mxu0 %v8138_v34  ;;  %5828 = vmatprep.subr.bf16.mxu1 %v8141_v35  ;;  %v8216_v34 = vld [vmem:[%s11132_s1 + $0x14a4] ss:$16 sps:$4 sm:$0xff]   ;;  %v8219_v35 = vld [vmem:[%s11132_s1 + $0x14ac] ss:$16 sps:$4 sm:$0xff]  }
 0x263   :  { %5296 = vmatpush1.bf16.msra.mxu0 %v8136_v36  ;;  %5829 = vmatpush1.bf16.msra.mxu1 %v8139_v37  ;;  %v8214_v36 = vld [vmem:[%s11132_s1 + $0x14a0] ss:$16 sps:$4 sm:$0xff]   ;;  %v8217_v37 = vld [vmem:[%s11132_s1 + $0x14a8] ss:$16 sps:$4 sm:$0xff]  }
 0x264   :  { %5297 = vmatprep.subr.bf16.mxu0 %v8144_v39  ;;  %5830 = vmatprep.subr.bf16.mxu1 %v8147_v42  ;;  %v8222_v39 = vld [vmem:[%s11132_s1 + $0x14c4] ss:$16 sps:$4 sm:$0xff]   ;;  %v8225_v42 = vld [vmem:[%s11132_s1 + $0x14cc] ss:$16 sps:$4 sm:$0xff]  }
 0x267   :  { %5298 = vmatpush1.bf16.msra.mxu0 %v8142_v40  ;;  %5831 = vmatpush1.bf16.msra.mxu1 %v8145_v7  ;;  %v8220_v40 = vld [vmem:[%s11132_s1 + $0x14c0] ss:$16 sps:$4 sm:$0xff]   ;;  %v8223_v7 = vld [vmem:[%s11132_s1 + $0x14c8] ss:$16 sps:$4 sm:$0xff]  }
 0x268   :  { %5299 = vmatprep.subr.bf16.mxu0 %v8150_v43  ;;  %5832 = vmatprep.subr.bf16.mxu1 %v8153_v45  ;;  %v8228_v43 = vld [vmem:[%s11132_s1 + $0x14e4] ss:$16 sps:$4 sm:$0xff]   ;;  %v8231_v45 = vld [vmem:[%s11132_s1 + $0x14ec] ss:$16 sps:$4 sm:$0xff]  }
 0x26b   :  { %5300 = vmatpush1.bf16.msra.mxu0 %v8148_v47  ;;  %5833 = vmatpush1.bf16.msra.mxu1 %v8151_v29  ;;  %v8226_v47 = vld [vmem:[%s11132_s1 + $0x14e0] ss:$16 sps:$4 sm:$0xff]   ;;  %v8229_v29 = vld [vmem:[%s11132_s1 + $0x14e8] ss:$16 sps:$4 sm:$0xff]  }
 0x26c   :  { %5301 = vmatprep.subr.bf16.mxu0 %v8156_v48  ;;  %5834 = vmatprep.subr.bf16.mxu1 %v8159_v50  ;;  %v8234_v48 = vld [vmem:[%s11132_s1 + $0x1504] ss:$16 sps:$4 sm:$0xff]   ;;  %v8237_v50 = vld [vmem:[%s11132_s1 + $0x150c] ss:$16 sps:$4 sm:$0xff]  }
 0x26f   :  { %5302 = vmatpush1.bf16.msra.mxu0 %v8154_v51  ;;  %5835 = vmatpush1.bf16.msra.mxu1 %v8157_v52  ;;  %v8232_v51 = vld [vmem:[%s11132_s1 + $0x1500] ss:$16 sps:$4 sm:$0xff]   ;;  %v8235_v52 = vld [vmem:[%s11132_s1 + $0x1508] ss:$16 sps:$4 sm:$0xff]  }
 0x270   :  { %5303 = vmatprep.subr.bf16.mxu0 %v8162_v53  ;;  %5836 = vmatprep.subr.bf16.mxu1 %v8165_v54  ;;  %v8240_v53 = vld [vmem:[%s11132_s1 + $0x1524] ss:$16 sps:$4 sm:$0xff]   ;;  %v8243_v54 = vld [vmem:[%s11132_s1 + $0x152c] ss:$16 sps:$4 sm:$0xff]  }
 0x273   :  { %5304 = vmatpush1.bf16.msra.mxu0 %v8160_v55  ;;  %5837 = vmatpush1.bf16.msra.mxu1 %v8163_v56  ;;  %v8238_v55 = vld [vmem:[%s11132_s1 + $0x1520] ss:$16 sps:$4 sm:$0xff]   ;;  %v8241_v56 = vld [vmem:[%s11132_s1 + $0x1528] ss:$16 sps:$4 sm:$0xff]  }
 0x274   :  { %5305 = vmatprep.subr.bf16.mxu0 %v8168_v57  ;;  %5838 = vmatprep.subr.bf16.mxu1 %v8171_v58  ;;  %v8246_v57 = vld [vmem:[%s11132_s1 + $0x1544] ss:$16 sps:$4 sm:$0xff]   ;;  %v8249_v58 = vld [vmem:[%s11132_s1 + $0x154c] ss:$16 sps:$4 sm:$0xff]  }
 0x277   :  { %5306 = vmatpush1.bf16.msra.mxu0 %v8166_v59  ;;  %5839 = vmatpush1.bf16.msra.mxu1 %v8169_v60  ;;  %v8244_v59 = vld [vmem:[%s11132_s1 + $0x1540] ss:$16 sps:$4 sm:$0xff]   ;;  %v8247_v60 = vld [vmem:[%s11132_s1 + $0x1548] ss:$16 sps:$4 sm:$0xff]  }
 0x278   :  { %5307 = vmatprep.subr.bf16.mxu0 %v8174_v61  ;;  %5840 = vmatprep.subr.bf16.mxu1 %v8177_v62  ;;  %v8252_v61 = vld [vmem:[%s11132_s1 + $0x1564] ss:$16 sps:$4 sm:$0xff]   ;;  %v8255_v62 = vld [vmem:[%s11132_s1 + $0x156c] ss:$16 sps:$4 sm:$0xff]  }
 0x27b   :  { %5308 = vmatpush1.bf16.msra.mxu0 %v8172_v63  ;;  %5841 = vmatpush1.bf16.msra.mxu1 %v8175_v0  ;;  %v8250_v63 = vld [vmem:[%s11132_s1 + $0x1560] ss:$16 sps:$4 sm:$0xff]   ;;  %v8253_v0 = vld [vmem:[%s11132_s1 + $0x1568] ss:$16 sps:$4 sm:$0xff]  }
 0x27c   :  { %5309 = vmatprep.subr.bf16.mxu0 %v8180_v2  ;;  %5842 = vmatprep.subr.bf16.mxu1 %v8183_v3  ;;  %v8258_v2 = vld [vmem:[%s11132_s1 + $0x1584] ss:$16 sps:$4 sm:$0xff]   ;;  %v8261_v3 = vld [vmem:[%s11132_s1 + $0x158c] ss:$16 sps:$4 sm:$0xff]  }
 0x27f   :  { %5310 = vmatpush1.bf16.msra.mxu0 %v8178_v44  ;;  %5843 = vmatpush1.bf16.msra.mxu1 %v8181_v6  ;;  %v8259_v44 = vld [vmem:[%s11132_s1 + $0x1588] ss:$16 sps:$4 sm:$0xff]   ;;  %v8264_v6 = vld [vmem:[%s11132_s1 + $0x15a4] ss:$16 sps:$4 sm:$0xff]  }
 0x280   :  { %5320 = vmatprep.subr.bf16.mxu0 %v8186_v8  ;;  %5853 = vmatprep.subr.bf16.mxu1 %v8189_v9  ;;  %v8267_v8 = vld [vmem:[%s11132_s1 + $0x15ac] ss:$16 sps:$4 sm:$0xff]   ;;  %v8262_v9 = vld [vmem:[%s11132_s1 + $0x15a0] ss:$16 sps:$4 sm:$0xff]  }
 0x282   :  { %5312 = vmatmul.mubr.bf16.vlgmr.msra.gmra.mrb[0].mxu0 %v173_v11  ;;  %5845 = vmatmul.mubr.bf16.vlgmr.msra.gmra.mrb[0].mxu1 %v173_v11  ;;  %v8270_v11 = vld [vmem:[%s11132_s1 + $0x15c4] ss:$16 sps:$4 sm:$0xff]  }
 0x283   :  { %5321 = vmatpush1.bf16.msra.mxu0 %v8184_v13  ;;  %5854 = vmatpush1.bf16.msra.mxu1 %v8187_v14  ;;  %v8273_v13 = vld [vmem:[%s11132_s1 + $0x15cc] ss:$16 sps:$4 sm:$0xff]   ;;  %v8268_v14 = vld [vmem:[%s11132_s1 + $0x15c0] ss:$16 sps:$4 sm:$0xff]  }
 0x284   :  { %5322 = vmatprep.subr.bf16.mxu0 %v8192_v15  ;;  %5855 = vmatprep.subr.bf16.mxu1 %v8195_v16  ;;  %v8271_v15 = vld [vmem:[%s11132_s1 + $0x15c8] ss:$16 sps:$4 sm:$0xff]   ;;  %v8276_v16 = vld [vmem:[%s11132_s1 + $0x15e4] ss:$16 sps:$4 sm:$0xff]  }
 0x285   :  { %5352 = vmatprep.mubr.bf16.mxu0 %v176_v17  ;;  %5885 = vmatprep.mubr.bf16.mxu1 %v176_v17  ;;  %v8279_v17 = vld [vmem:[%s11132_s1 + $0x15ec] ss:$16 sps:$4 sm:$0xff]  }
 0x287   :  { %5323 = vmatpush1.bf16.msra.mxu0 %v8190_v18  ;;  %5856 = vmatpush1.bf16.msra.mxu1 %v8193_v19  ;;  %v113_v18 = vrot.slane %v10070_v41, %v9053_v24  ;;  %v8274_v19 = vld [vmem:[%s11132_s1 + $0x15e0] ss:$16 sps:$4 sm:$0xff]   ;;  %v8285_v24 = vld [vmem:[%s11132_s1 + $0x160c] ss:$16 sps:$4 sm:$0xff]  }
 0x288   :  { %5324 = vmatprep.subr.bf16.mxu0 %v8198_v20  ;;  %5857 = vmatprep.subr.bf16.mxu1 %v8201_v21  ;;  %v8277_v20 = vld [vmem:[%s11132_s1 + $0x15e8] ss:$16 sps:$4 sm:$0xff]   ;;  %v8282_v21 = vld [vmem:[%s11132_s1 + $0x1604] ss:$16 sps:$4 sm:$0xff]  }
 0x28b   :  { %5325 = vmatpush1.bf16.msra.mxu0 %v8196_v22  ;;  %5858 = vmatpush1.bf16.msra.mxu1 %v8199_v23  ;;  %v125_v22 = vrot.slane %v10070_v41, %v9065_v27  ;;  %v175_v23 = vpack.c.bf16 %v113_v18, %v113_v18  ;;  %v8291_v27 = vld [vmem:[%s11132_s1 + $0x162c] ss:$16 sps:$4 sm:$0xff]  }
 0x28c   :  { %5326 = vmatprep.subr.bf16.mxu0 %v8204_v25  ;;  %5859 = vmatprep.subr.bf16.mxu1 %v8207_v26  ;;  %v8280_v25 = vld [vmem:[%s11132_s1 + $0x1600] ss:$16 sps:$4 sm:$0xff]   ;;  %v8283_v26 = vld [vmem:[%s11132_s1 + $0x1608] ss:$16 sps:$4 sm:$0xff]   ;;  %v8363_v18 = vld [vmem:[%s11132_s1 + $0x17ac] ss:$16 sps:$4 sm:$0xff]  }
 0x28d   :  { %v178_v41 = vpack.c.bf16 %v125_v22, %v125_v22  ;;  %v8364_v22 = vld [vmem:[%s11132_s1 + $0x17c0] ss:$16 sps:$4 sm:$0xff]  }
 0x28f   :  { %5327 = vmatpush1.bf16.msra.mxu0 %v8202_v49  ;;  %5860 = vmatpush1.bf16.msra.mxu1 %v8205_v28  ;;  %v8288_v49 = vld [vmem:[%s11132_s1 + $0x1624] ss:$16 sps:$4 sm:$0xff]   ;;  %v8286_v28 = vld [vmem:[%s11132_s1 + $0x1620] ss:$16 sps:$4 sm:$0xff]  }
 0x290   :  { %5328 = vmatprep.subr.bf16.mxu0 %v8210_v30  ;;  %5861 = vmatprep.subr.bf16.mxu1 %v8213_v31  ;;  %v8289_v30 = vld [vmem:[%s11132_s1 + $0x1628] ss:$16 sps:$4 sm:$0xff]   ;;  %v8294_v31 = vld [vmem:[%s11132_s1 + $0x1644] ss:$16 sps:$4 sm:$0xff]  }
 0x293   :  { %5329 = vmatpush1.bf16.msra.mxu0 %v8208_v32  ;;  %5862 = vmatpush1.bf16.msra.mxu1 %v8211_v33  ;;  %v8297_v32 = vld [vmem:[%s11132_s1 + $0x164c] ss:$16 sps:$4 sm:$0xff]   ;;  %v8292_v33 = vld [vmem:[%s11132_s1 + $0x1640] ss:$16 sps:$4 sm:$0xff]  }
 0x294   :  { %5330 = vmatprep.subr.bf16.mxu0 %v8216_v34  ;;  %5863 = vmatprep.subr.bf16.mxu1 %v8219_v35  ;;  %v8295_v34 = vld [vmem:[%s11132_s1 + $0x1648] ss:$16 sps:$4 sm:$0xff]   ;;  %v8300_v35 = vld [vmem:[%s11132_s1 + $0x1664] ss:$16 sps:$4 sm:$0xff]  }
 0x297   :  { %5331 = vmatpush1.bf16.msra.mxu0 %v8214_v36  ;;  %5864 = vmatpush1.bf16.msra.mxu1 %v8217_v37  ;;  %v8303_v36 = vld [vmem:[%s11132_s1 + $0x166c] ss:$16 sps:$4 sm:$0xff]   ;;  %v8298_v37 = vld [vmem:[%s11132_s1 + $0x1660] ss:$16 sps:$4 sm:$0xff]  }
 0x298   :  { %5332 = vmatprep.subr.bf16.mxu0 %v8222_v39  ;;  %5865 = vmatprep.subr.bf16.mxu1 %v8225_v42  ;;  %v8301_v39 = vld [vmem:[%s11132_s1 + $0x1668] ss:$16 sps:$4 sm:$0xff]   ;;  %v8306_v42 = vld [vmem:[%s11132_s1 + $0x1684] ss:$16 sps:$4 sm:$0xff]  }
 0x29b   :  { %5333 = vmatpush1.bf16.msra.mxu0 %v8220_v40  ;;  %5866 = vmatpush1.bf16.msra.mxu1 %v8223_v7  ;;  %v8309_v40 = vld [vmem:[%s11132_s1 + $0x168c] ss:$16 sps:$4 sm:$0xff]   ;;  %v8304_v7 = vld [vmem:[%s11132_s1 + $0x1680] ss:$16 sps:$4 sm:$0xff]  }
 0x29c   :  { %5334 = vmatprep.subr.bf16.mxu0 %v8228_v43  ;;  %5867 = vmatprep.subr.bf16.mxu1 %v8231_v45  ;;  %v8307_v43 = vld [vmem:[%s11132_s1 + $0x1688] ss:$16 sps:$4 sm:$0xff]   ;;  %v8312_v45 = vld [vmem:[%s11132_s1 + $0x16a4] ss:$16 sps:$4 sm:$0xff]  }
 0x29f   :  { %5335 = vmatpush1.bf16.msra.mxu0 %v8226_v47  ;;  %5868 = vmatpush1.bf16.msra.mxu1 %v8229_v29  ;;  %v8315_v47 = vld [vmem:[%s11132_s1 + $0x16ac] ss:$16 sps:$4 sm:$0xff]   ;;  %v8310_v29 = vld [vmem:[%s11132_s1 + $0x16a0] ss:$16 sps:$4 sm:$0xff]  }
 0x2a0   :  { %5336 = vmatprep.subr.bf16.mxu0 %v8234_v48  ;;  %5869 = vmatprep.subr.bf16.mxu1 %v8237_v50  ;;  %v8313_v48 = vld [vmem:[%s11132_s1 + $0x16a8] ss:$16 sps:$4 sm:$0xff]   ;;  %v8318_v50 = vld [vmem:[%s11132_s1 + $0x16c4] ss:$16 sps:$4 sm:$0xff]  }
 0x2a3   :  { %5337 = vmatpush1.bf16.msra.mxu0 %v8232_v51  ;;  %5870 = vmatpush1.bf16.msra.mxu1 %v8235_v52  ;;  %v8321_v51 = vld [vmem:[%s11132_s1 + $0x16cc] ss:$16 sps:$4 sm:$0xff]   ;;  %v8316_v52 = vld [vmem:[%s11132_s1 + $0x16c0] ss:$16 sps:$4 sm:$0xff]  }
 0x2a4   :  { %5338 = vmatprep.subr.bf16.mxu0 %v8240_v53  ;;  %5871 = vmatprep.subr.bf16.mxu1 %v8243_v54  ;;  %v8319_v53 = vld [vmem:[%s11132_s1 + $0x16c8] ss:$16 sps:$4 sm:$0xff]   ;;  %v8324_v54 = vld [vmem:[%s11132_s1 + $0x16e4] ss:$16 sps:$4 sm:$0xff]  }
 0x2a7   :  { %5339 = vmatpush1.bf16.msra.mxu0 %v8238_v55  ;;  %5872 = vmatpush1.bf16.msra.mxu1 %v8241_v56  ;;  %v8327_v55 = vld [vmem:[%s11132_s1 + $0x16ec] ss:$16 sps:$4 sm:$0xff]   ;;  %v8322_v56 = vld [vmem:[%s11132_s1 + $0x16e0] ss:$16 sps:$4 sm:$0xff]  }
 0x2a8   :  { %5340 = vmatprep.subr.bf16.mxu0 %v8246_v57  ;;  %5873 = vmatprep.subr.bf16.mxu1 %v8249_v58  ;;  %v8325_v57 = vld [vmem:[%s11132_s1 + $0x16e8] ss:$16 sps:$4 sm:$0xff]   ;;  %v8330_v58 = vld [vmem:[%s11132_s1 + $0x1704] ss:$16 sps:$4 sm:$0xff]  }
 0x2ab   :  { %5341 = vmatpush1.bf16.msra.mxu0 %v8244_v59  ;;  %5874 = vmatpush1.bf16.msra.mxu1 %v8247_v60  ;;  %v8333_v59 = vld [vmem:[%s11132_s1 + $0x170c] ss:$16 sps:$4 sm:$0xff]   ;;  %v8328_v60 = vld [vmem:[%s11132_s1 + $0x1700] ss:$16 sps:$4 sm:$0xff]  }
 0x2ac   :  { %5342 = vmatprep.subr.bf16.mxu0 %v8252_v61  ;;  %5875 = vmatprep.subr.bf16.mxu1 %v8255_v62  ;;  %v8331_v61 = vld [vmem:[%s11132_s1 + $0x1708] ss:$16 sps:$4 sm:$0xff]   ;;  %v8336_v62 = vld [vmem:[%s11132_s1 + $0x1724] ss:$16 sps:$4 sm:$0xff]  }
 0x2af   :  { %5343 = vmatpush1.bf16.msra.mxu0 %v8250_v63  ;;  %5876 = vmatpush1.bf16.msra.mxu1 %v8253_v0  ;;  %v8339_v63 = vld [vmem:[%s11132_s1 + $0x172c] ss:$16 sps:$4 sm:$0xff]   ;;  %v8334_v0 = vld [vmem:[%s11132_s1 + $0x1720] ss:$16 sps:$4 sm:$0xff]  }
 0x2b0   :  { %5344 = vmatprep.subr.bf16.mxu0 %v8258_v2  ;;  %5877 = vmatprep.subr.bf16.mxu1 %v8261_v3  ;;  %v8337_v2 = vld [vmem:[%s11132_s1 + $0x1728] ss:$16 sps:$4 sm:$0xff]   ;;  %v8342_v3 = vld [vmem:[%s11132_s1 + $0x1744] ss:$16 sps:$4 sm:$0xff]  }
 0x2b3   :  { %5345 = vmatpush1.bf16.msra.mxu0 %v8256_v4  ;;  %5878 = vmatpush1.bf16.msra.mxu1 %v8259_v44  ;;  %v8345_v4 = vld [vmem:[%s11132_s1 + $0x174c] ss:$16 sps:$4 sm:$0xff]   ;;  %v8340_v44 = vld [vmem:[%s11132_s1 + $0x1740] ss:$16 sps:$4 sm:$0xff]  }
 0x2b4   :  { %5346 = vmatprep.subr.bf16.mxu0 %v8264_v6  ;;  %5879 = vmatprep.subr.bf16.mxu1 %v8267_v8  ;;  %v8343_v6 = vld [vmem:[%s11132_s1 + $0x1748] ss:$16 sps:$4 sm:$0xff]   ;;  %v8348_v8 = vld [vmem:[%s11132_s1 + $0x1764] ss:$16 sps:$4 sm:$0xff]  }
 0x2b7   :  { %5347 = vmatpush1.bf16.msra.mxu0 %v8262_v9  ;;  %5880 = vmatpush1.bf16.msra.mxu1 %v8265_v10  ;;  %v8351_v9 = vld [vmem:[%s11132_s1 + $0x176c] ss:$16 sps:$4 sm:$0xff]   ;;  %v8346_v10 = vld [vmem:[%s11132_s1 + $0x1760] ss:$16 sps:$4 sm:$0xff]  }
 0x2b8   :  { %5348 = vmatprep.subr.bf16.mxu0 %v8270_v11  ;;  %5881 = vmatprep.subr.bf16.mxu1 %v8273_v13  ;;  %v8349_v11 = vld [vmem:[%s11132_s1 + $0x1768] ss:$16 sps:$4 sm:$0xff]   ;;  %v8354_v13 = vld [vmem:[%s11132_s1 + $0x1784] ss:$16 sps:$4 sm:$0xff]  }
 0x2bb   :  { %5349 = vmatpush1.bf16.msra.mxu0 %v8268_v14  ;;  %5882 = vmatpush1.bf16.msra.mxu1 %v8271_v15  ;;  %v8357_v14 = vld [vmem:[%s11132_s1 + $0x178c] ss:$16 sps:$4 sm:$0xff]   ;;  %v8352_v15 = vld [vmem:[%s11132_s1 + $0x1780] ss:$16 sps:$4 sm:$0xff]  }
 0x2bc   :  { %5350 = vmatprep.subr.bf16.mxu0 %v8276_v16  ;;  %5883 = vmatprep.subr.bf16.mxu1 %v8279_v17  ;;  %v8355_v16 = vld [vmem:[%s11132_s1 + $0x1788] ss:$16 sps:$4 sm:$0xff]   ;;  %v8360_v17 = vld [vmem:[%s11132_s1 + $0x17a4] ss:$16 sps:$4 sm:$0xff]  }
 0x2bf   :  { %5351 = vmatpush1.bf16.msra.mxu0 %v8274_v19  ;;  %5884 = vmatpush1.bf16.msra.mxu1 %v8277_v20  ;;  %v8358_v19 = vld [vmem:[%s11132_s1 + $0x17a0] ss:$16 sps:$4 sm:$0xff]   ;;  %v8361_v20 = vld [vmem:[%s11132_s1 + $0x17a8] ss:$16 sps:$4 sm:$0xff]  }
 0x2c0   :  { %5361 = vmatprep.subr.bf16.mxu0 %v8282_v21  ;;  %5894 = vmatprep.subr.bf16.mxu1 %v8285_v24  ;;  %v8366_v21 = vld [vmem:[%s11132_s1 + $0x17c4] ss:$16 sps:$4 sm:$0xff]   ;;  %v8369_v24 = vld [vmem:[%s11132_s1 + $0x17cc] ss:$16 sps:$4 sm:$0xff]  }
 0x2c2   :  { %5353 = vmatmul.mubr.bf16.vlgmr.msra.gmra.mrb[0].mxu0 %v175_v23  ;;  %5886 = vmatmul.mubr.bf16.vlgmr.msra.gmra.mrb[0].mxu1 %v175_v23  ;;  %v8367_v23 = vld [vmem:[%s11132_s1 + $0x17c8] ss:$16 sps:$4 sm:$0xff]  }
 0x2c3   :  { %5362 = vmatpush1.bf16.msra.mxu0 %v8280_v25  ;;  %5895 = vmatpush1.bf16.msra.mxu1 %v8283_v26  ;;  %v8372_v25 = vld [vmem:[%s11132_s1 + $0x17e4] ss:$16 sps:$4 sm:$0xff]   ;;  %v8375_v26 = vld [vmem:[%s11132_s1 + $0x17ec] ss:$16 sps:$4 sm:$0xff]  }
 0x2c4   :  { %5363 = vmatprep.subr.bf16.mxu0 %v8288_v49  ;;  %5896 = vmatprep.subr.bf16.mxu1 %v8291_v27  ;;  %v8402_v49 = vld [vmem:[%s11131_s0 + $0x10] sm:$0xff] }
 0x2c5   :  { %5393 = vmatprep.mubr.bf16.mxu0 %v178_v41  ;;  %5926 = vmatprep.mubr.bf16.mxu1 %v178_v41  ;;  %v121_v27 = vrot.slane %v8402_v49, %v9257_v38  ;;  %v8370_v41 = vld [vmem:[%s11132_s1 + $0x17e0] ss:$16 sps:$4 sm:$0xff]   ;;  %v8381_v38 = vld [vmem:[%s11132_s1 + $0x180c] ss:$16 sps:$4 sm:$0xff]  }
 0x2c6   :  { %v6034_v49 = vld [vmem:[%s11134_s3 + $0x1b0] sm:$0xff] }
 0x2c7   :  { %5364 = vmatpush1.bf16.msra.mxu0 %v8286_v28  ;;  %5897 = vmatpush1.bf16.msra.mxu1 %v8289_v30  ;;  %v8373_v28 = vld [vmem:[%s11132_s1 + $0x17e8] ss:$16 sps:$4 sm:$0xff]   ;;  %v8378_v30 = vld [vmem:[%s11132_s1 + $0x1804] ss:$16 sps:$4 sm:$0xff]  }
 0x2c8   :  { %5365 = vmatprep.subr.bf16.mxu0 %v8294_v31  ;;  %5898 = vmatprep.subr.bf16.mxu1 %v8297_v32  ;;  %v177_v31 = vpack.c.bf16 %v121_v27, %v121_v27  ;;  %v8376_v32 = vld [vmem:[%s11132_s1 + $0x1800] ss:$16 sps:$4 sm:$0xff]   ;;  %v6035_v27 = vld [vmem:[%s11134_s3 + $0x1b8] sm:$0xff] }
 0x2cb   :  { %5366 = vmatpush1.bf16.msra.mxu0 %v8292_v33  ;;  %5899 = vmatpush1.bf16.msra.mxu1 %v8295_v34  ;;  %v8379_v33 = vld [vmem:[%s11132_s1 + $0x1808] ss:$16 sps:$4 sm:$0xff]   ;;  %v8384_v34 = vld [vmem:[%s11132_s1 + $0x1824] ss:$16 sps:$4 sm:$0xff]  }
 0x2cc   :  { %5367 = vmatprep.subr.bf16.mxu0 %v8300_v35  ;;  %5900 = vmatprep.subr.bf16.mxu1 %v8303_v36  ;;  %v8387_v35 = vld [vmem:[%s11132_s1 + $0x182c] ss:$16 sps:$4 sm:$0xff]   ;;  %v8382_v36 = vld [vmem:[%s11132_s1 + $0x1820] ss:$16 sps:$4 sm:$0xff]  }
 0x2cf   :  { %5368 = vmatpush1.bf16.msra.mxu0 %v8298_v37  ;;  %5901 = vmatpush1.bf16.msra.mxu1 %v8301_v39  ;;  %v8385_v37 = vld [vmem:[%s11132_s1 + $0x1828] ss:$16 sps:$4 sm:$0xff]   ;;  %v8390_v39 = vld [vmem:[%s11132_s1 + $0x1844] ss:$16 sps:$4 sm:$0xff]  }
 0x2d0   :  { %5369 = vmatprep.subr.bf16.mxu0 %v8306_v42  ;;  %5902 = vmatprep.subr.bf16.mxu1 %v8309_v40  ;;  %v8393_v42 = vld [vmem:[%s11132_s1 + $0x184c] ss:$16 sps:$4 sm:$0xff]   ;;  %v8427_v40 = vmov 0  }
 0x2d3   :  { %5370 = vmatpush1.bf16.msra.mxu0 %v8304_v7  ;;  %5903 = vmatpush1.bf16.msra.mxu1 %v8307_v43  ;;  %v8388_v7 = vld [vmem:[%s11132_s1 + $0x1840] ss:$16 sps:$4 sm:$0xff]   ;;  %v8391_v43 = vld [vmem:[%s11132_s1 + $0x1848] ss:$16 sps:$4 sm:$0xff]  }
 0x2d4   :  { %5371 = vmatprep.subr.bf16.mxu0 %v8312_v45  ;;  %5904 = vmatprep.subr.bf16.mxu1 %v8315_v47  ;;  %v8396_v45 = vld [vmem:[%s11132_s1 + $0x1864] ss:$16 sps:$4 sm:$0xff]   ;;  %v8399_v47 = vld [vmem:[%s11132_s1 + $0x186c] ss:$16 sps:$4 sm:$0xff]  }
 0x2d7   :  { %5372 = vmatpush1.bf16.msra.mxu0 %v8310_v29  ;;  %5905 = vmatpush1.bf16.msra.mxu1 %v8313_v48  ;;  %v5996_v29 = vld [vmem:[%s11134_s3 + $0x80] sm:$0xff]  ;;  %v5997_v48 = vld [vmem:[%s11134_s3 + $0x88] sm:$0xff] }
 0x2d8   :  { %5373 = vmatprep.subr.bf16.mxu0 %v8318_v50  ;;  %5906 = vmatprep.subr.bf16.mxu1 %v8321_v51  ;;  %v6028_v50 = vld [vmem:[%s11134_s3 + $0x180] sm:$0xff]  ;;  %v6029_v51 = vld [vmem:[%s11134_s3 + $0x188] sm:$0xff] }
 0x2db   :  { %5374 = vmatpush1.bf16.msra.mxu0 %v8316_v52  ;;  %5907 = vmatpush1.bf16.msra.mxu1 %v8319_v53  ;;  %v8394_v52 = vld [vmem:[%s11132_s1 + $0x1860] ss:$16 sps:$4 sm:$0xff]   ;;  %v8397_v53 = vld [vmem:[%s11132_s1 + $0x1868] ss:$16 sps:$4 sm:$0xff]  }
 0x2dc   :  { %5375 = vmatprep.subr.bf16.mxu0 %v8324_v54  ;;  %5908 = vmatprep.subr.bf16.mxu1 %v8327_v55  ;;  %v6201_v54 = vld [vmem:[%s11131_s0 + $0x18] ss:$0 sm:$0xff]  ;;  %v5980_v55 = vld [vmem:[%s11134_s3] sm:$0xff] }
 0x2df   :  { %5376 = vmatpush1.bf16.msra.mxu0 %v8322_v56  ;;  %5909 = vmatpush1.bf16.msra.mxu1 %v8325_v57  ;;  %v5981_v56 = vld [vmem:[%s11134_s3 + $0x8] sm:$0xff]  ;;  %v7058_v57 = vpack.c.bf16 %v5997_v48, %v5996_v29  ;;  %v6020_v29 = vld [vmem:[%s11134_s3 + $0x140] sm:$0xff] }
 0x2e0   :  { %5377 = vmatprep.subr.bf16.mxu0 %v8330_v58  ;;  %5910 = vmatprep.subr.bf16.mxu1 %v8333_v59  ;;  %v7090_v58 = vpack.c.bf16 %v6029_v51, %v6028_v50  ;;  %v6012_v59 = vld [vmem:[%s11134_s3 + $0x100] sm:$0xff]  ;;  %v6021_v48 = vld [vmem:[%s11134_s3 + $0x148] sm:$0xff]  ;;  %v6006_v50 = vld [vmem:[%s11134_s3 + $0xd0] sm:$0xff] }
 0x2e1   :  { %v6007_v51 = vld [vmem:[%s11134_s3 + $0xd8] sm:$0xff] }
 0x2e3   :  { %5378 = vmatpush1.bf16.msra.mxu0 %v8328_v60  ;;  %5911 = vmatpush1.bf16.msra.mxu1 %v8331_v61  ;;  %v6013_v60 = vld [vmem:[%s11134_s3 + $0x108] sm:$0xff]  ;;  %v5998_v61 = vld [vmem:[%s11134_s3 + $0x90] sm:$0xff] }
 0x2e4   :  { %5379 = vmatprep.subr.bf16.mxu0 %v8336_v62  ;;  %5912 = vmatprep.subr.bf16.mxu1 %v8339_v63  ;;  %v5999_v62 = vld [vmem:[%s11134_s3 + $0x98] sm:$0xff]  ;;  %v6030_v63 = vld [vmem:[%s11134_s3 + $0x190] sm:$0xff] }
 0x2e7   :  { %5380 = vmatpush1.bf16.msra.mxu0 %v8334_v0  ;;  %5913 = vmatpush1.bf16.msra.mxu1 %v8337_v2  ;;  %v6031_v0 = vld [vmem:[%s11134_s3 + $0x198] sm:$0xff]  ;;  %v179_v2 = vpack.c.bf16 %v6201_v54, %v6201_v54 }
 0x2e8   :  { %5381 = vmatprep.subr.bf16.mxu0 %v8342_v3  ;;  %5914 = vmatprep.subr.bf16.mxu1 %v8345_v4  ;;  %v7060_v3 = vpack.c.bf16 %v5981_v56, %v5980_v55  ;;  %v7092_v4 = vpack.c.bf16 %v6013_v60, %v6012_v59  ;;  %v7108_v55 = vpack.c.bf16 %v6021_v48, %v6020_v29  ;;  %v5990_v56 = vld [vmem:[%s11134_s3 + $0x50] sm:$0xff] }
 0x2e9   :  { %v6022_v60 = vld [vmem:[%s11134_s3 + $0x150] sm:$0xff] }
 0x2eb   :  { %5382 = vmatpush1.bf16.msra.mxu0 %v8340_v44  ;;  %5915 = vmatpush1.bf16.msra.mxu1 %v8343_v6  ;;  %v5982_v44 = vld [vmem:[%s11134_s3 + $0x10] sm:$0xff]  ;;  %v5983_v6 = vld [vmem:[%s11134_s3 + $0x18] sm:$0xff] }
 0x2ec   :  { %5383 = vmatprep.subr.bf16.mxu0 %v8348_v8  ;;  %5916 = vmatprep.subr.bf16.mxu1 %v8351_v9  ;;  %v7062_v8 = vpack.c.bf16 %v5999_v62, %v5998_v61  ;;  %v7094_v9 = vpack.c.bf16 %v6031_v0, %v6030_v63  ;;  %v6023_v61 = vld [vmem:[%s11134_s3 + $0x158] sm:$0xff]  ;;  %v6008_v62 = vld [vmem:[%s11134_s3 + $0xe0] sm:$0xff]  ;;  %v6009_v63 = vld [vmem:[%s11134_s3 + $0xe8] sm:$0xff] }
 0x2ed   :  { %v6040_v0 = vld [vmem:[%s11134_s3 + $0x1e0] sm:$0xff] }
 0x2ef   :  { %5384 = vmatpush1.bf16.msra.mxu0 %v8346_v10  ;;  %5917 = vmatpush1.bf16.msra.mxu1 %v8349_v11  ;;  %v6014_v10 = vld [vmem:[%s11134_s3 + $0x110] sm:$0xff]  ;;  %v6015_v11 = vld [vmem:[%s11134_s3 + $0x118] sm:$0xff] }
 0x2f0   :  { %5385 = vmatprep.subr.bf16.mxu0 %v8354_v13  ;;  %5918 = vmatprep.subr.bf16.mxu1 %v8357_v14  ;;  %v6000_v13 = vld [vmem:[%s11134_s3 + $0xa0] sm:$0xff]  ;;  %v6001_v14 = vld [vmem:[%s11134_s3 + $0xa8] sm:$0xff] }
 0x2f3   :  { %5386 = vmatpush1.bf16.msra.mxu0 %v8352_v15  ;;  %5919 = vmatpush1.bf16.msra.mxu1 %v8355_v16  ;;  %v6032_v15 = vld [vmem:[%s11134_s3 + $0x1a0] sm:$0xff]  ;;  %v6033_v16 = vld [vmem:[%s11134_s3 + $0x1a8] sm:$0xff] }
 0x2f4   :  { %5387 = vmatprep.subr.bf16.mxu0 %v8360_v17  ;;  %5920 = vmatprep.subr.bf16.mxu1 %v8363_v18  ;;  %v7064_v17 = vpack.c.bf16 %v5983_v6, %v5982_v44  ;;  %v7096_v18 = vpack.c.bf16 %v6015_v11, %v6014_v10  ;;  %v7082_v44 = vpack.c.bf16 %v6009_v63, %v6008_v62  ;;  %v6024_v10 = vld [vmem:[%s11134_s3 + $0x160] sm:$0xff] }
 0x2f7   :  { %5388 = vmatpush1.bf16.msra.mxu0 %v8358_v19  ;;  %5921 = vmatpush1.bf16.msra.mxu1 %v8361_v20  ;;  %v5984_v19 = vld [vmem:[%s11134_s3 + $0x20] sm:$0xff]  ;;  %v5985_v20 = vld [vmem:[%s11134_s3 + $0x28] sm:$0xff] }
 0x2f8   :  { %5389 = vmatprep.subr.bf16.mxu0 %v8366_v21  ;;  %5922 = vmatprep.subr.bf16.mxu1 %v8369_v24  ;;  %v7066_v21 = vpack.c.bf16 %v6001_v14, %v6000_v13  ;;  %v7098_v24 = vpack.c.bf16 %v6033_v16, %v6032_v15  ;;  %v6025_v13 = vld [vmem:[%s11134_s3 + $0x168] sm:$0xff]  ;;  %v6010_v15 = vld [vmem:[%s11134_s3 + $0xf0] sm:$0xff]  ;;  %v6011_v16 = vld [vmem:[%s11134_s3 + $0xf8] sm:$0xff] }
 0x2f9   :  { %v7116_v14 = vpack.c.bf16 %v6025_v13, %v6024_v10 }
 0x2fb   :  { %5390 = vmatpush1.bf16.msra.mxu0 %v8364_v22  ;;  %5923 = vmatpush1.bf16.msra.mxu1 %v8367_v23  ;;  %v6016_v22 = vld [vmem:[%s11134_s3 + $0x120] sm:$0xff]  ;;  %v6017_v23 = vld [vmem:[%s11134_s3 + $0x128] sm:$0xff] }
 0x2fc   :  { %5391 = vmatprep.subr.bf16.mxu0 %v8372_v25  ;;  %5924 = vmatprep.subr.bf16.mxu1 %v8375_v26  ;;  %v6002_v25 = vld [vmem:[%s11134_s3 + $0xb0] sm:$0xff]  ;;  %v6003_v26 = vld [vmem:[%s11134_s3 + $0xb8] sm:$0xff] }
 0x2ff   :  { %5392 = vmatpush1.bf16.msra.mxu0 %v8370_v41  ;;  %5925 = vmatpush1.bf16.msra.mxu1 %v8373_v28  ;;  %v7068_v41 = vpack.c.bf16 %v5985_v20, %v5984_v19  ;;  %v7100_v28 = vpack.c.bf16 %v6017_v23, %v6016_v22  ;;  %v6043_v19 = vld [vmem:[%s11134_s3 + $0x1f8] sm:$0xff]  ;;  %v5994_v20 = vld [vmem:[%s11134_s3 + $0x70] sm:$0xff] }
 0x300   :  { %5402 = vmatprep.subr.bf16.mxu0 %v8378_v30  ;;  %5935 = vmatprep.subr.bf16.mxu1 %v8381_v38  ;;  %v5986_v30 = vld [vmem:[%s11134_s3 + $0x30] sm:$0xff]  ;;  %v5987_v38 = vld [vmem:[%s11134_s3 + $0x38] sm:$0xff] }
 0x301   :  { %v6026_v23 = vld [vmem:[%s11134_s3 + $0x170] sm:$0xff] }
 0x302   :  { %5394 = vmatmul.mubr.bf16.vlgmr.msra.gmra.mrb[0].mxu0 %v177_v31  ;;  %5927 = vmatmul.mubr.bf16.vlgmr.msra.gmra.mrb[0].mxu1 %v177_v31  ;;  %v7070_v31 = vpack.c.bf16 %v6003_v26, %v6002_v25  ;;  %v6027_v25 = vld [vmem:[%s11134_s3 + $0x178] sm:$0xff] }
 0x303   :  { %5403 = vmatpush1.bf16.msra.mxu0 %v8376_v32  ;;  %5936 = vmatpush1.bf16.msra.mxu1 %v8379_v33  ;;  %v7102_v32 = vpack.c.bf16 %v6035_v27, %v6034_v49  ;;  %v6018_v33 = vld [vmem:[%s11134_s3 + $0x130] sm:$0xff]  ;;  %v7120_v26 = vpack.c.bf16 %v6027_v25, %v6026_v23  ;;  %v964_v49 = vld [vmem:[%s11133_s2] sm:$0xf] }
 0x304   :  { %5404 = vmatprep.subr.bf16.mxu0 %v8384_v34  ;;  %5937 = vmatprep.subr.bf16.mxu1 %v8387_v35  ;;  %v6019_v34 = vld [vmem:[%s11134_s3 + $0x138] sm:$0xff]  ;;  %v6004_v35 = vld [vmem:[%s11134_s3 + $0xc0] sm:$0xff]  ;;  %v4889_v27 = vrot.slane %v964_v49, %v8649_v1 }
 0x305   :  { %5434 = vmatprep.mubr.bf16.mxu0 %v8427_v40  ;;  %5967 = vmatprep.mubr.bf16.mxu1 %v8427_v40  ;;  %v7104_v40 = vpack.c.bf16 %v6019_v34, %v6018_v33 }
 0x307   :  { %5405 = vmatpush1.bf16.msra.mxu0 %v8382_v36  ;;  %5938 = vmatpush1.bf16.msra.mxu1 %v8385_v37  ;;  %v6005_v36 = vld [vmem:[%s11134_s3 + $0xc8] sm:$0xff]  ;;  %v6036_v37 = vld [vmem:[%s11134_s3 + $0x1c0] sm:$0xff] }
 0x308   :  { %5406 = vmatprep.subr.bf16.mxu0 %v8390_v39  ;;  %5939 = vmatprep.subr.bf16.mxu1 %v8393_v42  ;;  %v6037_v39 = vld [vmem:[%s11134_s3 + $0x1c8] sm:$0xff]  ;;  %v7072_v42 = vpack.c.bf16 %v5987_v38, %v5986_v30  ;;  %v4901_v30 = vrot.slane %v964_v49, %v8661_v5 }
 0x30b   :  { %5407 = vmatpush1.bf16.msra.mxu0 %v8388_v7  ;;  %5940 = vmatpush1.bf16.msra.mxu1 %v8391_v43  ;;  %v5988_v7 = vld [vmem:[%s11134_s3 + $0x40] sm:$0xff]  ;;  %v5989_v43 = vld [vmem:[%s11134_s3 + $0x48] sm:$0xff] }
 0x30c   :  { %5408 = vmatprep.subr.bf16.mxu0 %v8396_v45  ;;  %5941 = vmatprep.subr.bf16.mxu1 %v8399_v47  ;;  %v7074_v45 = vpack.c.bf16 %v6005_v36, %v6004_v35  ;;  %v7106_v47 = vpack.c.bf16 %v6037_v39, %v6036_v37  ;;  %v7076_v54 = vpack.c.bf16 %v5989_v43, %v5988_v7 }
 0x30f   :  { %5409 = vmatpush1.bf16.msra.mxu0 %v8394_v52  ;;  %5942 = vmatpush1.bf16.msra.mxu1 %v8397_v53  ;;  %v6038_v52 = vld [vmem:[%s11134_s3 + $0x1d0] sm:$0xff]  ;;  %v6039_v53 = vld [vmem:[%s11134_s3 + $0x1d8] sm:$0xff] }
 0x310   :  { %7059 = vmatprep.subr.bf16.mxu0 %v7058_v57  ;;  %7091 = vmatprep.subr.bf16.mxu1 %v7090_v58  ;;  %v5991_v57 = vld [vmem:[%s11134_s3 + $0x58] sm:$0xff]  ;;  %v7078_v58 = vpack.c.bf16 %v6007_v51, %v6006_v50  ;;  %v7110_v59 = vpack.c.bf16 %v6039_v53, %v6038_v52 }
 0x312   :  { %6986 = vmatmul.mubr.msk.bf16.vlgmr.msra.gmra.mrb[0].mxu0 %vm4906_vm0, %v179_v2  ;;  %6987 = vmatmul.mubr.msk.bf16.vlgmr.msra.gmra.mrb[0].mxu1 %vm4906_vm0, %v179_v2  ;;  %v6041_v2 = vld [vmem:[%s11134_s3 + $0x1e8] sm:$0xff] }
 0x313   :  { %7061 = vmatpush3.bf16.msra.mxu0 %v7060_v3  ;;  %7093 = vmatpush3.bf16.msra.mxu1 %v7092_v4  ;;  %v7080_v3 = vpack.c.bf16 %v5991_v57, %v5990_v56  ;;  %v7112_v4 = vpack.c.bf16 %v6023_v61, %v6022_v60  ;;  %v7114_v6 = vpack.c.bf16 %v6041_v2, %v6040_v0 }
 0x314   :  { %7063 = vmatprep.subr.bf16.mxu0 %v7062_v8  ;;  %7095 = vmatprep.subr.bf16.mxu1 %v7094_v9  ;;  %v5992_v8 = vld [vmem:[%s11134_s3 + $0x60] sm:$0xff]  ;;  %v5993_v9 = vld [vmem:[%s11134_s3 + $0x68] sm:$0xff] }
 0x315   :  { %v7084_v11 = vpack.c.bf16 %v5993_v9, %v5992_v8 }
 0x317   :  { %7065 = vmatpush3.bf16.msra.mxu0 %v7064_v17  ;;  %7097 = vmatpush3.bf16.msra.mxu1 %v7096_v18  ;;  %v6042_v17 = vld [vmem:[%s11134_s3 + $0x1f0] sm:$0xff]  ;;  %v7086_v18 = vpack.c.bf16 %v6011_v16, %v6010_v15 }
 0x318   :  { %7067 = vmatprep.subr.bf16.mxu0 %v7066_v21  ;;  %7099 = vmatprep.subr.bf16.mxu1 %v7098_v24  ;;  %v5995_v21 = vld [vmem:[%s11134_s3 + $0x78] sm:$0xff]  ;;  %v7118_v24 = vpack.c.bf16 %v6043_v19, %v6042_v17 }
 0x319   :  { %v7088_v22 = vpack.c.bf16 %v5995_v21, %v5994_v20 }
 0x31b   :  { %7069 = vmatpush3.bf16.msra.mxu0 %v7068_v41  ;;  %7101 = vmatpush3.bf16.msra.mxu1 %v7100_v28  ;;  %v4897_v41 = vrot.slane %v964_v49, %v8851_v12  ;;  %v4893_v28 = vrot.slane %v964_v49, %v8594_v46 }
 0x31c   :  { %7071 = vmatprep.subr.bf16.mxu0 %v7070_v31  ;;  %7103 = vmatprep.subr.bf16.mxu1 %v7102_v32 }
 0x31f   :  { %7073 = vmatpush3.bf16.msra.mxu0 %v7072_v42  ;;  %7105 = vmatpush3.bf16.msra.mxu1 %v7104_v40 }
 0x320   :  { %7075 = vmatprep.subr.bf16.mxu0 %v7074_v45  ;;  %7107 = vmatprep.subr.bf16.mxu1 %v7106_v47  ;;  %v6044_v47 = vld [vmem:[%s11135_s4] sm:$0x1] }
 0x323   :  { %7077 = vmatpush3.bf16.msra.mxu0 %v7076_v54  ;;  %7109 = vmatpush3.bf16.msra.mxu1 %v7108_v55 }
 0x324   :  { %7079 = vmatprep.subr.bf16.mxu0 %v7078_v58  ;;  %7111 = vmatprep.subr.bf16.mxu1 %v7110_v59 }
 0x327   :  { %7081 = vmatpush3.bf16.msra.mxu0 %v7080_v3  ;;  %7113 = vmatpush3.bf16.msra.mxu1 %v7112_v4 }
 0x328   :  { %7083 = vmatprep.subr.bf16.mxu0 %v7082_v44  ;;  %7115 = vmatprep.subr.bf16.mxu1 %v7114_v6 }
 0x32b   :  { %7085 = vmatpush3.bf16.msra.mxu0 %v7084_v11  ;;  %7117 = vmatpush3.bf16.msra.mxu1 %v7116_v14 }
 0x32c   :  { %7087 = vmatprep.subr.bf16.mxu0 %v7086_v18  ;;  %7119 = vmatprep.subr.bf16.mxu1 %v7118_v24 }
 0x32f   :  { %7089 = vmatpush3.bf16.msra.mxu0 %v7088_v22  ;;  %7121 = vmatpush3.bf16.msra.mxu1 %v7120_v26 }
 0x3e5   :  { %v5436_v38 = vpop.f32.mrb[0].mxu0  ;;  %v5969_v31 = vpop.f32.mrb[0].mxu1 }
 0x3e6   :  { %v7122_v32 = vadd.f32 %v5436_v38, %v4889_v27  ;;  %v7124_v33 = vadd.f32 %v5969_v31, %v4897_v41  ;;  %v5438_v34 = vpop.f32.mrb[1].mxu0  ;;  %v5971_v35 = vpop.f32.mrb[1].mxu1 }
 0x3e7   :  { %v7123_v36 = vadd.f32 %v5438_v34, %v4893_v28  ;;  %v7125_v37 = vadd.f32 %v5971_v35, %v4901_v30  ;;  %v5440_v39 = vpop.f32.mrb[2].mxu0  ;;  %v5973_v42 = vpop.f32.mrb[2].mxu1 }
 0x3e8   :  { %v5441_v40 = vpop.f32.mrb[3].mxu0  ;;  %v5974_v7 = vpop.f32.mrb[3].mxu1  ;;  %v5976_v45 = vmax.f32 %v7122_v32, 0.0  ;;  %v5978_v12 = vmax.f32 %v7124_v33, 0.0 }
 0x3e9   :  { %v5977_v43 = vmax.f32 %v7123_v36, 0.0  ;;  %v5979_v1 = vmax.f32 %v7125_v37, 0.0 }
 0x3eb   :  { %6109 = vmatprep.mubr.f32.mxu0 %v5977_v43  ;;  %6179 = vmatprep.mubr.f32.mxu1 %v5979_v1 }
 0x3ec   :  { %6110 = vmatmul.mubr.f32.vlgmr.msra.gmra.mrb[4].mxu0 %v5976_v45  ;;  %6180 = vmatmul.mubr.f32.vlgmr.msra.gmra.mrb[4].mxu1 %v5978_v12 }
 0x4bf   :  { %v7020_v46 = vpop.f32.mrb[4].mxu0  ;;  %v7055_v5 = vpop.f32.mrb[4].mxu1 }
 0x4c0   :  { %v7021_v29 = vpop.f32.mrb[5].mxu0  ;;  %v7056_v48 = vpop.f32.mrb[5].mxu1 }
 0x4c1   :  { %v7022_v50 = vadd.f32 %v7021_v29, %v7020_v46  ;;  %v7057_v51 = vadd.f32 %v7056_v48, %v7055_v5 }
 0x4c3   :  { %v6112_v52 = vadd.f32 %v7022_v50, %v6044_v47 }
 0x4c5   :  { %v6182_v53 = vadd.f32 %v7057_v51, %v6112_v52 }
 0x4c7   :  { %6186 = vst.msk [vmem:[#allocation2] sm:$0x1] %vm6185_vm1, %v6182_v53 }
 0x4c8   :  { %8414 = shalt.err (!%p8411_p4)
}
 0x4c9   :  { %s8415_s25 = scalar_lea.hbm %s11136_s5, 16 }
 0x4ca   :  { %p8416_p5 = scmp.ne.s32.totalorder %s11136_s5, %s8415_s25  ;;  %p8419_p6 = scmp.lt.u32.totalorder %s8415_s25, %s11136_s5 }
 0x4cc   :  { %p8421_p7 = pnand %p8419_p6, %p8416_p5 }
 0x4ce   :  { %8424 = shalt.err (!%p8421_p7)
}
 0x4cf   :  { %6196 = dma.vmem_to_hbm [thread:$0]  %s6194_s21, 16, %s11136_s5, [#allocation3]  }
 0x4d0   :  { %8425 = dma.done.wait [#allocation3], 16  }
 0x4d1   :  { %8426 = vsyncadd [#allocation3], 4294967280 }
 0x4d2   :  { %6200 = vsyncpa [#allocation3], 1 }

// kernel: qnetwork_forward.2
= control target key start
LH: loop header
LB: loop body
LE: loop exit
PB: predicated region body
PF: predicated region fallthrough
CT: control target
= control target key end

     0   :  { %v15116_v3 = vmov 0   ;;  %s20223_s0 = inlined_call_operand.vmem [shape: f32[256,400], index: 0, kind: input, shape index: {}]   ;;  %s20224_s1 = inlined_call_operand.vmem [shape: f32[32,256], index: 1, kind: input, shape index: {}]   ;;  %s20225_s2 = inlined_call_operand.vmem [shape: f32[32,1], index: 2, kind: input, shape index: {}]   ;;  %s20226_s4 = inlined_call_operand.vmem [shape: f32[64,1], index: 4, kind: input, shape index: {}]   ;;  %s20227_s7 = inlined_call_operand.vmem [shape: s32[1,81], index: 7, kind: input, shape index: {}]   ;;  %s20228_s6 = inlined_call_operand.vmem [shape: f32[64,1], index: 6, kind: input, shape index: {}]   ;;  %s20229_s3 = inlined_call_operand.vmem [shape: f32[16,64,32], index: 3, kind: input, shape index: {}]   ;;  %s20230_s8 = inlined_call_operand.vmem [shape: s32[1,49], index: 8, kind: input, shape index: {}]   ;;  %s20231_s5 = inlined_call_operand.vmem [shape: f32[9,64,64], index: 5, kind: input, shape index: {}]   ;;  %s20232_s9 = inlined_call_operand.vmem [shape: f32[64,49], index: 9, kind: output, shape index: {}]  }
   0x1   :  { %v41_v0 = vld [vmem:[%s20223_s0 + $0x8] sm:$0xff]  ;;  %v43_v2 = vld [vmem:[%s20223_s0 + $0x18] sm:$0xff]  ;;  %15110 = vset.pattern.permute.xlu0 %v15116_v3  ;;  %15111 = vset.pattern.permute.xlu1 %v15116_v3  ;;  %v40_v6 = vld [vmem:[%s20223_s0] sm:$0xff] }
   0x2   :  { %v45_v1 = vld [vmem:[%s20223_s0 + $0x28] sm:$0xff]  ;;  %v47_v5 = vld [vmem:[%s20223_s0 + $0x38] sm:$0xff]  ;;  %v44_v7 = vld [vmem:[%s20223_s0 + $0x20] sm:$0xff] }
   0x3   :  { %v13390_v4 = vpack.c.bf16 %v45_v1, %v41_v0  ;;  %v13454_v8 = vpack.c.bf16 %v47_v5, %v43_v2  ;;  %v13392_v9 = vpack.c.bf16 %v44_v7, %v40_v6  ;;  %v42_v10 = vld [vmem:[%s20223_s0 + $0x10] sm:$0xff]  ;;  %v49_v12 = vld [vmem:[%s20223_s0 + $0x48] sm:$0xff]  ;;  %v51_v15 = vld [vmem:[%s20223_s0 + $0x58] sm:$0xff] }
   0x4   :  { %v46_v11 = vld [vmem:[%s20223_s0 + $0x30] sm:$0xff]  ;;  %v53_v14 = vld [vmem:[%s20223_s0 + $0x68] sm:$0xff]  ;;  %v55_v16 = vld [vmem:[%s20223_s0 + $0x78] sm:$0xff] }
   0x5   :  { %13391 = vmatprep.subr.bf16.mxu0 %v13390_v4  ;;  %v13456_v13 = vpack.c.bf16 %v46_v11, %v42_v10  ;;  %13455 = vmatprep.subr.bf16.mxu1 %v13454_v8  ;;  %v13394_v17 = vpack.c.bf16 %v53_v14, %v49_v12  ;;  %v13458_v18 = vpack.c.bf16 %v55_v16, %v51_v15  ;;  %v48_v19 = vld [vmem:[%s20223_s0 + $0x40] sm:$0xff]  ;;  %v50_v21 = vld [vmem:[%s20223_s0 + $0x50] sm:$0xff]  ;;  %v57_v24 = vld [vmem:[%s20223_s0 + $0x88] sm:$0xff] }
   0x6   :  { %13393 = vmatpush1.bf16.msra.mxu0 %v13392_v9  ;;  %v52_v20 = vld [vmem:[%s20223_s0 + $0x60] sm:$0xff]  ;;  %v54_v23 = vld [vmem:[%s20223_s0 + $0x70] sm:$0xff]  ;;  %v61_v25 = vld [vmem:[%s20223_s0 + $0xa8] sm:$0xff] }
   0x7   :  { %13457 = vmatpush1.bf16.msra.mxu1 %v13456_v13  ;;  %v13396_v22 = vpack.c.bf16 %v52_v20, %v48_v19  ;;  %13395 = vmatprep.subr.bf16.mxu0 %v13394_v17  ;;  %v13460_v26 = vpack.c.bf16 %v54_v23, %v50_v21  ;;  %v13398_v27 = vpack.c.bf16 %v61_v25, %v57_v24  ;;  %v59_v28 = vld [vmem:[%s20223_s0 + $0x98] sm:$0xff]  ;;  %v56_v30 = vld [vmem:[%s20223_s0 + $0x80] sm:$0xff]  ;;  %v58_v33 = vld [vmem:[%s20223_s0 + $0x90] sm:$0xff] }
   0x8   :  { %13459 = vmatprep.subr.bf16.mxu1 %v13458_v18  ;;  %v63_v29 = vld [vmem:[%s20223_s0 + $0xb8] sm:$0xff]  ;;  %v60_v32 = vld [vmem:[%s20223_s0 + $0xa0] sm:$0xff]  ;;  %v62_v34 = vld [vmem:[%s20223_s0 + $0xb0] sm:$0xff] }
   0x9   :  { %v13462_v31 = vpack.c.bf16 %v63_v29, %v59_v28  ;;  %v13400_v35 = vpack.c.bf16 %v60_v32, %v56_v30  ;;  %v65_v36 = vld [vmem:[%s20223_s0 + $0xc8] sm:$0xff]  ;;  %v67_v38 = vld [vmem:[%s20223_s0 + $0xd8] sm:$0xff]  ;;  %v13464_v39 = vpack.c.bf16 %v62_v34, %v58_v33  ;;  %v64_v42 = vld [vmem:[%s20223_s0 + $0xc0] sm:$0xff] }
   0xa   :  { %13397 = vmatpush1.bf16.msra.mxu0 %v13396_v22  ;;  %v69_v37 = vld [vmem:[%s20223_s0 + $0xe8] sm:$0xff]  ;;  %v71_v41 = vld [vmem:[%s20223_s0 + $0xf8] sm:$0xff]  ;;  %v68_v43 = vld [vmem:[%s20223_s0 + $0xe0] sm:$0xff] }
   0xb   :  { %13461 = vmatpush1.bf16.msra.mxu1 %v13460_v26  ;;  %13399 = vmatprep.subr.bf16.mxu0 %v13398_v27  ;;  %v13402_v40 = vpack.c.bf16 %v69_v37, %v65_v36  ;;  %v13466_v44 = vpack.c.bf16 %v71_v41, %v67_v38  ;;  %v66_v45 = vld [vmem:[%s20223_s0 + $0xd0] sm:$0xff]  ;;  %v73_v47 = vld [vmem:[%s20223_s0 + $0x108] sm:$0xff]  ;;  %v75_v49 = vld [vmem:[%s20223_s0 + $0x118] sm:$0xff]  ;;  %v13404_v51 = vpack.c.bf16 %v68_v43, %v64_v42 }
   0xc   :  { %13463 = vmatprep.subr.bf16.mxu1 %v13462_v31  ;;  %v70_v46 = vld [vmem:[%s20223_s0 + $0xf0] sm:$0xff]  ;;  %v77_v48 = vld [vmem:[%s20223_s0 + $0x128] sm:$0xff]  ;;  %v79_v50 = vld [vmem:[%s20223_s0 + $0x138] sm:$0xff] }
   0xd   :  { %v13468_v52 = vpack.c.bf16 %v70_v46, %v66_v45  ;;  %v13406_v53 = vpack.c.bf16 %v77_v48, %v73_v47  ;;  %v72_v54 = vld [vmem:[%s20223_s0 + $0x100] sm:$0xff]  ;;  %v74_v56 = vld [vmem:[%s20223_s0 + $0x110] sm:$0xff]  ;;  %v13470_v57 = vpack.c.bf16 %v79_v50, %v75_v49  ;;  %v81_v59 = vld [vmem:[%s20223_s0 + $0x148] sm:$0xff] }
   0xe   :  { %13401 = vmatpush1.bf16.msra.mxu0 %v13400_v35  ;;  %v76_v55 = vld [vmem:[%s20223_s0 + $0x120] sm:$0xff]  ;;  %v78_v58 = vld [vmem:[%s20223_s0 + $0x130] sm:$0xff]  ;;  %v85_v60 = vld [vmem:[%s20223_s0 + $0x168] sm:$0xff] }
   0xf   :  { %13465 = vmatpush1.bf16.msra.mxu1 %v13464_v39  ;;  %13403 = vmatprep.subr.bf16.mxu0 %v13402_v40  ;;  %v83_v61 = vld [vmem:[%s20223_s0 + $0x158] sm:$0xff]  ;;  %v13408_v63 = vpack.c.bf16 %v76_v55, %v72_v54  ;;  %v13472_v0 = vpack.c.bf16 %v78_v58, %v74_v56  ;;  %v13410_v1 = vpack.c.bf16 %v85_v60, %v81_v59  ;;  %v80_v2 = vld [vmem:[%s20223_s0 + $0x140] sm:$0xff]  ;;  %v82_v4 = vld [vmem:[%s20223_s0 + $0x150] sm:$0xff] }
  0x10   :  { %13467 = vmatprep.subr.bf16.mxu1 %v13466_v44  ;;  %v87_v62 = vld [vmem:[%s20223_s0 + $0x178] sm:$0xff]  ;;  %v84_v3 = vld [vmem:[%s20223_s0 + $0x160] sm:$0xff]  ;;  %v86_v6 = vld [vmem:[%s20223_s0 + $0x170] sm:$0xff] }
  0x11   :  { %v13474_v5 = vpack.c.bf16 %v87_v62, %v83_v61  ;;  %v89_v7 = vld [vmem:[%s20223_s0 + $0x188] sm:$0xff]  ;;  %v91_v9 = vld [vmem:[%s20223_s0 + $0x198] sm:$0xff]  ;;  %v13412_v11 = vpack.c.bf16 %v84_v3, %v80_v2  ;;  %v13476_v12 = vpack.c.bf16 %v86_v6, %v82_v4  ;;  %v88_v14 = vld [vmem:[%s20223_s0 + $0x180] sm:$0xff] }
  0x12   :  { %13405 = vmatpush1.bf16.msra.mxu0 %v13404_v51  ;;  %v93_v8 = vld [vmem:[%s20223_s0 + $0x1a8] sm:$0xff]  ;;  %v95_v10 = vld [vmem:[%s20223_s0 + $0x1b8] sm:$0xff]  ;;  %v92_v15 = vld [vmem:[%s20223_s0 + $0x1a0] sm:$0xff] }
  0x13   :  { %13469 = vmatpush1.bf16.msra.mxu1 %v13468_v52  ;;  %13407 = vmatprep.subr.bf16.mxu0 %v13406_v53  ;;  %v13414_v13 = vpack.c.bf16 %v93_v8, %v89_v7  ;;  %v90_v16 = vld [vmem:[%s20223_s0 + $0x190] sm:$0xff]  ;;  %v13478_v17 = vpack.c.bf16 %v95_v10, %v91_v9  ;;  %v97_v19 = vld [vmem:[%s20223_s0 + $0x1c8] sm:$0xff]  ;;  %v99_v21 = vld [vmem:[%s20223_s0 + $0x1d8] sm:$0xff]  ;;  %v13416_v23 = vpack.c.bf16 %v92_v15, %v88_v14 }
  0x14   :  { %13471 = vmatprep.subr.bf16.mxu1 %v13470_v57  ;;  %v94_v18 = vld [vmem:[%s20223_s0 + $0x1b0] sm:$0xff]  ;;  %v101_v20 = vld [vmem:[%s20223_s0 + $0x1e8] sm:$0xff]  ;;  %v103_v22 = vld [vmem:[%s20223_s0 + $0x1f8] sm:$0xff] }
  0x15   :  { %v13480_v24 = vpack.c.bf16 %v94_v18, %v90_v16  ;;  %v13418_v25 = vpack.c.bf16 %v101_v20, %v97_v19  ;;  %v96_v26 = vld [vmem:[%s20223_s0 + $0x1c0] sm:$0xff]  ;;  %v98_v28 = vld [vmem:[%s20223_s0 + $0x1d0] sm:$0xff]  ;;  %v13482_v29 = vpack.c.bf16 %v103_v22, %v99_v21  ;;  %v105_v31 = vld [vmem:[%s20223_s0 + $0x208] sm:$0xff] }
  0x16   :  { %13409 = vmatpush1.bf16.msra.mxu0 %v13408_v63  ;;  %v100_v27 = vld [vmem:[%s20223_s0 + $0x1e0] sm:$0xff]  ;;  %v102_v30 = vld [vmem:[%s20223_s0 + $0x1f0] sm:$0xff]  ;;  %v109_v32 = vld [vmem:[%s20223_s0 + $0x228] sm:$0xff] }
  0x17   :  { %13473 = vmatpush1.bf16.msra.mxu1 %v13472_v0  ;;  %13411 = vmatprep.subr.bf16.mxu0 %v13410_v1  ;;  %v107_v33 = vld [vmem:[%s20223_s0 + $0x218] sm:$0xff]  ;;  %v13420_v35 = vpack.c.bf16 %v100_v27, %v96_v26  ;;  %v13484_v36 = vpack.c.bf16 %v102_v30, %v98_v28  ;;  %v13422_v37 = vpack.c.bf16 %v109_v32, %v105_v31  ;;  %v104_v38 = vld [vmem:[%s20223_s0 + $0x200] sm:$0xff]  ;;  %v106_v40 = vld [vmem:[%s20223_s0 + $0x210] sm:$0xff] }
  0x18   :  { %13475 = vmatprep.subr.bf16.mxu1 %v13474_v5  ;;  %v111_v34 = vld [vmem:[%s20223_s0 + $0x238] sm:$0xff]  ;;  %v108_v39 = vld [vmem:[%s20223_s0 + $0x220] sm:$0xff]  ;;  %v110_v42 = vld [vmem:[%s20223_s0 + $0x230] sm:$0xff] }
  0x19   :  { %v13486_v41 = vpack.c.bf16 %v111_v34, %v107_v33  ;;  %v113_v43 = vld [vmem:[%s20223_s0 + $0x248] sm:$0xff]  ;;  %v115_v45 = vld [vmem:[%s20223_s0 + $0x258] sm:$0xff]  ;;  %v13424_v47 = vpack.c.bf16 %v108_v39, %v104_v38  ;;  %v13488_v48 = vpack.c.bf16 %v110_v42, %v106_v40  ;;  %v112_v50 = vld [vmem:[%s20223_s0 + $0x240] sm:$0xff]  ;;  %v418_v42 = vlaneseq }
  0x1a   :  { %13413 = vmatpush1.bf16.msra.mxu0 %v13412_v11  ;;  %v117_v44 = vld [vmem:[%s20223_s0 + $0x268] sm:$0xff]  ;;  %v119_v46 = vld [vmem:[%s20223_s0 + $0x278] sm:$0xff]  ;;  %v116_v51 = vld [vmem:[%s20223_s0 + $0x260] sm:$0xff] }
  0x1b   :  { %13477 = vmatpush1.bf16.msra.mxu1 %v13476_v12  ;;  %13415 = vmatprep.subr.bf16.mxu0 %v13414_v13  ;;  %v13426_v49 = vpack.c.bf16 %v117_v44, %v113_v43  ;;  %v114_v52 = vld [vmem:[%s20223_s0 + $0x250] sm:$0xff]  ;;  %v13490_v53 = vpack.c.bf16 %v119_v46, %v115_v45  ;;  %v121_v55 = vld [vmem:[%s20223_s0 + $0x288] sm:$0xff]  ;;  %v123_v57 = vld [vmem:[%s20223_s0 + $0x298] sm:$0xff]  ;;  %v13428_v59 = vpack.c.bf16 %v116_v51, %v112_v50  ;;  %v15536_v50 = vshrl.u32 %v418_v42, 7 }
  0x1c   :  { %13479 = vmatprep.subr.bf16.mxu1 %v13478_v17  ;;  %v118_v54 = vld [vmem:[%s20223_s0 + $0x270] sm:$0xff]  ;;  %v125_v56 = vld [vmem:[%s20223_s0 + $0x2a8] sm:$0xff]  ;;  %v127_v58 = vld [vmem:[%s20223_s0 + $0x2b8] sm:$0xff] }
  0x1d   :  { %v13492_v60 = vpack.c.bf16 %v118_v54, %v114_v52  ;;  %v13430_v61 = vpack.c.bf16 %v125_v56, %v121_v55  ;;  %v120_v62 = vld [vmem:[%s20223_s0 + $0x280] sm:$0xff]  ;;  %v122_v0 = vld [vmem:[%s20223_s0 + $0x290] sm:$0xff]  ;;  %v13494_v1 = vpack.c.bf16 %v127_v58, %v123_v57  ;;  %v129_v3 = vld [vmem:[%s20223_s0 + $0x2c8] sm:$0xff]  ;;  %20438 = vst [vmem:[#allocation2_spill] sm:$0xff] %v15536_v50 }
  0x1e   :  { %13417 = vmatpush1.bf16.msra.mxu0 %v13416_v23  ;;  %v124_v63 = vld [vmem:[%s20223_s0 + $0x2a0] sm:$0xff]  ;;  %v126_v2 = vld [vmem:[%s20223_s0 + $0x2b0] sm:$0xff]  ;;  %v133_v4 = vld [vmem:[%s20223_s0 + $0x2e8] sm:$0xff] }
  0x1f   :  { %13481 = vmatpush1.bf16.msra.mxu1 %v13480_v24  ;;  %13419 = vmatprep.subr.bf16.mxu0 %v13418_v25  ;;  %v131_v5 = vld [vmem:[%s20223_s0 + $0x2d8] sm:$0xff]  ;;  %v13432_v7 = vpack.c.bf16 %v124_v63, %v120_v62  ;;  %v128_v8 = vld [vmem:[%s20223_s0 + $0x2c0] sm:$0xff]  ;;  %v13496_v9 = vpack.c.bf16 %v126_v2, %v122_v0  ;;  %v13434_v10 = vpack.c.bf16 %v133_v4, %v129_v3  ;;  %v130_v12 = vld [vmem:[%s20223_s0 + $0x2d0] sm:$0xff]  ;;  %v15577_v3 = vadd.s32 128, %v15536_v50 }
  0x20   :  { %13483 = vmatprep.subr.bf16.mxu1 %v13482_v29  ;;  %v135_v6 = vld [vmem:[%s20223_s0 + $0x2f8] sm:$0xff]  ;;  %v132_v11 = vld [vmem:[%s20223_s0 + $0x2e0] sm:$0xff]  ;;  %v134_v13 = vld [vmem:[%s20223_s0 + $0x2f0] sm:$0xff]  ;;  %v15580_v4 = vadd.s32 136, %v15536_v50 }
  0x21   :  { %v13498_v14 = vpack.c.bf16 %v135_v6, %v131_v5  ;;  %v137_v15 = vld [vmem:[%s20223_s0 + $0x308] sm:$0xff]  ;;  %v139_v18 = vld [vmem:[%s20223_s0 + $0x318] sm:$0xff]  ;;  %v13436_v20 = vpack.c.bf16 %v132_v11, %v128_v8  ;;  %v136_v21 = vld [vmem:[%s20223_s0 + $0x300] sm:$0xff]  ;;  %v13500_v23 = vpack.c.bf16 %v134_v13, %v130_v12  ;;  %20440 = vst [vmem:[#allocation4_spill] sm:$0xff] %v15577_v3 }
  0x22   :  { %13421 = vmatpush1.bf16.msra.mxu0 %v13420_v35  ;;  %v141_v16 = vld [vmem:[%s20223_s0 + $0x328] sm:$0xff]  ;;  %v143_v19 = vld [vmem:[%s20223_s0 + $0x338] sm:$0xff]  ;;  %v140_v22 = vld [vmem:[%s20223_s0 + $0x320] sm:$0xff]  ;;  %20441 = vst [vmem:[#allocation5_spill] sm:$0xff] %v15580_v4 }
  0x23   :  { %13485 = vmatpush1.bf16.msra.mxu1 %v13484_v36  ;;  %13423 = vmatprep.subr.bf16.mxu0 %v13422_v37  ;;  %v33_v17 = vld [vmem:[%s20224_s1 + $0x8] sm:$0xff]  ;;  %v13438_v24 = vpack.c.bf16 %v141_v16, %v137_v15  ;;  %v138_v25 = vld [vmem:[%s20223_s0 + $0x310] sm:$0xff]  ;;  %v362_v27 = vld [vmem:[%s20225_s2] sm:$0xff]  ;;  %v13502_v28 = vpack.c.bf16 %v143_v19, %v139_v18  ;;  %v13440_v35 = vpack.c.bf16 %v140_v22, %v136_v21  ;;  %v15612_v18 = vadd.s32 264, %v15536_v50 }
  0x24   :  { %13487 = vmatprep.subr.bf16.mxu1 %v13486_v41  ;;  %232 = vmatprep.mubr.f32.mxu0 %v33_v17  ;;  %v142_v26 = vld [vmem:[%s20223_s0 + $0x330] sm:$0xff]  ;;  %v145_v29 = vld [vmem:[%s20223_s0 + $0x348] sm:$0xff]  ;;  %v147_v31 = vld [vmem:[%s20223_s0 + $0x358] sm:$0xff] }
  0x25   :  { %321 = vmatprep.mubr.f32.mxu1 %v33_v17  ;;  %v149_v30 = vld [vmem:[%s20223_s0 + $0x368] sm:$0xff]  ;;  %368 = vperm.xlu0 %15110, %v362_v27   ;;  %v151_v32 = vld [vmem:[%s20223_s0 + $0x378] sm:$0xff]  ;;  %v364_v34 = vld [vmem:[%s20225_s2 + $0x10] sm:$0xff]  ;;  %v13504_v37 = vpack.c.bf16 %v142_v26, %v138_v25  ;;  %v15609_v17 = vadd.s32 256, %v15536_v50  ;;  %20443 = vst [vmem:[#allocation7_spill] sm:$0xff] %v15612_v18  ;;  %v15635_v26 = vadd.s32 272, %v15536_v50 }
  0x26   :  { %13425 = vmatpush1.bf16.msra.mxu0 %v13424_v47  ;;  %v363_v33 = vld [vmem:[%s20225_s2 + $0x8] sm:$0xff]  ;;  %v144_v36 = vld [vmem:[%s20223_s0 + $0x340] sm:$0xff]  ;;  %378 = vperm.xlu1 %15111, %v364_v34   ;;  %v13442_v38 = vpack.c.bf16 %v149_v30, %v145_v29  ;;  %v146_v40 = vld [vmem:[%s20223_s0 + $0x350] sm:$0xff]  ;;  %v13506_v43 = vpack.c.bf16 %v151_v32, %v147_v31  ;;  %v20235_v25 = vmov 1.0|1.0   ;;  %v15638_v27 = vadd.s32 280, %v15536_v50 }
  0x27   :  { %13489 = vmatpush1.bf16.msra.mxu1 %v13488_v48  ;;  %13427 = vmatprep.subr.bf16.mxu0 %v13426_v49  ;;  %v148_v39 = vld [vmem:[%s20223_s0 + $0x360] sm:$0xff]  ;;  %v365_v41 = vld [vmem:[%s20225_s2 + $0x18] sm:$0xff]  ;;  %v150_v44 = vld [vmem:[%s20223_s0 + $0x370] sm:$0xff]  ;;  %20442 = vst [vmem:[#allocation6_spill] sm:$0xff] %v15609_v17  ;;  %v20233_v29 = vmov 0.0|0.0   ;;  %v15658_v32 = vadd.s32 144, %v15536_v50 }
  0x28   :  { %13491 = vmatprep.subr.bf16.mxu1 %v13490_v53  ;;  %v153_v45 = vld [vmem:[%s20223_s0 + $0x388] sm:$0xff]  ;;  %v155_v47 = vld [vmem:[%s20223_s0 + $0x398] sm:$0xff]  ;;  %v7202_v49 = vld [vmem:[%s20226_s4] sm:$0xff]  ;;  %v13444_v51 = vpack.c.bf16 %v148_v39, %v144_v36  ;;  %v13508_v54 = vpack.c.bf16 %v150_v44, %v146_v40  ;;  %20445 = vst [vmem:[#allocation9_spill] sm:$0xff] %v15635_v26  ;;  %v15675_v36 = vadd.s32 16, %v15536_v50  ;;  %v15695_v40 = vadd.s32 288, %v15536_v50 }
  0x29   :  { %v157_v46 = vld [vmem:[%s20223_s0 + $0x3a8] sm:$0xff]  ;;  %373 = vperm.xlu0 %15110, %v363_v33   ;;  %v159_v48 = vld [vmem:[%s20223_s0 + $0x3b8] sm:$0xff]  ;;  %v152_v52 = vld [vmem:[%s20223_s0 + $0x380] sm:$0xff]  ;;  %20446 = vst [vmem:[#allocation10_spill] sm:$0xff] %v15638_v27  ;;  %v15661_v33 = vadd.s32 152, %v15536_v50  ;;  %v15718_v44 = vadd.s32 160, %v15536_v50 }
  0x2a   :  { %13429 = vmatpush1.bf16.msra.mxu0 %v13428_v59  ;;  %v156_v53 = vld [vmem:[%s20223_s0 + $0x3a0] sm:$0xff]  ;;  %383 = vperm.xlu1 %15111, %v365_v41   ;;  %v13446_v55 = vpack.c.bf16 %v157_v46, %v153_v45  ;;  %v154_v56 = vld [vmem:[%s20223_s0 + $0x390] sm:$0xff]  ;;  %v7203_v58 = vld [vmem:[%s20226_s4 + $0x8] sm:$0xff]  ;;  %v15554_v59 = vsub.s32 0, %v15536_v50  ;;  %20447 = vst [vmem:[#allocation11_spill] sm:$0xff] %v15658_v32  ;;  %v15698_v41 = vadd.s32 296, %v15536_v50 }
  0x2b   :  { %13493 = vmatpush1.bf16.msra.mxu1 %v13492_v60  ;;  %13431 = vmatprep.subr.bf16.mxu0 %v13430_v61  ;;  %v158_v57 = vld [vmem:[%s20223_s0 + $0x3b0] sm:$0xff]  ;;  %v13510_v60 = vpack.c.bf16 %v159_v48, %v155_v47  ;;  %v161_v61 = vld [vmem:[%s20223_s0 + $0x3c8] sm:$0xff]  ;;  %v15565_v63 = vld [vmem:[%s20227_s7] sm:$0x1]  ;;  %v13448_v5 = vpack.c.bf16 %v156_v53, %v152_v52  ;;  %20448 = vst [vmem:[#allocation12_spill] sm:$0xff] %v15661_v33  ;;  %v15721_v45 = vadd.s32 168, %v15536_v50 }
  0x2c   :  { %13495 = vmatprep.subr.bf16.mxu1 %v13494_v1  ;;  %20439 = vst [vmem:[#allocation3_spill] sm:$0xff] %v15554_v59  ;;  %v165_v62 = vld [vmem:[%s20223_s0 + $0x3e8] sm:$0xff]  ;;  %v163_v0 = vld [vmem:[%s20223_s0 + $0x3d8] sm:$0xff]  ;;  %v7204_v2 = vld [vmem:[%s20226_s4 + $0x10] sm:$0xff]  ;;  %v13512_v6 = vpack.c.bf16 %v158_v57, %v154_v56  ;;  %v15593_v11 = vrot.slane %v15565_v63, %v15554_v59  ;;  %v15737_v48 = vadd.s32 32, %v15536_v50  ;;  %v15763_v53 = vadd.s32 304, %v15536_v50 }
  0x2d   :  { %7212 = vperm.xlu0 %15110, %v7202_v49   ;;  %v167_v1 = vld [vmem:[%s20223_s0 + $0x3f8] sm:$0xff]  ;;  %v160_v8 = vld [vmem:[%s20223_s0 + $0x3c0] sm:$0xff]  ;;  %v162_v13 = vld [vmem:[%s20223_s0 + $0x3d0] sm:$0xff]  ;;  %20451 = vst [vmem:[#allocation13_spill] sm:$0xff] %v15695_v40  ;;  %v15740_v49 = vadd.s32 40, %v15536_v50  ;;  %v15776_v56 = vadd.s32 176, %v15536_v50 }
  0x2e   :  { %13433 = vmatpush1.bf16.msra.mxu0 %v13432_v7  ;;  %7217 = vperm.xlu1 %15111, %v7203_v58   ;;  %v13450_v7 = vpack.c.bf16 %v165_v62, %v161_v61  ;;  %v13514_v12 = vpack.c.bf16 %v167_v1, %v163_v0  ;;  %v7206_v15 = vld [vmem:[%s20226_s4 + $0x20] sm:$0xff]  ;;  %vm490_vm0 = vcmp.eq.s32.totalorder %v15577_v3, %v15593_v11  ;;  %v7208_v21 = vld [vmem:[%s20226_s4 + $0x30] sm:$0xff]  ;;  %v37_v34 = vld [vmem:[%s20224_s1 + $0x28] sm:$0xff]  ;;  %v15779_v57 = vadd.s32 184, %v15536_v50 }
  0x2f   :  { %13497 = vmatpush1.bf16.msra.mxu1 %v13496_v9  ;;  %13435 = vmatprep.subr.bf16.mxu0 %v13434_v10  ;;  %v164_v9 = vld [vmem:[%s20223_s0 + $0x3e0] sm:$0xff]  ;;  %v7205_v10 = vld [vmem:[%s20226_s4 + $0x18] sm:$0xff]  ;;  %vm491_vm1 = vcmp.eq.s32.totalorder %v15580_v4, %v15593_v11  ;;  %vm506_vm3 = vcmp.eq.s32.totalorder %v15609_v17, %v15593_v11  ;;  %vm507_vm4 = vcmp.eq.s32.totalorder %v15612_v18, %v15593_v11  ;;  %v34_v31 = vld [vmem:[%s20224_s1 + $0x10] sm:$0xff]  ;;  %v15795_v61 = vadd.s32 56, %v15536_v50 }
  0x30   :  { %13499 = vmatprep.subr.bf16.mxu1 %v13498_v14  ;;  %v166_v14 = vld [vmem:[%s20223_s0 + $0x3f0] sm:$0xff]  ;;  %v13452_v16 = vpack.c.bf16 %v164_v9, %v160_v8  ;;  %vm13518_vm2 = vmpackc.low %vm491_vm1, %vm490_vm0  ;;  %v32_v22 = vld [vmem:[%s20224_s1] sm:$0xff]  ;;  %vm474_vm6 = vcmp.eq.s32.totalorder %v15536_v50, %v15593_v11  ;;  %vm508_vm8 = vcmp.eq.s32.totalorder %v15635_v26, %v15593_v11  ;;  %vm509_vm9 = vcmp.eq.s32.totalorder %v15638_v27, %v15593_v11 }
  0x31   :  { %7222 = vperm.xlu0 %15110, %v7204_v2   ;;  %v13516_v19 = vpack.c.bf16 %v166_v14, %v162_v13  ;;  %v9805_v30 = vld [vmem:[%s20228_s6] sm:$0xff]  ;;  %vm13551_vm5 = vmpackc.low %vm507_vm4, %vm506_vm3  ;;  %20452 = vst [vmem:[#allocation14_spill] sm:$0xff] %v15698_v41  ;;  %vm492_vm12 = vcmp.eq.s32.totalorder %v15658_v32, %v15593_v11  ;;  %vm493_vm13 = vcmp.eq.s32.totalorder %v15661_v33, %v15593_v11  ;;  %v39_v46 = vld [vmem:[%s20224_s1 + $0x38] sm:$0xff]  ;;  %v15818_v1 = vadd.s32 320, %v15536_v50 }
  0x32   :  { %13437 = vmatpush1.bf16.msra.mxu0 %v13436_v20  ;;  %7227 = vperm.xlu1 %15111, %v7205_v10   ;;  %v7207_v20 = vld [vmem:[%s20226_s4 + $0x28] sm:$0xff]  ;;  %v36_v42 = vld [vmem:[%s20224_s1 + $0x20] sm:$0xff]  ;;  %vm15709_vm11 = vmpackc.low %vm509_vm9, %vm508_vm8  ;;  %20455 = vst [vmem:[#allocation15_spill] sm:$0xff] %v15721_v45  ;;  %vm476_vm14 = vcmp.eq.s32.totalorder %v15675_v36, %v15593_v11  ;;  %vm510_vm1 = vcmp.eq.s32.totalorder %v15695_v40, %v15593_v11  ;;  %v15821_v2 = vadd.s32 328, %v15536_v50  ;;  %v15845_v8 = vadd.s32 200, %v15536_v50 }
  0x33   :  { %13501 = vmatpush1.bf16.msra.mxu1 %v13500_v23  ;;  %13439 = vmatprep.subr.bf16.mxu0 %v13438_v24  ;;  %v15628_v23 = vadd.s32 8, %v15536_v50  ;;  %v35_v24 = vld [vmem:[%s20224_s1 + $0x18] sm:$0xff]  ;;  %vm15754_vm0 = vmpackc.low %vm493_vm13, %vm492_vm12  ;;  %20458 = vst [vmem:[#allocation16_spill] sm:$0xff] %v15763_v53  ;;  %vm494_vm3 = vcmp.eq.s32.totalorder %v15718_v44, %v15593_v11  ;;  %vm495_vm4 = vcmp.eq.s32.totalorder %v15721_v45, %v15593_v11  ;;  %v9810_v62 = vld [vmem:[%s20228_s6 + $0x28] sm:$0xff]  ;;  %v15872_v10 = vadd.s32 64, %v15536_v50 }
  0x34   :  { %13503 = vmatprep.subr.bf16.mxu1 %v13502_v28  ;;  %v7209_v28 = vld [vmem:[%s20226_s4 + $0x38] sm:$0xff]  ;;  %20463 = vst [vmem:[#allocation19_spill] sm:$0xff] %v15795_v61  ;;  %vm479_vm8 = vcmp.eq.s32.totalorder %v15740_v49, %v15593_v11  ;;  %20466 = vst [vmem:[#allocation20_spill] sm:$0xff] %v15818_v1  ;;  %vm496_vm12 = vcmp.eq.s32.totalorder %v15776_v56, %v15593_v11  ;;  %vm497_vm13 = vcmp.eq.s32.totalorder %v15779_v57, %v15593_v11 }
  0x35   :  { %7232 = vperm.xlu0 %15110, %v7206_v15   ;;  %20444 = vst [vmem:[#allocation8_spill] sm:$0xff] %v15628_v23  ;;  %vm475_vm7 = vcmp.eq.s32.totalorder %v15628_v23, %v15593_v11  ;;  %v9808_v47 = vld [vmem:[%s20228_s6 + $0x18] sm:$0xff]  ;;  %20467 = vst [vmem:[#allocation21_spill] sm:$0xff] %v15821_v2  ;;  %v15894_v14 = vadd.s32 336, %v15536_v50  ;;  %v15897_v15 = vadd.s32 344, %v15536_v50  ;;  %v15996_v39 = vadd.s32 368, %v15536_v50 }
  0x36   :  { %13441 = vmatpush1.bf16.msra.mxu0 %v13440_v35  ;;  %7237 = vperm.xlu1 %15111, %v7207_v20   ;;  %v9806_v35 = vld [vmem:[%s20228_s6 + $0x8] sm:$0xff]  ;;  %vm15690_vm10 = vmpackc.low %vm475_vm7, %vm474_vm6  ;;  %vm478_vm7 = vcmp.eq.s32.totalorder %v15737_v48, %v15593_v11  ;;  %20471 = vst [vmem:[#allocation23_spill] sm:$0xff] %v15845_v8  ;;  %v9812_v13 = vld [vmem:[%s20228_s6 + $0x38] sm:$0xff]  ;;  %v16034_v52 = vadd.s32 384, %v15536_v50  ;;  %v765_v58 = vadd.s32 1, %v15565_v63 }
  0x37   :  { %13505 = vmatpush1.bf16.msra.mxu1 %v13504_v37  ;;  %13443 = vmatprep.subr.bf16.mxu0 %v13442_v38  ;;  %v15678_v37 = vadd.s32 24, %v15536_v50  ;;  %v9807_v38 = vld [vmem:[%s20228_s6 + $0x10] sm:$0xff]  ;;  %vm15833_vm9 = vmpackc.low %vm495_vm4, %vm494_vm3  ;;  %20474 = vst [vmem:[#allocation24_spill] sm:$0xff] %v15872_v10  ;;  %vm515_vm3 = vcmp.eq.s32.totalorder %v15821_v2, %v15593_v11 }
  0x38   :  { %13507 = vmatprep.subr.bf16.mxu1 %v13506_v43  ;;  %20476 = vst [vmem:[#allocation26_spill] sm:$0xff] %v15894_v14  ;;  %20477 = vst [vmem:[#allocation27_spill] sm:$0xff] %v15897_v15  ;;  %v16015_v43 = vadd.s32 240, %v15536_v50 }
  0x39   :  { %7242 = vperm.xlu0 %15110, %v7208_v21   ;;  %vm477_vm15 = vcmp.eq.s32.totalorder %v15678_v37, %v15593_v11  ;;  %vm13530_vm4 = vmpackc.low %vm497_vm13, %vm496_vm12  ;;  %vm516_vm12 = vcmp.eq.s32.totalorder %v15894_v14, %v15593_v11  ;;  %vm517_vm13 = vcmp.eq.s32.totalorder %v15897_v15, %v15593_v11  ;;  %20492 = vst [vmem:[#allocation38_spill] sm:$0xff] %v15996_v39 }
  0x3a   :  { %13445 = vmatpush1.bf16.msra.mxu0 %v13444_v51  ;;  %7247 = vperm.xlu1 %15111, %v7209_v28   ;;  %v9809_v51 = vld [vmem:[%s20228_s6 + $0x20] sm:$0xff]  ;;  %v15955_v28 = vadd.s32 352, %v15536_v50  ;;  %20494 = vst [vmem:[#allocation40_spill] sm:$0xff] %v16015_v43  ;;  %20498 = vst [vmem:[#allocation44_spill] sm:$0xff] %v16034_v52 }
  0x3b   :  { %13509 = vmatpush1.bf16.msra.mxu1 %v13508_v54  ;;  %13447 = vmatprep.subr.bf16.mxu0 %v13446_v55  ;;  %v15766_v54 = vadd.s32 312, %v15536_v50  ;;  %v38_v55 = vld [vmem:[%s20224_s1 + $0x30] sm:$0xff] }
  0x3c   :  { %13511 = vmatprep.subr.bf16.mxu1 %v13510_v60  ;;  %v15792_v60 = vadd.s32 48, %v15536_v50  ;;  %20486 = vst [vmem:[#allocation32_spill] sm:$0xff] %v15955_v28 }
  0x3d   :  { %9815 = vperm.xlu0 %15110, %v9805_v30   ;;  %20459 = vst [vmem:[#allocation17_spill] sm:$0xff] %v15766_v54  ;;  %v15958_v30 = vadd.s32 360, %v15536_v50 }
  0x3e   :  { %13449 = vmatpush1.bf16.msra.mxu0 %v13448_v5  ;;  %9820 = vperm.xlu1 %15111, %v9806_v35   ;;  %20462 = vst [vmem:[#allocation18_spill] sm:$0xff] %v15792_v60  ;;  %v9811_v5 = vld [vmem:[%s20228_s6 + $0x30] sm:$0xff]  ;;  %v15990_v35 = vadd.s32 96, %v15536_v50 }
  0x3f   :  { %13513 = vmatpush1.bf16.msra.mxu1 %v13512_v6  ;;  %13451 = vmatprep.subr.bf16.mxu0 %v13450_v7  ;;  %v15842_v7 = vadd.s32 192, %v15536_v50  ;;  %20487 = vst [vmem:[#allocation33_spill] sm:$0xff] %v15958_v30 }
  0x40   :  { %13515 = vmatprep.subr.bf16.mxu1 %v13514_v12  ;;  %v15875_v12 = vadd.s32 72, %v15536_v50  ;;  %20490 = vst [vmem:[#allocation36_spill] sm:$0xff] %v15990_v35 }
  0x41   :  { %9825 = vperm.xlu0 %15110, %v9807_v38   ;;  %20470 = vst [vmem:[#allocation22_spill] sm:$0xff] %v15842_v7  ;;  %v15993_v38 = vadd.s32 104, %v15536_v50 }
  0x42   :  { %13453 = vmatpush1.bf16.msra.mxu0 %v13452_v16  ;;  %9830 = vperm.xlu1 %15111, %v9808_v47   ;;  %20475 = vst [vmem:[#allocation25_spill] sm:$0xff] %v15875_v12  ;;  %v15911_v16 = vadd.s32 208, %v15536_v50  ;;  %v16027_v47 = vadd.s32 112, %v15536_v50 }
  0x43   :  { %13517 = vmatpush1.bf16.msra.mxu1 %v13516_v19  ;;  %13519 = vmatprep.subr.msk.bf16.mxu0 %vm13518_vm2, %v20235_v25  ;;  %vm511_vm2 = vcmp.eq.s32.totalorder %v15698_v41, %v15593_v11  ;;  %v15914_v19 = vadd.s32 216, %v15536_v50  ;;  %20491 = vst [vmem:[#allocation37_spill] sm:$0xff] %v15993_v38 }
  0x44   :  { %13550 = vmatprep.subr.bf16.mxu1 %v20233_v29  ;;  %vm15809_vm6 = vmpackc.low %vm511_vm2, %vm510_vm1  ;;  %vm514_vm2 = vcmp.eq.s32.totalorder %v15818_v1, %v15593_v11  ;;  %20478 = vst [vmem:[#allocation28_spill] sm:$0xff] %v15911_v16 }
  0x45   :  { %233 = vmatmul.mubr.f32.vlgmr.msra.gmra.mrb[0].mxu0 %v32_v22  ;;  %9835 = vperm.xlu0 %15110, %v9809_v51   ;;  %20479 = vst [vmem:[#allocation29_spill] sm:$0xff] %v15914_v19  ;;  %20496 = vst [vmem:[#allocation42_spill] sm:$0xff] %v16027_v47  ;;  %v16030_v51 = vadd.s32 120, %v15536_v50 }
  0x46   :  { %322 = vmatmul.mubr.f32.vlgmr.msra.gmra.mrb[0].mxu1 %v32_v22  ;;  %238 = vmatprep.mubr.f32.mxu0 %v35_v24  ;;  %v15945_v22 = vadd.s32 80, %v15536_v50 }
  0x47   :  { %327 = vmatprep.mubr.f32.mxu1 %v35_v24  ;;  %13552 = vmatpush1.bf16.msk.msra.mxu1 %vm13551_vm5, %v20235_v25  ;;  %vm15787_vm5 = vmpackc.low %vm477_vm15, %vm476_vm14  ;;  %vm480_vm15 = vcmp.eq.s32.totalorder %v15792_v60, %v15593_v11  ;;  %v15948_v24 = vadd.s32 88, %v15536_v50  ;;  %20497 = vst [vmem:[#allocation43_spill] sm:$0xff] %v16030_v51 }
  0x48   :  { %13553 = vmatprep.subr.bf16.mxu1 %v20233_v29  ;;  %13521 = vmatpush3.bf16.msk.msra.mxu0 %vm15690_vm10, %v20235_v25  ;;  %vm512_vm10 = vcmp.eq.s32.totalorder %v15763_v53, %v15593_v11  ;;  %vm15863_vm14 = vmpackc.low %vm479_vm8, %vm478_vm7  ;;  %20484 = vst [vmem:[#allocation30_spill] sm:$0xff] %v15945_v22 }
  0x49   :  { %239 = vmatmul.mubr.f32.gmra.mrb[2].mxu0 %v34_v31  ;;  %13523 = vmatprep.subr.msk.bf16.mxu0 %vm15754_vm0, %v20235_v25  ;;  %vm481_vm0 = vcmp.eq.s32.totalorder %v15795_v61, %v15593_v11  ;;  %vm15930_vm8 = vmpackc.low %vm515_vm3, %vm514_vm2  ;;  %20485 = vst [vmem:[#allocation31_spill] sm:$0xff] %v15948_v24  ;;  %vm484_vm3 = vcmp.eq.s32.totalorder %v15945_v22, %v15593_v11 }
  0x4a   :  { %328 = vmatmul.mubr.f32.gmra.mrb[2].mxu1 %v34_v31  ;;  %244 = vmatprep.mubr.f32.mxu0 %v37_v34  ;;  %vm15925_vm7 = vmpackc.low %vm481_vm0, %vm480_vm15  ;;  %vm501_vm15 = vcmp.eq.s32.totalorder %v15914_v19, %v15593_v11  ;;  %v15984_v31 = vadd.s32 224, %v15536_v50 }
  0x4b   :  { %333 = vmatprep.mubr.f32.mxu1 %v37_v34  ;;  %13555 = vmatpush1.bf16.msk.msra.mxu1 %vm15709_vm11, %v20235_v25  ;;  %vm513_vm11 = vcmp.eq.s32.totalorder %v15766_v54, %v15593_v11  ;;  %v15987_v34 = vadd.s32 232, %v15536_v50 }
  0x4c   :  { %13556 = vmatprep.subr.bf16.mxu1 %v20233_v29  ;;  %13525 = vmatpush3.bf16.msk.msra.mxu0 %vm15787_vm5, %v20235_v25  ;;  %vm13560_vm1 = vmpackc.low %vm513_vm11, %vm512_vm10  ;;  %vm498_vm5 = vcmp.eq.s32.totalorder %v15842_v7, %v15593_v11  ;;  %vm483_vm10 = vcmp.eq.s32.totalorder %v15875_v12, %v15593_v11  ;;  %20488 = vst [vmem:[#allocation34_spill] sm:$0xff] %v15984_v31 }
  0x4d   :  { %245 = vmatmul.mubr.f32.gmra.mrb[4].mxu0 %v36_v42  ;;  %9840 = vperm.xlu1 %15111, %v9810_v62   ;;  %20489 = vst [vmem:[#allocation35_spill] sm:$0xff] %v15987_v34  ;;  %v16050_v62 = vrot.slane %v765_v58, %v15554_v59 }
  0x4e   :  { %334 = vmatmul.mubr.f32.gmra.mrb[4].mxu1 %v36_v42  ;;  %250 = vmatprep.mubr.f32.mxu0 %v39_v46  ;;  %v15999_v42 = vadd.s32 376, %v15536_v50 }
  0x4f   :  { %339 = vmatprep.mubr.f32.mxu1 %v39_v46  ;;  %13558 = vmatpush1.bf16.msk.msra.mxu1 %vm15809_vm6, %v20235_v25  ;;  %vm499_vm6 = vcmp.eq.s32.totalorder %v15845_v8, %v15593_v11  ;;  %v16018_v46 = vadd.s32 248, %v15536_v50 }
  0x50   :  { %9845 = vperm.xlu0 %15110, %v9811_v5   ;;  %13527 = vmatprep.subr.msk.bf16.mxu0 %vm15833_vm9, %v20235_v25  ;;  %vm482_vm9 = vcmp.eq.s32.totalorder %v15872_v10, %v15593_v11  ;;  %vm13534_vm11 = vmpackc.low %vm499_vm6, %vm498_vm5  ;;  %vm518_vm5 = vcmp.eq.s32.totalorder %v15955_v28, %v15593_v11  ;;  %vm519_vm6 = vcmp.eq.s32.totalorder %v15958_v30, %v15593_v11 }
  0x51   :  { %251 = vmatmul.mubr.f32.gmra.mrb[6].mxu0 %v38_v55  ;;  %13559 = vmatprep.subr.bf16.mxu1 %v20233_v29  ;;  %vm13536_vm0 = vmpackc.low %vm483_vm10, %vm482_vm9  ;;  %20493 = vst [vmem:[#allocation39_spill] sm:$0xff] %v15999_v42  ;;  %vm502_vm9 = vcmp.eq.s32.totalorder %v15984_v31, %v15593_v11  ;;  %vm503_vm10 = vcmp.eq.s32.totalorder %v15987_v34, %v15593_v11 }
  0x52   :  { %340 = vmatmul.mubr.f32.gmra.mrb[6].mxu1 %v38_v55  ;;  %13529 = vmatpush3.bf16.msk.msra.mxu0 %vm15863_vm14, %v20235_v25  ;;  %vm500_vm14 = vcmp.eq.s32.totalorder %v15911_v16, %v15593_v11  ;;  %20495 = vst [vmem:[#allocation41_spill] sm:$0xff] %v16018_v46  ;;  %v16037_v55 = vadd.s32 392, %v15536_v50 }
  0x53   :  { %9850 = vperm.xlu1 %15111, %v9812_v13   ;;  %13561 = vmatpush1.bf16.msk.msra.mxu1 %vm13560_vm1, %v20235_v25  ;;  %vm13566_vm1 = vmpackc.low %vm517_vm13, %vm516_vm12  ;;  %vm486_vm12 = vcmp.eq.s32.totalorder %v15990_v35, %v15593_v11  ;;  %vm487_vm13 = vcmp.eq.s32.totalorder %v15993_v38, %v15593_v11 }
  0x54   :  { %13531 = vmatprep.subr.msk.bf16.mxu0 %vm13530_vm4, %v20235_v25  ;;  %13562 = vmatprep.subr.bf16.mxu1 %v20233_v29  ;;  %vm13538_vm2 = vmpackc.low %vm501_vm15, %vm500_vm14  ;;  %vm485_vm4 = vcmp.eq.s32.totalorder %v15948_v24, %v15593_v11  ;;  %vm520_vm14 = vcmp.eq.s32.totalorder %v15996_v39, %v15593_v11  ;;  %vm521_vm15 = vcmp.eq.s32.totalorder %v15999_v42, %v15593_v11 }
  0x55   :  { %20499 = vst [vmem:[#allocation45_spill] sm:$0xff] %v16037_v55 }
  0x56   :  { %13533 = vmatpush3.bf16.msk.msra.mxu0 %vm15925_vm7, %v20235_v25  ;;  %vm13540_vm7 = vmpackc.low %vm485_vm4, %vm484_vm3  ;;  %vm505_vm3 = vcmp.eq.s32.totalorder %v16018_v46, %v15593_v11 }
  0x57   :  { %13564 = vmatpush1.bf16.msk.msra.mxu1 %vm15930_vm8, %v20235_v25  ;;  %13535 = vmatprep.subr.msk.bf16.mxu0 %vm13534_vm11, %v20235_v25  ;;  %vm13569_vm8 = vmpackc.low %vm519_vm6, %vm518_vm5  ;;  %vm488_vm5 = vcmp.eq.s32.totalorder %v16027_v47, %v15593_v11  ;;  %vm489_vm6 = vcmp.eq.s32.totalorder %v16030_v51, %v15593_v11 }
  0x58   :  { %13565 = vmatprep.subr.bf16.mxu1 %v20233_v29  ;;  %vm13542_vm11 = vmpackc.low %vm503_vm10, %vm502_vm9  ;;  %vm523_vm9 = vcmp.eq.s32.totalorder %v16037_v55, %v15593_v11 }
  0x5a   :  { %13537 = vmatpush3.bf16.msk.msra.mxu0 %vm13536_vm0, %v20235_v25  ;;  %vm13544_vm0 = vmpackc.low %vm487_vm13, %vm486_vm12  ;;  %vm787_vm12 = vcmp.eq.s32.totalorder %v15580_v4, %v16050_v62 }
  0x5b   :  { %13567 = vmatpush1.bf16.msk.msra.mxu1 %vm13566_vm1, %v20235_v25  ;;  %13539 = vmatprep.subr.msk.bf16.mxu0 %vm13538_vm2, %v20235_v25  ;;  %vm13572_vm1 = vmpackc.low %vm521_vm15, %vm520_vm14  ;;  %vm504_vm2 = vcmp.eq.s32.totalorder %v16015_v43, %v15593_v11  ;;  %vm20391_vm14 = vcmask 130048   ;;  %vm770_vm15 = vcmp.eq.s32.totalorder %v15536_v50, %v16050_v62 }
  0x5c   :  { %13568 = vmatprep.subr.bf16.mxu1 %v20233_v29  ;;  %vm13546_vm4 = vmpackc.low %vm505_vm3, %vm504_vm2  ;;  %vm803_vm2 = vcmp.eq.s32.totalorder %v15612_v18, %v16050_v62  ;;  %vm788_vm3 = vcmp.eq.s32.totalorder %v15658_v32, %v16050_v62  ;;  %v20517_v18 = vmov 0.0|0.0  }
  0x5e   :  { %13541 = vmatpush3.bf16.msk.msra.mxu0 %vm13540_vm7, %v20235_v25  ;;  %vm13548_vm7 = vmpackc.low %vm489_vm6, %vm488_vm5  ;;  %vm772_vm5 = vcmp.eq.s32.totalorder %v15675_v36, %v16050_v62  ;;  %vm773_vm6 = vcmp.eq.s32.totalorder %v15678_v37, %v16050_v62 }
  0x5f   :  { %13570 = vmatpush1.bf16.msk.msra.mxu1 %vm13569_vm8, %v20235_v25  ;;  %13543 = vmatprep.subr.msk.bf16.mxu0 %vm13542_vm11, %v20235_v25  ;;  %vm522_vm8 = vcmp.eq.s32.totalorder %v16034_v52, %v15593_v11  ;;  %vm786_vm11 = vcmp.eq.s32.totalorder %v15577_v3, %v16050_v62 }
  0x60   :  { %13571 = vmatprep.subr.bf16.mxu1 %v20233_v29  ;;  %vm13575_vm10 = vmpackc.low %vm523_vm9, %vm522_vm8  ;;  %vm805_vm9 = vcmp.eq.s32.totalorder %v15638_v27, %v16050_v62 }
  0x61   :  { %vm13577_vm13 = vmpackc.low %vm787_vm12, %vm786_vm11  ;;  %vm790_vm11 = vcmp.eq.s32.totalorder %v15718_v44, %v16050_v62  ;;  %vm791_vm12 = vcmp.eq.s32.totalorder %v15721_v45, %v16050_v62 }
  0x62   :  { %13545 = vmatpush3.bf16.msk.msra.mxu0 %vm13544_vm0, %v20235_v25  ;;  %vm771_vm0 = vcmp.eq.s32.totalorder %v15628_v23, %v16050_v62 }
  0x63   :  { %13573 = vmatpush1.bf16.msk.msra.mxu1 %vm13572_vm1, %v20235_v25  ;;  %13547 = vmatprep.subr.msk.bf16.mxu0 %vm13546_vm4, %v20235_v25  ;;  %vm802_vm1 = vcmp.eq.s32.totalorder %v15609_v17, %v16050_v62  ;;  %vm789_vm4 = vcmp.eq.s32.totalorder %v15661_v33, %v16050_v62  ;;  %vm16088_vm8 = vmpackc.low %vm771_vm0, %vm770_vm15  ;;  %vm774_vm15 = vcmp.eq.s32.totalorder %v15737_v48, %v16050_v62  ;;  %v20511_v33 = vmov 1.0|1.0  }
  0x64   :  { %13574 = vmatprep.subr.bf16.mxu1 %v20233_v29  ;;  %vm775_vm0 = vcmp.eq.s32.totalorder %v15740_v49, %v16050_v62 }
  0x66   :  { %13549 = vmatpush3.bf16.msk.msra.mxu0 %vm13548_vm7, %v20235_v25  ;;  %vm804_vm7 = vcmp.eq.s32.totalorder %v15635_v26, %v16050_v62 }
  0x67   :  { %13576 = vmatpush1.bf16.msk.msra.mxu1 %vm13575_vm10, %v20235_v25  ;;  %13578 = vmatprep.subr.msk.bf16.mxu0 %vm13577_vm13, %v20235_v25  ;;  %vm16102_vm10 = vmpackc.low %vm803_vm2, %vm802_vm1  ;;  %vm806_vm1 = vcmp.eq.s32.totalorder %v15695_v40, %v16050_v62  ;;  %vm807_vm2 = vcmp.eq.s32.totalorder %v15698_v41, %v16050_v62 }
  0x68   :  { %13609 = vmatprep.subr.bf16.mxu1 %v20233_v29  ;;  %vm16119_vm13 = vmpackc.low %vm789_vm4, %vm788_vm3 }
  0x69   :  { %vm16154_vm3 = vmpackc.low %vm773_vm6, %vm772_vm5  ;;  %vm792_vm5 = vcmp.eq.s32.totalorder %v15776_v56, %v16050_v62 }
  0x6a   :  { %vm16170_vm4 = vmpackc.low %vm791_vm12, %vm790_vm11  ;;  %vm777_vm11 = vcmp.eq.s32.totalorder %v15795_v61, %v16050_v62 }
  0x6b   :  { %vm16185_vm6 = vmpackc.low %vm805_vm9, %vm804_vm7 }
  0x6c   :  { %vm16215_vm7 = vmpackc.low %vm775_vm0, %vm774_vm15  ;;  %vm809_vm15 = vcmp.eq.s32.totalorder %v15766_v54, %v16050_v62  ;;  %vm794_vm0 = vcmp.eq.s32.totalorder %v15842_v7, %v16050_v62 }
  0x6d   :  { %vm16228_vm9 = vmpackc.low %vm807_vm2, %vm806_vm1  ;;  %vm795_vm1 = vcmp.eq.s32.totalorder %v15845_v8, %v16050_v62 }
  0xa4   :  { %v369_v11 = vpop.permute.xlu0 %368 }
  0xa8   :  { %v374_v55 = vpop.permute.xlu0 %373 }
 0x118   :  { %v234_v0 = vpop.f32.mrb[0].mxu0 }
 0x119   :  { %v346_v5 = vmul.f32 0.003921569, %v234_v0  ;;  %v323_v6 = vpop.f32.mrb[0].mxu1  ;;  %v236_v9 = vpop.f32.mrb[1].mxu0 }
 0x11a   :  { %v348_v13 = vmul.f32 0.003921569, %v323_v6  ;;  %v347_v20 = vmul.f32 0.003921569, %v236_v9  ;;  %v325_v21 = vpop.f32.mrb[1].mxu1 }
 0x11b   :  { %v386_v58 = vadd.f32 %v369_v11, %v346_v5  ;;  %v349_v0 = vmul.f32 0.003921569, %v325_v21 }
 0x11c   :  { %v388_v29 = vadd.f32 %v369_v11, %v348_v13  ;;  %v387_v25 = vadd.f32 %v369_v11, %v347_v20  ;;  %v240_v4 = vpop.f32.mrb[2].mxu0 }
 0x11d   :  { %v16076_v6 = vmax.f32 %v386_v58, 0.0  ;;  %v389_v9 = vadd.f32 %v369_v11, %v349_v0  ;;  %v350_v5 = vmul.f32 0.003921569, %v240_v4  ;;  %v329_v21 = vpop.f32.mrb[2].mxu1  ;;  %v242_v3 = vpop.f32.mrb[3].mxu0 }
 0x11e   :  { %v16080_v52 = vmax.f32 %v387_v25, 0.0  ;;  %v352_v13 = vmul.f32 0.003921569, %v329_v21  ;;  %v351_v20 = vmul.f32 0.003921569, %v242_v3  ;;  %v331_v25 = vpop.f32.mrb[3].mxu1  ;;  %v379_v0 = vpop.permute.xlu1 %378 }
 0x11f   :  { %20500 = vst [vmem:[#allocation46_spill] sm:$0xff] %v16076_v6  ;;  %v16094_v4 = vmax.f32 %v389_v9, 0.0  ;;  %v390_v11 = vadd.f32 %v374_v55, %v350_v5  ;;  %v16110_v9 = vmax.f32 %v388_v29, 0.0  ;;  %v353_v23 = vmul.f32 0.003921569, %v331_v25 }
 0x120   :  { %20501 = vst [vmem:[#allocation47_spill] sm:$0xff] %v16080_v52  ;;  %v392_v5 = vadd.f32 %v374_v55, %v352_v13  ;;  %v391_v21 = vadd.f32 %v374_v55, %v351_v20  ;;  %v246_v17 = vpop.f32.mrb[4].mxu0  ;;  %651 = vmatprep.mubr.f32.mxu0 %v16080_v52 }
 0x121   :  { %20504 = vst [vmem:[#allocation48_spill] sm:$0xff] %v16094_v4  ;;  %20507 = vst [vmem:[#allocation49_spill] sm:$0xff] %v16110_v9  ;;  %v354_v50 = vmul.f32 0.003921569, %v246_v17  ;;  %v335_v59 = vpop.f32.mrb[4].mxu1  ;;  %9932 = vmatprep.mubr.msk.f32.mxu1 %vm20391_vm14, %v16094_v4  ;;  %v248_v29 = vpop.f32.mrb[5].mxu0  ;;  %652 = vmatmul.mubr.f32.vlgmr.msra.gmra.mrb[8].mxu0 %v16076_v6  ;;  %v393_v20 = vadd.f32 %v374_v55, %v353_v23 }
 0x122   :  { %v16132_v13 = vmax.f32 %v391_v21, 0.0  ;;  %v356_v17 = vmul.f32 0.003921569, %v335_v59  ;;  %v337_v25 = vpop.f32.mrb[5].mxu1  ;;  %737 = vmatmul.mubr.f32.vlgmr.msra.gmra.mrb[8].mxu1 %v16110_v9  ;;  %13580 = vmatpush3.bf16.msk.msra.mxu0 %vm16088_vm8, %v20511_v33  ;;  %v16140_v32 = vmax.f32 %v390_v11, 0.0  ;;  %v384_v45 = vpop.permute.xlu1 %383  ;;  %vm793_vm8 = vcmp.eq.s32.totalorder %v15779_v57, %v16050_v62  ;;  %v20540_v59 = vld [vmem:[#allocation4_spill] sm:$0xff] }
 0x123   :  { %v394_v6 = vadd.f32 %v379_v0, %v354_v50  ;;  %v355_v42 = vmul.f32 0.003921569, %v248_v29  ;;  %v357_v39 = vmul.f32 0.003921569, %v337_v25  ;;  %13611 = vmatpush1.bf16.msk.msra.mxu1 %vm16102_vm10, %v20511_v33  ;;  %13582 = vmatprep.subr.msk.bf16.mxu0 %vm16119_vm13, %v20511_v33  ;;  %v16158_v50 = vmax.f32 %v392_v5, 0.0  ;;  %vm13589_vm12 = vmpackc.low %vm793_vm8, %vm792_vm5 }
 0x124   :  { %20510 = vst [vmem:[#allocation50_spill] sm:$0xff] %v16132_v13  ;;  %20512 = vst [vmem:[#allocation51_spill] sm:$0xff] %v16140_v32  ;;  %v16160_v23 = vmax.f32 %v393_v20, 0.0  ;;  %v396_v55 = vadd.f32 %v379_v0, %v356_v17  ;;  %v252_v58 = vpop.f32.mrb[6].mxu0  ;;  %656 = vmatprep.mubr.f32.mxu0 %v16132_v13  ;;  %13612 = vmatprep.subr.bf16.mxu1 %v20517_v18  ;;  %vm776_vm10 = vcmp.eq.s32.totalorder %v15792_v60, %v16050_v62 }
 0x125   :  { %20515 = vst [vmem:[#allocation52_spill] sm:$0xff] %v16158_v50  ;;  %v16176_v3 = vmax.f32 %v394_v6, 0.0  ;;  %v395_v5 = vadd.f32 %v379_v0, %v355_v42  ;;  %v397_v21 = vadd.f32 %v379_v0, %v357_v39  ;;  %v358_v29 = vmul.f32 0.003921569, %v252_v58  ;;  %v341_v20 = vpop.f32.mrb[6].mxu1  ;;  %v254_v17 = vpop.f32.mrb[7].mxu0  ;;  %657 = vmatmul.mubr.f32.gmra.mrb[10].mxu0 %v16140_v32  ;;  %vm13591_vm2 = vmpackc.low %vm777_vm11, %vm776_vm10 }
 0x126   :  { %20516 = vst [vmem:[#allocation53_spill] sm:$0xff] %v16160_v23  ;;  %v16189_v6 = vmax.f32 %v396_v55, 0.0  ;;  %v360_v42 = vmul.f32 0.003921569, %v341_v20  ;;  %9933 = vmatprep.mubr.msk.f32.mxu1 %vm20391_vm14, %v16160_v23  ;;  %v359_v39 = vmul.f32 0.003921569, %v254_v17  ;;  %13584 = vmatpush3.bf16.msk.msra.mxu0 %vm16154_vm3, %v20511_v33  ;;  %vm808_vm13 = vcmp.eq.s32.totalorder %v15763_v53, %v16050_v62 }
 0x127   :  { %20520 = vst [vmem:[#allocation54_spill] sm:$0xff] %v16176_v3  ;;  %v343_v0 = vpop.f32.mrb[7].mxu1  ;;  %v16198_v58 = vmax.f32 %v395_v5, 0.0  ;;  %v16200_v27 = vmax.f32 %v397_v21, 0.0  ;;  %v398_v26 = vadd.f32 %v384_v45, %v358_v29  ;;  %742 = vmatmul.mubr.f32.gmra.mrb[10].mxu1 %v16158_v50  ;;  %13586 = vmatprep.subr.msk.bf16.mxu0 %vm16170_vm4, %v20511_v33  ;;  %vm778_vm3 = vcmp.eq.s32.totalorder %v15872_v10, %v16050_v62  ;;  %vm13619_vm5 = vmpackc.low %vm809_vm15, %vm808_vm13  ;;  %v20542_v11 = vld [vmem:[#allocation46_spill] sm:$0xff] }
 0x128   :  { %20523 = vst [vmem:[#allocation55_spill] sm:$0xff] %v16189_v6  ;;  %v361_v55 = vmul.f32 0.003921569, %v343_v0  ;;  %v400_v20 = vadd.f32 %v384_v45, %v360_v42  ;;  %v399_v17 = vadd.f32 %v384_v45, %v359_v39  ;;  %13614 = vmatpush1.bf16.msk.msra.mxu1 %vm16185_vm6, %v20511_v33  ;;  %vm779_vm4 = vcmp.eq.s32.totalorder %v15875_v12, %v16050_v62  ;;  %v20534_v42 = vld [vmem:[#allocation38_spill] sm:$0xff]  ;;  %v20535_v39 = vld [vmem:[#allocation39_spill] sm:$0xff] }
 0x129   :  { %20524 = vst [vmem:[#allocation56_spill] sm:$0xff] %v16198_v58  ;;  %20525 = vst [vmem:[#allocation57_spill] sm:$0xff] %v16200_v27  ;;  %661 = vmatprep.mubr.f32.mxu0 %v16198_v58  ;;  %9934 = vmatprep.mubr.msk.f32.mxu1 %vm20391_vm14, %v16200_v27  ;;  %vm810_vm6 = vcmp.eq.s32.totalorder %v15818_v1, %v16050_v62  ;;  %vm811_vm8 = vcmp.eq.s32.totalorder %v15821_v2, %v16050_v62  ;;  %v1308_v25 = vadd.s32 2, %v15565_v63  ;;  %v20536_v0 = vld [vmem:[#allocation3_spill] sm:$0xff] }
 0x12a   :  { %v401_v5 = vadd.f32 %v384_v45, %v361_v55  ;;  %v16236_v45 = vmax.f32 %v398_v26, 0.0  ;;  %v16238_v21 = vmax.f32 %v399_v17, 0.0  ;;  %13615 = vmatprep.subr.bf16.mxu1 %v20517_v18  ;;  %662 = vmatmul.mubr.f32.gmra.mrb[12].mxu0 %v16176_v3  ;;  %v16252_v26 = vmax.f32 %v400_v20, 0.0  ;;  %vm13595_vm11 = vmpackc.low %vm779_vm4, %vm778_vm3  ;;  %v20538_v20 = vld [vmem:[#allocation44_spill] sm:$0xff]  ;;  %v20539_v17 = vld [vmem:[#allocation45_spill] sm:$0xff] }
 0x12b   :  { %747 = vmatmul.mubr.f32.gmra.mrb[12].mxu1 %v16189_v6  ;;  %13588 = vmatpush3.bf16.msk.msra.mxu0 %vm16215_vm7, %v20511_v33  ;;  %vm13593_vm7 = vmpackc.low %vm795_vm1, %vm794_vm0  ;;  %vm797_vm10 = vcmp.eq.s32.totalorder %v15914_v19, %v16050_v62  ;;  %vm780_vm13 = vcmp.eq.s32.totalorder %v15945_v22, %v16050_v62  ;;  %vm781_vm15 = vcmp.eq.s32.totalorder %v15948_v24, %v16050_v62 }
 0x12c   :  { %20530 = vst [vmem:[#allocation58_spill] sm:$0xff] %v16236_v45  ;;  %20531 = vst [vmem:[#allocation59_spill] sm:$0xff] %v16238_v21  ;;  %v16254_v29 = vmax.f32 %v401_v5, 0.0  ;;  %13617 = vmatpush1.bf16.msk.msra.mxu1 %vm16228_vm9, %v20511_v33  ;;  %666 = vmatprep.mubr.f32.mxu0 %v16238_v21  ;;  %vm796_vm9 = vcmp.eq.s32.totalorder %v15911_v16, %v16050_v62  ;;  %vm812_vm1 = vcmp.eq.s32.totalorder %v15894_v14, %v16050_v62  ;;  %v20541_v5 = vld [vmem:[#allocation5_spill] sm:$0xff] }
 0x12d   :  { %20532 = vst [vmem:[#allocation60_spill] sm:$0xff] %v16252_v26  ;;  %13590 = vmatprep.subr.msk.bf16.mxu0 %vm13589_vm12, %v20511_v33  ;;  %13618 = vmatprep.subr.bf16.mxu1 %v20517_v18  ;;  %vm13622_vm12 = vmpackc.low %vm811_vm8, %vm810_vm6  ;;  %vm798_vm3 = vcmp.eq.s32.totalorder %v15984_v31, %v16050_v62  ;;  %vm799_vm4 = vcmp.eq.s32.totalorder %v15987_v34, %v16050_v62 }
 0x12e   :  { %20533 = vst [vmem:[#allocation61_spill] sm:$0xff] %v16254_v29  ;;  %9935 = vmatprep.mubr.msk.f32.mxu1 %vm20391_vm14, %v16254_v29  ;;  %667 = vmatmul.mubr.f32.gmra.mrb[14].mxu0 %v16236_v45  ;;  %vm13597_vm0 = vmpackc.low %vm797_vm10, %vm796_vm9  ;;  %vm782_vm8 = vcmp.eq.s32.totalorder %v15990_v35, %v16050_v62  ;;  %vm814_vm10 = vcmp.eq.s32.totalorder %v15955_v28, %v16050_v62 }
 0x12f   :  { %752 = vmatmul.mubr.f32.gmra.mrb[14].mxu1 %v16252_v26  ;;  %13592 = vmatpush3.bf16.msk.msra.mxu0 %vm13591_vm2, %v20511_v33  ;;  %vm813_vm2 = vcmp.eq.s32.totalorder %v15897_v15, %v16050_v62  ;;  %vm13601_vm9 = vmpackc.low %vm799_vm4, %vm798_vm3  ;;  %vm785_vm3 = vcmp.eq.s32.totalorder %v16030_v51, %v16050_v62  ;;  %vm816_vm4 = vcmp.eq.s32.totalorder %v20534_v42, %v16050_v62 }
 0x130   :  { %13620 = vmatpush1.bf16.msk.msra.mxu1 %vm13619_vm5, %v20511_v33  ;;  %934 = vmatprep.mubr.f32.mxu0 %v16080_v52  ;;  %vm13599_vm5 = vmpackc.low %vm781_vm15, %vm780_vm13  ;;  %vm801_vm13 = vcmp.eq.s32.totalorder %v16018_v46, %v16050_v62  ;;  %v16345_v55 = vrot.slane %v1308_v25, %v20536_v0  ;;  %v20543_v25 = vld [vmem:[#allocation2_spill] sm:$0xff] }
 0x131   :  { %9986 = vmatprep.mubr.msk.f32.mxu1 %vm20391_vm14, %v16094_v4  ;;  %13594 = vmatprep.subr.msk.bf16.mxu0 %vm13593_vm7, %v20511_v33  ;;  %vm13625_vm6 = vmpackc.low %vm813_vm2, %vm812_vm1  ;;  %vm783_vm7 = vcmp.eq.s32.totalorder %v15993_v38, %v16050_v62  ;;  %vm784_vm2 = vcmp.eq.s32.totalorder %v16027_v47, %v16050_v62 }
 0x132   :  { %13621 = vmatprep.subr.bf16.mxu1 %v20517_v18  ;;  %vm13603_vm15 = vmpackc.low %vm783_vm7, %vm782_vm8  ;;  %20537 = vst [vmem:[#allocation62_spill] sm:$0xff] %v16345_v55  ;;  %vm818_vm7 = vcmp.eq.s32.totalorder %v20538_v20, %v16050_v62  ;;  %v20546_v20 = vld [vmem:[#allocation12_spill] sm:$0xff] }
 0x133   :  { %13596 = vmatpush3.bf16.msk.msra.mxu0 %vm13595_vm11, %v20511_v33  ;;  %vm815_vm11 = vcmp.eq.s32.totalorder %v15958_v30, %v16050_v62 }
 0x134   :  { %13623 = vmatpush1.bf16.msk.msra.mxu1 %vm13622_vm12, %v20511_v33  ;;  %13598 = vmatprep.subr.msk.bf16.mxu0 %vm13597_vm0, %v20511_v33  ;;  %vm800_vm12 = vcmp.eq.s32.totalorder %v16015_v43, %v16050_v62  ;;  %vm13628_vm0 = vmpackc.low %vm815_vm11, %vm814_vm10  ;;  %vm1329_vm10 = vcmp.eq.s32.totalorder %v20540_v59, %v16345_v55  ;;  %vm1330_vm11 = vcmp.eq.s32.totalorder %v20541_v5, %v16345_v55 }
 0x135   :  { %13624 = vmatprep.subr.bf16.mxu1 %v20517_v18  ;;  %vm13605_vm1 = vmpackc.low %vm801_vm13, %vm800_vm12 }
 0x136   :  { %vm13652_vm13 = vmpackc.low %vm1330_vm11, %vm1329_vm10  ;;  %vm1317_vm11 = vcmp.eq.s32.totalorder %v15737_v48, %v16345_v55 }
 0x137   :  { %13600 = vmatpush3.bf16.msk.msra.mxu0 %vm13599_vm5, %v20511_v33  ;;  %vm817_vm5 = vcmp.eq.s32.totalorder %v20535_v39, %v16050_v62  ;;  %v20547_v39 = vld [vmem:[#allocation15_spill] sm:$0xff] }
 0x138   :  { %13626 = vmatpush1.bf16.msk.msra.mxu1 %vm13625_vm6, %v20511_v33  ;;  %13602 = vmatprep.subr.msk.bf16.mxu0 %vm13601_vm9, %v20511_v33  ;;  %vm13607_vm6 = vmpackc.low %vm785_vm3, %vm784_vm2  ;;  %vm819_vm9 = vcmp.eq.s32.totalorder %v20539_v17, %v16050_v62  ;;  %v20544_v62 = vld [vmem:[#allocation8_spill] sm:$0xff]  ;;  %v20545_v17 = vld [vmem:[#allocation11_spill] sm:$0xff]  ;;  %vm1332_vm2 = vcmp.eq.s32.totalorder %v20546_v20, %v16345_v55 }
 0x139   :  { %13627 = vmatprep.subr.bf16.mxu1 %v20517_v18  ;;  %vm13631_vm8 = vmpackc.low %vm817_vm5, %vm816_vm4  ;;  %vm1315_vm5 = vcmp.eq.s32.totalorder %v15675_v36, %v16345_v55 }
 0x13a   :  { %vm13634_vm12 = vmpackc.low %vm819_vm9, %vm818_vm7  ;;  %vm1334_vm7 = vcmp.eq.s32.totalorder %v20547_v39, %v16345_v55 }
 0x13b   :  { %13604 = vmatpush3.bf16.msk.msra.mxu0 %vm13603_vm15, %v20511_v33  ;;  %vm1313_vm15 = vcmp.eq.s32.totalorder %v20543_v25, %v16345_v55 }
 0x13c   :  { %13629 = vmatpush1.bf16.msk.msra.mxu1 %vm13628_vm0, %v20511_v33  ;;  %13606 = vmatprep.subr.msk.bf16.mxu0 %vm13605_vm1, %v20511_v33  ;;  %vm1314_vm0 = vcmp.eq.s32.totalorder %v20544_v62, %v16345_v55  ;;  %vm1331_vm1 = vcmp.eq.s32.totalorder %v20545_v17, %v16345_v55 }
 0x13d   :  { %13630 = vmatprep.subr.bf16.mxu1 %v20517_v18  ;;  %vm13654_vm3 = vmpackc.low %vm1314_vm0, %vm1313_vm15  ;;  %vm1336_vm15 = vcmp.eq.s32.totalorder %v15779_v57, %v16345_v55 }
 0x13e   :  { %vm13656_vm4 = vmpackc.low %vm1332_vm2, %vm1331_vm1  ;;  %vm1319_vm2 = vcmp.eq.s32.totalorder %v15792_v60, %v16345_v55 }
 0x13f   :  { %13608 = vmatpush3.bf16.msk.msra.mxu0 %vm13607_vm6, %v20511_v33  ;;  %vm1316_vm6 = vcmp.eq.s32.totalorder %v15678_v37, %v16345_v55 }
 0x140   :  { %13632 = vmatpush1.bf16.msk.msra.mxu1 %vm13631_vm8, %v20511_v33  ;;  %vm1333_vm8 = vcmp.eq.s32.totalorder %v15718_v44, %v16345_v55  ;;  %vm13658_vm9 = vmpackc.low %vm1316_vm6, %vm1315_vm5  ;;  %vm1338_vm5 = vcmp.eq.s32.totalorder %v15845_v8, %v16345_v55 }
 0x141   :  { %13633 = vmatprep.subr.bf16.mxu1 %v20517_v18  ;;  %vm13660_vm10 = vmpackc.low %vm1334_vm7, %vm1333_vm8  ;;  %vm1321_vm7 = vcmp.eq.s32.totalorder %v15872_v10, %v16345_v55 }
 0x142   :  { %935 = vmatmul.mubr.f32.vlgmr.msra.gmra.mrb[16].mxu0 %v20542_v11 }
 0x143   :  { %939 = vmatprep.mubr.f32.mxu0 %v16132_v13 }
 0x144   :  { %13635 = vmatpush1.bf16.msk.msra.mxu1 %vm13634_vm12, %v20511_v33  ;;  %vm1318_vm12 = vcmp.eq.s32.totalorder %v15740_v49, %v16345_v55 }
 0x145   :  { %13653 = vmatprep.subr.msk.bf16.mxu1 %vm13652_vm13, %v20511_v33  ;;  %vm1335_vm13 = vcmp.eq.s32.totalorder %v15776_v56, %v16345_v55  ;;  %vm13662_vm0 = vmpackc.low %vm1318_vm12, %vm1317_vm11  ;;  %vm1340_vm11 = vcmp.eq.s32.totalorder %v15914_v19, %v16345_v55 }
 0x146   :  { %940 = vmatmul.mubr.f32.gmra.mrb[18].mxu0 %v16140_v32  ;;  %vm13664_vm1 = vmpackc.low %vm1336_vm15, %vm1335_vm13  ;;  %vm1323_vm15 = vcmp.eq.s32.totalorder %v15945_v22, %v16345_v55 }
 0x147   :  { %1020 = vmatmul.mubr.f32.vlgmr.msra.gmra.mrb[16].mxu1 %v16110_v9  ;;  %944 = vmatprep.mubr.f32.mxu0 %v16198_v58 }
 0x148   :  { %9987 = vmatprep.mubr.msk.f32.mxu1 %vm20391_vm14, %v16160_v23  ;;  %13655 = vmatpush3.bf16.msk.msra.mxu1 %vm13654_vm3, %v20511_v33  ;;  %vm1320_vm3 = vcmp.eq.s32.totalorder %v15795_v61, %v16345_v55 }
 0x149   :  { %13657 = vmatprep.subr.msk.bf16.mxu1 %vm13656_vm4, %v20511_v33  ;;  %vm1337_vm4 = vcmp.eq.s32.totalorder %v15842_v7, %v16345_v55  ;;  %vm13666_vm6 = vmpackc.low %vm1320_vm3, %vm1319_vm2  ;;  %vm1342_vm2 = vcmp.eq.s32.totalorder %v15987_v34, %v16345_v55 }
 0x14a   :  { %945 = vmatmul.mubr.f32.gmra.mrb[20].mxu0 %v16176_v3  ;;  %vm13668_vm8 = vmpackc.low %vm1338_vm5, %vm1337_vm4  ;;  %vm1325_vm5 = vcmp.eq.s32.totalorder %v15990_v35, %v16345_v55 }
 0x14b   :  { %1025 = vmatmul.mubr.f32.gmra.mrb[18].mxu1 %v16158_v50  ;;  %949 = vmatprep.mubr.f32.mxu0 %v16238_v21 }
 0x14c   :  { %9988 = vmatprep.mubr.msk.f32.mxu1 %vm20391_vm14, %v16200_v27  ;;  %13659 = vmatpush3.bf16.msk.msra.mxu1 %vm13658_vm9, %v20511_v33  ;;  %vm1322_vm9 = vcmp.eq.s32.totalorder %v15875_v12, %v16345_v55 }
 0x14d   :  { %13661 = vmatprep.subr.msk.bf16.mxu1 %vm13660_vm10, %v20511_v33  ;;  %vm1339_vm10 = vcmp.eq.s32.totalorder %v15911_v16, %v16345_v55  ;;  %vm13670_vm12 = vmpackc.low %vm1322_vm9, %vm1321_vm7  ;;  %vm1344_vm7 = vcmp.eq.s32.totalorder %v16018_v46, %v16345_v55 }
 0x14e   :  { %950 = vmatmul.mubr.f32.gmra.mrb[22].mxu0 %v16236_v45  ;;  %vm13672_vm13 = vmpackc.low %vm1340_vm11, %vm1339_vm10  ;;  %vm1327_vm11 = vcmp.eq.s32.totalorder %v16027_v47, %v16345_v55 }
 0x14f   :  { %1030 = vmatmul.mubr.f32.gmra.mrb[20].mxu1 %v16189_v6 }
 0x150   :  { %9989 = vmatprep.mubr.msk.f32.mxu1 %vm20391_vm14, %v16254_v29  ;;  %13663 = vmatpush3.bf16.msk.msra.mxu1 %vm13662_vm0, %v20511_v33  ;;  %vm1324_vm0 = vcmp.eq.s32.totalorder %v15948_v24, %v16345_v55 }
 0x151   :  { %13665 = vmatprep.subr.msk.bf16.mxu1 %vm13664_vm1, %v20511_v33  ;;  %vm1341_vm1 = vcmp.eq.s32.totalorder %v15984_v31, %v16345_v55  ;;  %vm13674_vm3 = vmpackc.low %vm1324_vm0, %vm1323_vm15 }
 0x152   :  { %vm13676_vm4 = vmpackc.low %vm1342_vm2, %vm1341_vm1 }
 0x153   :  { %1035 = vmatmul.mubr.f32.gmra.mrb[22].mxu1 %v16252_v26  ;;  %v1729_v26 = vadd.s32 3, %v15565_v63 }
 0x154   :  { %13667 = vmatpush3.bf16.msk.msra.mxu1 %vm13666_vm6, %v20511_v33  ;;  %1477 = vmatprep.mubr.f32.mxu1 %v16080_v52  ;;  %vm1326_vm6 = vcmp.eq.s32.totalorder %v15993_v38, %v16345_v55 }
 0x155   :  { %13669 = vmatprep.subr.msk.bf16.mxu1 %vm13668_vm8, %v20511_v33  ;;  %vm1343_vm8 = vcmp.eq.s32.totalorder %v16015_v43, %v16345_v55  ;;  %v16449_v63 = vrot.slane %v1729_v26, %v20536_v0  ;;  %vm13678_vm9 = vmpackc.low %vm1326_vm6, %vm1325_vm5  ;;  %v20548_v26 = vld [vmem:[#allocation6_spill] sm:$0xff] }
 0x156   :  { %vm13680_vm10 = vmpackc.low %vm1344_vm7, %vm1343_vm8 }
 0x157   :  { %vm1751_vm15 = vcmp.eq.s32.totalorder %v20541_v5, %v16449_v63  ;;  %vm1734_vm2 = vcmp.eq.s32.totalorder %v20543_v25, %v16449_v63  ;;  %vm1753_vm5 = vcmp.eq.s32.totalorder %v20546_v20, %v16449_v63  ;;  %vm1736_vm7 = vcmp.eq.s32.totalorder %v15675_v36, %v16449_v63 }
 0x158   :  { %13671 = vmatpush3.bf16.msk.msra.mxu1 %vm13670_vm12, %v20511_v33  ;;  %vm1328_vm12 = vcmp.eq.s32.totalorder %v16030_v51, %v16345_v55  ;;  %v20549_v55 = vld [vmem:[#allocation7_spill] sm:$0xff] }
 0x159   :  { %13673 = vmatprep.subr.msk.bf16.mxu1 %vm13672_vm13, %v20511_v33  ;;  %vm1750_vm13 = vcmp.eq.s32.totalorder %v20540_v59, %v16449_v63  ;;  %vm13682_vm0 = vmpackc.low %vm1328_vm12, %vm1327_vm11  ;;  %vm1755_vm11 = vcmp.eq.s32.totalorder %v20547_v39, %v16449_v63 }
 0x15a   :  { %vm13719_vm1 = vmpackc.low %vm1751_vm15, %vm1750_vm13  ;;  %vm1738_vm15 = vcmp.eq.s32.totalorder %v15737_v48, %v16449_v63 }
 0x15c   :  { %13675 = vmatpush3.bf16.msk.msra.mxu1 %vm13674_vm3, %v20511_v33  ;;  %vm1735_vm3 = vcmp.eq.s32.totalorder %v20544_v62, %v16449_v63 }
 0x15d   :  { %13677 = vmatprep.subr.msk.bf16.mxu1 %vm13676_vm4, %v20511_v33  ;;  %vm1752_vm4 = vcmp.eq.s32.totalorder %v20545_v17, %v16449_v63  ;;  %vm13721_vm6 = vmpackc.low %vm1735_vm3, %vm1734_vm2  ;;  %vm1757_vm2 = vcmp.eq.s32.totalorder %v15779_v57, %v16449_v63 }
 0x15e   :  { %vm13723_vm8 = vmpackc.low %vm1753_vm5, %vm1752_vm4  ;;  %vm1740_vm5 = vcmp.eq.s32.totalorder %v15792_v60, %v16449_v63 }
 0x160   :  { %13679 = vmatpush3.bf16.msk.msra.mxu1 %vm13678_vm9, %v20511_v33  ;;  %vm1737_vm9 = vcmp.eq.s32.totalorder %v15678_v37, %v16449_v63 }
 0x161   :  { %13681 = vmatprep.subr.msk.bf16.mxu1 %vm13680_vm10, %v20511_v33  ;;  %vm1754_vm10 = vcmp.eq.s32.totalorder %v15718_v44, %v16449_v63  ;;  %vm13725_vm12 = vmpackc.low %vm1737_vm9, %vm1736_vm7  ;;  %vm1759_vm7 = vcmp.eq.s32.totalorder %v15845_v8, %v16449_v63 }
 0x162   :  { %vm13727_vm13 = vmpackc.low %vm1755_vm11, %vm1754_vm10  ;;  %vm1742_vm11 = vcmp.eq.s32.totalorder %v15872_v10, %v16449_v63 }
 0x164   :  { %13683 = vmatpush3.bf16.msk.msra.mxu1 %vm13682_vm0, %v20511_v33  ;;  %vm1739_vm0 = vcmp.eq.s32.totalorder %v15740_v49, %v16449_v63 }
 0x165   :  { %13720 = vmatprep.subr.msk.bf16.mxu1 %vm13719_vm1, %v20511_v33  ;;  %vm1756_vm1 = vcmp.eq.s32.totalorder %v15776_v56, %v16449_v63  ;;  %vm13729_vm3 = vmpackc.low %vm1739_vm0, %vm1738_vm15  ;;  %vm1761_vm15 = vcmp.eq.s32.totalorder %v15914_v19, %v16449_v63 }
 0x166   :  { %vm13731_vm4 = vmpackc.low %vm1757_vm2, %vm1756_vm1  ;;  %vm1744_vm2 = vcmp.eq.s32.totalorder %v15945_v22, %v16449_v63 }
 0x167   :  { %1478 = vmatmul.mubr.f32.vlgmr.msra.gmra.mrb[24].mxu1 %v20542_v11 }
 0x168   :  { %1482 = vmatprep.mubr.f32.mxu1 %v16132_v13  ;;  %13722 = vmatpush3.bf16.msk.msra.mxu1 %vm13721_vm6, %v20511_v33  ;;  %vm1741_vm6 = vcmp.eq.s32.totalorder %v15795_v61, %v16449_v63 }
 0x169   :  { %13724 = vmatprep.subr.msk.bf16.mxu1 %vm13723_vm8, %v20511_v33  ;;  %vm1758_vm8 = vcmp.eq.s32.totalorder %v15842_v7, %v16449_v63  ;;  %vm13733_vm9 = vmpackc.low %vm1741_vm6, %vm1740_vm5  ;;  %vm1763_vm5 = vcmp.eq.s32.totalorder %v15987_v34, %v16449_v63 }
 0x16a   :  { %vm13735_vm10 = vmpackc.low %vm1759_vm7, %vm1758_vm8  ;;  %vm1746_vm7 = vcmp.eq.s32.totalorder %v15990_v35, %v16449_v63 }
 0x16b   :  { %1483 = vmatmul.mubr.f32.gmra.mrb[26].mxu1 %v16140_v32 }
 0x16c   :  { %1487 = vmatprep.mubr.f32.mxu1 %v16198_v58  ;;  %13726 = vmatpush3.bf16.msk.msra.mxu1 %vm13725_vm12, %v20511_v33  ;;  %vm1743_vm12 = vcmp.eq.s32.totalorder %v15875_v12, %v16449_v63 }
 0x16d   :  { %13728 = vmatprep.subr.msk.bf16.mxu1 %vm13727_vm13, %v20511_v33  ;;  %vm1760_vm13 = vcmp.eq.s32.totalorder %v15911_v16, %v16449_v63  ;;  %vm13737_vm0 = vmpackc.low %vm1743_vm12, %vm1742_vm11  ;;  %vm1765_vm11 = vcmp.eq.s32.totalorder %v16018_v46, %v16449_v63 }
 0x16e   :  { %vm13739_vm1 = vmpackc.low %vm1761_vm15, %vm1760_vm13  ;;  %vm1748_vm15 = vcmp.eq.s32.totalorder %v16027_v47, %v16449_v63  ;;  %v20550_v47 = vld [vmem:[#allocation9_spill] sm:$0xff] }
 0x16f   :  { %1488 = vmatmul.mubr.f32.gmra.mrb[28].mxu1 %v16176_v3 }
 0x170   :  { %1492 = vmatprep.mubr.f32.mxu1 %v16238_v21  ;;  %13730 = vmatpush3.bf16.msk.msra.mxu1 %vm13729_vm3, %v20511_v33  ;;  %vm1745_vm3 = vcmp.eq.s32.totalorder %v15948_v24, %v16449_v63 }
 0x171   :  { %13732 = vmatprep.subr.msk.bf16.mxu1 %vm13731_vm4, %v20511_v33  ;;  %vm1762_vm4 = vcmp.eq.s32.totalorder %v15984_v31, %v16449_v63  ;;  %vm13741_vm6 = vmpackc.low %vm1745_vm3, %vm1744_vm2  ;;  %vm1766_vm2 = vcmp.eq.s32.totalorder %v20548_v26, %v16449_v63  ;;  %vm1767_vm3 = vcmp.eq.s32.totalorder %v20549_v55, %v16449_v63 }
 0x172   :  { %vm13743_vm8 = vmpackc.low %vm1763_vm5, %vm1762_vm4  ;;  %vm1768_vm5 = vcmp.eq.s32.totalorder %v20550_v47, %v16449_v63 }
 0x173   :  { %1493 = vmatmul.mubr.f32.gmra.mrb[30].mxu1 %v16236_v45  ;;  %vm13752_vm4 = vmpackc.low %vm1767_vm3, %vm1766_vm2  ;;  %vm1776_vm2 = vcmp.eq.s32.totalorder %v15894_v14, %v16449_v63  ;;  %vm1777_vm3 = vcmp.eq.s32.totalorder %v15897_v15, %v16449_v63 }
 0x174   :  { %13734 = vmatpush3.bf16.msk.msra.mxu1 %vm13733_vm9, %v20511_v33  ;;  %1898 = vmatprep.mubr.f32.mxu1 %v16080_v52  ;;  %vm1747_vm9 = vcmp.eq.s32.totalorder %v15993_v38, %v16449_v63 }
 0x175   :  { %13736 = vmatprep.subr.msk.bf16.mxu1 %vm13735_vm10, %v20511_v33  ;;  %vm1764_vm10 = vcmp.eq.s32.totalorder %v16015_v43, %v16449_v63  ;;  %vm13745_vm12 = vmpackc.low %vm1747_vm9, %vm1746_vm7  ;;  %vm1770_vm7 = vcmp.eq.s32.totalorder %v15695_v40, %v16449_v63  ;;  %vm1771_vm9 = vcmp.eq.s32.totalorder %v15698_v41, %v16449_v63 }
 0x176   :  { %vm13747_vm13 = vmpackc.low %vm1765_vm11, %vm1764_vm10  ;;  %vm1772_vm11 = vcmp.eq.s32.totalorder %v15763_v53, %v16449_v63 }
 0x177   :  { %vm13758_vm10 = vmpackc.low %vm1771_vm9, %vm1770_vm7  ;;  %vm1780_vm7 = vcmp.eq.s32.totalorder %v20534_v42, %v16449_v63 }
 0x178   :  { %13738 = vmatpush3.bf16.msk.msra.mxu1 %vm13737_vm0, %v20511_v33  ;;  %vm1749_vm0 = vcmp.eq.s32.totalorder %v16030_v51, %v16449_v63  ;;  %v20551_v51 = vld [vmem:[#allocation10_spill] sm:$0xff] }
 0x179   :  { %13740 = vmatprep.subr.msk.bf16.mxu1 %vm13739_vm1, %v20511_v33  ;;  %vm13749_vm1 = vmpackc.low %vm1749_vm0, %vm1748_vm15  ;;  %vm1774_vm15 = vcmp.eq.s32.totalorder %v15818_v1, %v16449_v63  ;;  %vm1775_vm0 = vcmp.eq.s32.totalorder %v15821_v2, %v16449_v63 }
 0x17c   :  { %13742 = vmatpush3.bf16.msk.msra.mxu1 %vm13741_vm6, %v20511_v33  ;;  %vm1769_vm6 = vcmp.eq.s32.totalorder %v20551_v51, %v16449_v63 }
 0x17d   :  { %13744 = vmatprep.subr.msk.bf16.mxu1 %vm13743_vm8, %v20511_v33  ;;  %vm13755_vm8 = vmpackc.low %vm1769_vm6, %vm1768_vm5  ;;  %vm1778_vm5 = vcmp.eq.s32.totalorder %v15955_v28, %v16449_v63  ;;  %vm1779_vm6 = vcmp.eq.s32.totalorder %v15958_v30, %v16449_v63 }
 0x180   :  { %13746 = vmatpush3.bf16.msk.msra.mxu1 %vm13745_vm12, %v20511_v33  ;;  %vm1773_vm12 = vcmp.eq.s32.totalorder %v15766_v54, %v16449_v63 }
 0x181   :  { %13748 = vmatprep.subr.msk.bf16.mxu1 %vm13747_vm13, %v20511_v33  ;;  %vm13761_vm13 = vmpackc.low %vm1773_vm12, %vm1772_vm11 }
 0x184   :  { %13750 = vmatpush3.bf16.msk.msra.mxu1 %vm13749_vm1, %v20511_v33  ;;  %vm13764_vm1 = vmpackc.low %vm1775_vm0, %vm1774_vm15 }
 0x185   :  { %13751 = vmatprep.subr.bf16.mxu1 %v20517_v18 }
 0x187   :  { %1899 = vmatmul.mubr.f32.vlgmr.msra.gmra.mrb[32].mxu1 %v20542_v11 }
 0x188   :  { %1903 = vmatprep.mubr.f32.mxu1 %v16132_v13  ;;  %13753 = vmatpush1.bf16.msk.msra.mxu1 %vm13752_vm4, %v20511_v33  ;;  %vm13767_vm4 = vmpackc.low %vm1777_vm3, %vm1776_vm2 }
 0x189   :  { %13754 = vmatprep.subr.bf16.mxu1 %v20517_v18 }
 0x18b   :  { %1904 = vmatmul.mubr.f32.gmra.mrb[34].mxu1 %v16140_v32  ;;  %v20554_v32 = vld [vmem:[#allocation45_spill] sm:$0xff] }
 0x18c   :  { %1908 = vmatprep.mubr.f32.mxu1 %v16198_v58  ;;  %13756 = vmatpush1.bf16.msk.msra.mxu1 %vm13755_vm8, %v20511_v33  ;;  %vm13770_vm8 = vmpackc.low %vm1779_vm6, %vm1778_vm5  ;;  %v20553_v58 = vld [vmem:[#allocation44_spill] sm:$0xff]  ;;  %vm1783_vm12 = vcmp.eq.s32.totalorder %v20554_v32, %v16449_v63  ;;  %vm1049_vm5 = vcmask 261120  }
 0x18d   :  { %13757 = vmatprep.subr.bf16.mxu1 %v20517_v18  ;;  %vm1782_vm11 = vcmp.eq.s32.totalorder %v20553_v58, %v16449_v63 }
 0x18f   :  { %1909 = vmatmul.mubr.f32.gmra.mrb[36].mxu1 %v16176_v3 }
 0x190   :  { %1913 = vmatprep.mubr.f32.mxu1 %v16238_v21  ;;  %13759 = vmatpush1.bf16.msk.msra.mxu1 %vm13758_vm10, %v20511_v33  ;;  %v16605_v21 = vld [vmem:[%s20227_s7] sm:$0x1] }
 0x191   :  { %13760 = vmatprep.subr.bf16.mxu1 %v20517_v18  ;;  %v2150_v3 = vadd.s32 20, %v16605_v21 }
 0x193   :  { %1914 = vmatmul.mubr.f32.gmra.mrb[38].mxu1 %v16236_v45  ;;  %v20552_v45 = vld [vmem:[#allocation39_spill] sm:$0xff]  ;;  %v16615_v13 = vrot.slane %v2150_v3, %v20536_v0  ;;  %v9990_v3 = vld [vmem:[%s20229_s3 + $0x40] sm:$0xff] }
 0x194   :  { %13762 = vmatpush1.bf16.msk.msra.mxu1 %vm13761_vm13, %v20511_v33  ;;  %10134 = vmatprep.mubr.msk.f32.mxu1 %vm20391_vm14, %v16094_v4  ;;  %vm1781_vm9 = vcmp.eq.s32.totalorder %v20552_v45, %v16449_v63  ;;  %vm13776_vm13 = vmpackc.low %vm1783_vm12, %vm1782_vm11  ;;  %v20556_v63 = vld [vmem:[#allocation60_spill] sm:$0xff] }
 0x195   :  { %13763 = vmatprep.subr.bf16.mxu1 %v20517_v18  ;;  %vm13773_vm10 = vmpackc.low %vm1781_vm9, %vm1780_vm7  ;;  %20555 = vst [vmem:[#allocation4_spill] sm:$0xff] %v16615_v13  ;;  %vm2187_vm15 = vcmp.eq.s32.totalorder %v20548_v26, %v16615_v13  ;;  %vm2188_vm0 = vcmp.eq.s32.totalorder %v20549_v55, %v16615_v13  ;;  %vm2189_vm2 = vcmp.eq.s32.totalorder %v20550_v47, %v16615_v13 }
 0x196   :  { %vm2190_vm3 = vcmp.eq.s32.totalorder %v20551_v51, %v16615_v13  ;;  %vm2191_vm6 = vcmp.eq.s32.totalorder %v15695_v40, %v16615_v13  ;;  %12520 = vmatprep.mubr.msk.f32.mxu0 %vm1049_vm5, %v9990_v3  ;;  %vm2193_vm9 = vcmp.eq.s32.totalorder %v15763_v53, %v16615_v13  ;;  %vm2195_vm12 = vcmp.eq.s32.totalorder %v15818_v1, %v16615_v13 }
 0x197   :  { %v2571_v3 = vadd.s32 21, %v16605_v21 }
 0x198   :  { %13765 = vmatpush1.bf16.msk.msra.mxu1 %vm13764_vm1, %v20511_v33  ;;  %vm13819_vm1 = vmpackc.low %vm2188_vm0, %vm2187_vm15  ;;  %vm2197_vm0 = vcmp.eq.s32.totalorder %v15894_v14, %v16615_v13 }
 0x199   :  { %13766 = vmatprep.subr.bf16.mxu1 %v20517_v18 }
 0x19c   :  { %13768 = vmatpush1.bf16.msk.msra.mxu1 %vm13767_vm4, %v20511_v33  ;;  %vm13822_vm4 = vmpackc.low %vm2190_vm3, %vm2189_vm2  ;;  %vm2199_vm3 = vcmp.eq.s32.totalorder %v15955_v28, %v16615_v13  ;;  %v20566_v28 = vld [vmem:[#allocation58_spill] sm:$0xff] }
 0x19d   :  { %13769 = vmatprep.subr.bf16.mxu1 %v20517_v18 }
 0x1a0   :  { %13771 = vmatpush1.bf16.msk.msra.mxu1 %vm13770_vm8, %v20511_v33  ;;  %vm2192_vm8 = vcmp.eq.s32.totalorder %v15698_v41, %v16615_v13 }
 0x1a1   :  { %13772 = vmatprep.subr.bf16.mxu1 %v20517_v18  ;;  %vm13825_vm7 = vmpackc.low %vm2192_vm8, %vm2191_vm6  ;;  %vm2201_vm8 = vcmp.eq.s32.totalorder %v20534_v42, %v16615_v13  ;;  %v20565_v42 = vld [vmem:[#allocation59_spill] sm:$0xff] }
 0x1a4   :  { %13774 = vmatpush1.bf16.msk.msra.mxu1 %vm13773_vm10, %v20511_v33  ;;  %vm2194_vm10 = vcmp.eq.s32.totalorder %v15766_v54, %v16615_v13 }
 0x1a5   :  { %13775 = vmatprep.subr.bf16.mxu1 %v20517_v18  ;;  %vm13828_vm11 = vmpackc.low %vm2194_vm10, %vm2193_vm9  ;;  %vm2203_vm10 = vcmp.eq.s32.totalorder %v20553_v58, %v16615_v13  ;;  %v20564_v58 = vld [vmem:[#allocation54_spill] sm:$0xff] }
 0x1a8   :  { %13777 = vmatpush1.bf16.msk.msra.mxu1 %vm13776_vm13, %v20511_v33  ;;  %vm2196_vm13 = vcmp.eq.s32.totalorder %v15821_v2, %v16615_v13 }
 0x1a9   :  { %13818 = vmatprep.subr.bf16.mxu1 %v20517_v18  ;;  %vm13831_vm15 = vmpackc.low %vm2196_vm13, %vm2195_vm12 }
 0x1ab   :  { %1984 = vmatmul.mubr.f32.vlgmr.msra.gmra.mrb[40].mxu1 %v16110_v9 }
 0x1ac   :  { %10135 = vmatprep.mubr.msk.f32.mxu1 %vm20391_vm14, %v16160_v23  ;;  %13820 = vmatpush1.bf16.msk.msra.mxu1 %vm13819_vm1, %v20511_v33  ;;  %vm2198_vm1 = vcmp.eq.s32.totalorder %v15897_v15, %v16615_v13  ;;  %v16683_v15 = vrot.slane %v2571_v3, %v20536_v0  ;;  %v2992_v3 = vadd.s32 22, %v16605_v21 }
 0x1ad   :  { %13821 = vmatprep.subr.bf16.mxu1 %v20517_v18  ;;  %vm13834_vm2 = vmpackc.low %vm2198_vm1, %vm2197_vm0 }
 0x1ae   :  { %20557 = vst [vmem:[#allocation5_spill] sm:$0xff] %v16683_v15  ;;  %vm2592_vm12 = vcmp.eq.s32.totalorder %v20540_v59, %v16683_v15  ;;  %vm2593_vm13 = vcmp.eq.s32.totalorder %v20541_v5, %v16683_v15  ;;  %vm2576_vm1 = vcmp.eq.s32.totalorder %v20543_v25, %v16683_v15 }
 0x1af   :  { %1989 = vmatmul.mubr.f32.gmra.mrb[42].mxu1 %v16158_v50  ;;  %vm13853_vm0 = vmpackc.low %vm2593_vm13, %vm2592_vm12 }
 0x1b0   :  { %10136 = vmatprep.mubr.msk.f32.mxu1 %vm20391_vm14, %v16200_v27  ;;  %13823 = vmatpush1.bf16.msk.msra.mxu1 %vm13822_vm4, %v20511_v33  ;;  %vm2200_vm4 = vcmp.eq.s32.totalorder %v15958_v30, %v16615_v13 }
 0x1b1   :  { %13824 = vmatprep.subr.bf16.mxu1 %v20517_v18  ;;  %vm13837_vm6 = vmpackc.low %vm2200_vm4, %vm2199_vm3  ;;  %vm2594_vm3 = vcmp.eq.s32.totalorder %v20545_v17, %v16683_v15  ;;  %vm2595_vm4 = vcmp.eq.s32.totalorder %v20546_v20, %v16683_v15 }
 0x1b3   :  { %1994 = vmatmul.mubr.f32.gmra.mrb[44].mxu1 %v16189_v6 }
 0x1b4   :  { %10137 = vmatprep.mubr.msk.f32.mxu1 %vm20391_vm14, %v16254_v29  ;;  %13826 = vmatpush1.bf16.msk.msra.mxu1 %vm13825_vm7, %v20511_v33  ;;  %vm2202_vm7 = vcmp.eq.s32.totalorder %v20552_v45, %v16615_v13 }
 0x1b5   :  { %13827 = vmatprep.subr.bf16.mxu1 %v20517_v18  ;;  %vm13840_vm9 = vmpackc.low %vm2202_vm7, %vm2201_vm8  ;;  %vm2578_vm7 = vcmp.eq.s32.totalorder %v15675_v36, %v16683_v15 }
 0x1b6   :  { %vm13857_vm8 = vmpackc.low %vm2595_vm4, %vm2594_vm3 }
 0x1b7   :  { %1999 = vmatmul.mubr.f32.gmra.mrb[46].mxu1 %v20556_v63 }
 0x1b8   :  { %13829 = vmatpush1.bf16.msk.msra.mxu1 %vm13828_vm11, %v20511_v33  ;;  %10204 = vmatprep.mubr.msk.f32.mxu1 %vm20391_vm14, %v16094_v4  ;;  %vm2204_vm11 = vcmp.eq.s32.totalorder %v20554_v32, %v16615_v13  ;;  %v16778_v13 = vrot.slane %v2992_v3, %v20536_v0  ;;  %v20561_v3 = vld [vmem:[#allocation50_spill] sm:$0xff]  ;;  %v3413_v4 = vadd.s32 23, %v16605_v21 }
 0x1b9   :  { %13830 = vmatprep.subr.bf16.mxu1 %v20517_v18 }
 0x1ba   :  { %20558 = vst [vmem:[#allocation2_spill] sm:$0xff] %v16778_v13 }
 0x1bc   :  { %13832 = vmatpush1.bf16.msk.msra.mxu1 %vm13831_vm15, %v20511_v33  ;;  %vm13843_vm15 = vmpackc.low %vm2204_vm11, %vm2203_vm10  ;;  %vm2596_vm10 = vcmp.eq.s32.totalorder %v15718_v44, %v16683_v15  ;;  %vm2597_vm11 = vcmp.eq.s32.totalorder %v20547_v39, %v16683_v15 }
 0x1bd   :  { %13833 = vmatprep.subr.bf16.mxu1 %v20517_v18  ;;  %vm13861_vm13 = vmpackc.low %vm2597_vm11, %vm2596_vm10 }
 0x1c0   :  { %13835 = vmatpush1.bf16.msk.msra.mxu1 %vm13834_vm2, %v20511_v33  ;;  %vm2577_vm2 = vcmp.eq.s32.totalorder %v20544_v62, %v16683_v15 }
 0x1c1   :  { %13836 = vmatprep.subr.bf16.mxu1 %v20517_v18 }
 0x1c4   :  { %13838 = vmatpush1.bf16.msk.msra.mxu1 %vm13837_vm6, %v20511_v33  ;;  %vm13855_vm6 = vmpackc.low %vm2577_vm2, %vm2576_vm1  ;;  %vm2598_vm1 = vcmp.eq.s32.totalorder %v15776_v56, %v16683_v15  ;;  %vm2599_vm2 = vcmp.eq.s32.totalorder %v15779_v57, %v16683_v15 }
 0x1c5   :  { %13839 = vmatprep.subr.bf16.mxu1 %v20517_v18  ;;  %vm13865_vm4 = vmpackc.low %vm2599_vm2, %vm2598_vm1 }
 0x1c8   :  { %13841 = vmatpush1.bf16.msk.msra.mxu1 %vm13840_vm9, %v20511_v33  ;;  %vm2579_vm9 = vcmp.eq.s32.totalorder %v15678_v37, %v16683_v15 }
 0x1c9   :  { %13842 = vmatprep.subr.bf16.mxu1 %v20517_v18  ;;  %vm13859_vm12 = vmpackc.low %vm2579_vm9, %vm2578_vm7  ;;  %vm2600_vm7 = vcmp.eq.s32.totalorder %v15842_v7, %v16683_v15  ;;  %vm2601_vm9 = vcmp.eq.s32.totalorder %v15845_v8, %v16683_v15 }
 0x1ca   :  { %vm13869_vm11 = vmpackc.low %vm2601_vm9, %vm2600_vm7 }
 0x1cc   :  { %13844 = vmatpush1.bf16.msk.msra.mxu1 %vm13843_vm15, %v20511_v33  ;;  %vm2580_vm15 = vcmp.eq.s32.totalorder %v15737_v48, %v16683_v15 }
 0x1cd   :  { %13854 = vmatprep.subr.msk.bf16.mxu1 %vm13853_vm0, %v20511_v33  ;;  %vm2581_vm0 = vcmp.eq.s32.totalorder %v15740_v49, %v16683_v15 }
 0x1ce   :  { %vm13863_vm3 = vmpackc.low %vm2581_vm0, %vm2580_vm15  ;;  %vm2602_vm15 = vcmp.eq.s32.totalorder %v15911_v16, %v16683_v15  ;;  %vm2603_vm0 = vcmp.eq.s32.totalorder %v15914_v19, %v16683_v15 }
 0x1cf   :  { %2405 = vmatmul.mubr.f32.vlgmr.msra.gmra.mrb[48].mxu1 %v16110_v9  ;;  %vm13873_vm2 = vmpackc.low %vm2603_vm0, %vm2602_vm15 }
 0x1d0   :  { %10205 = vmatprep.mubr.msk.f32.mxu1 %vm20391_vm14, %v16160_v23  ;;  %13856 = vmatpush3.bf16.msk.msra.mxu1 %vm13855_vm6, %v20511_v33  ;;  %vm2582_vm6 = vcmp.eq.s32.totalorder %v15792_v60, %v16683_v15 }
 0x1d1   :  { %13858 = vmatprep.subr.msk.bf16.mxu1 %vm13857_vm8, %v20511_v33  ;;  %vm2583_vm8 = vcmp.eq.s32.totalorder %v15795_v61, %v16683_v15 }
 0x1d2   :  { %vm13867_vm10 = vmpackc.low %vm2583_vm8, %vm2582_vm6  ;;  %vm2604_vm6 = vcmp.eq.s32.totalorder %v15984_v31, %v16683_v15  ;;  %vm2605_vm8 = vcmp.eq.s32.totalorder %v15987_v34, %v16683_v15 }
 0x1d3   :  { %2410 = vmatmul.mubr.f32.gmra.mrb[50].mxu1 %v16158_v50  ;;  %vm13877_vm9 = vmpackc.low %vm2605_vm8, %vm2604_vm6 }
 0x1d4   :  { %10206 = vmatprep.mubr.msk.f32.mxu1 %vm20391_vm14, %v16200_v27  ;;  %13860 = vmatpush3.bf16.msk.msra.mxu1 %vm13859_vm12, %v20511_v33  ;;  %vm2584_vm12 = vcmp.eq.s32.totalorder %v15872_v10, %v16683_v15 }
 0x1d5   :  { %13862 = vmatprep.subr.msk.bf16.mxu1 %vm13861_vm13, %v20511_v33  ;;  %vm2585_vm13 = vcmp.eq.s32.totalorder %v15875_v12, %v16683_v15 }
 0x1d6   :  { %vm13871_vm1 = vmpackc.low %vm2585_vm13, %vm2584_vm12  ;;  %vm2606_vm12 = vcmp.eq.s32.totalorder %v16015_v43, %v16683_v15  ;;  %vm2607_vm13 = vcmp.eq.s32.totalorder %v16018_v46, %v16683_v15 }
 0x1d7   :  { %2415 = vmatmul.mubr.f32.gmra.mrb[52].mxu1 %v16189_v6  ;;  %vm13881_vm0 = vmpackc.low %vm2607_vm13, %vm2606_vm12  ;;  %v20563_v6 = vld [vmem:[#allocation56_spill] sm:$0xff] }
 0x1d8   :  { %10207 = vmatprep.mubr.msk.f32.mxu1 %vm20391_vm14, %v16254_v29  ;;  %13864 = vmatpush3.bf16.msk.msra.mxu1 %vm13863_vm3, %v20511_v33  ;;  %vm2586_vm3 = vcmp.eq.s32.totalorder %v15945_v22, %v16683_v15  ;;  %v20560_v29 = vld [vmem:[#allocation43_spill] sm:$0xff] }
 0x1d9   :  { %13866 = vmatprep.subr.msk.bf16.mxu1 %vm13865_vm4, %v20511_v33  ;;  %vm2587_vm4 = vcmp.eq.s32.totalorder %v15948_v24, %v16683_v15 }
 0x1da   :  { %vm13875_vm7 = vmpackc.low %vm2587_vm4, %vm2586_vm3  ;;  %vm3013_vm3 = vcmp.eq.s32.totalorder %v20540_v59, %v16778_v13  ;;  %vm3014_vm4 = vcmp.eq.s32.totalorder %v20541_v5, %v16778_v13 }
 0x1db   :  { %2420 = vmatmul.mubr.f32.gmra.mrb[54].mxu1 %v20556_v63  ;;  %v20559_v63 = vld [vmem:[#allocation42_spill] sm:$0xff]  ;;  %vm13920_vm8 = vmpackc.low %vm3014_vm4, %vm3013_vm3 }
 0x1dc   :  { %13868 = vmatpush3.bf16.msk.msra.mxu1 %vm13867_vm10, %v20511_v33  ;;  %2740 = vmatprep.mubr.f32.mxu1 %v16080_v52  ;;  %vm2588_vm10 = vcmp.eq.s32.totalorder %v15990_v35, %v16683_v15 }
 0x1dd   :  { %13870 = vmatprep.subr.msk.bf16.mxu1 %vm13869_vm11, %v20511_v33  ;;  %vm2589_vm11 = vcmp.eq.s32.totalorder %v15993_v38, %v16683_v15 }
 0x1de   :  { %vm13879_vm15 = vmpackc.low %vm2589_vm11, %vm2588_vm10  ;;  %vm3015_vm10 = vcmp.eq.s32.totalorder %v20545_v17, %v16778_v13  ;;  %vm3016_vm11 = vcmp.eq.s32.totalorder %v20546_v20, %v16778_v13 }
 0x1df   :  { %vm13924_vm13 = vmpackc.low %vm3016_vm11, %vm3015_vm10 }
 0x1e0   :  { %13872 = vmatpush3.bf16.msk.msra.mxu1 %vm13871_vm1, %v20511_v33  ;;  %vm2590_vm1 = vcmp.eq.s32.totalorder %v20559_v63, %v16683_v15 }
 0x1e1   :  { %13874 = vmatprep.subr.msk.bf16.mxu1 %vm13873_vm2, %v20511_v33  ;;  %vm2591_vm2 = vcmp.eq.s32.totalorder %v20560_v29, %v16683_v15  ;;  %v20562_v15 = vld [vmem:[#allocation51_spill] sm:$0xff] }
 0x1e2   :  { %vm13883_vm6 = vmpackc.low %vm2591_vm2, %vm2590_vm1  ;;  %vm3017_vm1 = vcmp.eq.s32.totalorder %v15718_v44, %v16778_v13  ;;  %vm3018_vm2 = vcmp.eq.s32.totalorder %v20547_v39, %v16778_v13 }
 0x1e3   :  { %vm13928_vm4 = vmpackc.low %vm3018_vm2, %vm3017_vm1 }
 0x1e4   :  { %13876 = vmatpush3.bf16.msk.msra.mxu1 %vm13875_vm7, %v20511_v33  ;;  %vm2997_vm7 = vcmp.eq.s32.totalorder %v20543_v25, %v16778_v13 }
 0x1e5   :  { %13878 = vmatprep.subr.msk.bf16.mxu1 %vm13877_vm9, %v20511_v33  ;;  %vm2998_vm9 = vcmp.eq.s32.totalorder %v20544_v62, %v16778_v13 }
 0x1e6   :  { %vm13922_vm12 = vmpackc.low %vm2998_vm9, %vm2997_vm7  ;;  %vm3019_vm7 = vcmp.eq.s32.totalorder %v15776_v56, %v16778_v13  ;;  %vm3020_vm9 = vcmp.eq.s32.totalorder %v15779_v57, %v16778_v13 }
 0x1e7   :  { %vm13932_vm11 = vmpackc.low %vm3020_vm9, %vm3019_vm7 }
 0x1e8   :  { %13880 = vmatpush3.bf16.msk.msra.mxu1 %vm13879_vm15, %v20511_v33  ;;  %vm2999_vm15 = vcmp.eq.s32.totalorder %v15675_v36, %v16778_v13 }
 0x1e9   :  { %13882 = vmatprep.subr.msk.bf16.mxu1 %vm13881_vm0, %v20511_v33  ;;  %vm3000_vm0 = vcmp.eq.s32.totalorder %v15678_v37, %v16778_v13 }
 0x1ea   :  { %vm13926_vm3 = vmpackc.low %vm3000_vm0, %vm2999_vm15  ;;  %vm3021_vm15 = vcmp.eq.s32.totalorder %v15842_v7, %v16778_v13  ;;  %vm3022_vm0 = vcmp.eq.s32.totalorder %v15845_v8, %v16778_v13 }
 0x1eb   :  { %vm13936_vm2 = vmpackc.low %vm3022_vm0, %vm3021_vm15 }
 0x1ec   :  { %13884 = vmatpush3.bf16.msk.msra.mxu1 %vm13883_vm6, %v20511_v33  ;;  %vm3001_vm6 = vcmp.eq.s32.totalorder %v15737_v48, %v16778_v13 }
 0x1ed   :  { %13921 = vmatprep.subr.msk.bf16.mxu1 %vm13920_vm8, %v20511_v33  ;;  %vm3002_vm8 = vcmp.eq.s32.totalorder %v15740_v49, %v16778_v13 }
 0x1ee   :  { %vm13930_vm10 = vmpackc.low %vm3002_vm8, %vm3001_vm6  ;;  %vm3023_vm6 = vcmp.eq.s32.totalorder %v15911_v16, %v16778_v13  ;;  %vm3024_vm8 = vcmp.eq.s32.totalorder %v15914_v19, %v16778_v13 }
 0x1ef   :  { %2741 = vmatmul.mubr.f32.vlgmr.msra.gmra.mrb[56].mxu1 %v20542_v11  ;;  %vm13940_vm9 = vmpackc.low %vm3024_vm8, %vm3023_vm6 }
 0x1f0   :  { %2745 = vmatprep.mubr.f32.mxu1 %v20561_v3  ;;  %13923 = vmatpush3.bf16.msk.msra.mxu1 %vm13922_vm12, %v20511_v33  ;;  %vm3003_vm12 = vcmp.eq.s32.totalorder %v15792_v60, %v16778_v13 }
 0x1f1   :  { %13925 = vmatprep.subr.msk.bf16.mxu1 %vm13924_vm13, %v20511_v33  ;;  %vm3004_vm13 = vcmp.eq.s32.totalorder %v15795_v61, %v16778_v13 }
 0x1f2   :  { %vm13934_vm1 = vmpackc.low %vm3004_vm13, %vm3003_vm12  ;;  %vm3025_vm12 = vcmp.eq.s32.totalorder %v15984_v31, %v16778_v13  ;;  %vm3026_vm13 = vcmp.eq.s32.totalorder %v15987_v34, %v16778_v13 }
 0x1f3   :  { %2746 = vmatmul.mubr.f32.gmra.mrb[58].mxu1 %v20562_v15  ;;  %vm13944_vm0 = vmpackc.low %vm3026_vm13, %vm3025_vm12 }
 0x1f4   :  { %2750 = vmatprep.mubr.f32.mxu1 %v20563_v6  ;;  %13927 = vmatpush3.bf16.msk.msra.mxu1 %vm13926_vm3, %v20511_v33  ;;  %v11333_v27 = vpop.f32.mrb[8].mxu0  ;;  %vm3005_vm3 = vcmp.eq.s32.totalorder %v15872_v10, %v16778_v13 }
 0x1f5   :  { %v738_v50 = vpop.f32.mrb[8].mxu1  ;;  %13929 = vmatprep.subr.msk.bf16.mxu1 %vm13928_vm4, %v20511_v33  ;;  %v11334_v23 = vpop.f32.mrb[9].mxu0  ;;  %vm3006_vm4 = vcmp.eq.s32.totalorder %v15875_v12, %v16778_v13 }
 0x1f6   :  { %v11335_v9 = vadd.f32 %v11334_v23, %v11333_v27  ;;  %v740_v32 = vpop.f32.mrb[9].mxu1  ;;  %vm13938_vm7 = vmpackc.low %vm3006_vm4, %vm3005_vm3  ;;  %vm3027_vm3 = vcmp.eq.s32.totalorder %v16015_v43, %v16778_v13  ;;  %vm3028_vm4 = vcmp.eq.s32.totalorder %v16018_v46, %v16778_v13 }
 0x1f7   :  { %2751 = vmatmul.mubr.f32.gmra.mrb[60].mxu1 %v20564_v58  ;;  %vm13948_vm8 = vmpackc.low %vm3028_vm4, %vm3027_vm3 }
 0x1f8   :  { %v739_v45 = vadd.f32 %v11335_v9, %v738_v50  ;;  %2755 = vmatprep.mubr.f32.mxu1 %v20565_v42  ;;  %13931 = vmatpush3.bf16.msk.msra.mxu1 %vm13930_vm10, %v20511_v33  ;;  %v11336_v27 = vpop.f32.mrb[10].mxu0  ;;  %vm3007_vm10 = vcmp.eq.s32.totalorder %v15945_v22, %v16778_v13 }
 0x1f9   :  { %13933 = vmatprep.subr.msk.bf16.mxu1 %vm13932_vm11, %v20511_v33  ;;  %v11337_v32 = vpop.f32.mrb[11].mxu0  ;;  %vm3008_vm11 = vcmp.eq.s32.totalorder %v15948_v24, %v16778_v13 }
 0x1fa   :  { %v743_v23 = vpop.f32.mrb[10].mxu1  ;;  %v11338_v30 = vadd.f32 %v11337_v32, %v11336_v27  ;;  %vm13942_vm15 = vmpackc.low %vm3008_vm11, %vm3007_vm10 }
 0x1fb   :  { %2756 = vmatmul.mubr.f32.gmra.mrb[62].mxu1 %v20566_v28  ;;  %v745_v9 = vpop.f32.mrb[11].mxu1 }
 0x1fc   :  { %v744_v50 = vadd.f32 %v11338_v30, %v743_v23  ;;  %13935 = vmatpush3.bf16.msk.msra.mxu1 %vm13934_vm1, %v20511_v33  ;;  %3161 = vmatprep.mubr.f32.mxu1 %v16080_v52  ;;  %vm3009_vm1 = vcmp.eq.s32.totalorder %v15990_v35, %v16778_v13 }
 0x1fd   :  { %13937 = vmatprep.subr.msk.bf16.mxu1 %vm13936_vm2, %v20511_v33  ;;  %v11339_v27 = vpop.f32.mrb[12].mxu0  ;;  %vm3010_vm2 = vcmp.eq.s32.totalorder %v15993_v38, %v16778_v13 }
 0x1fe   :  { %v11340_v32 = vpop.f32.mrb[13].mxu0  ;;  %v748_v9 = vpop.f32.mrb[12].mxu1  ;;  %v16854_v14 = vpack.c.bf16 %v744_v50, %v739_v45  ;;  %vm13946_vm6 = vmpackc.low %vm3010_vm2, %vm3009_vm1 }
 0x1ff   :  { %v11341_v30 = vadd.f32 %v11340_v32, %v11339_v27  ;;  %v750_v23 = vpop.f32.mrb[13].mxu1 }
 0x200   :  { %13939 = vmatpush3.bf16.msk.msra.mxu1 %vm13938_vm7, %v20511_v33  ;;  %v16872_v23 = vrot.slane %v3413_v4, %v20536_v0  ;;  %vm3011_vm7 = vcmp.eq.s32.totalorder %v20559_v63, %v16778_v13 }
 0x201   :  { %13941 = vmatprep.subr.msk.bf16.mxu1 %vm13940_vm9, %v20511_v33  ;;  %v11342_v2 = vpop.f32.mrb[14].mxu0  ;;  %v749_v1 = vadd.f32 %v11341_v30, %v748_v9  ;;  %vm3012_vm9 = vcmp.eq.s32.totalorder %v20560_v29, %v16778_v13 }
 0x202   :  { %v11343_v45 = vpop.f32.mrb[15].mxu0  ;;  %v753_v50 = vpop.f32.mrb[14].mxu1  ;;  %vm3434_vm10 = vcmp.eq.s32.totalorder %v20540_v59, %v16872_v23  ;;  %vm3435_vm11 = vcmp.eq.s32.totalorder %v20541_v5, %v16872_v23  ;;  %vm13950_vm12 = vmpackc.low %vm3012_vm9, %vm3011_vm7  ;;  %vm3436_vm1 = vcmp.eq.s32.totalorder %v20545_v17, %v16872_v23  ;;  %vm3437_vm2 = vcmp.eq.s32.totalorder %v20546_v20, %v16872_v23 }
 0x203   :  { %v11344_v27 = vadd.f32 %v11343_v45, %v11342_v2  ;;  %v755_v32 = vpop.f32.mrb[15].mxu1  ;;  %vm13987_vm13 = vmpackc.low %vm3435_vm11, %vm3434_vm10  ;;  %vm3438_vm7 = vcmp.eq.s32.totalorder %v15718_v44, %v16872_v23  ;;  %vm3439_vm9 = vcmp.eq.s32.totalorder %v20547_v39, %v16872_v23 }
 0x204   :  { %13943 = vmatpush3.bf16.msk.msra.mxu1 %vm13942_vm15, %v20511_v33  ;;  %vm3418_vm15 = vcmp.eq.s32.totalorder %v20543_v25, %v16872_v23  ;;  %vm13991_vm4 = vmpackc.low %vm3437_vm2, %vm3436_vm1 }
 0x205   :  { %13945 = vmatprep.subr.msk.bf16.mxu1 %vm13944_vm0, %v20511_v33  ;;  %v754_v9 = vadd.f32 %v11344_v27, %v753_v50  ;;  %vm3419_vm0 = vcmp.eq.s32.totalorder %v20544_v62, %v16872_v23  ;;  %vm13995_vm11 = vmpackc.low %vm3439_vm9, %vm3438_vm7 }
 0x206   :  { %vm13989_vm3 = vmpackc.low %vm3419_vm0, %vm3418_vm15  ;;  %vm3440_vm15 = vcmp.eq.s32.totalorder %v15776_v56, %v16872_v23  ;;  %vm3441_vm0 = vcmp.eq.s32.totalorder %v15779_v57, %v16872_v23 }
 0x207   :  { %v16880_v30 = vpack.c.bf16 %v754_v9, %v749_v1  ;;  %vm13999_vm2 = vmpackc.low %vm3441_vm0, %vm3440_vm15 }
 0x208   :  { %13947 = vmatpush3.bf16.msk.msra.mxu1 %vm13946_vm6, %v20511_v33  ;;  %vm3420_vm6 = vcmp.eq.s32.totalorder %v15675_v36, %v16872_v23 }
 0x209   :  { %13949 = vmatprep.subr.msk.bf16.mxu1 %vm13948_vm8, %v20511_v33  ;;  %vm3421_vm8 = vcmp.eq.s32.totalorder %v15678_v37, %v16872_v23 }
 0x20a   :  { %vm13993_vm10 = vmpackc.low %vm3421_vm8, %vm3420_vm6  ;;  %vm3442_vm6 = vcmp.eq.s32.totalorder %v15842_v7, %v16872_v23  ;;  %vm3443_vm8 = vcmp.eq.s32.totalorder %v15845_v8, %v16872_v23 }
 0x20b   :  { %vm14003_vm9 = vmpackc.low %vm3443_vm8, %vm3442_vm6 }
 0x20c   :  { %13951 = vmatpush3.bf16.msk.msra.mxu1 %vm13950_vm12, %v20511_v33  ;;  %vm3422_vm12 = vcmp.eq.s32.totalorder %v15737_v48, %v16872_v23 }
 0x20d   :  { %13988 = vmatprep.subr.msk.bf16.mxu1 %vm13987_vm13, %v20511_v33  ;;  %vm3423_vm13 = vcmp.eq.s32.totalorder %v15740_v49, %v16872_v23 }
 0x20e   :  { %vm13997_vm1 = vmpackc.low %vm3423_vm13, %vm3422_vm12  ;;  %vm3444_vm12 = vcmp.eq.s32.totalorder %v15911_v16, %v16872_v23  ;;  %vm3445_vm13 = vcmp.eq.s32.totalorder %v15914_v19, %v16872_v23 }
 0x20f   :  { %3162 = vmatmul.mubr.f32.vlgmr.msra.gmra.mrb[64].mxu1 %v20542_v11  ;;  %vm14007_vm0 = vmpackc.low %vm3445_vm13, %vm3444_vm12 }
 0x210   :  { %3166 = vmatprep.mubr.f32.mxu1 %v20561_v3  ;;  %13990 = vmatpush3.bf16.msk.msra.mxu1 %vm13989_vm3, %v20511_v33  ;;  %vm3424_vm3 = vcmp.eq.s32.totalorder %v15792_v60, %v16872_v23 }
 0x211   :  { %13992 = vmatprep.subr.msk.bf16.mxu1 %vm13991_vm4, %v20511_v33  ;;  %vm3425_vm4 = vcmp.eq.s32.totalorder %v15795_v61, %v16872_v23 }
 0x212   :  { %vm14001_vm7 = vmpackc.low %vm3425_vm4, %vm3424_vm3  ;;  %vm3446_vm3 = vcmp.eq.s32.totalorder %v15984_v31, %v16872_v23  ;;  %vm3447_vm4 = vcmp.eq.s32.totalorder %v15987_v34, %v16872_v23 }
 0x213   :  { %3167 = vmatmul.mubr.f32.gmra.mrb[66].mxu1 %v20562_v15  ;;  %vm14011_vm8 = vmpackc.low %vm3447_vm4, %vm3446_vm3  ;;  %vm3451_vm3 = vcmp.eq.s32.totalorder %v20549_v55, %v16872_v23 }
 0x214   :  { %3171 = vmatprep.mubr.f32.mxu1 %v20563_v6  ;;  %13994 = vmatpush3.bf16.msk.msra.mxu1 %vm13993_vm10, %v20511_v33  ;;  %vm3426_vm10 = vcmp.eq.s32.totalorder %v15872_v10, %v16872_v23 }
 0x215   :  { %v11377_v1 = vpop.f32.mrb[16].mxu0  ;;  %13996 = vmatprep.subr.msk.bf16.mxu1 %vm13995_vm11, %v20511_v33  ;;  %vm3427_vm11 = vcmp.eq.s32.totalorder %v15875_v12, %v16872_v23 }
 0x216   :  { %v11378_v2 = vpop.f32.mrb[17].mxu0  ;;  %vm14005_vm15 = vmpackc.low %vm3427_vm11, %vm3426_vm10  ;;  %vm3448_vm10 = vcmp.eq.s32.totalorder %v16015_v43, %v16872_v23  ;;  %vm3449_vm11 = vcmp.eq.s32.totalorder %v16018_v46, %v16872_v23 }
 0x217   :  { %v11379_v4 = vadd.f32 %v11378_v2, %v11377_v1  ;;  %3172 = vmatmul.mubr.f32.gmra.mrb[68].mxu1 %v20564_v58  ;;  %vm14015_vm13 = vmpackc.low %vm3449_vm11, %vm3448_vm10  ;;  %vm3455_vm10 = vcmp.eq.s32.totalorder %v15698_v41, %v16872_v23 }
 0x218   :  { %3176 = vmatprep.mubr.f32.mxu1 %v20565_v42  ;;  %13998 = vmatpush3.bf16.msk.msra.mxu1 %vm13997_vm1, %v20511_v33  ;;  %vm3428_vm1 = vcmp.eq.s32.totalorder %v15945_v22, %v16872_v23 }
 0x219   :  { %v11380_v45 = vpop.f32.mrb[18].mxu0  ;;  %14000 = vmatprep.subr.msk.bf16.mxu1 %vm13999_vm2, %v20511_v33  ;;  %vm3429_vm2 = vcmp.eq.s32.totalorder %v15948_v24, %v16872_v23 }
 0x21a   :  { %v1021_v50 = vpop.f32.mrb[16].mxu1  ;;  %v11381_v27 = vpop.f32.mrb[19].mxu0  ;;  %vm14009_vm6 = vmpackc.low %vm3429_vm2, %vm3428_vm1  ;;  %vm3450_vm2 = vcmp.eq.s32.totalorder %v20548_v26, %v16872_v23 }
 0x21b   :  { %v1022_v32 = vadd.f32 %v11379_v4, %v1021_v50  ;;  %v11382_v9 = vadd.f32 %v11381_v27, %v11380_v45  ;;  %v1023_v1 = vpop.f32.mrb[17].mxu1  ;;  %3177 = vmatmul.mubr.f32.gmra.mrb[70].mxu1 %v20566_v28  ;;  %vm14020_vm4 = vmpackc.low %vm3451_vm3, %vm3450_vm2 }
 0x21c   :  { %14002 = vmatpush3.bf16.msk.msra.mxu1 %vm14001_vm7, %v20511_v33  ;;  %3582 = vmatprep.mubr.f32.mxu1 %v16080_v52  ;;  %vm3430_vm7 = vcmp.eq.s32.totalorder %v15990_v35, %v16872_v23 }
 0x21d   :  { %v11383_v2 = vpop.f32.mrb[20].mxu0  ;;  %14004 = vmatprep.subr.msk.bf16.mxu1 %vm14003_vm9, %v20511_v33  ;;  %vm3431_vm9 = vcmp.eq.s32.totalorder %v15993_v38, %v16872_v23 }
 0x21e   :  { %v1026_v13 = vpop.f32.mrb[18].mxu1  ;;  %v11384_v4 = vpop.f32.mrb[21].mxu0  ;;  %vm14013_vm12 = vmpackc.low %vm3431_vm9, %vm3430_vm7  ;;  %vm3454_vm9 = vcmp.eq.s32.totalorder %v15695_v40, %v16872_v23 }
 0x21f   :  { %v1027_v45 = vadd.f32 %v11382_v9, %v1026_v13  ;;  %v11385_v50 = vadd.f32 %v11384_v4, %v11383_v2  ;;  %v1028_v27 = vpop.f32.mrb[19].mxu1  ;;  %v9991_v4 = vld [vmem:[%s20229_s3 + $0x48] sm:$0xff]  ;;  %vm14026_vm11 = vmpackc.low %vm3455_vm10, %vm3454_vm9 }
 0x220   :  { %14006 = vmatpush3.bf16.msk.msra.mxu1 %vm14005_vm15, %v20511_v33  ;;  %vm3432_vm15 = vcmp.eq.s32.totalorder %v20559_v63, %v16872_v23  ;;  %v9994_v27 = vld [vmem:[%s20229_s3 + $0x60] sm:$0xff] }
 0x221   :  { %v13636_v1 = vpack.c.bf16 %v1027_v45, %v1022_v32  ;;  %v11386_v52 = vpop.f32.mrb[22].mxu0  ;;  %14008 = vmatprep.subr.msk.bf16.mxu1 %vm14007_vm0, %v20511_v33  ;;  %vm3433_vm0 = vcmp.eq.s32.totalorder %v20560_v29, %v16872_v23  ;;  %v9992_v45 = vld [vmem:[%s20229_s3 + $0x50] sm:$0xff] }
 0x222   :  { %v1031_v22 = vpop.f32.mrb[20].mxu1  ;;  %v11387_v19 = vpop.f32.mrb[23].mxu0  ;;  %vm14017_vm1 = vmpackc.low %vm3433_vm0, %vm3432_vm15 }
 0x223   :  { %v1032_v13 = vadd.f32 %v11385_v50, %v1031_v22  ;;  %v11388_v9 = vadd.f32 %v11387_v19, %v11386_v52  ;;  %v1033_v2 = vpop.f32.mrb[21].mxu1  ;;  %13637 = vmatprep.subr.bf16.mxu0 %v13636_v1  ;;  %v9993_v50 = vld [vmem:[%s20229_s3 + $0x58] sm:$0xff] }
 0x224   :  { %13639 = vmatpush3.bf16.msra.mxu0 %v13636_v1  ;;  %14010 = vmatpush3.bf16.msk.msra.mxu1 %vm14009_vm6, %v20511_v33  ;;  %vm3452_vm6 = vcmp.eq.s32.totalorder %v20550_v47, %v16872_v23  ;;  %v9996_v1 = vld [vmem:[%s20229_s3 + $0x70] sm:$0xff]  ;;  %v20567_v2 = vld [vmem:[#allocation62_spill] sm:$0xff] }
 0x225   :  { %14012 = vmatprep.subr.msk.bf16.mxu1 %vm14011_vm8, %v20511_v33  ;;  %vm3453_vm8 = vcmp.eq.s32.totalorder %v20551_v51, %v16872_v23  ;;  %vm1345_vm0 = vcmp.eq.s32.totalorder %v20548_v26, %v20567_v2 }
 0x226   :  { %v1036_v32 = vpop.f32.mrb[22].mxu1  ;;  %vm14023_vm7 = vmpackc.low %vm3453_vm8, %vm3452_vm6  ;;  %vm1347_vm8 = vcmp.eq.s32.totalorder %v20550_v47, %v20567_v2 }
 0x227   :  { %v1037_v19 = vadd.f32 %v11388_v9, %v1036_v32  ;;  %v1038_v22 = vpop.f32.mrb[23].mxu1 }
 0x228   :  { %14014 = vmatpush3.bf16.msk.msra.mxu1 %vm14013_vm12, %v20511_v33  ;;  %vm3456_vm12 = vcmp.eq.s32.totalorder %v15763_v53, %v16872_v23  ;;  %v20569_v22 = vld [vmem:[#allocation21_spill] sm:$0xff] }
 0x229   :  { %v13640_v52 = vpack.c.bf16 %v1037_v19, %v1032_v13  ;;  %14016 = vmatprep.subr.msk.bf16.mxu1 %vm14015_vm13, %v20511_v33  ;;  %vm3457_vm13 = vcmp.eq.s32.totalorder %v15766_v54, %v16872_v23  ;;  %v757_v13 = vld [vmem:[%s20229_s3] sm:$0xff]  ;;  %v20568_v19 = vld [vmem:[#allocation20_spill] sm:$0xff]  ;;  %vm3459_vm3 = vcmp.eq.s32.totalorder %v20569_v22, %v16872_v23 }
 0x22a   :  { %vm14029_vm15 = vmpackc.low %vm3457_vm13, %vm3456_vm12  ;;  %vm3458_vm2 = vcmp.eq.s32.totalorder %v20568_v19, %v16872_v23  ;;  %vm1349_vm13 = vcmp.eq.s32.totalorder %v15695_v40, %v20567_v2 }
 0x22b   :  { %13641 = vmatprep.subr.bf16.mxu0 %v13640_v52  ;;  %vm14032_vm6 = vmpackc.low %vm3459_vm3, %vm3458_vm2 }
 0x22c   :  { %13643 = vmatpush3.bf16.msra.mxu0 %v13640_v52  ;;  %14018 = vmatpush3.bf16.msk.msra.mxu1 %vm14017_vm1, %v20511_v33  ;;  %vm1346_vm1 = vcmp.eq.s32.totalorder %v20549_v55, %v20567_v2 }
 0x22d   :  { %13645 = vmatprep.subr.bf16.mxu0 %v16854_v14  ;;  %14019 = vmatprep.subr.bf16.mxu1 %v20517_v18 }
 0x22f   :  { %12521 = vmatmul.mubr.msk.f32.vlgmr.msra.gmra.mrb[24].mxu0 %vm1049_vm5, %v9991_v4  ;;  %3583 = vmatmul.mubr.f32.vlgmr.msra.gmra.mrb[72].mxu1 %v20542_v11  ;;  %v20571_v4 = vld [vmem:[#allocation48_spill] sm:$0xff] }
 0x230   :  { %13647 = vmatpush3.bf16.msra.mxu0 %v16854_v14  ;;  %3587 = vmatprep.mubr.f32.mxu1 %v20561_v3  ;;  %v9995_v14 = vld [vmem:[%s20229_s3 + $0x68] sm:$0xff] }
 0x231   :  { %14021 = vmatpush1.bf16.msk.msra.mxu1 %vm14020_vm4, %v20511_v33  ;;  %13649 = vmatprep.subr.bf16.mxu0 %v16880_v30  ;;  %vm13685_vm4 = vmpackc.low %vm1346_vm1, %vm1345_vm0 }
 0x232   :  { %12523 = vmatprep.mubr.msk.f32.mxu0 %vm1049_vm5, %v9992_v45  ;;  %14022 = vmatprep.subr.bf16.mxu1 %v20517_v18  ;;  %v758_v45 = vld [vmem:[%s20229_s3 + $0x8] sm:$0xff] }
 0x233   :  { %12524 = vmatmul.mubr.msk.f32.gmra.mrb[26].mxu0 %vm1049_vm5, %v9993_v50  ;;  %3588 = vmatmul.mubr.f32.gmra.mrb[74].mxu1 %v20562_v15  ;;  %v759_v50 = vld [vmem:[%s20229_s3 + $0x10] sm:$0xff] }
 0x234   :  { %13651 = vmatpush3.bf16.msra.mxu0 %v16880_v30  ;;  %3592 = vmatprep.mubr.f32.mxu1 %v20563_v6  ;;  %v9997_v30 = vld [vmem:[%s20229_s3 + $0x78] sm:$0xff] }
 0x235   :  { %14024 = vmatpush1.bf16.msk.msra.mxu1 %vm14023_vm7, %v20511_v33  ;;  %12526 = vmatprep.mubr.msk.f32.mxu0 %vm1049_vm5, %v9994_v27  ;;  %vm1348_vm7 = vcmp.eq.s32.totalorder %v20551_v51, %v20567_v2 }
 0x236   :  { %14025 = vmatprep.subr.bf16.mxu1 %v20517_v18  ;;  %13684 = vmatprep.subr.bf16.mxu0 %v20517_v18 }
 0x237   :  { %12527 = vmatmul.mubr.msk.f32.gmra.mrb[28].mxu0 %vm1049_vm5, %v9995_v14  ;;  %3593 = vmatmul.mubr.f32.gmra.mrb[76].mxu1 %v20564_v58  ;;  %v764_v58 = vld [vmem:[%s20229_s3 + $0x38] sm:$0xff] }
 0x238   :  { %3597 = vmatprep.mubr.f32.mxu1 %v20565_v42  ;;  %12529 = vmatprep.mubr.msk.f32.mxu0 %vm1049_vm5, %v9996_v1  ;;  %v20572_v1 = vld [vmem:[#allocation26_spill] sm:$0xff] }
 0x239   :  { %14027 = vmatpush1.bf16.msk.msra.mxu1 %vm14026_vm11, %v20511_v33  ;;  %vm3460_vm9 = vcmp.eq.s32.totalorder %v20572_v1, %v16872_v23  ;;  %vm13688_vm11 = vmpackc.low %vm1348_vm7, %vm1347_vm8 }
 0x23a   :  { %v11445_v9 = vpop.f32.mrb[24].mxu1  ;;  %14028 = vmatprep.subr.bf16.mxu1 %v20517_v18 }
 0x23b   :  { %12530 = vmatmul.mubr.msk.f32.gmra.mrb[30].mxu0 %vm1049_vm5, %v9997_v30  ;;  %v11446_v32 = vpop.f32.mrb[25].mxu1  ;;  %3598 = vmatmul.mubr.f32.gmra.mrb[78].mxu1 %v20566_v28  ;;  %v20573_v30 = vld [vmem:[#allocation27_spill] sm:$0xff] }
 0x23c   :  { %v17047_v52 = vadd.f32 %v11446_v32, %v11445_v9  ;;  %10414 = vmatprep.mubr.msk.f32.mxu1 %vm20391_vm14, %v20571_v4  ;;  %12540 = vmatprep.mubr.msk.f32.mxu0 %vm1049_vm5, %v757_v13  ;;  %vm3461_vm10 = vcmp.eq.s32.totalorder %v20573_v30, %v16872_v23  ;;  %v760_v9 = vld [vmem:[%s20229_s3 + $0x18] sm:$0xff]  ;;  %v761_v32 = vld [vmem:[%s20229_s3 + $0x20] sm:$0xff] }
 0x23d   :  { %14030 = vmatpush1.bf16.msk.msra.mxu1 %vm14029_vm15, %v20511_v33  ;;  %vm14035_vm12 = vmpackc.low %vm3461_vm10, %vm3460_vm9  ;;  %vm1350_vm15 = vcmp.eq.s32.totalorder %v15698_v41, %v20567_v2 }
 0x23e   :  { %20570 = vst [vmem:[#allocation8_spill] sm:$0xff] %v17047_v52  ;;  %v11448_v27 = vpop.f32.mrb[26].mxu1  ;;  %14031 = vmatprep.subr.bf16.mxu1 %v20517_v18  ;;  %v762_v52 = vld [vmem:[%s20229_s3 + $0x28] sm:$0xff]  ;;  %vm13691_vm2 = vmpackc.low %vm1350_vm15, %vm1349_vm13 }
 0x23f   :  { %12541 = vmatmul.mubr.msk.f32.vlgmr.msra.gmra.mrb[24].mxu0 %vm1049_vm5, %v758_v45  ;;  %v11449_v14 = vpop.f32.mrb[27].mxu1 }
 0x240   :  { %v17069_v13 = vadd.f32 %v11449_v14, %v11448_v27  ;;  %13686 = vmatpush1.bf16.msk.msra.mxu0 %vm13685_vm4, %v20511_v33  ;;  %12543 = vmatprep.mubr.msk.f32.mxu0 %vm1049_vm5, %v759_v50  ;;  %v20575_v27 = vld [vmem:[#allocation32_spill] sm:$0xff]  ;;  %v20576_v14 = vld [vmem:[#allocation33_spill] sm:$0xff]  ;;  %vm1351_vm4 = vcmp.eq.s32.totalorder %v15763_v53, %v20567_v2 }
 0x241   :  { %14033 = vmatpush1.bf16.msk.msra.mxu1 %vm14032_vm6, %v20511_v33  ;;  %13687 = vmatprep.subr.bf16.mxu0 %v20517_v18  ;;  %vm3462_vm0 = vcmp.eq.s32.totalorder %v20575_v27, %v16872_v23  ;;  %vm3463_vm1 = vcmp.eq.s32.totalorder %v20576_v14, %v16872_v23  ;;  %vm1352_vm6 = vcmp.eq.s32.totalorder %v15766_v54, %v20567_v2 }
 0x242   :  { %20574 = vst [vmem:[#allocation11_spill] sm:$0xff] %v17069_v13  ;;  %v11451_v45 = vpop.f32.mrb[28].mxu1  ;;  %14034 = vmatprep.subr.bf16.mxu1 %v20517_v18  ;;  %vm14038_vm3 = vmpackc.low %vm3463_vm1, %vm3462_vm0 }
 0x243   :  { %12544 = vmatmul.mubr.msk.f32.gmra.mrb[26].mxu0 %vm1049_vm5, %v760_v9  ;;  %v11452_v50 = vpop.f32.mrb[29].mxu1  ;;  %v763_v9 = vld [vmem:[%s20229_s3 + $0x30] sm:$0xff]  ;;  %vm13694_vm9 = vmpackc.low %vm1352_vm6, %vm1351_vm4 }
 0x244   :  { %v17091_v13 = vadd.f32 %v11452_v50, %v11451_v45  ;;  %13689 = vmatpush1.bf16.msk.msra.mxu0 %vm13688_vm11, %v20511_v33  ;;  %12546 = vmatprep.mubr.msk.f32.mxu0 %vm1049_vm5, %v761_v32  ;;  %v20578_v45 = vld [vmem:[#allocation38_spill] sm:$0xff]  ;;  %v20579_v50 = vld [vmem:[#allocation39_spill] sm:$0xff]  ;;  %vm1353_vm11 = vcmp.eq.s32.totalorder %v20568_v19, %v20567_v2 }
 0x245   :  { %14036 = vmatpush1.bf16.msk.msra.mxu1 %vm14035_vm12, %v20511_v33  ;;  %13690 = vmatprep.subr.bf16.mxu0 %v20517_v18  ;;  %vm3464_vm8 = vcmp.eq.s32.totalorder %v20578_v45, %v16872_v23  ;;  %vm3465_vm7 = vcmp.eq.s32.totalorder %v20579_v50, %v16872_v23  ;;  %vm1354_vm12 = vcmp.eq.s32.totalorder %v20569_v22, %v20567_v2 }
 0x246   :  { %20577 = vst [vmem:[#allocation12_spill] sm:$0xff] %v17091_v13  ;;  %v11454_v28 = vpop.f32.mrb[30].mxu1  ;;  %14037 = vmatprep.subr.bf16.mxu1 %v20517_v18  ;;  %v3834_v13 = vadd.s32 40, %v16605_v21  ;;  %vm14041_vm10 = vmpackc.low %vm3465_vm7, %vm3464_vm8  ;;  %v20582_v21 = vld [vmem:[#allocation45_spill] sm:$0xff] }
 0x247   :  { %12547 = vmatmul.mubr.msk.f32.gmra.mrb[28].mxu0 %vm1049_vm5, %v762_v52  ;;  %v11455_v32 = vpop.f32.mrb[31].mxu1  ;;  %vm3467_vm15 = vcmp.eq.s32.totalorder %v20582_v21, %v16872_v23  ;;  %vm13697_vm0 = vmpackc.low %vm1354_vm12, %vm1353_vm11 }
 0x248   :  { %v17114_v42 = vadd.f32 %v11455_v32, %v11454_v28  ;;  %13692 = vmatpush1.bf16.msk.msra.mxu0 %vm13691_vm2, %v20511_v33  ;;  %12549 = vmatprep.mubr.msk.f32.mxu0 %vm1049_vm5, %v763_v9  ;;  %v20581_v28 = vld [vmem:[#allocation44_spill] sm:$0xff]  ;;  %v17134_v52 = vrot.slane %v3834_v13, %v20536_v0  ;;  %vm1355_vm2 = vcmp.eq.s32.totalorder %v20572_v1, %v20567_v2  ;;  %v20587_v9 = vld [vmem:[#allocation57_spill] sm:$0xff] }
 0x249   :  { %14039 = vmatpush1.bf16.msk.msra.mxu1 %vm14038_vm3, %v20511_v33  ;;  %13693 = vmatprep.subr.bf16.mxu0 %v20517_v18  ;;  %vm3466_vm13 = vcmp.eq.s32.totalorder %v20581_v28, %v16872_v23  ;;  %vm1356_vm3 = vcmp.eq.s32.totalorder %v20573_v30, %v20567_v2  ;;  %v20585_v23 = vld [vmem:[#allocation53_spill] sm:$0xff]  ;;  %v20586_v13 = vld [vmem:[#allocation52_spill] sm:$0xff] }
 0x24a   :  { %20580 = vst [vmem:[#allocation15_spill] sm:$0xff] %v17114_v42  ;;  %14040 = vmatprep.subr.bf16.mxu1 %v20517_v18  ;;  %20583 = vst [vmem:[#allocation6_spill] sm:$0xff] %v17134_v52  ;;  %vm3871_vm4 = vcmp.eq.s32.totalorder %v20548_v26, %v17134_v52  ;;  %vm3872_vm6 = vcmp.eq.s32.totalorder %v20549_v55, %v17134_v52  ;;  %vm3873_vm11 = vcmp.eq.s32.totalorder %v20550_v47, %v17134_v52 }
 0x24b   :  { %12550 = vmatmul.mubr.msk.f32.gmra.mrb[30].mxu0 %vm1049_vm5, %v764_v58  ;;  %vm14044_vm1 = vmpackc.low %vm3467_vm15, %vm3466_vm13  ;;  %vm3874_vm12 = vcmp.eq.s32.totalorder %v20551_v51, %v17134_v52  ;;  %v20584_v58 = vld [vmem:[#allocation49_spill] sm:$0xff] }
 0x24c   :  { %13695 = vmatpush1.bf16.msk.msra.mxu0 %vm13694_vm9, %v20511_v33  ;;  %10064 = vmatprep.mubr.msk.f32.mxu0 %vm20391_vm14, %v20571_v4  ;;  %vm13700_vm8 = vmpackc.low %vm1356_vm3, %vm1355_vm2  ;;  %vm1357_vm9 = vcmp.eq.s32.totalorder %v20575_v27, %v20567_v2  ;;  %vm3875_vm2 = vcmp.eq.s32.totalorder %v15695_v40, %v17134_v52  ;;  %vm3876_vm3 = vcmp.eq.s32.totalorder %v15698_v41, %v17134_v52  ;;  %v20588_v40 = vld [vmem:[#allocation55_spill] sm:$0xff]  ;;  %v20589_v51 = vld [vmem:[#allocation61_spill] sm:$0xff] }
 0x24d   :  { %14042 = vmatpush1.bf16.msk.msra.mxu1 %vm14041_vm10, %v20511_v33  ;;  %13696 = vmatprep.subr.bf16.mxu0 %v20517_v18  ;;  %vm14087_vm7 = vmpackc.low %vm3872_vm6, %vm3871_vm4  ;;  %vm1358_vm10 = vcmp.eq.s32.totalorder %v20576_v14, %v20567_v2 }
 0x24e   :  { %14043 = vmatprep.subr.bf16.mxu1 %v20517_v18  ;;  %vm13703_vm13 = vmpackc.low %vm1358_vm10, %vm1357_vm9  ;;  %vm3877_vm9 = vcmp.eq.s32.totalorder %v15763_v53, %v17134_v52  ;;  %vm3878_vm10 = vcmp.eq.s32.totalorder %v15766_v54, %v17134_v52 }
 0x24f   :  { %vm14090_vm15 = vmpackc.low %vm3874_vm12, %vm3873_vm11 }
 0x250   :  { %13698 = vmatpush1.bf16.msk.msra.mxu0 %vm13697_vm0, %v20511_v33  ;;  %vm1359_vm0 = vcmp.eq.s32.totalorder %v20578_v45, %v20567_v2  ;;  %vm14093_vm6 = vmpackc.low %vm3876_vm3, %vm3875_vm2  ;;  %vm3882_vm2 = vcmp.eq.s32.totalorder %v20573_v30, %v17134_v52 }
 0x251   :  { %14045 = vmatpush1.bf16.msk.msra.mxu1 %vm14044_vm1, %v20511_v33  ;;  %13699 = vmatprep.subr.bf16.mxu0 %v20517_v18  ;;  %vm1360_vm1 = vcmp.eq.s32.totalorder %v20579_v50, %v20567_v2  ;;  %vm14096_vm12 = vmpackc.low %vm3878_vm10, %vm3877_vm9  ;;  %vm3886_vm9 = vcmp.eq.s32.totalorder %v20579_v50, %v17134_v52 }
 0x252   :  { %14086 = vmatprep.subr.bf16.mxu1 %v20517_v18  ;;  %vm13706_vm4 = vmpackc.low %vm1360_vm1, %vm1359_vm0  ;;  %vm3881_vm1 = vcmp.eq.s32.totalorder %v20572_v1, %v17134_v52 }
 0x253   :  { %vm14102_vm3 = vmpackc.low %vm3882_vm2, %vm3881_vm1 }
 0x254   :  { %13701 = vmatpush1.bf16.msk.msra.mxu0 %vm13700_vm8, %v20511_v33  ;;  %3668 = vmatmul.mubr.f32.vlgmr.msra.gmra.mrb[80].mxu1 %v20584_v58  ;;  %vm1361_vm8 = vcmp.eq.s32.totalorder %v20581_v28, %v20567_v2 }
 0x255   :  { %10415 = vmatprep.mubr.msk.f32.mxu1 %vm20391_vm14, %v20585_v23  ;;  %14088 = vmatpush1.bf16.msk.msra.mxu1 %vm14087_vm7, %v20511_v33  ;;  %vm1362_vm7 = vcmp.eq.s32.totalorder %v20582_v21, %v20567_v2 }
 0x256   :  { %13702 = vmatprep.subr.bf16.mxu0 %v20517_v18  ;;  %14089 = vmatprep.subr.bf16.mxu1 %v20517_v18  ;;  %vm13709_vm11 = vmpackc.low %vm1362_vm7, %vm1361_vm8  ;;  %vm3885_vm7 = vcmp.eq.s32.totalorder %v20578_v45, %v17134_v52 }
 0x257   :  { %vm14108_vm10 = vmpackc.low %vm3886_vm9, %vm3885_vm7 }
 0x258   :  { %13704 = vmatpush1.bf16.msk.msra.mxu0 %vm13703_vm13, %v20511_v33  ;;  %3673 = vmatmul.mubr.f32.gmra.mrb[82].mxu1 %v20586_v13  ;;  %vm3879_vm13 = vcmp.eq.s32.totalorder %v20568_v19, %v17134_v52 }
 0x259   :  { %10416 = vmatprep.mubr.msk.f32.mxu1 %vm20391_vm14, %v20587_v9  ;;  %14091 = vmatpush1.bf16.msk.msra.mxu1 %vm14090_vm15, %v20511_v33  ;;  %vm3880_vm15 = vcmp.eq.s32.totalorder %v20569_v22, %v17134_v52 }
 0x25a   :  { %13705 = vmatprep.subr.bf16.mxu0 %v20517_v18  ;;  %v11501_v32 = vpop.f32.mrb[32].mxu1  ;;  %14092 = vmatprep.subr.bf16.mxu1 %v20517_v18  ;;  %vm14099_vm0 = vmpackc.low %vm3880_vm15, %vm3879_vm13 }
 0x25b   :  { %v11502_v42 = vpop.f32.mrb[33].mxu1 }
 0x25c   :  { %13707 = vmatpush1.bf16.msk.msra.mxu0 %vm13706_vm4, %v20511_v33  ;;  %v17193_v41 = vadd.f32 %v11502_v42, %v11501_v32  ;;  %3678 = vmatmul.mubr.f32.gmra.mrb[84].mxu1 %v20588_v40  ;;  %v20590_v32 = vld [vmem:[#allocation60_spill] sm:$0xff]  ;;  %vm3883_vm4 = vcmp.eq.s32.totalorder %v20575_v27, %v17134_v52 }
 0x25d   :  { %10417 = vmatprep.mubr.msk.f32.mxu1 %vm20391_vm14, %v20589_v51  ;;  %14094 = vmatpush1.bf16.msk.msra.mxu1 %vm14093_vm6, %v20511_v33  ;;  %vm3884_vm6 = vcmp.eq.s32.totalorder %v20576_v14, %v17134_v52 }
 0x25e   :  { %13708 = vmatprep.subr.bf16.mxu0 %v20517_v18  ;;  %v11504_v2 = vpop.f32.mrb[34].mxu1  ;;  %14095 = vmatprep.subr.bf16.mxu1 %v20517_v18  ;;  %vm14105_vm8 = vmpackc.low %vm3884_vm6, %vm3883_vm4 }
 0x25f   :  { %v11505_v53 = vpop.f32.mrb[35].mxu1 }
 0x260   :  { %13710 = vmatpush1.bf16.msk.msra.mxu0 %vm13709_vm11, %v20511_v33  ;;  %v17206_v42 = vadd.f32 %v11505_v53, %v11504_v2  ;;  %3683 = vmatmul.mubr.f32.gmra.mrb[86].mxu1 %v20590_v32  ;;  %vm3887_vm11 = vcmp.eq.s32.totalorder %v20581_v28, %v17134_v52 }
 0x261   :  { %14097 = vmatpush1.bf16.msk.msra.mxu1 %vm14096_vm12, %v20511_v33  ;;  %10484 = vmatprep.mubr.msk.f32.mxu1 %vm20391_vm14, %v20571_v4  ;;  %vm3888_vm12 = vcmp.eq.s32.totalorder %v20582_v21, %v17134_v52 }
 0x262   :  { %v11507_v54 = vpop.f32.mrb[36].mxu1  ;;  %14098 = vmatprep.subr.bf16.mxu1 %v20517_v18 }
 0x263   :  { %1563 = vmatmul.mubr.f32.vlgmr.msra.gmra.mrb[32].mxu0 %v20584_v58  ;;  %v11508_v19 = vpop.f32.mrb[37].mxu1 }
 0x264   :  { %10065 = vmatprep.mubr.msk.f32.mxu0 %vm20391_vm14, %v20585_v23  ;;  %v17220_v53 = vadd.f32 %v11508_v19, %v11507_v54  ;;  %v17236_v19 = vld [vmem:[%s20227_s7] sm:$0x1] }
 0x265   :  { %14100 = vmatpush1.bf16.msk.msra.mxu1 %vm14099_vm0, %v20511_v33  ;;  %v4255_v30 = vadd.s32 41, %v17236_v19  ;;  %vm14111_vm0 = vmpackc.low %vm3888_vm12, %vm3887_vm11 }
 0x266   :  { %v11510_v2 = vpop.f32.mrb[38].mxu1  ;;  %14101 = vmatprep.subr.bf16.mxu1 %v20517_v18 }
 0x267   :  { %1568 = vmatmul.mubr.f32.gmra.mrb[34].mxu0 %v20586_v13  ;;  %v11511_v4 = vpop.f32.mrb[39].mxu1 }
 0x268   :  { %10066 = vmatprep.mubr.msk.f32.mxu0 %vm20391_vm14, %v20587_v9  ;;  %v17231_v54 = vadd.f32 %v11511_v4, %v11510_v2  ;;  %v17249_v4 = vrot.slane %v4255_v30, %v20536_v0 }
 0x269   :  { %14103 = vmatpush1.bf16.msk.msra.mxu1 %vm14102_vm3, %v20511_v33 }
 0x26a   :  { %14104 = vmatprep.subr.bf16.mxu1 %v20517_v18  ;;  %20591 = vst [vmem:[#allocation7_spill] sm:$0xff] %v17249_v4  ;;  %vm4276_vm13 = vcmp.eq.s32.totalorder %v20540_v59, %v17249_v4  ;;  %vm4277_vm15 = vcmp.eq.s32.totalorder %v20541_v5, %v17249_v4  ;;  %vm4260_vm2 = vcmp.eq.s32.totalorder %v20543_v25, %v17249_v4 }
 0x26b   :  { %1573 = vmatmul.mubr.f32.gmra.mrb[36].mxu0 %v20588_v40  ;;  %vm14121_vm1 = vmpackc.low %vm4277_vm15, %vm4276_vm13  ;;  %vm4261_vm3 = vcmp.eq.s32.totalorder %v20544_v62, %v17249_v4  ;;  %vm4278_vm4 = vcmp.eq.s32.totalorder %v20545_v17, %v17249_v4  ;;  %vm4279_vm6 = vcmp.eq.s32.totalorder %v20546_v20, %v17249_v4  ;;  %vm4262_vm9 = vcmp.eq.s32.totalorder %v15675_v36, %v17249_v4 }
 0x26c   :  { %10067 = vmatprep.mubr.msk.f32.mxu0 %vm20391_vm14, %v20589_v51  ;;  %vm14125_vm7 = vmpackc.low %vm4279_vm6, %vm4278_vm4  ;;  %vm4280_vm11 = vcmp.eq.s32.totalorder %v15718_v44, %v17249_v4  ;;  %vm4281_vm12 = vcmp.eq.s32.totalorder %v20547_v39, %v17249_v4 }
 0x26d   :  { %14106 = vmatpush1.bf16.msk.msra.mxu1 %vm14105_vm8, %v20511_v33  ;;  %vm14123_vm8 = vmpackc.low %vm4261_vm3, %vm4260_vm2  ;;  %vm4282_vm2 = vcmp.eq.s32.totalorder %v15776_v56, %v17249_v4  ;;  %vm4283_vm3 = vcmp.eq.s32.totalorder %v15779_v57, %v17249_v4 }
 0x26e   :  { %14107 = vmatprep.subr.bf16.mxu1 %v20517_v18  ;;  %vm14129_vm15 = vmpackc.low %vm4281_vm12, %vm4280_vm11 }
 0x26f   :  { %1578 = vmatmul.mubr.f32.gmra.mrb[38].mxu0 %v20590_v32  ;;  %vm14133_vm6 = vmpackc.low %vm4283_vm3, %vm4282_vm2 }
 0x271   :  { %14109 = vmatpush1.bf16.msk.msra.mxu1 %vm14108_vm10, %v20511_v33  ;;  %vm4263_vm10 = vcmp.eq.s32.totalorder %v15678_v37, %v17249_v4 }
 0x272   :  { %14110 = vmatprep.subr.bf16.mxu1 %v20517_v18  ;;  %vm14127_vm13 = vmpackc.low %vm4263_vm10, %vm4262_vm9  ;;  %vm4284_vm9 = vcmp.eq.s32.totalorder %v15842_v7, %v17249_v4  ;;  %vm4285_vm10 = vcmp.eq.s32.totalorder %v15845_v8, %v17249_v4 }
 0x273   :  { %vm14137_vm12 = vmpackc.low %vm4285_vm10, %vm4284_vm9 }
 0x275   :  { %14112 = vmatpush1.bf16.msk.msra.mxu1 %vm14111_vm0, %v20511_v33  ;;  %vm4264_vm0 = vcmp.eq.s32.totalorder %v15737_v48, %v17249_v4 }
 0x276   :  { %14122 = vmatprep.subr.msk.bf16.mxu1 %vm14121_vm1, %v20511_v33  ;;  %vm4265_vm1 = vcmp.eq.s32.totalorder %v15740_v49, %v17249_v4 }
 0x277   :  { %vm14131_vm4 = vmpackc.low %vm4265_vm1, %vm4264_vm0  ;;  %vm4286_vm0 = vcmp.eq.s32.totalorder %v15911_v16, %v17249_v4 }
 0x278   :  { %4089 = vmatmul.mubr.f32.vlgmr.msra.gmra.mrb[88].mxu1 %v20584_v58 }
 0x279   :  { %10485 = vmatprep.mubr.msk.f32.mxu1 %vm20391_vm14, %v20585_v23  ;;  %14124 = vmatpush3.bf16.msk.msra.mxu1 %vm14123_vm8, %v20511_v33  ;;  %vm4266_vm8 = vcmp.eq.s32.totalorder %v15792_v60, %v17249_v4 }
 0x27a   :  { %14126 = vmatprep.subr.msk.bf16.mxu1 %vm14125_vm7, %v20511_v33  ;;  %vm4267_vm7 = vcmp.eq.s32.totalorder %v15795_v61, %v17249_v4 }
 0x27b   :  { %vm14135_vm11 = vmpackc.low %vm4267_vm7, %vm4266_vm8  ;;  %vm4288_vm8 = vcmp.eq.s32.totalorder %v15984_v31, %v17249_v4  ;;  %vm4289_vm7 = vcmp.eq.s32.totalorder %v15987_v34, %v17249_v4 }
 0x27c   :  { %4094 = vmatmul.mubr.f32.gmra.mrb[90].mxu1 %v20586_v13  ;;  %vm14145_vm10 = vmpackc.low %vm4289_vm7, %vm4288_vm8 }
 0x27d   :  { %10486 = vmatprep.mubr.msk.f32.mxu1 %vm20391_vm14, %v20587_v9  ;;  %14128 = vmatpush3.bf16.msk.msra.mxu1 %vm14127_vm13, %v20511_v33  ;;  %vm4268_vm13 = vcmp.eq.s32.totalorder %v15872_v10, %v17249_v4 }
 0x27e   :  { %v1985_v30 = vpop.f32.mrb[40].mxu1  ;;  %14130 = vmatprep.subr.msk.bf16.mxu1 %vm14129_vm15, %v20511_v33  ;;  %vm4269_vm15 = vcmp.eq.s32.totalorder %v15875_v12, %v17249_v4 }
 0x27f   :  { %v1986_v2 = vadd.f32 %v17193_v41, %v1985_v30  ;;  %v1987_v52 = vpop.f32.mrb[41].mxu1  ;;  %vm14139_vm2 = vmpackc.low %vm4269_vm15, %vm4268_vm13  ;;  %vm4290_vm13 = vcmp.eq.s32.totalorder %v16015_v43, %v17249_v4  ;;  %vm4291_vm15 = vcmp.eq.s32.totalorder %v16018_v46, %v17249_v4 }
 0x280   :  { %4099 = vmatmul.mubr.f32.gmra.mrb[92].mxu1 %v20588_v40 }
 0x281   :  { %10487 = vmatprep.mubr.msk.f32.mxu1 %vm20391_vm14, %v20589_v51  ;;  %14132 = vmatpush3.bf16.msk.msra.mxu1 %vm14131_vm4, %v20511_v33  ;;  %v20592_v51 = vld [vmem:[#allocation29_spill] sm:$0xff] }
 0x282   :  { %v1990_v41 = vpop.f32.mrb[42].mxu1  ;;  %14134 = vmatprep.subr.msk.bf16.mxu1 %vm14133_vm6, %v20511_v33  ;;  %vm4287_vm1 = vcmp.eq.s32.totalorder %v20592_v51, %v17249_v4  ;;  %vm4271_vm6 = vcmp.eq.s32.totalorder %v15948_v24, %v17249_v4 }
 0x283   :  { %v1991_v52 = vadd.f32 %v17206_v42, %v1990_v41  ;;  %v1992_v30 = vpop.f32.mrb[43].mxu1  ;;  %v20594_v42 = vld [vmem:[#allocation47_spill] sm:$0xff]  ;;  %vm14141_vm3 = vmpackc.low %vm4287_vm1, %vm4286_vm0 }
 0x284   :  { %4104 = vmatmul.mubr.f32.gmra.mrb[94].mxu1 %v20590_v32  ;;  %v20595_v32 = vld [vmem:[#allocation30_spill] sm:$0xff]  ;;  %vm14149_vm1 = vmpackc.low %vm4291_vm15, %vm4290_vm13 }
 0x285   :  { %v17324_v40 = vpack.c.bf16 %v1991_v52, %v1986_v2  ;;  %14136 = vmatpush3.bf16.msk.msra.mxu1 %vm14135_vm11, %v20511_v33  ;;  %4424 = vmatprep.mubr.f32.mxu1 %v20594_v42  ;;  %vm4270_vm4 = vcmp.eq.s32.totalorder %v20595_v32, %v17249_v4  ;;  %v4676_v2 = vadd.s32 42, %v17236_v19  ;;  %vm4272_vm11 = vcmp.eq.s32.totalorder %v15990_v35, %v17249_v4 }
 0x286   :  { %v1995_v41 = vpop.f32.mrb[44].mxu1  ;;  %14138 = vmatprep.subr.msk.bf16.mxu1 %vm14137_vm12, %v20511_v33  ;;  %vm14143_vm9 = vmpackc.low %vm4271_vm6, %vm4270_vm4  ;;  %vm4273_vm12 = vcmp.eq.s32.totalorder %v15993_v38, %v17249_v4 }
 0x287   :  { %20593 = vst [vmem:[#allocation9_spill] sm:$0xff] %v17324_v40  ;;  %v1996_v30 = vadd.f32 %v17220_v53, %v1995_v41  ;;  %v1997_v9 = vpop.f32.mrb[45].mxu1  ;;  %v17351_v41 = vrot.slane %v4676_v2, %v20536_v0  ;;  %vm14147_vm0 = vmpackc.low %vm4273_vm12, %vm4272_vm11 }
 0x289   :  { %14140 = vmatpush3.bf16.msk.msra.mxu1 %vm14139_vm2, %v20511_v33  ;;  %20596 = vst [vmem:[#allocation62_spill] sm:$0xff] %v17351_v41  ;;  %vm4274_vm2 = vcmp.eq.s32.totalorder %v20559_v63, %v17249_v4  ;;  %vm4697_vm4 = vcmp.eq.s32.totalorder %v20540_v59, %v17351_v41  ;;  %vm4698_vm6 = vcmp.eq.s32.totalorder %v20541_v5, %v17351_v41 }
 0x28a   :  { %v2000_v52 = vpop.f32.mrb[46].mxu1  ;;  %14142 = vmatprep.subr.msk.bf16.mxu1 %vm14141_vm3, %v20511_v33  ;;  %vm4275_vm3 = vcmp.eq.s32.totalorder %v20560_v29, %v17249_v4  ;;  %vm14188_vm7 = vmpackc.low %vm4698_vm6, %vm4697_vm4  ;;  %vm4699_vm11 = vcmp.eq.s32.totalorder %v20545_v17, %v17351_v41  ;;  %vm4700_vm12 = vcmp.eq.s32.totalorder %v20546_v20, %v17351_v41  ;;  %v5097_v4 = vadd.s32 43, %v17236_v19 }
 0x28b   :  { %v2001_v9 = vadd.f32 %v17231_v54, %v2000_v52  ;;  %v2002_v53 = vpop.f32.mrb[47].mxu1  ;;  %vm14151_vm8 = vmpackc.low %vm4275_vm3, %vm4274_vm2  ;;  %vm4701_vm2 = vcmp.eq.s32.totalorder %v15718_v44, %v17351_v41  ;;  %vm4702_vm3 = vcmp.eq.s32.totalorder %v20547_v39, %v17351_v41  ;;  %v20598_v54 = vld [vmem:[#allocation54_spill] sm:$0xff] }
 0x28c   :  { %vm14192_vm15 = vmpackc.low %vm4700_vm12, %vm4699_vm11 }
 0x28d   :  { %v17353_v40 = vpack.c.bf16 %v2001_v9, %v1996_v30  ;;  %14144 = vmatpush3.bf16.msk.msra.mxu1 %vm14143_vm9, %v20511_v33  ;;  %vm4681_vm9 = vcmp.eq.s32.totalorder %v20543_v25, %v17351_v41  ;;  %vm14196_vm6 = vmpackc.low %vm4702_vm3, %vm4701_vm2  ;;  %v20599_v30 = vld [vmem:[#allocation59_spill] sm:$0xff]  ;;  %v20601_v9 = vld [vmem:[#allocation58_spill] sm:$0xff] }
 0x28e   :  { %14146 = vmatprep.subr.msk.bf16.mxu1 %vm14145_vm10, %v20511_v33  ;;  %vm4682_vm10 = vcmp.eq.s32.totalorder %v20544_v62, %v17351_v41 }
 0x28f   :  { %20597 = vst [vmem:[#allocation32_spill] sm:$0xff] %v17353_v40  ;;  %vm14190_vm13 = vmpackc.low %vm4682_vm10, %vm4681_vm9  ;;  %vm4703_vm9 = vcmp.eq.s32.totalorder %v15776_v56, %v17351_v41  ;;  %vm4704_vm10 = vcmp.eq.s32.totalorder %v15779_v57, %v17351_v41 }
 0x290   :  { %vm14200_vm12 = vmpackc.low %vm4704_vm10, %vm4703_vm9 }
 0x291   :  { %14148 = vmatpush3.bf16.msk.msra.mxu1 %vm14147_vm0, %v20511_v33  ;;  %vm4683_vm0 = vcmp.eq.s32.totalorder %v15675_v36, %v17351_v41 }
 0x292   :  { %14150 = vmatprep.subr.msk.bf16.mxu1 %vm14149_vm1, %v20511_v33  ;;  %vm4684_vm1 = vcmp.eq.s32.totalorder %v15678_v37, %v17351_v41 }
 0x293   :  { %vm14194_vm4 = vmpackc.low %vm4684_vm1, %vm4683_vm0  ;;  %vm4705_vm0 = vcmp.eq.s32.totalorder %v15842_v7, %v17351_v41  ;;  %vm4706_vm1 = vcmp.eq.s32.totalorder %v15845_v8, %v17351_v41 }
 0x294   :  { %vm14204_vm3 = vmpackc.low %vm4706_vm1, %vm4705_vm0 }
 0x295   :  { %14152 = vmatpush3.bf16.msk.msra.mxu1 %vm14151_vm8, %v20511_v33  ;;  %vm4685_vm8 = vcmp.eq.s32.totalorder %v15737_v48, %v17351_v41 }
 0x296   :  { %14189 = vmatprep.subr.msk.bf16.mxu1 %vm14188_vm7, %v20511_v33  ;;  %vm4686_vm7 = vcmp.eq.s32.totalorder %v15740_v49, %v17351_v41 }
 0x297   :  { %vm14198_vm11 = vmpackc.low %vm4686_vm7, %vm4685_vm8  ;;  %vm4707_vm8 = vcmp.eq.s32.totalorder %v15911_v16, %v17351_v41  ;;  %vm4708_vm7 = vcmp.eq.s32.totalorder %v20592_v51, %v17351_v41 }
 0x298   :  { %4425 = vmatmul.mubr.f32.vlgmr.msra.gmra.mrb[96].mxu1 %v20542_v11  ;;  %vm14208_vm10 = vmpackc.low %vm4708_vm7, %vm4707_vm8 }
 0x299   :  { %4429 = vmatprep.mubr.f32.mxu1 %v20561_v3  ;;  %14191 = vmatpush3.bf16.msk.msra.mxu1 %vm14190_vm13, %v20511_v33  ;;  %vm4687_vm13 = vcmp.eq.s32.totalorder %v15792_v60, %v17351_v41 }
 0x29a   :  { %14193 = vmatprep.subr.msk.bf16.mxu1 %vm14192_vm15, %v20511_v33  ;;  %vm4688_vm15 = vcmp.eq.s32.totalorder %v15795_v61, %v17351_v41 }
 0x29b   :  { %vm14202_vm2 = vmpackc.low %vm4688_vm15, %vm4687_vm13  ;;  %vm4709_vm13 = vcmp.eq.s32.totalorder %v15984_v31, %v17351_v41  ;;  %vm4710_vm15 = vcmp.eq.s32.totalorder %v15987_v34, %v17351_v41 }
 0x29c   :  { %4430 = vmatmul.mubr.f32.gmra.mrb[98].mxu1 %v20562_v15  ;;  %vm14212_vm1 = vmpackc.low %vm4710_vm15, %vm4709_vm13 }
 0x29d   :  { %4434 = vmatprep.mubr.f32.mxu1 %v20563_v6  ;;  %14195 = vmatpush3.bf16.msk.msra.mxu1 %vm14194_vm4, %v20511_v33  ;;  %vm4689_vm4 = vcmp.eq.s32.totalorder %v15872_v10, %v17351_v41 }
 0x29e   :  { %14197 = vmatprep.subr.msk.bf16.mxu1 %vm14196_vm6, %v20511_v33  ;;  %vm4690_vm6 = vcmp.eq.s32.totalorder %v15875_v12, %v17351_v41 }
 0x29f   :  { %vm14206_vm9 = vmpackc.low %vm4690_vm6, %vm4689_vm4  ;;  %vm4711_vm4 = vcmp.eq.s32.totalorder %v16015_v43, %v17351_v41  ;;  %vm4712_vm6 = vcmp.eq.s32.totalorder %v16018_v46, %v17351_v41 }
 0x2a0   :  { %4435 = vmatmul.mubr.f32.gmra.mrb[100].mxu1 %v20598_v54  ;;  %vm14216_vm7 = vmpackc.low %vm4712_vm6, %vm4711_vm4 }
 0x2a1   :  { %4439 = vmatprep.mubr.f32.mxu1 %v20599_v30  ;;  %14199 = vmatpush3.bf16.msk.msra.mxu1 %vm14198_vm11, %v20511_v33  ;;  %vm4691_vm11 = vcmp.eq.s32.totalorder %v20595_v32, %v17351_v41 }
 0x2a2   :  { %v17412_v2 = vpop.f32.mrb[48].mxu1  ;;  %14201 = vmatprep.subr.msk.bf16.mxu1 %vm14200_vm12, %v20511_v33  ;;  %vm4692_vm12 = vcmp.eq.s32.totalorder %v15948_v24, %v17351_v41 }
 0x2a3   :  { %20600 = vst [vmem:[#allocation33_spill] sm:$0xff] %v17412_v2  ;;  %v2408_v52 = vpop.f32.mrb[49].mxu1  ;;  %vm14210_vm0 = vmpackc.low %vm4692_vm12, %vm4691_vm11  ;;  %v17451_v2 = vrot.slane %v5097_v4, %v20536_v0 }
 0x2a4   :  { %4440 = vmatmul.mubr.f32.gmra.mrb[102].mxu1 %v20601_v9 }
 0x2a5   :  { %14203 = vmatpush3.bf16.msk.msra.mxu1 %vm14202_vm2, %v20511_v33  ;;  %4845 = vmatprep.mubr.f32.mxu1 %v20594_v42  ;;  %vm4693_vm2 = vcmp.eq.s32.totalorder %v15990_v35, %v17351_v41  ;;  %vm5118_vm11 = vcmp.eq.s32.totalorder %v20540_v59, %v17451_v2  ;;  %vm5119_vm12 = vcmp.eq.s32.totalorder %v20541_v5, %v17451_v2 }
 0x2a6   :  { %v17426_v53 = vpop.f32.mrb[50].mxu1  ;;  %14205 = vmatprep.subr.msk.bf16.mxu1 %vm14204_vm3, %v20511_v33  ;;  %vm4694_vm3 = vcmp.eq.s32.totalorder %v15993_v38, %v17351_v41  ;;  %vm14255_vm15 = vmpackc.low %vm5119_vm12, %vm5118_vm11 }
 0x2a7   :  { %20602 = vst [vmem:[#allocation38_spill] sm:$0xff] %v17426_v53  ;;  %v2413_v52 = vpop.f32.mrb[51].mxu1  ;;  %vm14214_vm8 = vmpackc.low %vm4694_vm3, %vm4693_vm2  ;;  %vm5120_vm2 = vcmp.eq.s32.totalorder %v20545_v17, %v17451_v2  ;;  %vm5121_vm3 = vcmp.eq.s32.totalorder %v20546_v20, %v17451_v2 }
 0x2a8   :  { %vm14259_vm6 = vmpackc.low %vm5121_vm3, %vm5120_vm2 }
 0x2a9   :  { %14207 = vmatpush3.bf16.msk.msra.mxu1 %vm14206_vm9, %v20511_v33  ;;  %vm4695_vm9 = vcmp.eq.s32.totalorder %v20559_v63, %v17351_v41 }
 0x2aa   :  { %v17439_v53 = vpop.f32.mrb[52].mxu1  ;;  %14209 = vmatprep.subr.msk.bf16.mxu1 %vm14208_vm10, %v20511_v33  ;;  %vm4696_vm10 = vcmp.eq.s32.totalorder %v20560_v29, %v17351_v41 }
 0x2ab   :  { %20603 = vst [vmem:[#allocation39_spill] sm:$0xff] %v17439_v53  ;;  %v2418_v52 = vpop.f32.mrb[53].mxu1  ;;  %vm14218_vm13 = vmpackc.low %vm4696_vm10, %vm4695_vm9  ;;  %vm5122_vm9 = vcmp.eq.s32.totalorder %v15718_v44, %v17451_v2  ;;  %vm5123_vm10 = vcmp.eq.s32.totalorder %v20547_v39, %v17451_v2 }
 0x2ac   :  { %vm14263_vm12 = vmpackc.low %vm5123_vm10, %vm5122_vm9 }
 0x2ad   :  { %14211 = vmatpush3.bf16.msk.msra.mxu1 %vm14210_vm0, %v20511_v33  ;;  %vm5102_vm0 = vcmp.eq.s32.totalorder %v20543_v25, %v17451_v2 }
 0x2ae   :  { %v17454_v53 = vpop.f32.mrb[54].mxu1  ;;  %14213 = vmatprep.subr.msk.bf16.mxu1 %vm14212_vm1, %v20511_v33  ;;  %vm5103_vm1 = vcmp.eq.s32.totalorder %v20544_v62, %v17451_v2 }
 0x2af   :  { %20604 = vst [vmem:[#allocation44_spill] sm:$0xff] %v17454_v53  ;;  %v2423_v52 = vpop.f32.mrb[55].mxu1  ;;  %vm14257_vm4 = vmpackc.low %vm5103_vm1, %vm5102_vm0  ;;  %vm5124_vm0 = vcmp.eq.s32.totalorder %v15776_v56, %v17451_v2  ;;  %vm5125_vm1 = vcmp.eq.s32.totalorder %v15779_v57, %v17451_v2 }
 0x2b0   :  { %vm14267_vm3 = vmpackc.low %vm5125_vm1, %vm5124_vm0 }
 0x2b1   :  { %14215 = vmatpush3.bf16.msk.msra.mxu1 %vm14214_vm8, %v20511_v33  ;;  %vm5104_vm8 = vcmp.eq.s32.totalorder %v15675_v36, %v17451_v2 }
 0x2b2   :  { %14217 = vmatprep.subr.msk.bf16.mxu1 %vm14216_vm7, %v20511_v33  ;;  %vm5105_vm7 = vcmp.eq.s32.totalorder %v15678_v37, %v17451_v2 }
 0x2b3   :  { %vm14261_vm11 = vmpackc.low %vm5105_vm7, %vm5104_vm8  ;;  %vm5126_vm8 = vcmp.eq.s32.totalorder %v15842_v7, %v17451_v2  ;;  %vm5127_vm7 = vcmp.eq.s32.totalorder %v15845_v8, %v17451_v2 }
 0x2b4   :  { %vm14271_vm10 = vmpackc.low %vm5127_vm7, %vm5126_vm8 }
 0x2b5   :  { %14219 = vmatpush3.bf16.msk.msra.mxu1 %vm14218_vm13, %v20511_v33  ;;  %vm5106_vm13 = vcmp.eq.s32.totalorder %v15737_v48, %v17451_v2 }
 0x2b6   :  { %14256 = vmatprep.subr.msk.bf16.mxu1 %vm14255_vm15, %v20511_v33  ;;  %vm5107_vm15 = vcmp.eq.s32.totalorder %v15740_v49, %v17451_v2 }
 0x2b7   :  { %vm14265_vm2 = vmpackc.low %vm5107_vm15, %vm5106_vm13  ;;  %vm5128_vm13 = vcmp.eq.s32.totalorder %v15911_v16, %v17451_v2  ;;  %vm5129_vm15 = vcmp.eq.s32.totalorder %v20592_v51, %v17451_v2 }
 0x2b8   :  { %4846 = vmatmul.mubr.f32.vlgmr.msra.gmra.mrb[104].mxu1 %v20542_v11  ;;  %vm14275_vm1 = vmpackc.low %vm5129_vm15, %vm5128_vm13 }
 0x2b9   :  { %4850 = vmatprep.mubr.f32.mxu1 %v20561_v3  ;;  %14258 = vmatpush3.bf16.msk.msra.mxu1 %vm14257_vm4, %v20511_v33  ;;  %vm5108_vm4 = vcmp.eq.s32.totalorder %v15792_v60, %v17451_v2 }
 0x2ba   :  { %14260 = vmatprep.subr.msk.bf16.mxu1 %vm14259_vm6, %v20511_v33  ;;  %vm5109_vm6 = vcmp.eq.s32.totalorder %v15795_v61, %v17451_v2 }
 0x2bb   :  { %vm14269_vm9 = vmpackc.low %vm5109_vm6, %vm5108_vm4  ;;  %vm5130_vm4 = vcmp.eq.s32.totalorder %v15984_v31, %v17451_v2  ;;  %vm5131_vm6 = vcmp.eq.s32.totalorder %v15987_v34, %v17451_v2 }
 0x2bc   :  { %4851 = vmatmul.mubr.f32.gmra.mrb[106].mxu1 %v20562_v15  ;;  %vm14279_vm7 = vmpackc.low %vm5131_vm6, %vm5130_vm4  ;;  %vm5135_vm4 = vcmp.eq.s32.totalorder %v20549_v55, %v17451_v2 }
 0x2bd   :  { %4855 = vmatprep.mubr.f32.mxu1 %v20563_v6  ;;  %14262 = vmatpush3.bf16.msk.msra.mxu1 %vm14261_vm11, %v20511_v33  ;;  %vm5110_vm11 = vcmp.eq.s32.totalorder %v15872_v10, %v17451_v2 }
 0x2be   :  { %14264 = vmatprep.subr.msk.bf16.mxu1 %vm14263_vm12, %v20511_v33  ;;  %vm5111_vm12 = vcmp.eq.s32.totalorder %v15875_v12, %v17451_v2 }
 0x2bf   :  { %vm14273_vm0 = vmpackc.low %vm5111_vm12, %vm5110_vm11  ;;  %vm5132_vm11 = vcmp.eq.s32.totalorder %v16015_v43, %v17451_v2  ;;  %vm5133_vm12 = vcmp.eq.s32.totalorder %v16018_v46, %v17451_v2 }
 0x2c0   :  { %4856 = vmatmul.mubr.f32.gmra.mrb[108].mxu1 %v20598_v54  ;;  %vm14283_vm15 = vmpackc.low %vm5133_vm12, %vm5132_vm11 }
 0x2c1   :  { %4860 = vmatprep.mubr.f32.mxu1 %v20599_v30  ;;  %14266 = vmatpush3.bf16.msk.msra.mxu1 %vm14265_vm2, %v20511_v33  ;;  %vm5112_vm2 = vcmp.eq.s32.totalorder %v20595_v32, %v17451_v2 }
 0x2c2   :  { %v11613_v4 = vpop.f32.mrb[56].mxu1  ;;  %14268 = vmatprep.subr.msk.bf16.mxu1 %vm14267_vm3, %v20511_v33  ;;  %vm5113_vm3 = vcmp.eq.s32.totalorder %v15948_v24, %v17451_v2 }
 0x2c3   :  { %v11614_v52 = vpop.f32.mrb[57].mxu1  ;;  %vm14277_vm8 = vmpackc.low %vm5113_vm3, %vm5112_vm2  ;;  %vm5134_vm3 = vcmp.eq.s32.totalorder %v20548_v26, %v17451_v2 }
 0x2c4   :  { %v17517_v41 = vadd.f32 %v11614_v52, %v11613_v4  ;;  %4861 = vmatmul.mubr.f32.gmra.mrb[110].mxu1 %v20601_v9  ;;  %vm14288_vm6 = vmpackc.low %vm5135_vm4, %vm5134_vm3  ;;  %vm5144_vm4 = vcmp.eq.s32.totalorder %v20572_v1, %v17451_v2 }
 0x2c5   :  { %14270 = vmatpush3.bf16.msk.msra.mxu1 %vm14269_vm9, %v20511_v33  ;;  %5266 = vmatprep.mubr.f32.mxu1 %v20594_v42  ;;  %vm5114_vm9 = vcmp.eq.s32.totalorder %v15990_v35, %v17451_v2 }
 0x2c6   :  { %20605 = vst [vmem:[#allocation63_spill] sm:$0xff] %v17517_v41  ;;  %v11616_v53 = vpop.f32.mrb[58].mxu1  ;;  %14272 = vmatprep.subr.msk.bf16.mxu1 %vm14271_vm10, %v20511_v33  ;;  %v10068_v41 = vld [vmem:[%s20229_s3 + $0x80] sm:$0xff]  ;;  %vm5115_vm10 = vcmp.eq.s32.totalorder %v15993_v38, %v17451_v2 }
 0x2c7   :  { %v11617_v40 = vpop.f32.mrb[59].mxu1  ;;  %12560 = vmatprep.mubr.msk.f32.mxu0 %vm1049_vm5, %v10068_v41  ;;  %vm14281_vm13 = vmpackc.low %vm5115_vm10, %vm5114_vm9  ;;  %v20609_v41 = vld [vmem:[#allocation10_spill] sm:$0xff] }
 0x2c8   :  { %v17531_v4 = vadd.f32 %v11617_v40, %v11616_v53 }
 0x2c9   :  { %14274 = vmatpush3.bf16.msk.msra.mxu1 %vm14273_vm0, %v20511_v33  ;;  %vm5116_vm0 = vcmp.eq.s32.totalorder %v20559_v63, %v17451_v2 }
 0x2ca   :  { %20606 = vst [vmem:[#allocation64_spill] sm:$0xff] %v17531_v4  ;;  %v11619_v52 = vpop.f32.mrb[60].mxu1  ;;  %14276 = vmatprep.subr.msk.bf16.mxu1 %vm14275_vm1, %v20511_v33  ;;  %vm5117_vm1 = vcmp.eq.s32.totalorder %v20560_v29, %v17451_v2  ;;  %v20617_v29 = vld [vmem:[#allocation27_spill] sm:$0xff] }
 0x2cb   :  { %v11620_v32 = vpop.f32.mrb[61].mxu1  ;;  %vm14285_vm2 = vmpackc.low %vm5117_vm1, %vm5116_vm0 }
 0x2cc   :  { %v17547_v40 = vadd.f32 %v11620_v32, %v11619_v52  ;;  %v20611_v52 = vld [vmem:[#allocation14_spill] sm:$0xff] }
 0x2cd   :  { %14278 = vmatpush3.bf16.msk.msra.mxu1 %vm14277_vm8, %v20511_v33  ;;  %vm5136_vm8 = vcmp.eq.s32.totalorder %v20550_v47, %v17451_v2  ;;  %vm5139_vm11 = vcmp.eq.s32.totalorder %v20611_v52, %v17451_v2 }
 0x2ce   :  { %20607 = vst [vmem:[#allocation65_spill] sm:$0xff] %v17547_v40  ;;  %v11622_v53 = vpop.f32.mrb[62].mxu1  ;;  %14280 = vmatprep.subr.msk.bf16.mxu1 %vm14279_vm7, %v20511_v33  ;;  %vm5137_vm7 = vcmp.eq.s32.totalorder %v20609_v41, %v17451_v2 }
 0x2cf   :  { %v11623_v4 = vpop.f32.mrb[63].mxu1  ;;  %vm14291_vm9 = vmpackc.low %vm5137_vm7, %vm5136_vm8  ;;  %vm5146_vm7 = vcmp.eq.s32.totalorder %v20575_v27, %v17451_v2 }
 0x2d0   :  { %v17559_v32 = vadd.f32 %v11623_v4, %v11622_v53  ;;  %v20610_v4 = vld [vmem:[#allocation13_spill] sm:$0xff]  ;;  %v20612_v53 = vld [vmem:[#allocation16_spill] sm:$0xff] }
 0x2d1   :  { %14282 = vmatpush3.bf16.msk.msra.mxu1 %vm14281_vm13, %v20511_v33  ;;  %vm5138_vm10 = vcmp.eq.s32.totalorder %v20610_v4, %v17451_v2  ;;  %vm5140_vm13 = vcmp.eq.s32.totalorder %v20612_v53, %v17451_v2 }
 0x2d2   :  { %20608 = vst [vmem:[#allocation66_spill] sm:$0xff] %v17559_v32  ;;  %14284 = vmatprep.subr.msk.bf16.mxu1 %vm14283_vm15, %v20511_v33  ;;  %vm14294_vm12 = vmpackc.low %vm5139_vm11, %vm5138_vm10  ;;  %v20613_v32 = vld [vmem:[#allocation17_spill] sm:$0xff]  ;;  %vm5148_vm11 = vcmp.eq.s32.totalorder %v20578_v45, %v17451_v2 }
 0x2d3   :  { %vm5141_vm15 = vcmp.eq.s32.totalorder %v20613_v32, %v17451_v2 }
 0x2d4   :  { %vm14297_vm0 = vmpackc.low %vm5141_vm15, %vm5140_vm13  ;;  %vm5150_vm15 = vcmp.eq.s32.totalorder %v20581_v28, %v17451_v2 }
 0x2d5   :  { %14286 = vmatpush3.bf16.msk.msra.mxu1 %vm14285_vm2, %v20511_v33  ;;  %vm5143_vm2 = vcmp.eq.s32.totalorder %v20569_v22, %v17451_v2 }
 0x2d6   :  { %14287 = vmatprep.subr.bf16.mxu1 %v20517_v18 }
 0x2d8   :  { %5267 = vmatmul.mubr.f32.vlgmr.msra.gmra.mrb[112].mxu1 %v20542_v11 }
 0x2d9   :  { %5271 = vmatprep.mubr.f32.mxu1 %v20561_v3  ;;  %14289 = vmatpush1.bf16.msk.msra.mxu1 %vm14288_vm6, %v20511_v33  ;;  %vm5145_vm6 = vcmp.eq.s32.totalorder %v20617_v29, %v17451_v2 }
 0x2da   :  { %14290 = vmatprep.subr.bf16.mxu1 %v20517_v18  ;;  %vm14303_vm8 = vmpackc.low %vm5145_vm6, %vm5144_vm4 }
 0x2dc   :  { %5272 = vmatmul.mubr.f32.gmra.mrb[114].mxu1 %v20562_v15  ;;  %v20614_v15 = vld [vmem:[#allocation20_spill] sm:$0xff] }
 0x2dd   :  { %5276 = vmatprep.mubr.f32.mxu1 %v20563_v6  ;;  %14292 = vmatpush1.bf16.msk.msra.mxu1 %vm14291_vm9, %v20511_v33  ;;  %vm5142_vm1 = vcmp.eq.s32.totalorder %v20614_v15, %v17451_v2  ;;  %vm5147_vm9 = vcmp.eq.s32.totalorder %v20576_v14, %v17451_v2 }
 0x2de   :  { %14293 = vmatprep.subr.bf16.mxu1 %v20517_v18  ;;  %vm14300_vm3 = vmpackc.low %vm5143_vm2, %vm5142_vm1 }
 0x2df   :  { %vm14306_vm10 = vmpackc.low %vm5147_vm9, %vm5146_vm7 }
 0x2e0   :  { %5277 = vmatmul.mubr.f32.gmra.mrb[116].mxu1 %v20598_v54 }
 0x2e1   :  { %5281 = vmatprep.mubr.f32.mxu1 %v20599_v30  ;;  %14295 = vmatpush1.bf16.msk.msra.mxu1 %vm14294_vm12, %v20511_v33  ;;  %v20616_v30 = vld [vmem:[#allocation48_spill] sm:$0xff]  ;;  %vm5149_vm12 = vcmp.eq.s32.totalorder %v20579_v50, %v17451_v2 }
 0x2e2   :  { %v11669_v40 = vpop.f32.mrb[64].mxu1  ;;  %14296 = vmatprep.subr.bf16.mxu1 %v20517_v18  ;;  %vm14309_vm13 = vmpackc.low %vm5149_vm12, %vm5148_vm11 }
 0x2e3   :  { %v11670_v6 = vpop.f32.mrb[65].mxu1 }
 0x2e4   :  { %v17597_v3 = vadd.f32 %v11670_v6, %v11669_v40  ;;  %5282 = vmatmul.mubr.f32.gmra.mrb[118].mxu1 %v20601_v9 }
 0x2e5   :  { %14298 = vmatpush1.bf16.msk.msra.mxu1 %vm14297_vm0, %v20511_v33  ;;  %10694 = vmatprep.mubr.msk.f32.mxu1 %vm20391_vm14, %v20616_v30  ;;  %vm5151_vm0 = vcmp.eq.s32.totalorder %v20582_v21, %v17451_v2 }
 0x2e6   :  { %20615 = vst [vmem:[#allocation10_spill] sm:$0xff] %v17597_v3  ;;  %v11672_v54 = vpop.f32.mrb[66].mxu1  ;;  %14299 = vmatprep.subr.bf16.mxu1 %v20517_v18  ;;  %vm14312_vm1 = vmpackc.low %vm5151_vm0, %vm5150_vm15 }
 0x2e7   :  { %v11673_v11 = vpop.f32.mrb[67].mxu1 }
 0x2e8   :  { %v17608_v6 = vadd.f32 %v11673_v11, %v11672_v54  ;;  %v5518_v54 = vadd.s32 60, %v17236_v19 }
 0x2e9   :  { %14301 = vmatpush1.bf16.msk.msra.mxu1 %vm14300_vm3, %v20511_v33 }
 0x2ea   :  { %20618 = vst [vmem:[#allocation13_spill] sm:$0xff] %v17608_v6  ;;  %v11675_v40 = vpop.f32.mrb[68].mxu1  ;;  %14302 = vmatprep.subr.bf16.mxu1 %v20517_v18 }
 0x2eb   :  { %v11676_v3 = vpop.f32.mrb[69].mxu1 }
 0x2ec   :  { %v17616_v9 = vadd.f32 %v11676_v3, %v11675_v40  ;;  %v17634_v3 = vrot.slane %v5518_v54, %v20536_v0  ;;  %v20623_v54 = vld [vmem:[#allocation55_spill] sm:$0xff] }
 0x2ed   :  { %14304 = vmatpush1.bf16.msk.msra.mxu1 %vm14303_vm8, %v20511_v33 }
 0x2ee   :  { %20619 = vst [vmem:[#allocation20_spill] sm:$0xff] %v17616_v9  ;;  %v11678_v63 = vpop.f32.mrb[70].mxu1  ;;  %14305 = vmatprep.subr.bf16.mxu1 %v20517_v18  ;;  %20621 = vst [vmem:[#allocation67_spill] sm:$0xff] %v17634_v3  ;;  %vm5555_vm2 = vcmp.eq.s32.totalorder %v20548_v26, %v17634_v3  ;;  %vm5556_vm3 = vcmp.eq.s32.totalorder %v20549_v55, %v17634_v3  ;;  %vm5557_vm6 = vcmp.eq.s32.totalorder %v20550_v47, %v17634_v3 }
 0x2ef   :  { %v11679_v11 = vpop.f32.mrb[71].mxu1  ;;  %vm14355_vm4 = vmpackc.low %vm5556_vm3, %vm5555_vm2  ;;  %vm5558_vm8 = vcmp.eq.s32.totalorder %v20609_v41, %v17634_v3  ;;  %vm5559_vm9 = vcmp.eq.s32.totalorder %v20610_v4, %v17634_v3  ;;  %vm5561_vm12 = vcmp.eq.s32.totalorder %v20612_v53, %v17634_v3  ;;  %vm5563_vm0 = vcmp.eq.s32.totalorder %v20614_v15, %v17634_v3 }
 0x2f0   :  { %v17625_v6 = vadd.f32 %v11679_v11, %v11678_v63  ;;  %vm14358_vm7 = vmpackc.low %vm5558_vm8, %vm5557_vm6  ;;  %v20622_v63 = vld [vmem:[#allocation57_spill] sm:$0xff]  ;;  %vm5565_vm3 = vcmp.eq.s32.totalorder %v20572_v1, %v17634_v3  ;;  %vm5567_vm8 = vcmp.eq.s32.totalorder %v20575_v27, %v17634_v3  ;;  %v5939_v1 = vadd.s32 61, %v17236_v19 }
 0x2f1   :  { %14307 = vmatpush1.bf16.msk.msra.mxu1 %vm14306_vm10, %v20511_v33  ;;  %vm5560_vm10 = vcmp.eq.s32.totalorder %v20611_v52, %v17634_v3 }
 0x2f2   :  { %20620 = vst [vmem:[#allocation27_spill] sm:$0xff] %v17625_v6  ;;  %14308 = vmatprep.subr.bf16.mxu1 %v20517_v18  ;;  %vm14361_vm11 = vmpackc.low %vm5560_vm10, %vm5559_vm9  ;;  %v20624_v6 = vld [vmem:[#allocation61_spill] sm:$0xff]  ;;  %vm5569_vm10 = vcmp.eq.s32.totalorder %v20578_v45, %v17634_v3 }
 0x2f5   :  { %14310 = vmatpush1.bf16.msk.msra.mxu1 %vm14309_vm13, %v20511_v33  ;;  %vm5562_vm13 = vcmp.eq.s32.totalorder %v20613_v32, %v17634_v3 }
 0x2f6   :  { %14311 = vmatprep.subr.bf16.mxu1 %v20517_v18  ;;  %vm14364_vm15 = vmpackc.low %vm5562_vm13, %vm5561_vm12  ;;  %vm5571_vm13 = vcmp.eq.s32.totalorder %v20581_v28, %v17634_v3 }
 0x2f9   :  { %14313 = vmatpush1.bf16.msk.msra.mxu1 %vm14312_vm1, %v20511_v33  ;;  %vm5564_vm1 = vcmp.eq.s32.totalorder %v20569_v22, %v17634_v3 }
 0x2fa   :  { %14354 = vmatprep.subr.bf16.mxu1 %v20517_v18  ;;  %vm14367_vm2 = vmpackc.low %vm5564_vm1, %vm5563_vm0 }
 0x2fc   :  { %5352 = vmatmul.mubr.f32.vlgmr.msra.gmra.mrb[120].mxu1 %v20584_v58 }
 0x2fd   :  { %10695 = vmatprep.mubr.msk.f32.mxu1 %vm20391_vm14, %v20585_v23  ;;  %14356 = vmatpush1.bf16.msk.msra.mxu1 %vm14355_vm4, %v20511_v33  ;;  %vm5566_vm4 = vcmp.eq.s32.totalorder %v20617_v29, %v17634_v3 }
 0x2fe   :  { %14357 = vmatprep.subr.bf16.mxu1 %v20517_v18  ;;  %vm14370_vm6 = vmpackc.low %vm5566_vm4, %vm5565_vm3 }
 0x300   :  { %5357 = vmatmul.mubr.f32.gmra.mrb[122].mxu1 %v20586_v13 }
 0x301   :  { %10696 = vmatprep.mubr.msk.f32.mxu1 %vm20391_vm14, %v20622_v63  ;;  %14359 = vmatpush1.bf16.msk.msra.mxu1 %vm14358_vm7, %v20511_v33  ;;  %vm5568_vm7 = vcmp.eq.s32.totalorder %v20576_v14, %v17634_v3 }
 0x302   :  { %v11725_v2 = vpop.f32.mrb[72].mxu1  ;;  %14360 = vmatprep.subr.bf16.mxu1 %v20517_v18  ;;  %vm14373_vm9 = vmpackc.low %vm5568_vm7, %vm5567_vm8 }
 0x303   :  { %v11726_v40 = vpop.f32.mrb[73].mxu1 }
 0x304   :  { %v17666_v11 = vadd.f32 %v11726_v40, %v11725_v2  ;;  %5362 = vmatmul.mubr.f32.gmra.mrb[124].mxu1 %v20623_v54  ;;  %v20625_v40 = vld [vmem:[#allocation60_spill] sm:$0xff] }
 0x305   :  { %10697 = vmatprep.mubr.msk.f32.mxu1 %vm20391_vm14, %v20624_v6  ;;  %14362 = vmatpush1.bf16.msk.msra.mxu1 %vm14361_vm11, %v20511_v33  ;;  %vm5570_vm11 = vcmp.eq.s32.totalorder %v20579_v50, %v17634_v3 }
 0x306   :  { %v11728_v9 = vpop.f32.mrb[74].mxu1  ;;  %14363 = vmatprep.subr.bf16.mxu1 %v20517_v18  ;;  %vm14376_vm12 = vmpackc.low %vm5570_vm11, %vm5569_vm10 }
 0x307   :  { %v11729_v52 = vpop.f32.mrb[75].mxu1 }
 0x308   :  { %v17677_v2 = vadd.f32 %v11729_v52, %v11728_v9  ;;  %5367 = vmatmul.mubr.f32.gmra.mrb[126].mxu1 %v20625_v40 }
 0x309   :  { %14365 = vmatpush1.bf16.msk.msra.mxu1 %vm14364_vm15, %v20511_v33  ;;  %10764 = vmatprep.mubr.msk.f32.mxu1 %vm20391_vm14, %v20616_v30  ;;  %vm5572_vm15 = vcmp.eq.s32.totalorder %v20582_v21, %v17634_v3  ;;  %v10075_v21 = vld [vmem:[%s20229_s3 + $0xb8] sm:$0xff] }
 0x30a   :  { %v11731_v32 = vpop.f32.mrb[76].mxu1  ;;  %14366 = vmatprep.subr.bf16.mxu1 %v20517_v18 }
 0x30b   :  { %v11732_v53 = vpop.f32.mrb[77].mxu1 }
 0x30c   :  { %v17688_v9 = vadd.f32 %v11732_v53, %v11731_v32  ;;  %v17706_v32 = vrot.slane %v5939_v1, %v20536_v0 }
 0x30d   :  { %14368 = vmatpush1.bf16.msk.msra.mxu1 %vm14367_vm2, %v20511_v33  ;;  %vm14379_vm2 = vmpackc.low %vm5572_vm15, %vm5571_vm13 }
 0x30e   :  { %v11734_v52 = vpop.f32.mrb[78].mxu1  ;;  %14369 = vmatprep.subr.bf16.mxu1 %v20517_v18  ;;  %20626 = vst [vmem:[#allocation68_spill] sm:$0xff] %v17706_v32  ;;  %vm5960_vm0 = vcmp.eq.s32.totalorder %v20540_v59, %v17706_v32  ;;  %vm5961_vm1 = vcmp.eq.s32.totalorder %v20541_v5, %v17706_v32  ;;  %vm5944_vm4 = vcmp.eq.s32.totalorder %v20543_v25, %v17706_v32 }
 0x30f   :  { %v11735_v30 = vpop.f32.mrb[79].mxu1  ;;  %vm14389_vm3 = vmpackc.low %vm5961_vm1, %vm5960_vm0  ;;  %vm5962_vm8 = vcmp.eq.s32.totalorder %v20545_v17, %v17706_v32  ;;  %vm5963_vm7 = vcmp.eq.s32.totalorder %v20546_v20, %v17706_v32  ;;  %vm5946_vm11 = vcmp.eq.s32.totalorder %v15675_v36, %v17706_v32  ;;  %vm5964_vm13 = vcmp.eq.s32.totalorder %v15718_v44, %v17706_v32 }
 0x310   :  { %v17696_v22 = vadd.f32 %v11735_v30, %v11734_v52  ;;  %vm14393_vm10 = vmpackc.low %vm5963_vm7, %vm5962_vm8  ;;  %vm5965_vm15 = vcmp.eq.s32.totalorder %v20547_v39, %v17706_v32 }
 0x311   :  { %14371 = vmatpush1.bf16.msk.msra.mxu1 %vm14370_vm6, %v20511_v33  ;;  %vm5945_vm6 = vcmp.eq.s32.totalorder %v20544_v62, %v17706_v32  ;;  %vm14397_vm1 = vmpackc.low %vm5965_vm15, %vm5964_vm13 }
 0x312   :  { %14372 = vmatprep.subr.bf16.mxu1 %v20517_v18 }
 0x315   :  { %14374 = vmatpush1.bf16.msk.msra.mxu1 %vm14373_vm9, %v20511_v33  ;;  %vm14391_vm9 = vmpackc.low %vm5945_vm6, %vm5944_vm4  ;;  %vm5966_vm4 = vcmp.eq.s32.totalorder %v15776_v56, %v17706_v32  ;;  %vm5967_vm6 = vcmp.eq.s32.totalorder %v15779_v57, %v17706_v32 }
 0x316   :  { %14375 = vmatprep.subr.bf16.mxu1 %v20517_v18  ;;  %vm14401_vm7 = vmpackc.low %vm5967_vm6, %vm5966_vm4 }
 0x319   :  { %14377 = vmatpush1.bf16.msk.msra.mxu1 %vm14376_vm12, %v20511_v33  ;;  %vm5947_vm12 = vcmp.eq.s32.totalorder %v15678_v37, %v17706_v32 }
 0x31a   :  { %14378 = vmatprep.subr.bf16.mxu1 %v20517_v18  ;;  %vm14395_vm0 = vmpackc.low %vm5947_vm12, %vm5946_vm11  ;;  %vm5968_vm11 = vcmp.eq.s32.totalorder %v15842_v7, %v17706_v32  ;;  %vm5969_vm12 = vcmp.eq.s32.totalorder %v15845_v8, %v17706_v32 }
 0x31b   :  { %vm14405_vm15 = vmpackc.low %vm5969_vm12, %vm5968_vm11 }
 0x31d   :  { %14380 = vmatpush1.bf16.msk.msra.mxu1 %vm14379_vm2, %v20511_v33  ;;  %vm5948_vm2 = vcmp.eq.s32.totalorder %v15737_v48, %v17706_v32 }
 0x31e   :  { %14390 = vmatprep.subr.msk.bf16.mxu1 %vm14389_vm3, %v20511_v33  ;;  %vm5949_vm3 = vcmp.eq.s32.totalorder %v15740_v49, %v17706_v32 }
 0x31f   :  { %vm14399_vm8 = vmpackc.low %vm5949_vm3, %vm5948_vm2  ;;  %vm5970_vm2 = vcmp.eq.s32.totalorder %v15911_v16, %v17706_v32  ;;  %vm5971_vm3 = vcmp.eq.s32.totalorder %v20592_v51, %v17706_v32 }
 0x320   :  { %5773 = vmatmul.mubr.f32.vlgmr.msra.gmra.mrb[128].mxu1 %v20584_v58  ;;  %vm14409_vm6 = vmpackc.low %vm5971_vm3, %vm5970_vm2  ;;  %v20649_v58 = vld [vmem:[#allocation32_spill] sm:$0xff] }
 0x321   :  { %10765 = vmatprep.mubr.msk.f32.mxu1 %vm20391_vm14, %v20585_v23  ;;  %14392 = vmatpush3.bf16.msk.msra.mxu1 %vm14391_vm9, %v20511_v33  ;;  %vm5950_vm9 = vcmp.eq.s32.totalorder %v15792_v60, %v17706_v32  ;;  %v10071_v23 = vld [vmem:[%s20229_s3 + $0x98] sm:$0xff] }
 0x322   :  { %14394 = vmatprep.subr.msk.bf16.mxu1 %vm14393_vm10, %v20511_v33  ;;  %vm5951_vm10 = vcmp.eq.s32.totalorder %v15795_v61, %v17706_v32 }
 0x323   :  { %vm14403_vm13 = vmpackc.low %vm5951_vm10, %vm5950_vm9  ;;  %vm5972_vm9 = vcmp.eq.s32.totalorder %v15984_v31, %v17706_v32  ;;  %vm5973_vm10 = vcmp.eq.s32.totalorder %v15987_v34, %v17706_v32 }
 0x324   :  { %5778 = vmatmul.mubr.f32.gmra.mrb[130].mxu1 %v20586_v13  ;;  %vm14413_vm12 = vmpackc.low %vm5973_vm10, %vm5972_vm9  ;;  %v20647_v13 = vld [vmem:[#allocation4_spill] sm:$0xff] }
 0x325   :  { %10766 = vmatprep.mubr.msk.f32.mxu1 %vm20391_vm14, %v20622_v63  ;;  %14396 = vmatpush3.bf16.msk.msra.mxu1 %vm14395_vm0, %v20511_v33  ;;  %vm5952_vm0 = vcmp.eq.s32.totalorder %v15872_v10, %v17706_v32  ;;  %v10070_v63 = vld [vmem:[%s20229_s3 + $0x90] sm:$0xff] }
 0x326   :  { %14398 = vmatprep.subr.msk.bf16.mxu1 %vm14397_vm1, %v20511_v33  ;;  %vm5953_vm1 = vcmp.eq.s32.totalorder %v15875_v12, %v17706_v32 }
 0x327   :  { %v3669_v1 = vpop.f32.mrb[80].mxu1  ;;  %vm14407_vm4 = vmpackc.low %vm5953_vm1, %vm5952_vm0  ;;  %vm5974_vm0 = vcmp.eq.s32.totalorder %v16015_v43, %v17706_v32  ;;  %vm5975_vm1 = vcmp.eq.s32.totalorder %v16018_v46, %v17706_v32 }
 0x328   :  { %v3670_v30 = vadd.f32 %v17666_v11, %v3669_v1  ;;  %v3671_v53 = vpop.f32.mrb[81].mxu1  ;;  %5783 = vmatmul.mubr.f32.gmra.mrb[132].mxu1 %v20623_v54  ;;  %vm14417_vm3 = vmpackc.low %vm5975_vm1, %vm5974_vm0  ;;  %v20640_v54 = vld [vmem:[#allocation56_spill] sm:$0xff] }
 0x329   :  { %10767 = vmatprep.mubr.msk.f32.mxu1 %vm20391_vm14, %v20624_v6  ;;  %14400 = vmatpush3.bf16.msk.msra.mxu1 %vm14399_vm8, %v20511_v33  ;;  %v20633_v6 = vld [vmem:[#allocation43_spill] sm:$0xff]  ;;  %vm2176_vm14 = vcmp.eq.s32.totalorder %v20547_v39, %v20647_v13 }
 0x32a   :  { %14402 = vmatprep.subr.msk.bf16.mxu1 %vm14401_vm7, %v20511_v33  ;;  %vm5955_vm7 = vcmp.eq.s32.totalorder %v15948_v24, %v17706_v32 }
 0x32b   :  { %v3674_v52 = vpop.f32.mrb[82].mxu1 }
 0x32c   :  { %v3675_v11 = vadd.f32 %v17677_v2, %v3674_v52  ;;  %v3676_v1 = vpop.f32.mrb[83].mxu1  ;;  %5788 = vmatmul.mubr.f32.gmra.mrb[134].mxu1 %v20625_v40  ;;  %v20628_v2 = vld [vmem:[#allocation30_spill] sm:$0xff]  ;;  %v20631_v40 = vld [vmem:[#allocation8_spill] sm:$0xff] }
 0x32d   :  { %14404 = vmatpush3.bf16.msk.msra.mxu1 %vm14403_vm13, %v20511_v33  ;;  %6108 = vmatprep.mubr.f32.mxu1 %v20594_v42  ;;  %vm5954_vm8 = vcmp.eq.s32.totalorder %v20628_v2, %v17706_v32  ;;  %vm5956_vm13 = vcmp.eq.s32.totalorder %v15990_v35, %v17706_v32 }
 0x32e   :  { %v17782_v53 = vpack.c.bf16 %v3675_v11, %v3670_v30  ;;  %14406 = vmatprep.subr.msk.bf16.mxu1 %vm14405_vm15, %v20511_v33  ;;  %v6360_v30 = vadd.s32 62, %v17236_v19  ;;  %vm14411_vm11 = vmpackc.low %vm5955_vm7, %vm5954_vm8  ;;  %vm5957_vm15 = vcmp.eq.s32.totalorder %v15993_v38, %v17706_v32 }
 0x32f   :  { %v3679_v3 = vpop.f32.mrb[84].mxu1  ;;  %vm14415_vm2 = vmpackc.low %vm5957_vm15, %vm5956_vm13 }
 0x330   :  { %20627 = vst [vmem:[#allocation69_spill] sm:$0xff] %v17782_v53  ;;  %v3680_v52 = vadd.f32 %v17688_v9, %v3679_v3  ;;  %v3681_v1 = vpop.f32.mrb[85].mxu1  ;;  %v17807_v19 = vrot.slane %v6360_v30, %v20536_v0 }
 0x331   :  { %14408 = vmatpush3.bf16.msk.msra.mxu1 %vm14407_vm4, %v20511_v33 }
 0x332   :  { %14410 = vmatprep.subr.msk.bf16.mxu1 %vm14409_vm6, %v20511_v33  ;;  %20629 = vst [vmem:[#allocation70_spill] sm:$0xff] %v17807_v19  ;;  %vm5959_vm6 = vcmp.eq.s32.totalorder %v20633_v6, %v17706_v32  ;;  %vm6381_vm8 = vcmp.eq.s32.totalorder %v20540_v59, %v17807_v19  ;;  %vm6382_vm7 = vcmp.eq.s32.totalorder %v20541_v5, %v17807_v19 }
 0x333   :  { %v3684_v11 = vpop.f32.mrb[86].mxu1  ;;  %vm14456_vm10 = vmpackc.low %vm6382_vm7, %vm6381_vm8  ;;  %vm6383_vm13 = vcmp.eq.s32.totalorder %v20545_v17, %v17807_v19  ;;  %vm6384_vm15 = vcmp.eq.s32.totalorder %v20546_v20, %v17807_v19 }
 0x334   :  { %v3685_v3 = vadd.f32 %v17696_v22, %v3684_v11  ;;  %v3686_v9 = vpop.f32.mrb[87].mxu1  ;;  %vm14460_vm1 = vmpackc.low %vm6384_vm15, %vm6383_vm13 }
 0x335   :  { %14412 = vmatpush3.bf16.msk.msra.mxu1 %vm14411_vm11, %v20511_v33  ;;  %v20632_v9 = vld [vmem:[#allocation42_spill] sm:$0xff]  ;;  %vm6365_vm11 = vcmp.eq.s32.totalorder %v20543_v25, %v17807_v19 }
 0x336   :  { %v17810_v1 = vpack.c.bf16 %v3685_v3, %v3680_v52  ;;  %v1564_v53 = vpop.f32.mrb[32].mxu0  ;;  %14414 = vmatprep.subr.msk.bf16.mxu1 %vm14413_vm12, %v20511_v33  ;;  %vm5958_vm4 = vcmp.eq.s32.totalorder %v20632_v9, %v17706_v32  ;;  %vm6366_vm12 = vcmp.eq.s32.totalorder %v20544_v62, %v17807_v19  ;;  %v20636_v32 = vld [vmem:[#allocation46_spill] sm:$0xff] }
 0x337   :  { %v1565_v22 = vadd.f32 %v20631_v40, %v1564_v53  ;;  %v1566_v11 = vpop.f32.mrb[33].mxu0  ;;  %vm14419_vm9 = vmpackc.low %vm5959_vm6, %vm5958_vm4  ;;  %v20634_v40 = vld [vmem:[#allocation11_spill] sm:$0xff]  ;;  %vm6385_vm4 = vcmp.eq.s32.totalorder %v15718_v44, %v17807_v19  ;;  %vm6386_vm6 = vcmp.eq.s32.totalorder %v20547_v39, %v17807_v19 }
 0x338   :  { %20630 = vst [vmem:[#allocation71_spill] sm:$0xff] %v17810_v1  ;;  %vm14458_vm0 = vmpackc.low %vm6366_vm12, %vm6365_vm11  ;;  %vm6387_vm11 = vcmp.eq.s32.totalorder %v15776_v56, %v17807_v19  ;;  %vm6388_vm12 = vcmp.eq.s32.totalorder %v15779_v57, %v17807_v19 }
 0x339   :  { %14416 = vmatpush3.bf16.msk.msra.mxu1 %vm14415_vm2, %v20511_v33  ;;  %vm6367_vm2 = vcmp.eq.s32.totalorder %v15675_v36, %v17807_v19  ;;  %vm14464_vm7 = vmpackc.low %vm6386_vm6, %vm6385_vm4  ;;  %vm2171_vm6 = vcmp.eq.s32.totalorder %v20540_v59, %v20647_v13 }
 0x33a   :  { %v1569_v52 = vpop.f32.mrb[34].mxu0  ;;  %14418 = vmatprep.subr.msk.bf16.mxu1 %vm14417_vm3, %v20511_v33  ;;  %vm6368_vm3 = vcmp.eq.s32.totalorder %v15678_v37, %v17807_v19  ;;  %vm14468_vm15 = vmpackc.low %vm6388_vm12, %vm6387_vm11  ;;  %vm6391_vm11 = vcmp.eq.s32.totalorder %v15911_v16, %v17807_v19  ;;  %vm6392_vm12 = vcmp.eq.s32.totalorder %v20592_v51, %v17807_v19 }
 0x33b   :  { %v1570_v53 = vadd.f32 %v20634_v40, %v1569_v52  ;;  %v1571_v30 = vpop.f32.mrb[35].mxu0  ;;  %v20635_v52 = vld [vmem:[#allocation12_spill] sm:$0xff]  ;;  %vm14462_vm8 = vmpackc.low %vm6368_vm3, %vm6367_vm2  ;;  %vm6389_vm2 = vcmp.eq.s32.totalorder %v15842_v7, %v17807_v19  ;;  %vm6390_vm3 = vcmp.eq.s32.totalorder %v15845_v8, %v17807_v19 }
 0x33d   :  { %v13711_v3 = vpack.c.bf16 %v1570_v53, %v1565_v22  ;;  %14420 = vmatpush3.bf16.msk.msra.mxu1 %vm14419_vm9, %v20511_v33  ;;  %v20637_v22 = vld [vmem:[#allocation50_spill] sm:$0xff]  ;;  %vm6369_vm9 = vcmp.eq.s32.totalorder %v15737_v48, %v17807_v19 }
 0x33e   :  { %v1574_v11 = vpop.f32.mrb[36].mxu0  ;;  %14457 = vmatprep.subr.msk.bf16.mxu1 %vm14456_vm10, %v20511_v33  ;;  %vm6370_vm10 = vcmp.eq.s32.totalorder %v15740_v49, %v17807_v19 }
 0x33f   :  { %v1575_v40 = vadd.f32 %v20635_v52, %v1574_v11  ;;  %v1576_v30 = vpop.f32.mrb[37].mxu0  ;;  %13712 = vmatprep.subr.bf16.mxu0 %v13711_v3  ;;  %v20638_v11 = vld [vmem:[#allocation15_spill] sm:$0xff]  ;;  %vm14466_vm13 = vmpackc.low %vm6370_vm10, %vm6369_vm9  ;;  %vm6373_vm9 = vcmp.eq.s32.totalorder %v15872_v10, %v17807_v19  ;;  %vm6374_vm10 = vcmp.eq.s32.totalorder %v15875_v12, %v17807_v19 }
 0x340   :  { %13714 = vmatpush3.bf16.msra.mxu0 %v13711_v3  ;;  %6109 = vmatmul.mubr.f32.vlgmr.msra.gmra.mrb[136].mxu1 %v20636_v32  ;;  %v20639_v3 = vld [vmem:[#allocation51_spill] sm:$0xff] }
 0x341   :  { %6113 = vmatprep.mubr.f32.mxu1 %v20637_v22  ;;  %14459 = vmatpush3.bf16.msk.msra.mxu1 %vm14458_vm0, %v20511_v33  ;;  %vm6371_vm0 = vcmp.eq.s32.totalorder %v15792_v60, %v17807_v19 }
 0x342   :  { %v1579_v53 = vpop.f32.mrb[38].mxu0  ;;  %14461 = vmatprep.subr.msk.bf16.mxu1 %vm14460_vm1, %v20511_v33  ;;  %vm6372_vm1 = vcmp.eq.s32.totalorder %v15795_v61, %v17807_v19 }
 0x343   :  { %v1580_v52 = vadd.f32 %v20638_v11, %v1579_v53  ;;  %v1581_v30 = vpop.f32.mrb[39].mxu0  ;;  %v20641_v53 = vld [vmem:[#allocation54_spill] sm:$0xff]  ;;  %v20642_v11 = vld [vmem:[#allocation9_spill] sm:$0xff]  ;;  %vm17880_vm4 = vmpackc.low %vm6372_vm1, %vm6371_vm0  ;;  %vm6375_vm1 = vcmp.eq.s32.totalorder %v20628_v2, %v17807_v19 }
 0x344   :  { %6114 = vmatmul.mubr.f32.gmra.mrb[138].mxu1 %v20639_v3  ;;  %vm14476_vm0 = vmpackc.low %vm6392_vm12, %vm6391_vm11  ;;  %vm6396_vm11 = vcmp.eq.s32.totalorder %v16018_v46, %v17807_v19  ;;  %vm2155_vm12 = vcmp.eq.s32.totalorder %v20543_v25, %v20647_v13 }
 0x345   :  { %v13715_v1 = vpack.c.bf16 %v1580_v52, %v1575_v40  ;;  %6118 = vmatprep.mubr.f32.mxu1 %v20640_v54  ;;  %14463 = vmatpush3.bf16.msk.msra.mxu1 %vm14462_vm8, %v20511_v33  ;;  %v10069_v40 = vld [vmem:[%s20229_s3 + $0x88] sm:$0xff]  ;;  %vm2172_vm8 = vcmp.eq.s32.totalorder %v20541_v5, %v20647_v13 }
 0x346   :  { %14465 = vmatprep.subr.msk.bf16.mxu1 %vm14464_vm7, %v20511_v33  ;;  %v20643_v52 = vld [vmem:[#allocation59_spill] sm:$0xff]  ;;  %vm14472_vm7 = vmpackc.low %vm6390_vm3, %vm6389_vm2  ;;  %vm6376_vm2 = vcmp.eq.s32.totalorder %v15948_v24, %v17807_v19  ;;  %vm6393_vm3 = vcmp.eq.s32.totalorder %v15984_v31, %v17807_v19 }
 0x347   :  { %13716 = vmatprep.subr.bf16.mxu0 %v13715_v1 }
 0x348   :  { %13718 = vmatpush3.bf16.msra.mxu0 %v13715_v1  ;;  %6119 = vmatmul.mubr.f32.gmra.mrb[140].mxu1 %v20641_v53 }
 0x349   :  { %13779 = vmatprep.subr.bf16.mxu0 %v20642_v11  ;;  %6123 = vmatprep.mubr.f32.mxu1 %v20643_v52 }
 0x34a   :  { %14467 = vmatpush3.bf16.msk.msra.mxu1 %vm14466_vm13, %v20511_v33  ;;  %vm13786_vm13 = vmpackc.low %vm2172_vm8, %vm2171_vm6 }
 0x34b   :  { %12561 = vmatmul.mubr.msk.f32.vlgmr.msra.gmra.mrb[24].mxu0 %vm1049_vm5, %v10069_v40  ;;  %v17877_v1 = vpop.f32.mrb[88].mxu1  ;;  %14469 = vmatprep.subr.msk.bf16.mxu1 %vm14468_vm15, %v20511_v33  ;;  %vm14474_vm15 = vmpackc.low %vm6374_vm10, %vm6373_vm9  ;;  %vm6378_vm9 = vcmp.eq.s32.totalorder %v15993_v38, %v17807_v19  ;;  %vm6395_vm10 = vcmp.eq.s32.totalorder %v16015_v43, %v17807_v19 }
 0x34c   :  { %20644 = vst [vmem:[#allocation8_spill] sm:$0xff] %v17877_v1  ;;  %13781 = vmatpush3.bf16.msra.mxu0 %v20642_v11  ;;  %v4092_v40 = vpop.f32.mrb[89].mxu1  ;;  %v20648_v1 = vld [vmem:[#allocation58_spill] sm:$0xff]  ;;  %12563 = vmatprep.mubr.msk.f32.mxu0 %vm1049_vm5, %v10070_v63  ;;  %v10073_v63 = vld [vmem:[%s20229_s3 + $0xa8] sm:$0xff]  ;;  %vm14478_vm6 = vmpackc.low %vm6376_vm2, %vm6375_vm1  ;;  %vm2174_vm1 = vcmp.eq.s32.totalorder %v20546_v20, %v20647_v13 }
 0x34d   :  { %6124 = vmatmul.mubr.f32.gmra.mrb[142].mxu1 %v20648_v1  ;;  %13783 = vmatprep.subr.bf16.mxu0 %v20649_v58  ;;  %v10072_v11 = vld [vmem:[%s20229_s3 + $0xa0] sm:$0xff]  ;;  %vm14484_vm2 = vmpackc.low %vm6396_vm11, %vm6395_vm10  ;;  %vm2157_vm10 = vcmp.eq.s32.totalorder %v15675_v36, %v20647_v13  ;;  %vm2158_vm11 = vcmp.eq.s32.totalorder %v15678_v37, %v20647_v13 }
 0x34e   :  { %6529 = vmatprep.mubr.f32.mxu1 %v20594_v42  ;;  %14471 = vmatpush3.bf16.msk.msra.mxu1 %vm17880_vm4, %v20511_v33  ;;  %vm6394_vm4 = vcmp.eq.s32.totalorder %v15987_v34, %v17807_v19 }
 0x34f   :  { %12564 = vmatmul.mubr.msk.f32.gmra.mrb[26].mxu0 %vm1049_vm5, %v10071_v23  ;;  %v17920_v40 = vpop.f32.mrb[90].mxu1  ;;  %14473 = vmatprep.subr.msk.bf16.mxu1 %vm14472_vm7, %v20511_v33  ;;  %v10074_v23 = vld [vmem:[%s20229_s3 + $0xb0] sm:$0xff]  ;;  %vm14480_vm8 = vmpackc.low %vm6394_vm4, %vm6393_vm3  ;;  %vm6377_vm7 = vcmp.eq.s32.totalorder %v15990_v35, %v17807_v19  ;;  %vm6379_vm3 = vcmp.eq.s32.totalorder %v20632_v9, %v17807_v19  ;;  %vm6380_vm4 = vcmp.eq.s32.totalorder %v20633_v6, %v17807_v19 }
 0x350   :  { %20650 = vst [vmem:[#allocation11_spill] sm:$0xff] %v17920_v40  ;;  %13785 = vmatpush3.bf16.msra.mxu0 %v20649_v58  ;;  %v4097_v30 = vpop.f32.mrb[91].mxu1  ;;  %12566 = vmatprep.mubr.msk.f32.mxu0 %vm1049_vm5, %v10072_v11  ;;  %v15114_v58 = vld [vmem:[%s20227_s7] sm:$0x1] }
 0x351   :  { %13787 = vmatprep.subr.msk.bf16.mxu0 %vm13786_vm13, %v20511_v33  ;;  %v6781_v11 = vadd.s32 63, %v15114_v58  ;;  %vm2156_vm13 = vcmp.eq.s32.totalorder %v20544_v62, %v20647_v13 }
 0x352   :  { %14475 = vmatpush3.bf16.msk.msra.mxu1 %vm14474_vm15, %v20511_v33  ;;  %vm14482_vm15 = vmpackc.low %vm6378_vm9, %vm6377_vm7 }
 0x353   :  { %12567 = vmatmul.mubr.msk.f32.gmra.mrb[28].mxu0 %vm1049_vm5, %v10073_v63  ;;  %v17945_v30 = vpop.f32.mrb[92].mxu1  ;;  %14477 = vmatprep.subr.msk.bf16.mxu1 %vm14476_vm0, %v20511_v33  ;;  %v10138_v63 = vld [vmem:[%s20229_s3 + $0xc0] sm:$0xff]  ;;  %vm2173_vm0 = vcmp.eq.s32.totalorder %v20545_v17, %v20647_v13 }
 0x354   :  { %20651 = vst [vmem:[#allocation12_spill] sm:$0xff] %v17945_v30  ;;  %v4102_v40 = vpop.f32.mrb[93].mxu1  ;;  %12569 = vmatprep.mubr.msk.f32.mxu0 %vm1049_vm5, %v10074_v23  ;;  %vm13790_vm9 = vmpackc.low %vm2174_vm1, %vm2173_vm0 }
 0x355   :  { %v17964_v40 = vrot.slane %v6781_v11, %v20536_v0  ;;  %v10139_v11 = vld [vmem:[%s20229_s3 + $0xc8] sm:$0xff] }
 0x356   :  { %14479 = vmatpush3.bf16.msk.msra.mxu1 %vm14478_vm6, %v20511_v33  ;;  %vm13788_vm6 = vmpackc.low %vm2156_vm13, %vm2155_vm12  ;;  %vm2175_vm13 = vcmp.eq.s32.totalorder %v15718_v44, %v20647_v13 }
 0x357   :  { %12570 = vmatmul.mubr.msk.f32.gmra.mrb[30].mxu0 %vm1049_vm5, %v10075_v21  ;;  %v17972_v23 = vpop.f32.mrb[94].mxu1  ;;  %14481 = vmatprep.subr.msk.bf16.mxu1 %vm14480_vm8, %v20511_v33  ;;  %v10140_v21 = vld [vmem:[%s20229_s3 + $0xd0] sm:$0xff]  ;;  %vm6802_vm8 = vcmp.eq.s32.totalorder %v20540_v59, %v17964_v40  ;;  %vm6803_vm7 = vcmp.eq.s32.totalorder %v20541_v5, %v17964_v40  ;;  %vm14486_vm12 = vmpackc.low %vm6380_vm4, %vm6379_vm3  ;;  %vm6786_vm0 = vcmp.eq.s32.totalorder %v20543_v25, %v17964_v40 }
 0x358   :  { %20652 = vst [vmem:[#allocation15_spill] sm:$0xff] %v17972_v23  ;;  %v4107_v58 = vpop.f32.mrb[95].mxu1  ;;  %12580 = vmatprep.mubr.msk.f32.mxu0 %vm1049_vm5, %v10138_v63  ;;  %v10141_v63 = vld [vmem:[%s20229_s3 + $0xd8] sm:$0xff]  ;;  %vm6787_vm1 = vcmp.eq.s32.totalorder %v20544_v62, %v17964_v40  ;;  %vm6804_vm3 = vcmp.eq.s32.totalorder %v20545_v17, %v17964_v40  ;;  %vm6805_vm4 = vcmp.eq.s32.totalorder %v20546_v20, %v17964_v40  ;;  %v20664_v23 = vld [vmem:[#allocation48_spill] sm:$0xff] }
 0x359   :  { %v10142_v58 = vld [vmem:[%s20229_s3 + $0xe0] sm:$0xff] }
 0x35a   :  { %14483 = vmatpush3.bf16.msk.msra.mxu1 %vm14482_vm15, %v20511_v33  ;;  %vm14523_vm15 = vmpackc.low %vm6803_vm7, %vm6802_vm8  ;;  %vm2159_vm8 = vcmp.eq.s32.totalorder %v15737_v48, %v20647_v13  ;;  %vm2160_vm7 = vcmp.eq.s32.totalorder %v15740_v49, %v20647_v13 }
 0x35b   :  { %12581 = vmatmul.mubr.msk.f32.vlgmr.msra.gmra.mrb[24].mxu0 %vm1049_vm5, %v10139_v11  ;;  %14485 = vmatprep.subr.msk.bf16.mxu1 %vm14484_vm2, %v20511_v33  ;;  %vm13792_vm2 = vmpackc.low %vm2158_vm11, %vm2157_vm10  ;;  %vm2177_vm10 = vcmp.eq.s32.totalorder %v15776_v56, %v20647_v13 }
 0x35c   :  { %13789 = vmatpush3.bf16.msk.msra.mxu0 %vm13788_vm6, %v20511_v33  ;;  %12583 = vmatprep.mubr.msk.f32.mxu0 %vm1049_vm5, %v10140_v21  ;;  %vm13794_vm6 = vmpackc.low %vm2176_vm14, %vm2175_vm13  ;;  %vm2178_vm14 = vcmp.eq.s32.totalorder %v15779_v57, %v20647_v13  ;;  %v10143_v21 = vld [vmem:[%s20229_s3 + $0xe8] sm:$0xff]  ;;  %vm6789_vm13 = vcmp.eq.s32.totalorder %v15678_v37, %v17964_v40 }
 0x35d   :  { %13791 = vmatprep.subr.msk.bf16.mxu0 %vm13790_vm9, %v20511_v33  ;;  %vm18032_vm9 = vmpackc.low %vm6787_vm1, %vm6786_vm0  ;;  %vm6806_vm0 = vcmp.eq.s32.totalorder %v15718_v44, %v17964_v40  ;;  %vm6807_vm1 = vcmp.eq.s32.totalorder %v20547_v39, %v17964_v40 }
 0x35e   :  { %14487 = vmatpush3.bf16.msk.msra.mxu1 %vm14486_vm12, %v20511_v33  ;;  %vm14527_vm11 = vmpackc.low %vm6805_vm4, %vm6804_vm3  ;;  %vm6788_vm12 = vcmp.eq.s32.totalorder %v15675_v36, %v17964_v40  ;;  %vm2161_vm3 = vcmp.eq.s32.totalorder %v15792_v60, %v20647_v13  ;;  %vm2162_vm4 = vcmp.eq.s32.totalorder %v15795_v61, %v20647_v13 }
 0x35f   :  { %12584 = vmatmul.mubr.msk.f32.gmra.mrb[26].mxu0 %vm1049_vm5, %v10141_v63  ;;  %14524 = vmatprep.subr.msk.bf16.mxu1 %vm14523_vm15, %v20511_v33  ;;  %vm13796_vm15 = vmpackc.low %vm2160_vm7, %vm2159_vm8  ;;  %v10144_v63 = vld [vmem:[%s20229_s3 + $0xf0] sm:$0xff]  ;;  %vm2179_vm8 = vcmp.eq.s32.totalorder %v15842_v7, %v20647_v13  ;;  %vm2180_vm7 = vcmp.eq.s32.totalorder %v15845_v8, %v20647_v13 }
 0x360   :  { %13793 = vmatpush3.bf16.msk.msra.mxu0 %vm13792_vm2, %v20511_v33  ;;  %12586 = vmatprep.mubr.msk.f32.mxu0 %vm1049_vm5, %v10142_v58  ;;  %vm13798_vm2 = vmpackc.low %vm2178_vm14, %vm2177_vm10  ;;  %v10145_v58 = vld [vmem:[%s20229_s3 + $0xf8] sm:$0xff]  ;;  %vm6790_vm10 = vcmp.eq.s32.totalorder %v15737_v48, %v17964_v40  ;;  %vm6791_vm14 = vcmp.eq.s32.totalorder %v15740_v49, %v17964_v40 }
 0x361   :  { %6530 = vmatmul.mubr.f32.vlgmr.msra.gmra.mrb[144].mxu1 %v20636_v32  ;;  %13795 = vmatprep.subr.msk.bf16.mxu0 %vm13794_vm6, %v20511_v33  ;;  %vm14529_vm6 = vmpackc.low %vm6789_vm13, %vm6788_vm12  ;;  %vm6808_vm12 = vcmp.eq.s32.totalorder %v15776_v56, %v17964_v40  ;;  %vm6809_vm13 = vcmp.eq.s32.totalorder %v15779_v57, %v17964_v40 }
 0x362   :  { %6534 = vmatprep.mubr.f32.mxu1 %v20637_v22  ;;  %14526 = vmatpush3.bf16.msk.msra.mxu1 %vm18032_vm9, %v20511_v33  ;;  %vm14531_vm9 = vmpackc.low %vm6807_vm1, %vm6806_vm0  ;;  %vm2163_vm0 = vcmp.eq.s32.totalorder %v15872_v10, %v20647_v13  ;;  %vm2164_vm1 = vcmp.eq.s32.totalorder %v15875_v12, %v20647_v13 }
 0x363   :  { %12587 = vmatmul.mubr.msk.f32.gmra.mrb[28].mxu0 %vm1049_vm5, %v10143_v21  ;;  %14528 = vmatprep.subr.msk.bf16.mxu1 %vm14527_vm11, %v20511_v33  ;;  %vm13800_vm11 = vmpackc.low %vm2162_vm4, %vm2161_vm3  ;;  %vm2181_vm3 = vcmp.eq.s32.totalorder %v15911_v16, %v20647_v13  ;;  %vm2182_vm4 = vcmp.eq.s32.totalorder %v20592_v51, %v20647_v13 }
 0x364   :  { %13797 = vmatpush3.bf16.msk.msra.mxu0 %vm13796_vm15, %v20511_v33  ;;  %12589 = vmatprep.mubr.msk.f32.mxu0 %vm1049_vm5, %v10144_v63  ;;  %vm13802_vm15 = vmpackc.low %vm2180_vm7, %vm2179_vm8  ;;  %vm6792_vm8 = vcmp.eq.s32.totalorder %v15792_v60, %v17964_v40  ;;  %vm6793_vm7 = vcmp.eq.s32.totalorder %v15795_v61, %v17964_v40 }
 0x365   :  { %6535 = vmatmul.mubr.f32.gmra.mrb[146].mxu1 %v20639_v3  ;;  %13799 = vmatprep.subr.msk.bf16.mxu0 %vm13798_vm2, %v20511_v33  ;;  %vm14533_vm2 = vmpackc.low %vm6791_vm14, %vm6790_vm10  ;;  %vm6810_vm10 = vcmp.eq.s32.totalorder %v15842_v7, %v17964_v40  ;;  %vm6811_vm14 = vcmp.eq.s32.totalorder %v15845_v8, %v17964_v40 }
 0x366   :  { %6539 = vmatprep.mubr.f32.mxu1 %v20640_v54  ;;  %14530 = vmatpush3.bf16.msk.msra.mxu1 %vm14529_vm6, %v20511_v33  ;;  %vm14535_vm6 = vmpackc.low %vm6809_vm13, %vm6808_vm12  ;;  %vm2165_vm12 = vcmp.eq.s32.totalorder %v20628_v2, %v20647_v13  ;;  %vm2166_vm13 = vcmp.eq.s32.totalorder %v15948_v24, %v20647_v13 }
 0x367   :  { %12590 = vmatmul.mubr.msk.f32.gmra.mrb[30].mxu0 %vm1049_vm5, %v10145_v58  ;;  %14532 = vmatprep.subr.msk.bf16.mxu1 %vm14531_vm9, %v20511_v33  ;;  %vm13804_vm9 = vmpackc.low %vm2164_vm1, %vm2163_vm0  ;;  %vm2183_vm0 = vcmp.eq.s32.totalorder %v15984_v31, %v20647_v13  ;;  %vm2184_vm1 = vcmp.eq.s32.totalorder %v15987_v34, %v20647_v13 }
 0x368   :  { %13801 = vmatpush3.bf16.msk.msra.mxu0 %vm13800_vm11, %v20511_v33  ;;  %2319 = vmatprep.mubr.f32.mxu0 %v20594_v42  ;;  %vm13806_vm11 = vmpackc.low %vm2182_vm4, %vm2181_vm3  ;;  %vm6794_vm3 = vcmp.eq.s32.totalorder %v15872_v10, %v17964_v40  ;;  %vm6795_vm4 = vcmp.eq.s32.totalorder %v15875_v12, %v17964_v40 }
 0x369   :  { %6540 = vmatmul.mubr.f32.gmra.mrb[148].mxu1 %v20641_v53  ;;  %13803 = vmatprep.subr.msk.bf16.mxu0 %vm13802_vm15, %v20511_v33  ;;  %vm14537_vm15 = vmpackc.low %vm6793_vm7, %vm6792_vm8  ;;  %vm6812_vm8 = vcmp.eq.s32.totalorder %v15911_v16, %v17964_v40  ;;  %vm6813_vm7 = vcmp.eq.s32.totalorder %v20592_v51, %v17964_v40 }
 0x36a   :  { %6544 = vmatprep.mubr.f32.mxu1 %v20643_v52  ;;  %14534 = vmatpush3.bf16.msk.msra.mxu1 %vm14533_vm2, %v20511_v33  ;;  %vm14539_vm2 = vmpackc.low %vm6811_vm14, %vm6810_vm10  ;;  %vm2167_vm10 = vcmp.eq.s32.totalorder %v15990_v35, %v20647_v13  ;;  %vm2168_vm14 = vcmp.eq.s32.totalorder %v15993_v38, %v20647_v13 }
 0x36b   :  { %v11837_v11 = vpop.f32.mrb[96].mxu1  ;;  %14536 = vmatprep.subr.msk.bf16.mxu1 %vm14535_vm6, %v20511_v33  ;;  %vm13808_vm6 = vmpackc.low %vm2166_vm13, %vm2165_vm12  ;;  %vm2185_vm12 = vcmp.eq.s32.totalorder %v16015_v43, %v20647_v13  ;;  %vm2186_vm13 = vcmp.eq.s32.totalorder %v16018_v46, %v20647_v13 }
 0x36c   :  { %13805 = vmatpush3.bf16.msk.msra.mxu0 %vm13804_vm9, %v20511_v33  ;;  %v11838_v21 = vpop.f32.mrb[97].mxu1  ;;  %vm13810_vm9 = vmpackc.low %vm2184_vm1, %vm2183_vm0  ;;  %vm6796_vm0 = vcmp.eq.s32.totalorder %v20628_v2, %v17964_v40  ;;  %vm6797_vm1 = vcmp.eq.s32.totalorder %v15948_v24, %v17964_v40 }
 0x36d   :  { %v18148_v63 = vadd.f32 %v11838_v21, %v11837_v11  ;;  %6545 = vmatmul.mubr.f32.gmra.mrb[150].mxu1 %v20648_v1  ;;  %13807 = vmatprep.subr.msk.bf16.mxu0 %vm13806_vm11, %v20511_v33  ;;  %vm14541_vm11 = vmpackc.low %vm6795_vm4, %vm6794_vm3  ;;  %vm6814_vm3 = vcmp.eq.s32.totalorder %v15984_v31, %v17964_v40  ;;  %vm6815_vm4 = vcmp.eq.s32.totalorder %v15987_v34, %v17964_v40 }
 0x36e   :  { %14538 = vmatpush3.bf16.msk.msra.mxu1 %vm14537_vm15, %v20511_v33  ;;  %6950 = vmatprep.mubr.f32.mxu1 %v20594_v42  ;;  %vm14543_vm15 = vmpackc.low %vm6813_vm7, %vm6812_vm8  ;;  %vm2169_vm8 = vcmp.eq.s32.totalorder %v20632_v9, %v20647_v13  ;;  %vm2170_vm7 = vcmp.eq.s32.totalorder %v20633_v6, %v20647_v13 }
 0x36f   :  { %20655 = vst [vmem:[#allocation9_spill] sm:$0xff] %v18148_v63  ;;  %v11840_v58 = vpop.f32.mrb[98].mxu1  ;;  %14540 = vmatprep.subr.msk.bf16.mxu1 %vm14539_vm2, %v20511_v33  ;;  %vm13812_vm2 = vmpackc.low %vm2168_vm14, %vm2167_vm10  ;;  %vm6798_vm14 = vcmp.eq.s32.totalorder %v15990_v35, %v17964_v40 }
 0x370   :  { %13809 = vmatpush3.bf16.msk.msra.mxu0 %vm13808_vm6, %v20511_v33  ;;  %v11841_v11 = vpop.f32.mrb[99].mxu1  ;;  %vm13814_vm6 = vmpackc.low %vm2186_vm13, %vm2185_vm12  ;;  %vm6816_vm13 = vcmp.eq.s32.totalorder %v16015_v43, %v17964_v40 }
 0x371   :  { %v18181_v21 = vadd.f32 %v11841_v11, %v11840_v58  ;;  %13811 = vmatprep.subr.msk.bf16.mxu0 %vm13810_vm9, %v20511_v33  ;;  %vm14545_vm9 = vmpackc.low %vm6797_vm1, %vm6796_vm0 }
 0x372   :  { %14542 = vmatpush3.bf16.msk.msra.mxu1 %vm14541_vm11, %v20511_v33  ;;  %vm14547_vm10 = vmpackc.low %vm6815_vm4, %vm6814_vm3  ;;  %vm6799_vm11 = vcmp.eq.s32.totalorder %v15993_v38, %v17964_v40  ;;  %vm6801_vm3 = vcmp.eq.s32.totalorder %v20633_v6, %v17964_v40 }
 0x373   :  { %20656 = vst [vmem:[#allocation4_spill] sm:$0xff] %v18181_v21  ;;  %v11843_v58 = vpop.f32.mrb[100].mxu1  ;;  %14544 = vmatprep.subr.msk.bf16.mxu1 %vm14543_vm15, %v20511_v33  ;;  %vm13816_vm12 = vmpackc.low %vm2170_vm7, %vm2169_vm8  ;;  %vm6817_vm15 = vcmp.eq.s32.totalorder %v16018_v46, %v17964_v40  ;;  %vm6819_vm8 = vcmp.eq.s32.totalorder %v20549_v55, %v17964_v40  ;;  %v20662_v21 = vld [vmem:[#allocation21_spill] sm:$0xff]  ;;  %v20680_v46 = vld [vmem:[#allocation60_spill] sm:$0xff] }
 0x374   :  { %13813 = vmatpush3.bf16.msk.msra.mxu0 %vm13812_vm2, %v20511_v33  ;;  %v11844_v11 = vpop.f32.mrb[101].mxu1  ;;  %vm14549_vm0 = vmpackc.low %vm6799_vm11, %vm6798_vm14  ;;  %vm6800_vm2 = vcmp.eq.s32.totalorder %v20632_v9, %v17964_v40  ;;  %vm6822_vm11 = vcmp.eq.s32.totalorder %v20610_v4, %v17964_v40 }
 0x375   :  { %v18199_v0 = vadd.f32 %v11844_v11, %v11843_v58  ;;  %13815 = vmatprep.subr.msk.bf16.mxu0 %vm13814_vm6, %v20511_v33  ;;  %vm14551_vm1 = vmpackc.low %vm6817_vm15, %vm6816_vm13  ;;  %vm6818_vm6 = vcmp.eq.s32.totalorder %v20548_v26, %v17964_v40  ;;  %v20660_v11 = vld [vmem:[#allocation16_spill] sm:$0xff] }
 0x376   :  { %14546 = vmatpush3.bf16.msk.msra.mxu1 %vm14545_vm9, %v20511_v33  ;;  %vm14553_vm4 = vmpackc.low %vm6801_vm3, %vm6800_vm2  ;;  %vm6820_vm9 = vcmp.eq.s32.totalorder %v20550_v47, %v17964_v40  ;;  %vm6824_vm15 = vcmp.eq.s32.totalorder %v20660_v11, %v17964_v40  ;;  %vm6826_vm2 = vcmp.eq.s32.totalorder %v20614_v15, %v17964_v40  ;;  %vm6827_vm3 = vcmp.eq.s32.totalorder %v20662_v21, %v17964_v40 }
 0x377   :  { %20657 = vst [vmem:[#allocation32_spill] sm:$0xff] %v18199_v0  ;;  %v11846_v13 = vpop.f32.mrb[102].mxu1  ;;  %14548 = vmatprep.subr.msk.bf16.mxu1 %vm14547_vm10, %v20511_v33  ;;  %vm14556_vm7 = vmpackc.low %vm6819_vm8, %vm6818_vm6  ;;  %vm6821_vm10 = vcmp.eq.s32.totalorder %v20609_v41, %v17964_v40 }
 0x378   :  { %13817 = vmatpush3.bf16.msk.msra.mxu0 %vm13816_vm12, %v20511_v33  ;;  %v11847_v19 = vpop.f32.mrb[103].mxu1  ;;  %vm14559_vm14 = vmpackc.low %vm6821_vm10, %vm6820_vm9  ;;  %vm6830_vm10 = vcmp.eq.s32.totalorder %v20575_v27, %v17964_v40 }
 0x379   :  { %v18213_v58 = vadd.f32 %v11847_v19, %v11846_v13  ;;  %v20659_v19 = vld [vmem:[#allocation14_spill] sm:$0xff]  ;;  %v20661_v13 = vld [vmem:[#allocation17_spill] sm:$0xff]  ;;  %vm14568_vm6 = vmpackc.low %vm6827_vm3, %vm6826_vm2 }
 0x37a   :  { %14550 = vmatpush3.bf16.msk.msra.mxu1 %vm14549_vm0, %v20511_v33  ;;  %vm6823_vm12 = vcmp.eq.s32.totalorder %v20659_v19, %v17964_v40  ;;  %vm6825_vm0 = vcmp.eq.s32.totalorder %v20661_v13, %v17964_v40 }
 0x37b   :  { %20658 = vst [vmem:[#allocation72_spill] sm:$0xff] %v18213_v58  ;;  %2320 = vmatmul.mubr.f32.vlgmr.msra.gmra.mrb[40].mxu0 %v20636_v32  ;;  %14552 = vmatprep.subr.msk.bf16.mxu1 %vm14551_vm1, %v20511_v33  ;;  %vm14562_vm13 = vmpackc.low %vm6823_vm12, %vm6822_vm11  ;;  %vm6832_vm12 = vcmp.eq.s32.totalorder %v20578_v45, %v17964_v40 }
 0x37c   :  { %2324 = vmatprep.mubr.f32.mxu0 %v20637_v22  ;;  %vm14565_vm1 = vmpackc.low %vm6825_vm0, %vm6824_vm15  ;;  %vm6834_vm0 = vcmp.eq.s32.totalorder %v20581_v28, %v17964_v40 }
 0x37e   :  { %14554 = vmatpush3.bf16.msk.msra.mxu1 %vm14553_vm4, %v20511_v33  ;;  %vm20665_vm4 = vcmask 130048  }
 0x37f   :  { %2325 = vmatmul.mubr.f32.gmra.mrb[42].mxu0 %v20639_v3  ;;  %14555 = vmatprep.subr.bf16.mxu1 %v20517_v18  ;;  %vm20673_vm3 = vmmov %vm20665_vm4 }
 0x380   :  { %2329 = vmatprep.mubr.f32.mxu0 %v20640_v54 }
 0x381   :  { %6951 = vmatmul.mubr.f32.vlgmr.msra.gmra.mrb[152].mxu1 %v20636_v32 }
 0x382   :  { %6955 = vmatprep.mubr.f32.mxu1 %v20637_v22  ;;  %14557 = vmatpush1.bf16.msk.msra.mxu1 %vm14556_vm7, %v20511_v33  ;;  %vm6829_vm7 = vcmp.eq.s32.totalorder %v20617_v29, %v17964_v40  ;;  %v20678_v22 = vld [vmem:[#allocation61_spill] sm:$0xff] }
 0x383   :  { %2330 = vmatmul.mubr.f32.gmra.mrb[44].mxu0 %v20641_v53  ;;  %14558 = vmatprep.subr.bf16.mxu1 %v20517_v18 }
 0x384   :  { %2334 = vmatprep.mubr.f32.mxu0 %v20643_v52 }
 0x385   :  { %6956 = vmatmul.mubr.f32.gmra.mrb[154].mxu1 %v20639_v3  ;;  %v20677_v3 = vld [vmem:[#allocation55_spill] sm:$0xff] }
 0x386   :  { %6960 = vmatprep.mubr.f32.mxu1 %v20640_v54  ;;  %14560 = vmatpush1.bf16.msk.msra.mxu1 %vm14559_vm14, %v20511_v33  ;;  %vm6831_vm14 = vcmp.eq.s32.totalorder %v20576_v14, %v17964_v40 }
 0x387   :  { %2335 = vmatmul.mubr.f32.gmra.mrb[46].mxu0 %v20648_v1  ;;  %14561 = vmatprep.subr.bf16.mxu1 %v20517_v18  ;;  %vm14574_vm11 = vmpackc.low %vm6831_vm14, %vm6830_vm10 }
 0x389   :  { %6961 = vmatmul.mubr.f32.gmra.mrb[156].mxu1 %v20641_v53  ;;  %v20666_v53 = vld [vmem:[#allocation26_spill] sm:$0xff] }
 0x38a   :  { %6965 = vmatprep.mubr.f32.mxu1 %v20643_v52  ;;  %14563 = vmatpush1.bf16.msk.msra.mxu1 %vm14562_vm13, %v20511_v33  ;;  %vm6828_vm8 = vcmp.eq.s32.totalorder %v20666_v53, %v17964_v40  ;;  %vm6833_vm13 = vcmp.eq.s32.totalorder %v20579_v50, %v17964_v40 }
 0x38b   :  { %v11893_v58 = vpop.f32.mrb[104].mxu1  ;;  %14564 = vmatprep.subr.bf16.mxu1 %v20517_v18  ;;  %vm14571_vm9 = vmpackc.low %vm6829_vm7, %vm6828_vm8 }
 0x38c   :  { %v11894_v0 = vpop.f32.mrb[105].mxu1  ;;  %vm14577_vm15 = vmpackc.low %vm6833_vm13, %vm6832_vm12 }
 0x38d   :  { %v18258_v63 = vadd.f32 %v11894_v0, %v11893_v58  ;;  %6966 = vmatmul.mubr.f32.gmra.mrb[158].mxu1 %v20648_v1 }
 0x38e   :  { %14566 = vmatpush1.bf16.msk.msra.mxu1 %vm14565_vm1, %v20511_v33  ;;  %10974 = vmatprep.mubr.msk.f32.mxu1 %vm20665_vm4, %v20664_v23  ;;  %vm20676_vm4 = vmmov %vm20673_vm3 }
 0x38f   :  { %20663 = vst [vmem:[#allocation14_spill] sm:$0xff] %v18258_v63  ;;  %v11896_v30 = vpop.f32.mrb[106].mxu1  ;;  %14567 = vmatprep.subr.bf16.mxu1 %v20517_v18 }
 0x390   :  { %v11897_v52 = vpop.f32.mrb[107].mxu1 }
 0x391   :  { %v18269_v0 = vadd.f32 %v11897_v52, %v11896_v30 }
 0x392   :  { %14569 = vmatpush1.bf16.msk.msra.mxu1 %vm14568_vm6, %v20511_v33  ;;  %vm20679_vm6 = vmmov %vm20673_vm3 }
 0x393   :  { %20667 = vst [vmem:[#allocation16_spill] sm:$0xff] %v18269_v0  ;;  %v11899_v58 = vpop.f32.mrb[108].mxu1  ;;  %14570 = vmatprep.subr.bf16.mxu1 %v20517_v18 }
 0x394   :  { %v11900_v63 = vpop.f32.mrb[109].mxu1 }
 0x395   :  { %v18277_v1 = vadd.f32 %v11900_v63, %v11899_v58  ;;  %v20670_v63 = vld [vmem:[#allocation45_spill] sm:$0xff] }
 0x396   :  { %14572 = vmatpush1.bf16.msk.msra.mxu1 %vm14571_vm9, %v20511_v33  ;;  %vm6835_vm1 = vcmp.eq.s32.totalorder %v20670_v63, %v17964_v40  ;;  %v20672_v58 = vld [vmem:[#allocation53_spill] sm:$0xff] }
 0x397   :  { %20668 = vst [vmem:[#allocation17_spill] sm:$0xff] %v18277_v1  ;;  %v11902_v54 = vpop.f32.mrb[110].mxu1  ;;  %14573 = vmatprep.subr.bf16.mxu1 %v20517_v18  ;;  %vm14580_vm2 = vmpackc.low %vm6835_vm1, %vm6834_vm0 }
 0x398   :  { %v11903_v52 = vpop.f32.mrb[111].mxu1 }
 0x399   :  { %v18285_v30 = vadd.f32 %v11903_v52, %v11902_v54  ;;  %v20671_v54 = vld [vmem:[#allocation49_spill] sm:$0xff]  ;;  %v20674_v52 = vld [vmem:[#allocation52_spill] sm:$0xff] }
 0x39a   :  { %14575 = vmatpush1.bf16.msk.msra.mxu1 %vm14574_vm11, %v20511_v33 }
 0x39b   :  { %20669 = vst [vmem:[#allocation21_spill] sm:$0xff] %v18285_v30  ;;  %14576 = vmatprep.subr.bf16.mxu1 %v20517_v18  ;;  %v20675_v30 = vld [vmem:[#allocation57_spill] sm:$0xff] }
 0x39e   :  { %14578 = vmatpush1.bf16.msk.msra.mxu1 %vm14577_vm15, %v20511_v33 }
 0x39f   :  { %14579 = vmatprep.subr.bf16.mxu1 %v20517_v18 }
 0x3a2   :  { %14581 = vmatpush1.bf16.msk.msra.mxu1 %vm14580_vm2, %v20511_v33 }
 0x3a5   :  { %7036 = vmatmul.mubr.f32.vlgmr.msra.gmra.mrb[160].mxu1 %v20671_v54 }
 0x3a6   :  { %10975 = vmatprep.mubr.msk.f32.mxu1 %vm20673_vm3, %v20672_v58 }
 0x3a9   :  { %7041 = vmatmul.mubr.f32.gmra.mrb[162].mxu1 %v20674_v52 }
 0x3aa   :  { %10976 = vmatprep.mubr.msk.f32.mxu1 %vm20676_vm4, %v20675_v30 }
 0x3ab   :  { %v11949_v1 = vpop.f32.mrb[112].mxu1 }
 0x3ac   :  { %v11950_v0 = vpop.f32.mrb[113].mxu1 }
 0x3ad   :  { %v11951_v40 = vadd.f32 %v11950_v0, %v11949_v1  ;;  %7046 = vmatmul.mubr.f32.gmra.mrb[164].mxu1 %v20677_v3 }
 0x3ae   :  { %10977 = vmatprep.mubr.msk.f32.mxu1 %vm20679_vm6, %v20678_v22 }
 0x3af   :  { %v11952_v32 = vpop.f32.mrb[114].mxu1 }
 0x3b0   :  { %v11953_v6 = vpop.f32.mrb[115].mxu1 }
 0x3b1   :  { %v11954_v9 = vadd.f32 %v11953_v6, %v11952_v32  ;;  %7051 = vmatmul.mubr.f32.gmra.mrb[166].mxu1 %v20680_v46 }
 0x3b3   :  { %v11955_v43 = vpop.f32.mrb[116].mxu1 }
 0x3b4   :  { %v11956_v38 = vpop.f32.mrb[117].mxu1 }
 0x3b5   :  { %v11957_v35 = vadd.f32 %v11956_v38, %v11955_v43 }
 0x3b7   :  { %v11958_v34 = vpop.f32.mrb[118].mxu1 }
 0x3b8   :  { %v11959_v31 = vpop.f32.mrb[119].mxu1 }
 0x3b9   :  { %v11960_v24 = vadd.f32 %v11959_v31, %v11958_v34  ;;  %v10208_v31 = vld [vmem:[%s20229_s3 + $0x100] sm:$0xff] }
 0x3ba   :  { %12600 = vmatprep.mubr.msk.f32.mxu0 %vm1049_vm5, %v10208_v31 }
 0x3cf   :  { %v5353_v2 = vpop.f32.mrb[120].mxu1 }
 0x3d0   :  { %v5354_v42 = vadd.f32 %v11951_v40, %v5353_v2  ;;  %v5355_v51 = vpop.f32.mrb[121].mxu1 }
 0x3d3   :  { %v5358_v1 = vpop.f32.mrb[122].mxu1 }
 0x3d4   :  { %v5359_v0 = vadd.f32 %v11954_v9, %v5358_v1  ;;  %v5360_v16 = vpop.f32.mrb[123].mxu1 }
 0x3d6   :  { %v18306_v12 = vpack.c.bf16 %v5359_v0, %v5354_v42 }
 0x3d7   :  { %v5363_v10 = vpop.f32.mrb[124].mxu1 }
 0x3d8   :  { %v5364_v8 = vadd.f32 %v11957_v35, %v5363_v10  ;;  %v5365_v7 = vpop.f32.mrb[125].mxu1 }
 0x3db   :  { %v5368_v6 = vpop.f32.mrb[126].mxu1 }
 0x3dc   :  { %v5369_v32 = vadd.f32 %v11960_v24, %v5368_v6  ;;  %v5370_v61 = vpop.f32.mrb[127].mxu1 }
 0x3de   :  { %v18308_v60 = vpack.c.bf16 %v5369_v32, %v5364_v8 }
 0x3e0   :  { %20681 = vst [vmem:[#allocation48_spill] sm:$0xff] %v18308_v60 }
 0x3f3   :  { %v18314_v34 = vpop.f32.mrb[128].mxu1 }
 0x3f4   :  { %20682 = vst [vmem:[#allocation26_spill] sm:$0xff] %v18314_v34  ;;  %v5776_v38 = vpop.f32.mrb[129].mxu1 }
 0x3f7   :  { %v18316_v16 = vpop.f32.mrb[130].mxu1 }
 0x3f8   :  { %20683 = vst [vmem:[#allocation45_spill] sm:$0xff] %v18316_v16  ;;  %v5781_v43 = vpop.f32.mrb[131].mxu1 }
 0x3fb   :  { %v18318_v51 = vpop.f32.mrb[132].mxu1 }
 0x3fc   :  { %20684 = vst [vmem:[#allocation49_spill] sm:$0xff] %v18318_v51  ;;  %v5786_v7 = vpop.f32.mrb[133].mxu1 }
 0x3ff   :  { %v18320_v10 = vpop.f32.mrb[134].mxu1 }
 0x400   :  { %20685 = vst [vmem:[#allocation53_spill] sm:$0xff] %v18320_v10  ;;  %v5791_v61 = vpop.f32.mrb[135].mxu1 }
 0x413   :  { %v12061_v8 = vpop.f32.mrb[136].mxu1 }
 0x414   :  { %v12062_v24 = vpop.f32.mrb[137].mxu1 }
 0x415   :  { %v18322_v35 = vadd.f32 %v12062_v24, %v12061_v8 }
 0x417   :  { %20686 = vst [vmem:[#allocation52_spill] sm:$0xff] %v18322_v35  ;;  %v12064_v42 = vpop.f32.mrb[138].mxu1 }
 0x418   :  { %v12065_v2 = vpop.f32.mrb[139].mxu1 }
 0x419   :  { %v18324_v9 = vadd.f32 %v12065_v2, %v12064_v42 }
 0x41b   :  { %20687 = vst [vmem:[#allocation57_spill] sm:$0xff] %v18324_v9  ;;  %v12067_v40 = vpop.f32.mrb[140].mxu1 }
 0x41c   :  { %v12068_v1 = vpop.f32.mrb[141].mxu1 }
 0x41d   :  { %v18326_v0 = vadd.f32 %v12068_v1, %v12067_v40 }
 0x41f   :  { %20688 = vst [vmem:[#allocation55_spill] sm:$0xff] %v18326_v0 }
 0x420   :  { %v12070_v6 = vpop.f32.mrb[142].mxu1 }
 0x421   :  { %v12071_v32 = vpop.f32.mrb[143].mxu1 }
 0x422   :  { %v18328_v31 = vadd.f32 %v12071_v32, %v12070_v6  ;;  %v20694_v32 = vld [vmem:[#allocation33_spill] sm:$0xff] }
 0x424   :  { %20689 = vst [vmem:[#allocation61_spill] sm:$0xff] %v18328_v31 }
 0x434   :  { %v12117_v38 = vpop.f32.mrb[144].mxu1 }
 0x435   :  { %v12118_v43 = vpop.f32.mrb[145].mxu1 }
 0x436   :  { %v18330_v7 = vadd.f32 %v12118_v43, %v12117_v38 }
 0x438   :  { %20690 = vst [vmem:[#allocation60_spill] sm:$0xff] %v18330_v7  ;;  %v12120_v61 = vpop.f32.mrb[146].mxu1 }
 0x439   :  { %v12121_v10 = vpop.f32.mrb[147].mxu1 }
 0x43a   :  { %v18332_v8 = vadd.f32 %v12121_v10, %v12120_v61  ;;  %v20695_v10 = vld [vmem:[#allocation38_spill] sm:$0xff] }
 0x43c   :  { %20691 = vst [vmem:[#allocation73_spill] sm:$0xff] %v18332_v8  ;;  %v12123_v24 = vpop.f32.mrb[148].mxu1 }
 0x43d   :  { %v12124_v35 = vpop.f32.mrb[149].mxu1 }
 0x43e   :  { %v18334_v42 = vadd.f32 %v12124_v35, %v12123_v24 }
 0x440   :  { %20692 = vst [vmem:[#allocation74_spill] sm:$0xff] %v18334_v42  ;;  %v12126_v2 = vpop.f32.mrb[150].mxu1 }
 0x441   :  { %v12127_v9 = vpop.f32.mrb[151].mxu1 }
 0x442   :  { %v18336_v40 = vadd.f32 %v12127_v9, %v12126_v2 }
 0x444   :  { %20693 = vst [vmem:[#allocation75_spill] sm:$0xff] %v18336_v40  ;;  %v20696_v40 = vld [vmem:[#allocation39_spill] sm:$0xff] }
 0x44e   :  { %v11557_v1 = vpop.f32.mrb[40].mxu0 }
 0x44f   :  { %v11558_v0 = vpop.f32.mrb[41].mxu0 }
 0x450   :  { %v11559_v6 = vadd.f32 %v11558_v0, %v11557_v1 }
 0x452   :  { %v2407_v31 = vadd.f32 %v11559_v6, %v20694_v32  ;;  %v11560_v51 = vpop.f32.mrb[42].mxu0 }
 0x453   :  { %v11561_v38 = vpop.f32.mrb[43].mxu0 }
 0x454   :  { %v11562_v43 = vadd.f32 %v11561_v38, %v11560_v51  ;;  %v12173_v7 = vpop.f32.mrb[152].mxu1 }
 0x455   :  { %v12174_v16 = vpop.f32.mrb[153].mxu1 }
 0x456   :  { %v2412_v61 = vadd.f32 %v11562_v43, %v20695_v10  ;;  %v18340_v8 = vadd.f32 %v12174_v16, %v12173_v7  ;;  %v11563_v35 = vpop.f32.mrb[44].mxu0  ;;  %v20697_v43 = vld [vmem:[#allocation44_spill] sm:$0xff] }
 0x457   :  { %v11564_v24 = vpop.f32.mrb[45].mxu0 }
 0x458   :  { %v11565_v42 = vadd.f32 %v11564_v24, %v11563_v35  ;;  %v12176_v34 = vpop.f32.mrb[154].mxu1  ;;  %v13845_v9 = vpack.c.bf16 %v2412_v61, %v2407_v31  ;;  %v20698_v31 = vld [vmem:[#allocation5_spill] sm:$0xff]  ;;  %v10212_v61 = vld [vmem:[%s20229_s3 + $0x120] sm:$0xff] }
 0x459   :  { %v12177_v2 = vpop.f32.mrb[155].mxu1  ;;  %vm2608_vm8 = vcmp.eq.s32.totalorder %v20548_v26, %v20698_v31  ;;  %vm2609_vm7 = vcmp.eq.s32.totalorder %v20549_v55, %v20698_v31  ;;  %vm2610_vm10 = vcmp.eq.s32.totalorder %v20550_v47, %v20698_v31  ;;  %vm2611_vm14 = vcmp.eq.s32.totalorder %v20609_v41, %v20698_v31 }
 0x45a   :  { %v2417_v60 = vadd.f32 %v11565_v42, %v20696_v40  ;;  %v18343_v0 = vadd.f32 %v12177_v2, %v12176_v34  ;;  %v11566_v1 = vpop.f32.mrb[46].mxu0  ;;  %13846 = vmatprep.subr.bf16.mxu0 %v13845_v9  ;;  %v10209_v42 = vld [vmem:[%s20229_s3 + $0x108] sm:$0xff]  ;;  %vm13886_vm9 = vmpackc.low %vm2609_vm7, %vm2608_vm8  ;;  %v10211_v40 = vld [vmem:[%s20229_s3 + $0x118] sm:$0xff]  ;;  %vm2612_vm12 = vcmp.eq.s32.totalorder %v20610_v4, %v20698_v31  ;;  %vm2613_vm13 = vcmp.eq.s32.totalorder %v20659_v19, %v20698_v31 }
 0x45b   :  { %v11567_v6 = vpop.f32.mrb[47].mxu0  ;;  %13848 = vmatpush3.bf16.msra.mxu0 %v13845_v9  ;;  %vm13889_vm11 = vmpackc.low %vm2611_vm14, %vm2610_vm10  ;;  %v10213_v9 = vld [vmem:[%s20229_s3 + $0x128] sm:$0xff]  ;;  %v10214_v2 = vld [vmem:[%s20229_s3 + $0x130] sm:$0xff]  ;;  %vm2614_vm0 = vcmp.eq.s32.totalorder %v20660_v11, %v20698_v31  ;;  %vm2615_vm1 = vcmp.eq.s32.totalorder %v20661_v13, %v20698_v31  ;;  %vm2616_vm3 = vcmp.eq.s32.totalorder %v20614_v15, %v20698_v31  ;;  %vm2617_vm4 = vcmp.eq.s32.totalorder %v20662_v21, %v20698_v31 }
 0x45c   :  { %v11568_v51 = vadd.f32 %v11567_v6, %v11566_v1  ;;  %v12179_v32 = vpop.f32.mrb[156].mxu1  ;;  %vm13892_vm15 = vmpackc.low %vm2613_vm13, %vm2612_vm12  ;;  %v10215_v1 = vld [vmem:[%s20229_s3 + $0x138] sm:$0xff]  ;;  %vm2618_vm7 = vcmp.eq.s32.totalorder %v20666_v53, %v20698_v31  ;;  %vm2620_vm14 = vcmp.eq.s32.totalorder %v20575_v27, %v20698_v31  ;;  %vm2622_vm13 = vcmp.eq.s32.totalorder %v20578_v45, %v20698_v31 }
 0x45d   :  { %v12180_v38 = vpop.f32.mrb[157].mxu1  ;;  %vm13895_vm2 = vmpackc.low %vm2615_vm1, %vm2614_vm0  ;;  %vm2624_vm1 = vcmp.eq.s32.totalorder %v20581_v28, %v20698_v31 }
 0x45e   :  { %v2422_v16 = vadd.f32 %v11568_v51, %v20697_v43  ;;  %v18346_v7 = vadd.f32 %v12180_v38, %v12179_v32  ;;  %vm13898_vm8 = vmpackc.low %vm2617_vm4, %vm2616_vm3 }
 0x45f   :  { %vm20701_vm4 = vmmov %vm20679_vm6 }
 0x460   :  { %v12182_v10 = vpop.f32.mrb[158].mxu1  ;;  %v13849_v35 = vpack.c.bf16 %v2422_v16, %v2417_v60  ;;  %v10210_v60 = vld [vmem:[%s20229_s3 + $0x110] sm:$0xff] }
 0x461   :  { %v12183_v24 = vpop.f32.mrb[159].mxu1 }
 0x462   :  { %v18352_v34 = vadd.f32 %v12183_v24, %v12182_v10  ;;  %13850 = vmatprep.subr.bf16.mxu0 %v13849_v35 }
 0x463   :  { %13852 = vmatpush3.bf16.msra.mxu0 %v13849_v35 }
 0x464   :  { %13885 = vmatprep.subr.bf16.mxu0 %v20517_v18 }
 0x466   :  { %12601 = vmatmul.mubr.msk.f32.vlgmr.msra.gmra.mrb[24].mxu0 %vm1049_vm5, %v10209_v42 }
 0x467   :  { %13887 = vmatpush1.bf16.msk.msra.mxu0 %vm13886_vm9, %v20511_v33  ;;  %12603 = vmatprep.mubr.msk.f32.mxu0 %vm1049_vm5, %v10210_v60  ;;  %vm2619_vm9 = vcmp.eq.s32.totalorder %v20617_v29, %v20698_v31 }
 0x468   :  { %13888 = vmatprep.subr.bf16.mxu0 %v20517_v18  ;;  %vm13901_vm10 = vmpackc.low %vm2619_vm9, %vm2618_vm7 }
 0x46a   :  { %12604 = vmatmul.mubr.msk.f32.gmra.mrb[26].mxu0 %vm1049_vm5, %v10211_v40 }
 0x46b   :  { %13890 = vmatpush1.bf16.msk.msra.mxu0 %vm13889_vm11, %v20511_v33  ;;  %12606 = vmatprep.mubr.msk.f32.mxu0 %vm1049_vm5, %v10212_v61  ;;  %vm2621_vm11 = vcmp.eq.s32.totalorder %v20576_v14, %v20698_v31 }
 0x46c   :  { %13891 = vmatprep.subr.bf16.mxu0 %v20517_v18  ;;  %vm13904_vm12 = vmpackc.low %vm2621_vm11, %vm2620_vm14 }
 0x46e   :  { %12607 = vmatmul.mubr.msk.f32.gmra.mrb[28].mxu0 %vm1049_vm5, %v10213_v9 }
 0x46f   :  { %13893 = vmatpush1.bf16.msk.msra.mxu0 %vm13892_vm15, %v20511_v33  ;;  %12609 = vmatprep.mubr.msk.f32.mxu0 %vm1049_vm5, %v10214_v2  ;;  %vm2623_vm15 = vcmp.eq.s32.totalorder %v20579_v50, %v20698_v31 }
 0x470   :  { %13894 = vmatprep.subr.bf16.mxu0 %v20517_v18  ;;  %vm13907_vm0 = vmpackc.low %vm2623_vm15, %vm2622_vm13 }
 0x472   :  { %12610 = vmatmul.mubr.msk.f32.gmra.mrb[30].mxu0 %vm1049_vm5, %v10215_v1  ;;  %v20705_v1 = vld [vmem:[#allocation64_spill] sm:$0xff] }
 0x473   :  { %13896 = vmatpush1.bf16.msk.msra.mxu0 %vm13895_vm2, %v20511_v33  ;;  %10274 = vmatprep.mubr.msk.f32.mxu0 %vm20679_vm6, %v20664_v23  ;;  %vm2625_vm2 = vcmp.eq.s32.totalorder %v20670_v63, %v20698_v31  ;;  %vm20702_vm6 = vmmov %vm20701_vm4 }
 0x474   :  { %13897 = vmatprep.subr.bf16.mxu0 %v20517_v18  ;;  %vm13910_vm3 = vmpackc.low %vm2625_vm2, %vm2624_vm1 }
 0x477   :  { %13899 = vmatpush1.bf16.msk.msra.mxu0 %vm13898_vm8, %v20511_v33  ;;  %vm20703_vm8 = vmmov %vm20701_vm4 }
 0x478   :  { %v7037_v6 = vpop.f32.mrb[160].mxu1  ;;  %13900 = vmatprep.subr.bf16.mxu0 %v20517_v18 }
 0x479   :  { %v7038_v51 = vadd.f32 %v18340_v8, %v7037_v6  ;;  %v7039_v32 = vpop.f32.mrb[161].mxu1 }
 0x47b   :  { %13902 = vmatpush1.bf16.msk.msra.mxu0 %vm13901_vm10, %v20511_v33 }
 0x47c   :  { %v7042_v38 = vpop.f32.mrb[162].mxu1  ;;  %13903 = vmatprep.subr.bf16.mxu0 %v20517_v18 }
 0x47d   :  { %v7043_v43 = vadd.f32 %v18343_v0, %v7042_v38  ;;  %v7044_v16 = vpop.f32.mrb[163].mxu1 }
 0x47f   :  { %v18427_v8 = vpack.c.bf16 %v7043_v43, %v7038_v51  ;;  %13905 = vmatpush1.bf16.msk.msra.mxu0 %vm13904_vm12, %v20511_v33  ;;  %v20706_v43 = vld [vmem:[#allocation65_spill] sm:$0xff] }
 0x480   :  { %v7047_v10 = vpop.f32.mrb[164].mxu1  ;;  %13906 = vmatprep.subr.bf16.mxu0 %v20517_v18 }
 0x481   :  { %20699 = vst [vmem:[#allocation33_spill] sm:$0xff] %v18427_v8  ;;  %v7048_v35 = vadd.f32 %v18346_v7, %v7047_v10  ;;  %v7049_v24 = vpop.f32.mrb[165].mxu1  ;;  %v10278_v7 = vld [vmem:[%s20229_s3 + $0x140] sm:$0xff] }
 0x482   :  { %v20707_v24 = vld [vmem:[#allocation66_spill] sm:$0xff] }
 0x483   :  { %13908 = vmatpush1.bf16.msk.msra.mxu0 %vm13907_vm0, %v20511_v33  ;;  %v20738_v8 = vld [vmem:[#allocation46_spill] sm:$0xff] }
 0x484   :  { %v7052_v0 = vpop.f32.mrb[166].mxu1  ;;  %13909 = vmatprep.subr.bf16.mxu0 %v20517_v18 }
 0x485   :  { %v7053_v42 = vadd.f32 %v18352_v34, %v7052_v0  ;;  %v7054_v60 = vpop.f32.mrb[167].mxu1  ;;  %v20704_v34 = vld [vmem:[#allocation63_spill] sm:$0xff] }
 0x487   :  { %v18439_v40 = vpack.c.bf16 %v7053_v42, %v7048_v35  ;;  %13911 = vmatpush1.bf16.msk.msra.mxu0 %vm13910_vm3, %v20511_v33 }
 0x489   :  { %20700 = vst [vmem:[#allocation38_spill] sm:$0xff] %v18439_v40  ;;  %v20737_v40 = vld [vmem:[#allocation43_spill] sm:$0xff] }
 0x48a   :  { %2826 = vmatmul.mubr.f32.vlgmr.msra.gmra.mrb[48].mxu0 %v20671_v54 }
 0x48b   :  { %10275 = vmatprep.mubr.msk.f32.mxu0 %vm20701_vm4, %v20672_v58 }
 0x48e   :  { %2831 = vmatmul.mubr.f32.gmra.mrb[50].mxu0 %v20674_v52 }
 0x48f   :  { %10276 = vmatprep.mubr.msk.f32.mxu0 %vm20702_vm6, %v20675_v30 }
 0x492   :  { %2836 = vmatmul.mubr.f32.gmra.mrb[52].mxu0 %v20677_v3 }
 0x493   :  { %10277 = vmatprep.mubr.msk.f32.mxu0 %vm20703_vm8, %v20678_v22 }
 0x496   :  { %2841 = vmatmul.mubr.f32.gmra.mrb[54].mxu0 %v20680_v46 }
 0x497   :  { %12620 = vmatprep.mubr.msk.f32.mxu0 %vm1049_vm5, %v10278_v7  ;;  %v20708_v7 = vld [vmem:[#allocation2_spill] sm:$0xff] }
 0x498   :  { %vm3029_vm7 = vcmp.eq.s32.totalorder %v20548_v26, %v20708_v7  ;;  %vm3030_vm9 = vcmp.eq.s32.totalorder %v20549_v55, %v20708_v7  ;;  %vm3031_vm14 = vcmp.eq.s32.totalorder %v20550_v47, %v20708_v7  ;;  %vm3032_vm11 = vcmp.eq.s32.totalorder %v20609_v41, %v20708_v7 }
 0x499   :  { %vm13953_vm10 = vmpackc.low %vm3030_vm9, %vm3029_vm7  ;;  %vm3033_vm13 = vcmp.eq.s32.totalorder %v20610_v4, %v20708_v7  ;;  %vm3034_vm15 = vcmp.eq.s32.totalorder %v20659_v19, %v20708_v7  ;;  %vm3035_vm1 = vcmp.eq.s32.totalorder %v20660_v11, %v20708_v7  ;;  %vm3036_vm2 = vcmp.eq.s32.totalorder %v20661_v13, %v20708_v7 }
 0x49a   :  { %vm13956_vm12 = vmpackc.low %vm3032_vm11, %vm3031_vm14  ;;  %vm3037_vm4 = vcmp.eq.s32.totalorder %v20614_v15, %v20708_v7  ;;  %vm3038_vm6 = vcmp.eq.s32.totalorder %v20662_v21, %v20708_v7  ;;  %vm3039_vm9 = vcmp.eq.s32.totalorder %v20666_v53, %v20708_v7  ;;  %vm3041_vm11 = vcmp.eq.s32.totalorder %v20575_v27, %v20708_v7 }
 0x49b   :  { %vm13959_vm0 = vmpackc.low %vm3034_vm15, %vm3033_vm13  ;;  %vm3043_vm15 = vcmp.eq.s32.totalorder %v20578_v45, %v20708_v7 }
 0x49c   :  { %vm13962_vm3 = vmpackc.low %vm3036_vm2, %vm3035_vm1  ;;  %vm3045_vm2 = vcmp.eq.s32.totalorder %v20581_v28, %v20708_v7 }
 0x49d   :  { %vm13965_vm7 = vmpackc.low %vm3038_vm6, %vm3037_vm4 }
 0x49e   :  { %vm20709_vm6 = vmmov %vm20703_vm8 }
 0x55d   :  { %v2827_v31 = vpop.f32.mrb[48].mxu0 }
 0x55e   :  { %v2828_v61 = vadd.f32 %v20704_v34, %v2827_v31  ;;  %v2829_v9 = vpop.f32.mrb[49].mxu0  ;;  %v10279_v31 = vld [vmem:[%s20229_s3 + $0x148] sm:$0xff]  ;;  %v10280_v34 = vld [vmem:[%s20229_s3 + $0x150] sm:$0xff] }
 0x55f   :  { %v10282_v9 = vld [vmem:[%s20229_s3 + $0x160] sm:$0xff] }
 0x561   :  { %v2832_v2 = vpop.f32.mrb[50].mxu0 }
 0x562   :  { %v2833_v6 = vadd.f32 %v20705_v1, %v2832_v2  ;;  %v2834_v51 = vpop.f32.mrb[51].mxu0  ;;  %v10283_v2 = vld [vmem:[%s20229_s3 + $0x168] sm:$0xff]  ;;  %v10284_v1 = vld [vmem:[%s20229_s3 + $0x170] sm:$0xff] }
 0x563   :  { %v10348_v51 = vld [vmem:[%s20229_s3 + $0x180] sm:$0xff] }
 0x564   :  { %v13912_v32 = vpack.c.bf16 %v2833_v6, %v2828_v61  ;;  %v10281_v61 = vld [vmem:[%s20229_s3 + $0x158] sm:$0xff] }
 0x565   :  { %v2837_v38 = vpop.f32.mrb[52].mxu0  ;;  %v10285_v6 = vld [vmem:[%s20229_s3 + $0x178] sm:$0xff] }
 0x566   :  { %v2838_v16 = vadd.f32 %v20706_v43, %v2837_v38  ;;  %v2839_v10 = vpop.f32.mrb[53].mxu0  ;;  %13913 = vmatprep.subr.bf16.mxu0 %v13912_v32  ;;  %v20712_v38 = vld [vmem:[#allocation10_spill] sm:$0xff] }
 0x567   :  { %13915 = vmatpush3.bf16.msra.mxu0 %v13912_v32 }
 0x569   :  { %v2842_v35 = vpop.f32.mrb[54].mxu0 }
 0x56a   :  { %v2843_v0 = vadd.f32 %v20707_v24, %v2842_v35  ;;  %v2844_v42 = vpop.f32.mrb[55].mxu0  ;;  %v20713_v35 = vld [vmem:[#allocation13_spill] sm:$0xff] }
 0x56c   :  { %v13916_v60 = vpack.c.bf16 %v2843_v0, %v2838_v16 }
 0x56e   :  { %13917 = vmatprep.subr.bf16.mxu0 %v13916_v60 }
 0x56f   :  { %13919 = vmatpush3.bf16.msra.mxu0 %v13916_v60 }
 0x570   :  { %13952 = vmatprep.subr.bf16.mxu0 %v20517_v18 }
 0x572   :  { %12621 = vmatmul.mubr.msk.f32.vlgmr.msra.gmra.mrb[24].mxu0 %vm1049_vm5, %v10279_v31 }
 0x573   :  { %13954 = vmatpush1.bf16.msk.msra.mxu0 %vm13953_vm10, %v20511_v33  ;;  %12623 = vmatprep.mubr.msk.f32.mxu0 %vm1049_vm5, %v10280_v34  ;;  %vm3040_vm10 = vcmp.eq.s32.totalorder %v20617_v29, %v20708_v7 }
 0x574   :  { %13955 = vmatprep.subr.bf16.mxu0 %v20517_v18  ;;  %vm13968_vm14 = vmpackc.low %vm3040_vm10, %vm3039_vm9 }
 0x576   :  { %12624 = vmatmul.mubr.msk.f32.gmra.mrb[26].mxu0 %vm1049_vm5, %v10281_v61 }
 0x577   :  { %13957 = vmatpush1.bf16.msk.msra.mxu0 %vm13956_vm12, %v20511_v33  ;;  %12626 = vmatprep.mubr.msk.f32.mxu0 %vm1049_vm5, %v10282_v9  ;;  %vm3042_vm12 = vcmp.eq.s32.totalorder %v20576_v14, %v20708_v7  ;;  %v20715_v9 = vld [vmem:[#allocation27_spill] sm:$0xff] }
 0x578   :  { %13958 = vmatprep.subr.bf16.mxu0 %v20517_v18  ;;  %vm13971_vm13 = vmpackc.low %vm3042_vm12, %vm3041_vm11 }
 0x57a   :  { %12627 = vmatmul.mubr.msk.f32.gmra.mrb[28].mxu0 %vm1049_vm5, %v10283_v2 }
 0x57b   :  { %13960 = vmatpush1.bf16.msk.msra.mxu0 %vm13959_vm0, %v20511_v33  ;;  %12629 = vmatprep.mubr.msk.f32.mxu0 %vm1049_vm5, %v10284_v1  ;;  %vm3044_vm0 = vcmp.eq.s32.totalorder %v20579_v50, %v20708_v7 }
 0x57c   :  { %13961 = vmatprep.subr.bf16.mxu0 %v20517_v18  ;;  %vm13974_vm1 = vmpackc.low %vm3044_vm0, %vm3043_vm15 }
 0x57e   :  { %12630 = vmatmul.mubr.msk.f32.gmra.mrb[30].mxu0 %vm1049_vm5, %v10285_v6 }
 0x57f   :  { %13963 = vmatpush1.bf16.msk.msra.mxu0 %vm13962_vm3, %v20511_v33  ;;  %10344 = vmatprep.mubr.msk.f32.mxu0 %vm20703_vm8, %v20664_v23  ;;  %vm3046_vm3 = vcmp.eq.s32.totalorder %v20670_v63, %v20708_v7  ;;  %vm20710_vm8 = vmmov %vm20709_vm6  ;;  %v20714_v7 = vld [vmem:[#allocation20_spill] sm:$0xff] }
 0x580   :  { %13964 = vmatprep.subr.bf16.mxu0 %v20517_v18  ;;  %vm13977_vm4 = vmpackc.low %vm3046_vm3, %vm3045_vm2 }
 0x583   :  { %13966 = vmatpush1.bf16.msk.msra.mxu0 %vm13965_vm7, %v20511_v33  ;;  %vm20711_vm7 = vmmov %vm20709_vm6 }
 0x584   :  { %13967 = vmatprep.subr.bf16.mxu0 %v20517_v18 }
 0x587   :  { %13969 = vmatpush1.bf16.msk.msra.mxu0 %vm13968_vm14, %v20511_v33 }
 0x588   :  { %13970 = vmatprep.subr.bf16.mxu0 %v20517_v18 }
 0x58b   :  { %13972 = vmatpush1.bf16.msk.msra.mxu0 %vm13971_vm13, %v20511_v33 }
 0x58c   :  { %13973 = vmatprep.subr.bf16.mxu0 %v20517_v18 }
 0x58f   :  { %13975 = vmatpush1.bf16.msk.msra.mxu0 %vm13974_vm1, %v20511_v33 }
 0x590   :  { %13976 = vmatprep.subr.bf16.mxu0 %v20517_v18 }
 0x593   :  { %13978 = vmatpush1.bf16.msk.msra.mxu0 %vm13977_vm4, %v20511_v33 }
 0x596   :  { %3247 = vmatmul.mubr.f32.vlgmr.msra.gmra.mrb[56].mxu0 %v20671_v54 }
 0x597   :  { %10345 = vmatprep.mubr.msk.f32.mxu0 %vm20709_vm6, %v20672_v58 }
 0x59a   :  { %3252 = vmatmul.mubr.f32.gmra.mrb[58].mxu0 %v20674_v52 }
 0x59b   :  { %10346 = vmatprep.mubr.msk.f32.mxu0 %vm20710_vm8, %v20675_v30 }
 0x59e   :  { %3257 = vmatmul.mubr.f32.gmra.mrb[60].mxu0 %v20677_v3 }
 0x59f   :  { %10347 = vmatprep.mubr.msk.f32.mxu0 %vm20711_vm7, %v20678_v22 }
 0x5a2   :  { %3262 = vmatmul.mubr.f32.gmra.mrb[62].mxu0 %v20680_v46 }
 0x5a3   :  { %12640 = vmatprep.mubr.msk.f32.mxu0 %vm1049_vm5, %v10348_v51  ;;  %v10349_v51 = vld [vmem:[%s20229_s3 + $0x188] sm:$0xff] }
 0x669   :  { %v3248_v32 = vpop.f32.mrb[56].mxu0 }
 0x66a   :  { %v3249_v43 = vadd.f32 %v20712_v38, %v3248_v32  ;;  %v3250_v16 = vpop.f32.mrb[57].mxu0  ;;  %v20716_v32 = vld [vmem:[#allocation69_spill] sm:$0xff]  ;;  %v10350_v38 = vld [vmem:[%s20229_s3 + $0x190] sm:$0xff] }
 0x66b   :  { %v10351_v16 = vld [vmem:[%s20229_s3 + $0x198] sm:$0xff] }
 0x66d   :  { %v3253_v10 = vpop.f32.mrb[58].mxu0 }
 0x66e   :  { %v3254_v24 = vadd.f32 %v20713_v35, %v3253_v10  ;;  %v3255_v0 = vpop.f32.mrb[59].mxu0  ;;  %v20718_v10 = vld [vmem:[#allocation71_spill] sm:$0xff]  ;;  %v10352_v35 = vld [vmem:[%s20229_s3 + $0x1a0] sm:$0xff] }
 0x66f   :  { %v10354_v0 = vld [vmem:[%s20229_s3 + $0x1b0] sm:$0xff] }
 0x670   :  { %v13979_v42 = vpack.c.bf16 %v3254_v24, %v3249_v43  ;;  %v20717_v43 = vld [vmem:[#allocation6_spill] sm:$0xff]  ;;  %v10353_v24 = vld [vmem:[%s20229_s3 + $0x1a8] sm:$0xff] }
 0x671   :  { %v3258_v60 = vpop.f32.mrb[60].mxu0  ;;  %vm3855_vm9 = vcmp.eq.s32.totalorder %v20540_v59, %v20717_v43  ;;  %vm3856_vm10 = vcmp.eq.s32.totalorder %v20541_v5, %v20717_v43  ;;  %vm3839_vm11 = vcmp.eq.s32.totalorder %v20543_v25, %v20717_v43  ;;  %vm3840_vm12 = vcmp.eq.s32.totalorder %v20544_v62, %v20717_v43 }
 0x672   :  { %v3259_v31 = vadd.f32 %v20714_v7, %v3258_v60  ;;  %v3260_v34 = vpop.f32.mrb[61].mxu0  ;;  %13980 = vmatprep.subr.bf16.mxu0 %v13979_v42  ;;  %vm14054_vm14 = vmpackc.low %vm3856_vm10, %vm3855_vm9  ;;  %v10418_v60 = vld [vmem:[%s20229_s3 + $0x1c0] sm:$0xff]  ;;  %vm3857_vm13 = vcmp.eq.s32.totalorder %v20545_v17, %v20717_v43  ;;  %vm3858_vm15 = vcmp.eq.s32.totalorder %v20546_v20, %v20717_v43  ;;  %v10419_v7 = vld [vmem:[%s20229_s3 + $0x1c8] sm:$0xff]  ;;  %vm3841_vm2 = vcmp.eq.s32.totalorder %v15675_v36, %v20717_v43 }
 0x673   :  { %13982 = vmatpush3.bf16.msra.mxu0 %v13979_v42  ;;  %v10355_v42 = vld [vmem:[%s20229_s3 + $0x1b8] sm:$0xff]  ;;  %vm14056_vm0 = vmpackc.low %vm3840_vm12, %vm3839_vm11  ;;  %vm3842_vm3 = vcmp.eq.s32.totalorder %v15678_v37, %v20717_v43  ;;  %vm3859_vm4 = vcmp.eq.s32.totalorder %v15718_v44, %v20717_v43  ;;  %vm3860_vm6 = vcmp.eq.s32.totalorder %v20547_v39, %v20717_v43  ;;  %vm3843_vm9 = vcmp.eq.s32.totalorder %v15737_v48, %v20717_v43 }
 0x674   :  { %vm14058_vm1 = vmpackc.low %vm3858_vm15, %vm3857_vm13  ;;  %v10421_v34 = vld [vmem:[%s20229_s3 + $0x1d8] sm:$0xff]  ;;  %vm3844_vm10 = vcmp.eq.s32.totalorder %v15740_v49, %v20717_v43  ;;  %vm3862_vm11 = vcmp.eq.s32.totalorder %v15779_v57, %v20717_v43 }
 0x675   :  { %v3263_v61 = vpop.f32.mrb[62].mxu0  ;;  %vm14060_vm8 = vmpackc.low %vm3842_vm3, %vm3841_vm2 }
 0x676   :  { %v3264_v2 = vadd.f32 %v20715_v9, %v3263_v61  ;;  %v3265_v1 = vpop.f32.mrb[63].mxu0  ;;  %v10422_v61 = vld [vmem:[%s20229_s3 + $0x1e0] sm:$0xff]  ;;  %vm14062_vm7 = vmpackc.low %vm3860_vm6, %vm3859_vm4  ;;  %v10423_v9 = vld [vmem:[%s20229_s3 + $0x1e8] sm:$0xff] }
 0x677   :  { %vm14064_vm12 = vmpackc.low %vm3844_vm10, %vm3843_vm9  ;;  %v20719_v1 = vld [vmem:[#allocation18_spill] sm:$0xff] }
 0x678   :  { %v13983_v6 = vpack.c.bf16 %v3264_v2, %v3259_v31  ;;  %v10420_v31 = vld [vmem:[%s20229_s3 + $0x1d0] sm:$0xff]  ;;  %vm3845_vm15 = vcmp.eq.s32.totalorder %v20719_v1, %v20717_v43 }
 0x679   :  { %v10424_v2 = vld [vmem:[%s20229_s3 + $0x1f0] sm:$0xff] }
 0x67a   :  { %13984 = vmatprep.subr.bf16.mxu0 %v13983_v6 }
 0x67b   :  { %13986 = vmatpush3.bf16.msra.mxu0 %v13983_v6  ;;  %v20720_v6 = vld [vmem:[#allocation19_spill] sm:$0xff] }
 0x67c   :  { %14047 = vmatprep.subr.bf16.mxu0 %v20716_v32 }
 0x67e   :  { %12641 = vmatmul.mubr.msk.f32.vlgmr.msra.gmra.mrb[24].mxu0 %vm1049_vm5, %v10349_v51  ;;  %v20721_v51 = vld [vmem:[#allocation22_spill] sm:$0xff] }
 0x67f   :  { %14049 = vmatpush3.bf16.msra.mxu0 %v20716_v32  ;;  %12643 = vmatprep.mubr.msk.f32.mxu0 %vm1049_vm5, %v10350_v38  ;;  %v20722_v32 = vld [vmem:[#allocation23_spill] sm:$0xff]  ;;  %v10425_v38 = vld [vmem:[%s20229_s3 + $0x1f8] sm:$0xff] }
 0x680   :  { %14051 = vmatprep.subr.bf16.mxu0 %v20718_v10  ;;  %vm3864_vm2 = vcmp.eq.s32.totalorder %v20722_v32, %v20717_v43 }
 0x682   :  { %12644 = vmatmul.mubr.msk.f32.gmra.mrb[26].mxu0 %vm1049_vm5, %v10351_v16  ;;  %v20723_v16 = vld [vmem:[#allocation24_spill] sm:$0xff] }
 0x683   :  { %14053 = vmatpush3.bf16.msra.mxu0 %v20718_v10  ;;  %12646 = vmatprep.mubr.msk.f32.mxu0 %vm1049_vm5, %v10352_v35  ;;  %vm3847_vm6 = vcmp.eq.s32.totalorder %v20723_v16, %v20717_v43  ;;  %v20724_v10 = vld [vmem:[#allocation25_spill] sm:$0xff]  ;;  %v20725_v35 = vld [vmem:[#allocation28_spill] sm:$0xff] }
 0x684   :  { %14055 = vmatprep.subr.msk.bf16.mxu0 %vm14054_vm14, %v20511_v33  ;;  %vm3861_vm14 = vcmp.eq.s32.totalorder %v15776_v56, %v20717_v43 }
 0x685   :  { %vm14066_vm13 = vmpackc.low %vm3862_vm11, %vm3861_vm14 }
 0x686   :  { %12647 = vmatmul.mubr.msk.f32.gmra.mrb[28].mxu0 %vm1049_vm5, %v10353_v24  ;;  %v20726_v24 = vld [vmem:[#allocation29_spill] sm:$0xff] }
 0x687   :  { %12649 = vmatprep.mubr.msk.f32.mxu0 %vm1049_vm5, %v10354_v0  ;;  %vm3866_vm9 = vcmp.eq.s32.totalorder %v20726_v24, %v20717_v43  ;;  %v20727_v0 = vld [vmem:[#allocation47_spill] sm:$0xff] }
 0x68a   :  { %12650 = vmatmul.mubr.msk.f32.gmra.mrb[30].mxu0 %vm1049_vm5, %v10355_v42  ;;  %v20728_v42 = vld [vmem:[#allocation30_spill] sm:$0xff] }
 0x68b   :  { %12660 = vmatprep.mubr.msk.f32.mxu0 %vm1049_vm5, %v10418_v60  ;;  %vm3849_vm11 = vcmp.eq.s32.totalorder %v20728_v42, %v20717_v43  ;;  %v20729_v60 = vld [vmem:[#allocation31_spill] sm:$0xff] }
 0x68e   :  { %12661 = vmatmul.mubr.msk.f32.vlgmr.msra.gmra.mrb[24].mxu0 %vm1049_vm5, %v10419_v7  ;;  %v20730_v7 = vld [vmem:[#allocation34_spill] sm:$0xff] }
 0x68f   :  { %14057 = vmatpush3.bf16.msk.msra.mxu0 %vm14056_vm0, %v20511_v33  ;;  %12663 = vmatprep.mubr.msk.f32.mxu0 %vm1049_vm5, %v10420_v31  ;;  %vm3846_vm0 = vcmp.eq.s32.totalorder %v20720_v6, %v20717_v43  ;;  %v20731_v31 = vld [vmem:[#allocation35_spill] sm:$0xff] }
 0x690   :  { %14059 = vmatprep.subr.msk.bf16.mxu0 %vm14058_vm1, %v20511_v33  ;;  %vm3863_vm1 = vcmp.eq.s32.totalorder %v20721_v51, %v20717_v43  ;;  %vm14068_vm3 = vmpackc.low %vm3846_vm0, %vm3845_vm15  ;;  %vm3868_vm15 = vcmp.eq.s32.totalorder %v20731_v31, %v20717_v43  ;;  %v20748_v6 = vld [vmem:[#allocation15_spill] sm:$0xff] }
 0x691   :  { %vm14070_vm4 = vmpackc.low %vm3864_vm2, %vm3863_vm1 }
 0x692   :  { %12664 = vmatmul.mubr.msk.f32.gmra.mrb[26].mxu0 %vm1049_vm5, %v10421_v34  ;;  %v20732_v34 = vld [vmem:[#allocation36_spill] sm:$0xff] }
 0x693   :  { %14061 = vmatpush3.bf16.msk.msra.mxu0 %vm14060_vm8, %v20511_v33  ;;  %12666 = vmatprep.mubr.msk.f32.mxu0 %vm1049_vm5, %v10422_v61  ;;  %vm3848_vm8 = vcmp.eq.s32.totalorder %v20724_v10, %v20717_v43  ;;  %vm3851_vm2 = vcmp.eq.s32.totalorder %v20732_v34, %v20717_v43  ;;  %v20733_v61 = vld [vmem:[#allocation37_spill] sm:$0xff]  ;;  %v20742_v34 = vld [vmem:[#allocation54_spill] sm:$0xff]  ;;  %v20747_v10 = vld [vmem:[#allocation12_spill] sm:$0xff] }
 0x694   :  { %14063 = vmatprep.subr.msk.bf16.mxu0 %vm14062_vm7, %v20511_v33  ;;  %vm3865_vm7 = vcmp.eq.s32.totalorder %v20725_v35, %v20717_v43  ;;  %vm14072_vm10 = vmpackc.low %vm3848_vm8, %vm3847_vm6 }
 0x695   :  { %vm14074_vm14 = vmpackc.low %vm3866_vm9, %vm3865_vm7 }
 0x696   :  { %12667 = vmatmul.mubr.msk.f32.gmra.mrb[28].mxu0 %vm1049_vm5, %v10423_v9  ;;  %v20734_v9 = vld [vmem:[#allocation40_spill] sm:$0xff] }
 0x697   :  { %14065 = vmatpush3.bf16.msk.msra.mxu0 %vm14064_vm12, %v20511_v33  ;;  %12669 = vmatprep.mubr.msk.f32.mxu0 %vm1049_vm5, %v10424_v2  ;;  %vm3850_vm12 = vcmp.eq.s32.totalorder %v20729_v60, %v20717_v43  ;;  %v20735_v2 = vld [vmem:[#allocation41_spill] sm:$0xff] }
 0x698   :  { %14067 = vmatprep.subr.msk.bf16.mxu0 %vm14066_vm13, %v20511_v33  ;;  %vm3867_vm13 = vcmp.eq.s32.totalorder %v20730_v7, %v20717_v43  ;;  %vm14076_vm0 = vmpackc.low %vm3850_vm12, %vm3849_vm11  ;;  %vm3870_vm6 = vcmp.eq.s32.totalorder %v20735_v2, %v20717_v43  ;;  %v20739_v2 = vld [vmem:[#allocation50_spill] sm:$0xff] }
 0x699   :  { %vm14078_vm1 = vmpackc.low %vm3868_vm15, %vm3867_vm13 }
 0x69a   :  { %12670 = vmatmul.mubr.msk.f32.gmra.mrb[30].mxu0 %vm1049_vm5, %v10425_v38  ;;  %v20736_v38 = vld [vmem:[#allocation42_spill] sm:$0xff] }
 0x69b   :  { %14069 = vmatpush3.bf16.msk.msra.mxu0 %vm14068_vm3, %v20511_v33  ;;  %4003 = vmatprep.mubr.f32.mxu0 %v20727_v0  ;;  %vm3852_vm3 = vcmp.eq.s32.totalorder %v20733_v61, %v20717_v43  ;;  %vm3853_vm9 = vcmp.eq.s32.totalorder %v20736_v38, %v20717_v43  ;;  %v20741_v61 = vld [vmem:[#allocation56_spill] sm:$0xff]  ;;  %v20743_v38 = vld [vmem:[#allocation59_spill] sm:$0xff] }
 0x69c   :  { %14071 = vmatprep.subr.msk.bf16.mxu0 %vm14070_vm4, %v20511_v33  ;;  %vm3869_vm4 = vcmp.eq.s32.totalorder %v20734_v9, %v20717_v43  ;;  %vm14080_vm8 = vmpackc.low %vm3852_vm3, %vm3851_vm2  ;;  %v20740_v9 = vld [vmem:[#allocation51_spill] sm:$0xff] }
 0x69d   :  { %vm14082_vm7 = vmpackc.low %vm3870_vm6, %vm3869_vm4  ;;  %v20746_v0 = vld [vmem:[#allocation11_spill] sm:$0xff] }
 0x69f   :  { %14073 = vmatpush3.bf16.msk.msra.mxu0 %vm14072_vm10, %v20511_v33  ;;  %vm3854_vm10 = vcmp.eq.s32.totalorder %v20737_v40, %v20717_v43  ;;  %v20744_v43 = vld [vmem:[#allocation58_spill] sm:$0xff] }
 0x6a0   :  { %14075 = vmatprep.subr.msk.bf16.mxu0 %vm14074_vm14, %v20511_v33  ;;  %vm14084_vm14 = vmpackc.low %vm3854_vm10, %vm3853_vm9  ;;  %v10488_v40 = vld [vmem:[%s20229_s3 + $0x200] sm:$0xff] }
 0x6a3   :  { %14077 = vmatpush3.bf16.msk.msra.mxu0 %vm14076_vm0, %v20511_v33 }
 0x6a4   :  { %14079 = vmatprep.subr.msk.bf16.mxu0 %vm14078_vm1, %v20511_v33 }
 0x6a7   :  { %14081 = vmatpush3.bf16.msk.msra.mxu0 %vm14080_vm8, %v20511_v33 }
 0x6a8   :  { %14083 = vmatprep.subr.msk.bf16.mxu0 %vm14082_vm7, %v20511_v33 }
 0x6ab   :  { %14085 = vmatpush3.bf16.msk.msra.mxu0 %vm14084_vm14, %v20511_v33  ;;  %vm20750_vm14 = vcmask 130048  }
 0x6ae   :  { %4004 = vmatmul.mubr.f32.vlgmr.msra.gmra.mrb[64].mxu0 %v20738_v8 }
 0x6af   :  { %4008 = vmatprep.mubr.f32.mxu0 %v20739_v2  ;;  %v20745_v2 = vld [vmem:[#allocation8_spill] sm:$0xff] }
 0x6b2   :  { %4009 = vmatmul.mubr.f32.gmra.mrb[66].mxu0 %v20740_v9 }
 0x6b3   :  { %4013 = vmatprep.mubr.f32.mxu0 %v20741_v61 }
 0x6b6   :  { %4014 = vmatmul.mubr.f32.gmra.mrb[68].mxu0 %v20742_v34 }
 0x6b7   :  { %4018 = vmatprep.mubr.f32.mxu0 %v20743_v38 }
 0x6ba   :  { %4019 = vmatmul.mubr.f32.gmra.mrb[70].mxu0 %v20744_v43 }
 0x6bb   :  { %12680 = vmatprep.mubr.msk.f32.mxu0 %vm1049_vm5, %v10488_v40 }
 0x781   :  { %v11781_v31 = vpop.f32.mrb[64].mxu0 }
 0x782   :  { %v11782_v8 = vpop.f32.mrb[65].mxu0 }
 0x783   :  { %v11783_v7 = vadd.f32 %v11782_v8, %v11781_v31 }
 0x785   :  { %v4091_v60 = vadd.f32 %v11783_v7, %v20745_v2  ;;  %v11784_v9 = vpop.f32.mrb[66].mxu0  ;;  %v20749_v7 = vld [vmem:[#allocation7_spill] sm:$0xff]  ;;  %v20755_v2 = vld [vmem:[#allocation4_spill] sm:$0xff] }
 0x786   :  { %v11785_v42 = vpop.f32.mrb[67].mxu0  ;;  %vm4292_vm11 = vcmp.eq.s32.totalorder %v20548_v26, %v20749_v7  ;;  %vm4293_vm12 = vcmp.eq.s32.totalorder %v20549_v55, %v20749_v7  ;;  %vm4294_vm15 = vcmp.eq.s32.totalorder %v20550_v47, %v20749_v7  ;;  %vm4295_vm0 = vcmp.eq.s32.totalorder %v20609_v41, %v20749_v7 }
 0x787   :  { %v11786_v61 = vadd.f32 %v11785_v42, %v11784_v9  ;;  %vm14154_vm13 = vmpackc.low %vm4293_vm12, %vm4292_vm11  ;;  %vm4296_vm2 = vcmp.eq.s32.totalorder %v20610_v4, %v20749_v7  ;;  %vm4297_vm3 = vcmp.eq.s32.totalorder %v20659_v19, %v20749_v7  ;;  %vm4298_vm6 = vcmp.eq.s32.totalorder %v20660_v11, %v20749_v7 }
 0x788   :  { %vm14157_vm1 = vmpackc.low %vm4295_vm0, %vm4294_vm15  ;;  %vm4299_vm8 = vcmp.eq.s32.totalorder %v20661_v13, %v20749_v7  ;;  %vm4300_vm9 = vcmp.eq.s32.totalorder %v20614_v15, %v20749_v7  ;;  %vm4301_vm10 = vcmp.eq.s32.totalorder %v20662_v21, %v20749_v7  ;;  %vm4302_vm12 = vcmp.eq.s32.totalorder %v20666_v53, %v20749_v7 }
 0x789   :  { %v4096_v34 = vadd.f32 %v11786_v61, %v20746_v0  ;;  %v11787_v24 = vpop.f32.mrb[68].mxu0  ;;  %vm14160_vm4 = vmpackc.low %vm4297_vm3, %vm4296_vm2  ;;  %vm4304_vm0 = vcmp.eq.s32.totalorder %v20575_v27, %v20749_v7  ;;  %vm4306_vm3 = vcmp.eq.s32.totalorder %v20578_v45, %v20749_v7  ;;  %v10558_v0 = vld [vmem:[%s20229_s3 + $0x240] sm:$0xff] }
 0x78a   :  { %v11788_v38 = vpop.f32.mrb[69].mxu0  ;;  %vm14163_vm7 = vmpackc.low %vm4299_vm8, %vm4298_vm6  ;;  %vm4308_vm8 = vcmp.eq.s32.totalorder %v20581_v28, %v20749_v7 }
 0x78b   :  { %v11789_v35 = vadd.f32 %v11788_v38, %v11787_v24  ;;  %v14113_v43 = vpack.c.bf16 %v4096_v34, %v4091_v60  ;;  %v10495_v24 = vld [vmem:[%s20229_s3 + $0x238] sm:$0xff]  ;;  %vm14166_vm11 = vmpackc.low %vm4301_vm10, %vm4300_vm9 }
 0x78c   :  { %vm20751_vm10 = vmmov %vm20750_vm14  ;;  %v20754_v60 = vld [vmem:[#allocation9_spill] sm:$0xff] }
 0x78d   :  { %v4101_v16 = vadd.f32 %v11789_v35, %v20747_v10  ;;  %v11790_v32 = vpop.f32.mrb[70].mxu0  ;;  %14114 = vmatprep.subr.bf16.mxu0 %v14113_v43  ;;  %v10489_v10 = vld [vmem:[%s20229_s3 + $0x208] sm:$0xff]  ;;  %v10494_v35 = vld [vmem:[%s20229_s3 + $0x230] sm:$0xff] }
 0x78e   :  { %v11791_v51 = vpop.f32.mrb[71].mxu0  ;;  %14116 = vmatpush3.bf16.msra.mxu0 %v14113_v43 }
 0x78f   :  { %v11792_v40 = vadd.f32 %v11791_v51, %v11790_v32  ;;  %v10491_v51 = vld [vmem:[%s20229_s3 + $0x218] sm:$0xff]  ;;  %v10492_v32 = vld [vmem:[%s20229_s3 + $0x220] sm:$0xff] }
 0x791   :  { %v4106_v8 = vadd.f32 %v11792_v40, %v20748_v6  ;;  %v10490_v6 = vld [vmem:[%s20229_s3 + $0x210] sm:$0xff] }
 0x793   :  { %v14117_v31 = vpack.c.bf16 %v4106_v8, %v4101_v16  ;;  %v10493_v16 = vld [vmem:[%s20229_s3 + $0x228] sm:$0xff] }
 0x795   :  { %14118 = vmatprep.subr.bf16.mxu0 %v14117_v31 }
 0x796   :  { %14120 = vmatpush3.bf16.msra.mxu0 %v14117_v31  ;;  %v20756_v31 = vld [vmem:[#allocation32_spill] sm:$0xff] }
 0x797   :  { %14153 = vmatprep.subr.bf16.mxu0 %v20517_v18 }
 0x799   :  { %12681 = vmatmul.mubr.msk.f32.vlgmr.msra.gmra.mrb[24].mxu0 %vm1049_vm5, %v10489_v10 }
 0x79a   :  { %14155 = vmatpush1.bf16.msk.msra.mxu0 %vm14154_vm13, %v20511_v33  ;;  %12683 = vmatprep.mubr.msk.f32.mxu0 %vm1049_vm5, %v10490_v6  ;;  %vm4303_vm13 = vcmp.eq.s32.totalorder %v20617_v29, %v20749_v7 }
 0x79b   :  { %14156 = vmatprep.subr.bf16.mxu0 %v20517_v18  ;;  %vm14169_vm15 = vmpackc.low %vm4303_vm13, %vm4302_vm12 }
 0x79d   :  { %12684 = vmatmul.mubr.msk.f32.gmra.mrb[26].mxu0 %vm1049_vm5, %v10491_v51  ;;  %v20757_v51 = vld [vmem:[#allocation72_spill] sm:$0xff] }
 0x79e   :  { %14158 = vmatpush1.bf16.msk.msra.mxu0 %vm14157_vm1, %v20511_v33  ;;  %12686 = vmatprep.mubr.msk.f32.mxu0 %vm1049_vm5, %v10492_v32  ;;  %vm4305_vm1 = vcmp.eq.s32.totalorder %v20576_v14, %v20749_v7 }
 0x79f   :  { %14159 = vmatprep.subr.bf16.mxu0 %v20517_v18  ;;  %vm14172_vm2 = vmpackc.low %vm4305_vm1, %vm4304_vm0 }
 0x7a1   :  { %12687 = vmatmul.mubr.msk.f32.gmra.mrb[28].mxu0 %vm1049_vm5, %v10493_v16 }
 0x7a2   :  { %14161 = vmatpush1.bf16.msk.msra.mxu0 %vm14160_vm4, %v20511_v33  ;;  %12689 = vmatprep.mubr.msk.f32.mxu0 %vm1049_vm5, %v10494_v35  ;;  %vm4307_vm4 = vcmp.eq.s32.totalorder %v20579_v50, %v20749_v7 }
 0x7a3   :  { %14162 = vmatprep.subr.bf16.mxu0 %v20517_v18  ;;  %vm14175_vm6 = vmpackc.low %vm4307_vm4, %vm4306_vm3 }
 0x7a5   :  { %12690 = vmatmul.mubr.msk.f32.gmra.mrb[30].mxu0 %vm1049_vm5, %v10495_v24  ;;  %v20758_v24 = vld [vmem:[#allocation62_spill] sm:$0xff] }
 0x7a6   :  { %14164 = vmatpush1.bf16.msk.msra.mxu0 %vm14163_vm7, %v20511_v33  ;;  %10554 = vmatprep.mubr.msk.f32.mxu0 %vm20750_vm14, %v20664_v23  ;;  %vm4309_vm7 = vcmp.eq.s32.totalorder %v20670_v63, %v20749_v7  ;;  %vm20752_vm14 = vmmov %vm20751_vm10  ;;  %vm4713_vm12 = vcmp.eq.s32.totalorder %v20548_v26, %v20758_v24  ;;  %vm4714_vm13 = vcmp.eq.s32.totalorder %v20549_v55, %v20758_v24 }
 0x7a7   :  { %14165 = vmatprep.subr.bf16.mxu0 %v20517_v18  ;;  %vm14178_vm9 = vmpackc.low %vm4309_vm7, %vm4308_vm8  ;;  %vm4715_vm0 = vcmp.eq.s32.totalorder %v20550_v47, %v20758_v24  ;;  %vm4716_vm1 = vcmp.eq.s32.totalorder %v20609_v41, %v20758_v24  ;;  %vm4717_vm3 = vcmp.eq.s32.totalorder %v20610_v4, %v20758_v24  ;;  %vm4718_vm4 = vcmp.eq.s32.totalorder %v20659_v19, %v20758_v24 }
 0x7a8   :  { %vm4719_vm8 = vcmp.eq.s32.totalorder %v20660_v11, %v20758_v24  ;;  %vm4720_vm7 = vcmp.eq.s32.totalorder %v20661_v13, %v20758_v24 }
 0x7aa   :  { %14167 = vmatpush1.bf16.msk.msra.mxu0 %vm14166_vm11, %v20511_v33  ;;  %vm20753_vm11 = vmmov %vm20751_vm10 }
 0x7ab   :  { %14168 = vmatprep.subr.bf16.mxu0 %v20517_v18 }
 0x7ae   :  { %14170 = vmatpush1.bf16.msk.msra.mxu0 %vm14169_vm15, %v20511_v33  ;;  %vm14221_vm15 = vmpackc.low %vm4714_vm13, %vm4713_vm12  ;;  %vm4723_vm13 = vcmp.eq.s32.totalorder %v20666_v53, %v20758_v24 }
 0x7af   :  { %14171 = vmatprep.subr.bf16.mxu0 %v20517_v18 }
 0x7b2   :  { %14173 = vmatpush1.bf16.msk.msra.mxu0 %vm14172_vm2, %v20511_v33  ;;  %vm14224_vm2 = vmpackc.low %vm4716_vm1, %vm4715_vm0  ;;  %vm4725_vm1 = vcmp.eq.s32.totalorder %v20575_v27, %v20758_v24 }
 0x7b3   :  { %14174 = vmatprep.subr.bf16.mxu0 %v20517_v18 }
 0x7b6   :  { %14176 = vmatpush1.bf16.msk.msra.mxu0 %vm14175_vm6, %v20511_v33  ;;  %vm14227_vm6 = vmpackc.low %vm4718_vm4, %vm4717_vm3  ;;  %vm4727_vm4 = vcmp.eq.s32.totalorder %v20578_v45, %v20758_v24 }
 0x7b7   :  { %14177 = vmatprep.subr.bf16.mxu0 %v20517_v18 }
 0x7ba   :  { %14179 = vmatpush1.bf16.msk.msra.mxu0 %vm14178_vm9, %v20511_v33  ;;  %vm14230_vm9 = vmpackc.low %vm4720_vm7, %vm4719_vm8  ;;  %vm4729_vm7 = vcmp.eq.s32.totalorder %v20581_v28, %v20758_v24 }
 0x7bd   :  { %4510 = vmatmul.mubr.f32.vlgmr.msra.gmra.mrb[72].mxu0 %v20671_v54 }
 0x7be   :  { %10555 = vmatprep.mubr.msk.f32.mxu0 %vm20751_vm10, %v20672_v58  ;;  %vm4721_vm10 = vcmp.eq.s32.totalorder %v20614_v15, %v20758_v24 }
 0x7c1   :  { %4515 = vmatmul.mubr.f32.gmra.mrb[74].mxu0 %v20674_v52 }
 0x7c2   :  { %10556 = vmatprep.mubr.msk.f32.mxu0 %vm20752_vm14, %v20675_v30  ;;  %vm4722_vm14 = vcmp.eq.s32.totalorder %v20662_v21, %v20758_v24 }
 0x7c3   :  { %vm14233_vm12 = vmpackc.low %vm4722_vm14, %vm4721_vm10 }
 0x7c4   :  { %vm20759_vm14 = vmmov %vm20753_vm11 }
 0x7c5   :  { %4520 = vmatmul.mubr.f32.gmra.mrb[76].mxu0 %v20677_v3 }
 0x7c6   :  { %10557 = vmatprep.mubr.msk.f32.mxu0 %vm20753_vm11, %v20678_v22 }
 0x7c9   :  { %4525 = vmatmul.mubr.f32.gmra.mrb[78].mxu0 %v20680_v46 }
 0x7ca   :  { %12700 = vmatprep.mubr.msk.f32.mxu0 %vm1049_vm5, %v10558_v0  ;;  %v10559_v0 = vld [vmem:[%s20229_s3 + $0x248] sm:$0xff] }
 0x890   :  { %v4511_v42 = vpop.f32.mrb[72].mxu0 }
 0x891   :  { %v4512_v34 = vadd.f32 %v20754_v60, %v4511_v42  ;;  %v4513_v61 = vpop.f32.mrb[73].mxu0  ;;  %v10560_v42 = vld [vmem:[%s20229_s3 + $0x250] sm:$0xff]  ;;  %v10561_v60 = vld [vmem:[%s20229_s3 + $0x258] sm:$0xff] }
 0x892   :  { %v10563_v61 = vld [vmem:[%s20229_s3 + $0x268] sm:$0xff] }
 0x894   :  { %v4516_v9 = vpop.f32.mrb[74].mxu0 }
 0x895   :  { %v4517_v38 = vadd.f32 %v20755_v2, %v4516_v9  ;;  %v4518_v43 = vpop.f32.mrb[75].mxu0  ;;  %v10564_v9 = vld [vmem:[%s20229_s3 + $0x270] sm:$0xff]  ;;  %v10565_v2 = vld [vmem:[%s20229_s3 + $0x278] sm:$0xff] }
 0x897   :  { %v14180_v40 = vpack.c.bf16 %v4517_v38, %v4512_v34  ;;  %v10562_v34 = vld [vmem:[%s20229_s3 + $0x260] sm:$0xff] }
 0x898   :  { %v4521_v8 = vpop.f32.mrb[76].mxu0  ;;  %v10628_v38 = vld [vmem:[%s20229_s3 + $0x280] sm:$0xff] }
 0x899   :  { %v4522_v7 = vadd.f32 %v20756_v31, %v4521_v8  ;;  %v4523_v10 = vpop.f32.mrb[77].mxu0  ;;  %14181 = vmatprep.subr.bf16.mxu0 %v14180_v40 }
 0x89a   :  { %14183 = vmatpush3.bf16.msra.mxu0 %v14180_v40  ;;  %v20761_v40 = vld [vmem:[#allocation14_spill] sm:$0xff]  ;;  %v20762_v10 = vld [vmem:[#allocation16_spill] sm:$0xff] }
 0x89c   :  { %v4526_v6 = vpop.f32.mrb[78].mxu0 }
 0x89d   :  { %v4527_v32 = vadd.f32 %v20757_v51, %v4526_v6  ;;  %v4528_v16 = vpop.f32.mrb[79].mxu0 }
 0x89f   :  { %v14184_v35 = vpack.c.bf16 %v4527_v32, %v4522_v7 }
 0x8a1   :  { %14185 = vmatprep.subr.bf16.mxu0 %v14184_v35 }
 0x8a2   :  { %14187 = vmatpush3.bf16.msra.mxu0 %v14184_v35  ;;  %v20763_v35 = vld [vmem:[#allocation17_spill] sm:$0xff] }
 0x8a3   :  { %14220 = vmatprep.subr.bf16.mxu0 %v20517_v18 }
 0x8a5   :  { %12701 = vmatmul.mubr.msk.f32.vlgmr.msra.gmra.mrb[24].mxu0 %vm1049_vm5, %v10559_v0 }
 0x8a6   :  { %14222 = vmatpush1.bf16.msk.msra.mxu0 %vm14221_vm15, %v20511_v33  ;;  %12703 = vmatprep.mubr.msk.f32.mxu0 %vm1049_vm5, %v10560_v42  ;;  %vm4724_vm15 = vcmp.eq.s32.totalorder %v20617_v29, %v20758_v24 }
 0x8a7   :  { %14223 = vmatprep.subr.bf16.mxu0 %v20517_v18  ;;  %vm14236_vm0 = vmpackc.low %vm4724_vm15, %vm4723_vm13 }
 0x8a9   :  { %12704 = vmatmul.mubr.msk.f32.gmra.mrb[26].mxu0 %vm1049_vm5, %v10561_v60  ;;  %v20764_v60 = vld [vmem:[#allocation21_spill] sm:$0xff] }
 0x8aa   :  { %14225 = vmatpush1.bf16.msk.msra.mxu0 %vm14224_vm2, %v20511_v33  ;;  %12706 = vmatprep.mubr.msk.f32.mxu0 %vm1049_vm5, %v10562_v34  ;;  %vm4726_vm2 = vcmp.eq.s32.totalorder %v20576_v14, %v20758_v24 }
 0x8ab   :  { %14226 = vmatprep.subr.bf16.mxu0 %v20517_v18  ;;  %vm14239_vm3 = vmpackc.low %vm4726_vm2, %vm4725_vm1 }
 0x8ad   :  { %12707 = vmatmul.mubr.msk.f32.gmra.mrb[28].mxu0 %vm1049_vm5, %v10563_v61 }
 0x8ae   :  { %14228 = vmatpush1.bf16.msk.msra.mxu0 %vm14227_vm6, %v20511_v33  ;;  %12709 = vmatprep.mubr.msk.f32.mxu0 %vm1049_vm5, %v10564_v9  ;;  %vm4728_vm6 = vcmp.eq.s32.totalorder %v20579_v50, %v20758_v24 }
 0x8af   :  { %14229 = vmatprep.subr.bf16.mxu0 %v20517_v18  ;;  %vm14242_vm8 = vmpackc.low %vm4728_vm6, %vm4727_vm4 }
 0x8b1   :  { %12710 = vmatmul.mubr.msk.f32.gmra.mrb[30].mxu0 %vm1049_vm5, %v10565_v2  ;;  %v10629_v2 = vld [vmem:[%s20229_s3 + $0x288] sm:$0xff] }
 0x8b2   :  { %14231 = vmatpush1.bf16.msk.msra.mxu0 %vm14230_vm9, %v20511_v33  ;;  %10624 = vmatprep.mubr.msk.f32.mxu0 %vm20753_vm11, %v20664_v23  ;;  %vm4730_vm9 = vcmp.eq.s32.totalorder %v20670_v63, %v20758_v24 }
 0x8b3   :  { %14232 = vmatprep.subr.bf16.mxu0 %v20517_v18  ;;  %vm14245_vm10 = vmpackc.low %vm4730_vm9, %vm4729_vm7 }
 0x8b6   :  { %14234 = vmatpush1.bf16.msk.msra.mxu0 %vm14233_vm12, %v20511_v33  ;;  %vm20760_vm12 = vmmov %vm20753_vm11 }
 0x8b7   :  { %14235 = vmatprep.subr.bf16.mxu0 %v20517_v18 }
 0x8ba   :  { %14237 = vmatpush1.bf16.msk.msra.mxu0 %vm14236_vm0, %v20511_v33 }
 0x8bb   :  { %14238 = vmatprep.subr.bf16.mxu0 %v20517_v18 }
 0x8be   :  { %14240 = vmatpush1.bf16.msk.msra.mxu0 %vm14239_vm3, %v20511_v33 }
 0x8bf   :  { %14241 = vmatprep.subr.bf16.mxu0 %v20517_v18 }
 0x8c2   :  { %14243 = vmatpush1.bf16.msk.msra.mxu0 %vm14242_vm8, %v20511_v33 }
 0x8c3   :  { %14244 = vmatprep.subr.bf16.mxu0 %v20517_v18 }
 0x8c6   :  { %14246 = vmatpush1.bf16.msk.msra.mxu0 %vm14245_vm10, %v20511_v33 }
 0x8c9   :  { %4931 = vmatmul.mubr.f32.vlgmr.msra.gmra.mrb[80].mxu0 %v20671_v54 }
 0x8ca   :  { %10625 = vmatprep.mubr.msk.f32.mxu0 %vm20759_vm14, %v20672_v58 }
 0x8cd   :  { %4936 = vmatmul.mubr.f32.gmra.mrb[82].mxu0 %v20674_v52 }
 0x8ce   :  { %10626 = vmatprep.mubr.msk.f32.mxu0 %vm20753_vm11, %v20675_v30 }
 0x8d1   :  { %4941 = vmatmul.mubr.f32.gmra.mrb[84].mxu0 %v20677_v3 }
 0x8d2   :  { %10627 = vmatprep.mubr.msk.f32.mxu0 %vm20760_vm12, %v20678_v22 }
 0x8d5   :  { %4946 = vmatmul.mubr.f32.gmra.mrb[86].mxu0 %v20680_v46 }
 0x8d6   :  { %12720 = vmatprep.mubr.msk.f32.mxu0 %vm1049_vm5, %v10628_v38  ;;  %v10630_v38 = vld [vmem:[%s20229_s3 + $0x290] sm:$0xff] }
 0x99c   :  { %v4932_v43 = vpop.f32.mrb[80].mxu0 }
 0x99d   :  { %v4933_v8 = vadd.f32 %v20761_v40, %v4932_v43  ;;  %v4934_v31 = vpop.f32.mrb[81].mxu0  ;;  %v20765_v43 = vld [vmem:[#allocation67_spill] sm:$0xff]  ;;  %v10631_v40 = vld [vmem:[%s20229_s3 + $0x298] sm:$0xff] }
 0x99e   :  { %vm5539_vm13 = vcmp.eq.s32.totalorder %v20540_v59, %v20765_v43  ;;  %vm5540_vm15 = vcmp.eq.s32.totalorder %v20541_v5, %v20765_v43  ;;  %v10632_v31 = vld [vmem:[%s20229_s3 + $0x2a0] sm:$0xff]  ;;  %v10634_v59 = vld [vmem:[%s20229_s3 + $0x2b0] sm:$0xff]  ;;  %v10635_v5 = vld [vmem:[%s20229_s3 + $0x2b8] sm:$0xff]  ;;  %vm5523_vm1 = vcmp.eq.s32.totalorder %v20543_v25, %v20765_v43  ;;  %vm5524_vm2 = vcmp.eq.s32.totalorder %v20544_v62, %v20765_v43 }
 0x99f   :  { %vm14322_vm0 = vmpackc.low %vm5540_vm15, %vm5539_vm13  ;;  %vm5541_vm3 = vcmp.eq.s32.totalorder %v20545_v17, %v20765_v43  ;;  %vm5542_vm4 = vcmp.eq.s32.totalorder %v20546_v20, %v20765_v43  ;;  %vm5525_vm7 = vcmp.eq.s32.totalorder %v15675_v36, %v20765_v43  ;;  %vm5526_vm9 = vcmp.eq.s32.totalorder %v15678_v37, %v20765_v43  ;;  %v10701_v20 = vld [vmem:[%s20229_s3 + $0x2d8] sm:$0xff]  ;;  %v10702_v17 = vld [vmem:[%s20229_s3 + $0x2e0] sm:$0xff] }
 0x9a0   :  { %v4937_v7 = vpop.f32.mrb[82].mxu0  ;;  %vm14324_vm6 = vmpackc.low %vm5524_vm2, %vm5523_vm1  ;;  %vm5543_vm10 = vcmp.eq.s32.totalorder %v15718_v44, %v20765_v43  ;;  %vm5544_vm14 = vcmp.eq.s32.totalorder %v20547_v39, %v20765_v43  ;;  %vm5527_vm13 = vcmp.eq.s32.totalorder %v15737_v48, %v20765_v43  ;;  %vm5528_vm15 = vcmp.eq.s32.totalorder %v15740_v49, %v20765_v43  ;;  %v10703_v44 = vld [vmem:[%s20229_s3 + $0x2e8] sm:$0xff]  ;;  %v10704_v39 = vld [vmem:[%s20229_s3 + $0x2f0] sm:$0xff] }
 0x9a1   :  { %v4938_v6 = vadd.f32 %v20762_v10, %v4937_v7  ;;  %v4939_v51 = vpop.f32.mrb[83].mxu0  ;;  %v10698_v7 = vld [vmem:[%s20229_s3 + $0x2c0] sm:$0xff]  ;;  %v10699_v10 = vld [vmem:[%s20229_s3 + $0x2c8] sm:$0xff]  ;;  %vm14326_vm8 = vmpackc.low %vm5542_vm4, %vm5541_vm3  ;;  %vm5546_vm1 = vcmp.eq.s32.totalorder %v15779_v57, %v20765_v43  ;;  %vm5529_vm4 = vcmp.eq.s32.totalorder %v20719_v1, %v20765_v43 }
 0x9a2   :  { %vm14328_vm11 = vmpackc.low %vm5526_vm9, %vm5525_vm7  ;;  %v20768_v57 = vld [vmem:[#allocation22_spill] sm:$0xff]  ;;  %v20769_v51 = vld [vmem:[#allocation23_spill] sm:$0xff] }
 0x9a3   :  { %v14247_v32 = vpack.c.bf16 %v4938_v6, %v4933_v8  ;;  %v20766_v8 = vld [vmem:[#allocation48_spill] sm:$0xff]  ;;  %vm14330_vm12 = vmpackc.low %vm5544_vm14, %vm5543_vm10  ;;  %vm5548_vm7 = vcmp.eq.s32.totalorder %v20769_v51, %v20765_v43  ;;  %v20792_v51 = vld [vmem:[#allocation26_spill] sm:$0xff] }
 0x9a4   :  { %v4942_v16 = vpop.f32.mrb[84].mxu0  ;;  %v10700_v6 = vld [vmem:[%s20229_s3 + $0x2d0] sm:$0xff]  ;;  %vm14332_vm2 = vmpackc.low %vm5528_vm15, %vm5527_vm13 }
 0x9a5   :  { %v4943_v24 = vadd.f32 %v20763_v35, %v4942_v16  ;;  %v4944_v0 = vpop.f32.mrb[85].mxu0  ;;  %14248 = vmatprep.subr.bf16.mxu0 %v14247_v32  ;;  %v20770_v16 = vld [vmem:[#allocation24_spill] sm:$0xff]  ;;  %v20771_v35 = vld [vmem:[#allocation25_spill] sm:$0xff] }
 0x9a6   :  { %14250 = vmatpush3.bf16.msra.mxu0 %v14247_v32  ;;  %v10705_v32 = vld [vmem:[%s20229_s3 + $0x2f8] sm:$0xff]  ;;  %vm5531_vm14 = vcmp.eq.s32.totalorder %v20770_v16, %v20765_v43 }
 0x9a7   :  { %v20773_v0 = vld [vmem:[#allocation29_spill] sm:$0xff] }
 0x9a8   :  { %v4947_v42 = vpop.f32.mrb[86].mxu0  ;;  %vm5550_vm13 = vcmp.eq.s32.totalorder %v20773_v0, %v20765_v43 }
 0x9a9   :  { %v4948_v34 = vadd.f32 %v20764_v60, %v4947_v42  ;;  %v4949_v61 = vpop.f32.mrb[87].mxu0  ;;  %v20774_v42 = vld [vmem:[#allocation47_spill] sm:$0xff]  ;;  %v20775_v60 = vld [vmem:[#allocation30_spill] sm:$0xff] }
 0x9aa   :  { %v20777_v61 = vld [vmem:[#allocation34_spill] sm:$0xff] }
 0x9ab   :  { %v14251_v9 = vpack.c.bf16 %v4948_v34, %v4943_v24  ;;  %v20772_v24 = vld [vmem:[#allocation28_spill] sm:$0xff]  ;;  %v20776_v34 = vld [vmem:[#allocation31_spill] sm:$0xff] }
 0x9ad   :  { %14252 = vmatprep.subr.bf16.mxu0 %v14251_v9 }
 0x9ae   :  { %14254 = vmatpush3.bf16.msra.mxu0 %v14251_v9  ;;  %v20778_v9 = vld [vmem:[#allocation35_spill] sm:$0xff] }
 0x9af   :  { %14315 = vmatprep.subr.bf16.mxu0 %v18306_v12 }
 0x9b1   :  { %12721 = vmatmul.mubr.msk.f32.vlgmr.msra.gmra.mrb[24].mxu0 %vm1049_vm5, %v10629_v2  ;;  %v20779_v2 = vld [vmem:[#allocation36_spill] sm:$0xff] }
 0x9b2   :  { %14317 = vmatpush3.bf16.msra.mxu0 %v18306_v12  ;;  %12723 = vmatprep.mubr.msk.f32.mxu0 %vm1049_vm5, %v10630_v38  ;;  %v10633_v12 = vld [vmem:[%s20229_s3 + $0x2a8] sm:$0xff]  ;;  %v20780_v38 = vld [vmem:[#allocation37_spill] sm:$0xff] }
 0x9b3   :  { %14319 = vmatprep.subr.bf16.mxu0 %v20766_v8 }
 0x9b5   :  { %12724 = vmatmul.mubr.msk.f32.gmra.mrb[26].mxu0 %vm1049_vm5, %v10631_v40  ;;  %v20781_v40 = vld [vmem:[#allocation40_spill] sm:$0xff] }
 0x9b6   :  { %14321 = vmatpush3.bf16.msra.mxu0 %v20766_v8  ;;  %12726 = vmatprep.mubr.msk.f32.mxu0 %vm1049_vm5, %v10632_v31  ;;  %v20782_v8 = vld [vmem:[#allocation41_spill] sm:$0xff]  ;;  %v20783_v31 = vld [vmem:[#allocation42_spill] sm:$0xff] }
 0x9b7   :  { %14323 = vmatprep.subr.msk.bf16.mxu0 %vm14322_vm0, %v20511_v33  ;;  %vm5545_vm0 = vcmp.eq.s32.totalorder %v15776_v56, %v20765_v43  ;;  %v20767_v56 = vld [vmem:[#allocation19_spill] sm:$0xff] }
 0x9b8   :  { %vm14334_vm3 = vmpackc.low %vm5546_vm1, %vm5545_vm0  ;;  %vm5533_vm1 = vcmp.eq.s32.totalorder %v20775_v60, %v20765_v43 }
 0x9b9   :  { %12727 = vmatmul.mubr.msk.f32.gmra.mrb[28].mxu0 %vm1049_vm5, %v10633_v12  ;;  %v20784_v12 = vld [vmem:[#allocation43_spill] sm:$0xff] }
 0x9ba   :  { %12729 = vmatprep.mubr.msk.f32.mxu0 %vm1049_vm5, %v10634_v59  ;;  %v20785_v59 = vld [vmem:[#allocation46_spill] sm:$0xff] }
 0x9bd   :  { %12730 = vmatmul.mubr.msk.f32.gmra.mrb[30].mxu0 %vm1049_vm5, %v10635_v5  ;;  %v20786_v5 = vld [vmem:[#allocation50_spill] sm:$0xff] }
 0x9be   :  { %12740 = vmatprep.mubr.msk.f32.mxu0 %vm1049_vm5, %v10698_v7  ;;  %v20787_v7 = vld [vmem:[#allocation51_spill] sm:$0xff] }
 0x9c1   :  { %12741 = vmatmul.mubr.msk.f32.vlgmr.msra.gmra.mrb[24].mxu0 %vm1049_vm5, %v10699_v10  ;;  %v20788_v10 = vld [vmem:[#allocation56_spill] sm:$0xff] }
 0x9c2   :  { %14325 = vmatpush3.bf16.msk.msra.mxu0 %vm14324_vm6, %v20511_v33  ;;  %12743 = vmatprep.mubr.msk.f32.mxu0 %vm1049_vm5, %v10700_v6  ;;  %vm5530_vm6 = vcmp.eq.s32.totalorder %v20767_v56, %v20765_v43  ;;  %v20789_v6 = vld [vmem:[#allocation54_spill] sm:$0xff] }
 0x9c3   :  { %14327 = vmatprep.subr.msk.bf16.mxu0 %vm14326_vm8, %v20511_v33  ;;  %vm5547_vm8 = vcmp.eq.s32.totalorder %v20768_v57, %v20765_v43  ;;  %vm14336_vm9 = vmpackc.low %vm5530_vm6, %vm5529_vm4  ;;  %vm5552_vm4 = vcmp.eq.s32.totalorder %v20778_v9, %v20765_v43 }
 0x9c4   :  { %vm14338_vm10 = vmpackc.low %vm5548_vm7, %vm5547_vm8  ;;  %vm5535_vm7 = vcmp.eq.s32.totalorder %v20779_v2, %v20765_v43 }
 0x9c5   :  { %12744 = vmatmul.mubr.msk.f32.gmra.mrb[26].mxu0 %vm1049_vm5, %v10701_v20  ;;  %v20790_v20 = vld [vmem:[#allocation59_spill] sm:$0xff] }
 0x9c6   :  { %14329 = vmatpush3.bf16.msk.msra.mxu0 %vm14328_vm11, %v20511_v33  ;;  %12746 = vmatprep.mubr.msk.f32.mxu0 %vm1049_vm5, %v10702_v17  ;;  %vm5532_vm11 = vcmp.eq.s32.totalorder %v20771_v35, %v20765_v43  ;;  %v10768_v17 = vld [vmem:[%s20229_s3 + $0x300] sm:$0xff] }
 0x9c7   :  { %14331 = vmatprep.subr.msk.bf16.mxu0 %vm14330_vm12, %v20511_v33  ;;  %vm5549_vm12 = vcmp.eq.s32.totalorder %v20772_v24, %v20765_v43  ;;  %vm14340_vm15 = vmpackc.low %vm5532_vm11, %vm5531_vm14  ;;  %vm5554_vm14 = vcmp.eq.s32.totalorder %v20782_v8, %v20765_v43  ;;  %v20794_v8 = vld [vmem:[#allocation49_spill] sm:$0xff] }
 0x9c8   :  { %vm14342_vm0 = vmpackc.low %vm5550_vm13, %vm5549_vm12  ;;  %vm5537_vm13 = vcmp.eq.s32.totalorder %v20783_v31, %v20765_v43 }
 0x9c9   :  { %12747 = vmatmul.mubr.msk.f32.gmra.mrb[28].mxu0 %vm1049_vm5, %v10703_v44 }
 0x9ca   :  { %14333 = vmatpush3.bf16.msk.msra.mxu0 %vm14332_vm2, %v20511_v33  ;;  %12749 = vmatprep.mubr.msk.f32.mxu0 %vm1049_vm5, %v10704_v39  ;;  %vm5534_vm2 = vcmp.eq.s32.totalorder %v20776_v34, %v20765_v43  ;;  %v20793_v34 = vld [vmem:[#allocation45_spill] sm:$0xff] }
 0x9cb   :  { %14335 = vmatprep.subr.msk.bf16.mxu0 %vm14334_vm3, %v20511_v33  ;;  %vm5551_vm3 = vcmp.eq.s32.totalorder %v20777_v61, %v20765_v43  ;;  %vm14344_vm6 = vmpackc.low %vm5534_vm2, %vm5533_vm1 }
 0x9cc   :  { %vm14346_vm8 = vmpackc.low %vm5552_vm4, %vm5551_vm3 }
 0x9cd   :  { %12750 = vmatmul.mubr.msk.f32.gmra.mrb[30].mxu0 %vm1049_vm5, %v10705_v32 }
 0x9ce   :  { %14337 = vmatpush3.bf16.msk.msra.mxu0 %vm14336_vm9, %v20511_v33  ;;  %5687 = vmatprep.mubr.f32.mxu0 %v20774_v42  ;;  %vm5536_vm9 = vcmp.eq.s32.totalorder %v20780_v38, %v20765_v43 }
 0x9cf   :  { %14339 = vmatprep.subr.msk.bf16.mxu0 %vm14338_vm10, %v20511_v33  ;;  %vm5553_vm10 = vcmp.eq.s32.totalorder %v20781_v40, %v20765_v43  ;;  %vm14348_vm11 = vmpackc.low %vm5536_vm9, %vm5535_vm7 }
 0x9d0   :  { %vm14350_vm12 = vmpackc.low %vm5554_vm14, %vm5553_vm10 }
 0x9d2   :  { %14341 = vmatpush3.bf16.msk.msra.mxu0 %vm14340_vm15, %v20511_v33  ;;  %vm5538_vm15 = vcmp.eq.s32.totalorder %v20784_v12, %v20765_v43  ;;  %v20791_v43 = vld [vmem:[#allocation58_spill] sm:$0xff] }
 0x9d3   :  { %14343 = vmatprep.subr.msk.bf16.mxu0 %vm14342_vm0, %v20511_v33  ;;  %vm14352_vm0 = vmpackc.low %vm5538_vm15, %vm5537_vm13 }
 0x9d6   :  { %14345 = vmatpush3.bf16.msk.msra.mxu0 %vm14344_vm6, %v20511_v33 }
 0x9d7   :  { %14347 = vmatprep.subr.msk.bf16.mxu0 %vm14346_vm8, %v20511_v33 }
 0x9da   :  { %14349 = vmatpush3.bf16.msk.msra.mxu0 %vm14348_vm11, %v20511_v33 }
 0x9db   :  { %14351 = vmatprep.subr.msk.bf16.mxu0 %vm14350_vm12, %v20511_v33 }
 0x9de   :  { %14353 = vmatpush3.bf16.msk.msra.mxu0 %vm14352_vm0, %v20511_v33  ;;  %vm20797_vm0 = vcmask 130048  }
 0x9e1   :  { %5688 = vmatmul.mubr.f32.vlgmr.msra.gmra.mrb[88].mxu0 %v20785_v59 }
 0x9e2   :  { %5692 = vmatprep.mubr.f32.mxu0 %v20786_v5 }
 0x9e5   :  { %5693 = vmatmul.mubr.f32.gmra.mrb[90].mxu0 %v20787_v7  ;;  %v20795_v7 = vld [vmem:[#allocation53_spill] sm:$0xff] }
 0x9e6   :  { %5697 = vmatprep.mubr.f32.mxu0 %v20788_v10 }
 0x9e9   :  { %5698 = vmatmul.mubr.f32.gmra.mrb[92].mxu0 %v20789_v6 }
 0x9ea   :  { %5702 = vmatprep.mubr.f32.mxu0 %v20790_v20  ;;  %v20796_v20 = vld [vmem:[#allocation68_spill] sm:$0xff] }
 0x9eb   :  { %vm5976_vm1 = vcmp.eq.s32.totalorder %v20548_v26, %v20796_v20  ;;  %vm5977_vm2 = vcmp.eq.s32.totalorder %v20549_v55, %v20796_v20  ;;  %vm5978_vm4 = vcmp.eq.s32.totalorder %v20550_v47, %v20796_v20  ;;  %vm5979_vm6 = vcmp.eq.s32.totalorder %v20609_v41, %v20796_v20 }
 0x9ec   :  { %vm14422_vm3 = vmpackc.low %vm5977_vm2, %vm5976_vm1  ;;  %vm5980_vm7 = vcmp.eq.s32.totalorder %v20610_v4, %v20796_v20  ;;  %vm5981_vm9 = vcmp.eq.s32.totalorder %v20659_v19, %v20796_v20  ;;  %vm5982_vm14 = vcmp.eq.s32.totalorder %v20660_v11, %v20796_v20  ;;  %vm5983_vm11 = vcmp.eq.s32.totalorder %v20661_v13, %v20796_v20 }
 0x9ed   :  { %5703 = vmatmul.mubr.f32.gmra.mrb[94].mxu0 %v20791_v43  ;;  %v10769_v43 = vld [vmem:[%s20229_s3 + $0x308] sm:$0xff]  ;;  %vm14425_vm8 = vmpackc.low %vm5979_vm6, %vm5978_vm4  ;;  %vm5984_vm13 = vcmp.eq.s32.totalorder %v20614_v15, %v20796_v20  ;;  %vm5985_vm15 = vcmp.eq.s32.totalorder %v20662_v21, %v20796_v20  ;;  %vm5986_vm2 = vcmp.eq.s32.totalorder %v20666_v53, %v20796_v20  ;;  %vm5988_vm6 = vcmp.eq.s32.totalorder %v20575_v27, %v20796_v20 }
 0x9ee   :  { %12760 = vmatprep.mubr.msk.f32.mxu0 %vm1049_vm5, %v10768_v17  ;;  %v10770_v17 = vld [vmem:[%s20229_s3 + $0x310] sm:$0xff]  ;;  %vm14428_vm10 = vmpackc.low %vm5981_vm9, %vm5980_vm7  ;;  %vm5990_vm9 = vcmp.eq.s32.totalorder %v20578_v45, %v20796_v20 }
 0x9ef   :  { %vm14431_vm12 = vmpackc.low %vm5983_vm11, %vm5982_vm14  ;;  %vm5992_vm11 = vcmp.eq.s32.totalorder %v20581_v28, %v20796_v20 }
 0x9f0   :  { %vm14434_vm1 = vmpackc.low %vm5985_vm15, %vm5984_vm13 }
 0x9f1   :  { %vm20798_vm15 = vmmov %vm20797_vm0 }
 0xab4   :  { %v12005_v44 = vpop.f32.mrb[88].mxu0 }
 0xab5   :  { %v12006_v39 = vpop.f32.mrb[89].mxu0 }
 0xab6   :  { %v12007_v57 = vadd.f32 %v12006_v39, %v12005_v44  ;;  %v10771_v44 = vld [vmem:[%s20229_s3 + $0x318] sm:$0xff]  ;;  %v10772_v39 = vld [vmem:[%s20229_s3 + $0x320] sm:$0xff] }
 0xab8   :  { %v5775_v32 = vadd.f32 %v12007_v57, %v20792_v51  ;;  %v12008_v24 = vpop.f32.mrb[90].mxu0  ;;  %v10773_v57 = vld [vmem:[%s20229_s3 + $0x328] sm:$0xff]  ;;  %v10774_v51 = vld [vmem:[%s20229_s3 + $0x330] sm:$0xff] }
 0xab9   :  { %v12009_v0 = vpop.f32.mrb[91].mxu0 }
 0xaba   :  { %v12010_v42 = vadd.f32 %v12009_v0, %v12008_v24  ;;  %v10838_v24 = vld [vmem:[%s20229_s3 + $0x340] sm:$0xff] }
 0xabc   :  { %v5780_v61 = vadd.f32 %v12010_v42, %v20793_v34  ;;  %v12011_v9 = vpop.f32.mrb[92].mxu0  ;;  %v20800_v42 = vld [vmem:[#allocation52_spill] sm:$0xff] }
 0xabd   :  { %v12012_v2 = vpop.f32.mrb[93].mxu0 }
 0xabe   :  { %v12013_v38 = vadd.f32 %v12012_v2, %v12011_v9  ;;  %v14381_v40 = vpack.c.bf16 %v5780_v61, %v5775_v32  ;;  %v10775_v32 = vld [vmem:[%s20229_s3 + $0x338] sm:$0xff] }
 0xabf   :  { %v20801_v2 = vld [vmem:[#allocation57_spill] sm:$0xff] }
 0xac0   :  { %v5785_v31 = vadd.f32 %v12013_v38, %v20794_v8  ;;  %v12014_v12 = vpop.f32.mrb[94].mxu0  ;;  %14382 = vmatprep.subr.bf16.mxu0 %v14381_v40 }
 0xac1   :  { %v12015_v59 = vpop.f32.mrb[95].mxu0  ;;  %14384 = vmatpush3.bf16.msra.mxu0 %v14381_v40 }
 0xac2   :  { %v12016_v5 = vadd.f32 %v12015_v59, %v12014_v12  ;;  %v20802_v12 = vld [vmem:[#allocation55_spill] sm:$0xff] }
 0xac4   :  { %v5790_v10 = vadd.f32 %v12016_v5, %v20795_v7 }
 0xac6   :  { %v14385_v6 = vpack.c.bf16 %v5790_v10, %v5785_v31  ;;  %v20803_v10 = vld [vmem:[#allocation61_spill] sm:$0xff] }
 0xac8   :  { %14386 = vmatprep.subr.bf16.mxu0 %v14385_v6 }
 0xac9   :  { %14388 = vmatpush3.bf16.msra.mxu0 %v14385_v6 }
 0xaca   :  { %14421 = vmatprep.subr.bf16.mxu0 %v20517_v18 }
 0xacc   :  { %12761 = vmatmul.mubr.msk.f32.vlgmr.msra.gmra.mrb[24].mxu0 %vm1049_vm5, %v10769_v43 }
 0xacd   :  { %14423 = vmatpush1.bf16.msk.msra.mxu0 %vm14422_vm3, %v20511_v33  ;;  %12763 = vmatprep.mubr.msk.f32.mxu0 %vm1049_vm5, %v10770_v17  ;;  %vm5987_vm3 = vcmp.eq.s32.totalorder %v20617_v29, %v20796_v20  ;;  %v20804_v17 = vld [vmem:[#allocation70_spill] sm:$0xff] }
 0xace   :  { %14424 = vmatprep.subr.bf16.mxu0 %v20517_v18  ;;  %vm14437_vm4 = vmpackc.low %vm5987_vm3, %vm5986_vm2  ;;  %vm6397_vm2 = vcmp.eq.s32.totalorder %v20548_v26, %v20804_v17  ;;  %vm6398_vm3 = vcmp.eq.s32.totalorder %v20549_v55, %v20804_v17  ;;  %v10841_v55 = vld [vmem:[%s20229_s3 + $0x358] sm:$0xff]  ;;  %v10843_v26 = vld [vmem:[%s20229_s3 + $0x368] sm:$0xff] }
 0xad0   :  { %12764 = vmatmul.mubr.msk.f32.gmra.mrb[26].mxu0 %vm1049_vm5, %v10771_v44  ;;  %v10839_v44 = vld [vmem:[%s20229_s3 + $0x348] sm:$0xff] }
 0xad1   :  { %14426 = vmatpush1.bf16.msk.msra.mxu0 %vm14425_vm8, %v20511_v33  ;;  %12766 = vmatprep.mubr.msk.f32.mxu0 %vm1049_vm5, %v10772_v39  ;;  %vm5989_vm8 = vcmp.eq.s32.totalorder %v20576_v14, %v20796_v20  ;;  %v10840_v39 = vld [vmem:[%s20229_s3 + $0x350] sm:$0xff] }
 0xad2   :  { %14427 = vmatprep.subr.bf16.mxu0 %v20517_v18  ;;  %vm14440_vm7 = vmpackc.low %vm5989_vm8, %vm5988_vm6  ;;  %vm6399_vm6 = vcmp.eq.s32.totalorder %v20550_v47, %v20804_v17  ;;  %vm6400_vm8 = vcmp.eq.s32.totalorder %v20609_v41, %v20804_v17  ;;  %v10842_v47 = vld [vmem:[%s20229_s3 + $0x360] sm:$0xff]  ;;  %v10844_v41 = vld [vmem:[%s20229_s3 + $0x370] sm:$0xff] }
 0xad4   :  { %12767 = vmatmul.mubr.msk.f32.gmra.mrb[28].mxu0 %vm1049_vm5, %v10773_v57 }
 0xad5   :  { %14429 = vmatpush1.bf16.msk.msra.mxu0 %vm14428_vm10, %v20511_v33  ;;  %12769 = vmatprep.mubr.msk.f32.mxu0 %vm1049_vm5, %v10774_v51  ;;  %vm5991_vm10 = vcmp.eq.s32.totalorder %v20579_v50, %v20796_v20 }
 0xad6   :  { %14430 = vmatprep.subr.bf16.mxu0 %v20517_v18  ;;  %vm14443_vm14 = vmpackc.low %vm5991_vm10, %vm5990_vm9  ;;  %vm6401_vm9 = vcmp.eq.s32.totalorder %v20610_v4, %v20804_v17  ;;  %vm6402_vm10 = vcmp.eq.s32.totalorder %v20659_v19, %v20804_v17  ;;  %v10845_v4 = vld [vmem:[%s20229_s3 + $0x378] sm:$0xff] }
 0xad8   :  { %12770 = vmatmul.mubr.msk.f32.gmra.mrb[30].mxu0 %vm1049_vm5, %v10775_v32  ;;  %v10909_v32 = vld [vmem:[%s20229_s3 + $0x388] sm:$0xff] }
 0xad9   :  { %14432 = vmatpush1.bf16.msk.msra.mxu0 %vm14431_vm12, %v20511_v33  ;;  %10834 = vmatprep.mubr.msk.f32.mxu0 %vm20797_vm0, %v20664_v23  ;;  %vm5993_vm12 = vcmp.eq.s32.totalorder %v20670_v63, %v20796_v20 }
 0xada   :  { %14433 = vmatprep.subr.bf16.mxu0 %v20517_v18  ;;  %vm14446_vm13 = vmpackc.low %vm5993_vm12, %vm5992_vm11  ;;  %vm6403_vm11 = vcmp.eq.s32.totalorder %v20660_v11, %v20804_v17  ;;  %vm6404_vm12 = vcmp.eq.s32.totalorder %v20661_v13, %v20804_v17  ;;  %v20811_v11 = vld [vmem:[#allocation74_spill] sm:$0xff] }
 0xadd   :  { %14435 = vmatpush1.bf16.msk.msra.mxu0 %vm14434_vm1, %v20511_v33  ;;  %vm20799_vm1 = vmmov %vm20797_vm0 }
 0xade   :  { %14436 = vmatprep.subr.bf16.mxu0 %v20517_v18 }
 0xae1   :  { %14438 = vmatpush1.bf16.msk.msra.mxu0 %vm14437_vm4, %v20511_v33  ;;  %vm14489_vm4 = vmpackc.low %vm6398_vm3, %vm6397_vm2  ;;  %vm6407_vm3 = vcmp.eq.s32.totalorder %v20666_v53, %v20804_v17 }
 0xae2   :  { %14439 = vmatprep.subr.bf16.mxu0 %v20517_v18 }
 0xae5   :  { %14441 = vmatpush1.bf16.msk.msra.mxu0 %vm14440_vm7, %v20511_v33  ;;  %vm14492_vm7 = vmpackc.low %vm6400_vm8, %vm6399_vm6  ;;  %vm6409_vm8 = vcmp.eq.s32.totalorder %v20575_v27, %v20804_v17  ;;  %v20808_v27 = vld [vmem:[#allocation3_spill] sm:$0xff] }
 0xae6   :  { %14442 = vmatprep.subr.bf16.mxu0 %v20517_v18 }
 0xae9   :  { %14444 = vmatpush1.bf16.msk.msra.mxu0 %vm14443_vm14, %v20511_v33  ;;  %vm14495_vm14 = vmpackc.low %vm6402_vm10, %vm6401_vm9  ;;  %vm6411_vm10 = vcmp.eq.s32.totalorder %v20578_v45, %v20804_v17  ;;  %v20809_v45 = vld [vmem:[#allocation60_spill] sm:$0xff] }
 0xaea   :  { %14445 = vmatprep.subr.bf16.mxu0 %v20517_v18 }
 0xaed   :  { %14447 = vmatpush1.bf16.msk.msra.mxu0 %vm14446_vm13, %v20511_v33  ;;  %vm14498_vm13 = vmpackc.low %vm6404_vm12, %vm6403_vm11  ;;  %vm6413_vm12 = vcmp.eq.s32.totalorder %v20581_v28, %v20804_v17 }
 0xaf0   :  { %6194 = vmatmul.mubr.f32.vlgmr.msra.gmra.mrb[96].mxu0 %v20671_v54 }
 0xaf1   :  { %10835 = vmatprep.mubr.msk.f32.mxu0 %vm20798_vm15, %v20672_v58  ;;  %vm6405_vm15 = vcmp.eq.s32.totalorder %v20614_v15, %v20804_v17  ;;  %v10908_v15 = vld [vmem:[%s20229_s3 + $0x380] sm:$0xff] }
 0xaf4   :  { %6199 = vmatmul.mubr.f32.gmra.mrb[98].mxu0 %v20674_v52 }
 0xaf5   :  { %10836 = vmatprep.mubr.msk.f32.mxu0 %vm20797_vm0, %v20675_v30  ;;  %vm6406_vm0 = vcmp.eq.s32.totalorder %v20662_v21, %v20804_v17 }
 0xaf6   :  { %vm14501_vm2 = vmpackc.low %vm6406_vm0, %vm6405_vm15 }
 0xaf7   :  { %vm20805_vm0 = vmmov %vm20799_vm1 }
 0xaf8   :  { %6204 = vmatmul.mubr.f32.gmra.mrb[100].mxu0 %v20677_v3 }
 0xaf9   :  { %10837 = vmatprep.mubr.msk.f32.mxu0 %vm20799_vm1, %v20678_v22 }
 0xafc   :  { %6209 = vmatmul.mubr.f32.gmra.mrb[102].mxu0 %v20680_v46 }
 0xafd   :  { %12780 = vmatprep.mubr.msk.f32.mxu0 %vm1049_vm5, %v10838_v24  ;;  %v20813_v24 = vld [vmem:[#allocation33_spill] sm:$0xff] }
 0xbc3   :  { %v6195_v0 = vpop.f32.mrb[96].mxu0 }
 0xbc4   :  { %v6196_v34 = vadd.f32 %v20800_v42, %v6195_v0  ;;  %v6197_v61 = vpop.f32.mrb[97].mxu0  ;;  %v10910_v0 = vld [vmem:[%s20229_s3 + $0x390] sm:$0xff]  ;;  %v10911_v42 = vld [vmem:[%s20229_s3 + $0x398] sm:$0xff] }
 0xbc5   :  { %v10912_v61 = vld [vmem:[%s20229_s3 + $0x3a0] sm:$0xff] }
 0xbc7   :  { %v6200_v9 = vpop.f32.mrb[98].mxu0 }
 0xbc8   :  { %v6201_v38 = vadd.f32 %v20801_v2, %v6200_v9  ;;  %v6202_v40 = vpop.f32.mrb[99].mxu0  ;;  %v10913_v2 = vld [vmem:[%s20229_s3 + $0x3a8] sm:$0xff] }
 0xbc9   :  { %v10915_v40 = vld [vmem:[%s20229_s3 + $0x3b8] sm:$0xff]  ;;  %v11033_v9 = vld [vmem:[%s20231_s5 + $0x48] sm:$0xff] }
 0xbca   :  { %v14448_v8 = vpack.c.bf16 %v6201_v38, %v6196_v34  ;;  %v20814_v34 = vld [vmem:[#allocation38_spill] sm:$0xff]  ;;  %v10914_v38 = vld [vmem:[%s20229_s3 + $0x3b0] sm:$0xff] }
 0xbcb   :  { %v6205_v31 = vpop.f32.mrb[100].mxu0 }
 0xbcc   :  { %v6206_v59 = vadd.f32 %v20802_v12, %v6205_v31  ;;  %v6207_v5 = vpop.f32.mrb[101].mxu0  ;;  %14449 = vmatprep.subr.bf16.mxu0 %v14448_v8  ;;  %v10979_v31 = vld [vmem:[%s20229_s3 + $0x3c8] sm:$0xff]  ;;  %v10980_v12 = vld [vmem:[%s20229_s3 + $0x3d0] sm:$0xff] }
 0xbcd   :  { %14451 = vmatpush3.bf16.msra.mxu0 %v14448_v8  ;;  %v10978_v8 = vld [vmem:[%s20229_s3 + $0x3c0] sm:$0xff] }
 0xbce   :  { %v10982_v5 = vld [vmem:[%s20229_s3 + $0x3e0] sm:$0xff] }
 0xbcf   :  { %v6210_v7 = vpop.f32.mrb[102].mxu0 }
 0xbd0   :  { %v6211_v6 = vadd.f32 %v20803_v10, %v6210_v7  ;;  %v6212_v20 = vpop.f32.mrb[103].mxu0  ;;  %v10983_v7 = vld [vmem:[%s20229_s3 + $0x3e8] sm:$0xff]  ;;  %v10984_v10 = vld [vmem:[%s20229_s3 + $0x3f0] sm:$0xff] }
 0xbd2   :  { %v14452_v43 = vpack.c.bf16 %v6211_v6, %v6206_v59  ;;  %v10981_v59 = vld [vmem:[%s20229_s3 + $0x3d8] sm:$0xff] }
 0xbd3   :  { %v10985_v6 = vld [vmem:[%s20229_s3 + $0x3f8] sm:$0xff] }
 0xbd4   :  { %14453 = vmatprep.subr.bf16.mxu0 %v14452_v43 }
 0xbd5   :  { %14455 = vmatpush3.bf16.msra.mxu0 %v14452_v43 }
 0xbd6   :  { %14488 = vmatprep.subr.bf16.mxu0 %v20517_v18 }
 0xbd8   :  { %12781 = vmatmul.mubr.msk.f32.vlgmr.msra.gmra.mrb[24].mxu0 %vm1049_vm5, %v10839_v44 }
 0xbd9   :  { %14490 = vmatpush1.bf16.msk.msra.mxu0 %vm14489_vm4, %v20511_v33  ;;  %12783 = vmatprep.mubr.msk.f32.mxu0 %vm1049_vm5, %v10840_v39  ;;  %vm6408_vm4 = vcmp.eq.s32.totalorder %v20617_v29, %v20804_v17 }
 0xbda   :  { %14491 = vmatprep.subr.bf16.mxu0 %v20517_v18  ;;  %vm14504_vm6 = vmpackc.low %vm6408_vm4, %vm6407_vm3 }
 0xbdc   :  { %12784 = vmatmul.mubr.msk.f32.gmra.mrb[26].mxu0 %vm1049_vm5, %v10841_v55 }
 0xbdd   :  { %14493 = vmatpush1.bf16.msk.msra.mxu0 %vm14492_vm7, %v20511_v33  ;;  %12786 = vmatprep.mubr.msk.f32.mxu0 %vm1049_vm5, %v10842_v47  ;;  %vm6410_vm7 = vcmp.eq.s32.totalorder %v20576_v14, %v20804_v17  ;;  %v7218_v47 = vpop.permute.xlu1 %7217 }
 0xbde   :  { %14494 = vmatprep.subr.bf16.mxu0 %v20517_v18  ;;  %vm14507_vm9 = vmpackc.low %vm6410_vm7, %vm6409_vm8 }
 0xbe0   :  { %12787 = vmatmul.mubr.msk.f32.gmra.mrb[28].mxu0 %vm1049_vm5, %v10843_v26  ;;  %v7213_v26 = vpop.permute.xlu0 %7212 }
 0xbe1   :  { %14496 = vmatpush1.bf16.msk.msra.mxu0 %vm14495_vm14, %v20511_v33  ;;  %12789 = vmatprep.mubr.msk.f32.mxu0 %vm1049_vm5, %v10844_v41  ;;  %vm6412_vm14 = vcmp.eq.s32.totalorder %v20579_v50, %v20804_v17  ;;  %v7228_v41 = vpop.permute.xlu1 %7227 }
 0xbe2   :  { %14497 = vmatprep.subr.bf16.mxu0 %v20517_v18  ;;  %vm14510_vm11 = vmpackc.low %vm6412_vm14, %vm6411_vm10 }
 0xbe4   :  { %12790 = vmatmul.mubr.msk.f32.gmra.mrb[30].mxu0 %vm1049_vm5, %v10845_v4 }
 0xbe5   :  { %14499 = vmatpush1.bf16.msk.msra.mxu0 %vm14498_vm13, %v20511_v33  ;;  %10904 = vmatprep.mubr.msk.f32.mxu0 %vm20799_vm1, %v20664_v23  ;;  %vm6414_vm13 = vcmp.eq.s32.totalorder %v20670_v63, %v20804_v17  ;;  %vm20806_vm1 = vmmov %vm20805_vm0  ;;  %v15119_v17 = vmov 0.0  }
 0xbe6   :  { %14500 = vmatprep.subr.bf16.mxu0 %v20517_v18  ;;  %vm14513_vm15 = vmpackc.low %vm6414_vm13, %vm6413_vm12 }
 0xbe9   :  { %14502 = vmatpush1.bf16.msk.msra.mxu0 %vm14501_vm2, %v20511_v33  ;;  %vm20807_vm2 = vmmov %vm20805_vm0 }
 0xbea   :  { %14503 = vmatprep.subr.bf16.mxu0 %v20517_v18 }
 0xbed   :  { %14505 = vmatpush1.bf16.msk.msra.mxu0 %vm14504_vm6, %v20511_v33 }
 0xbee   :  { %14506 = vmatprep.subr.bf16.mxu0 %v20517_v18 }
 0xbf1   :  { %14508 = vmatpush1.bf16.msk.msra.mxu0 %vm14507_vm9, %v20511_v33 }
 0xbf2   :  { %14509 = vmatprep.subr.bf16.mxu0 %v20517_v18 }
 0xbf5   :  { %14511 = vmatpush1.bf16.msk.msra.mxu0 %vm14510_vm11, %v20511_v33 }
 0xbf6   :  { %14512 = vmatprep.subr.bf16.mxu0 %v20517_v18  ;;  %v19289_v18 = vld [vmem:[%s20230_s8] sm:$0x1] }
 0xbf7   :  { %v7435_v29 = vadd.s32 1, %v19289_v18  ;;  %v19325_v51 = vrot.slane %v19289_v18, %v20808_v27  ;;  %v7838_v20 = vadd.s32 2, %v19289_v18 }
 0xbf9   :  { %14514 = vmatpush1.bf16.msk.msra.mxu0 %vm14513_vm15, %v20511_v33  ;;  %v19293_v14 = vrot.slane %v7435_v29, %v20808_v27  ;;  %v19439_v43 = vrot.slane %v7838_v20, %v20808_v27  ;;  %v9243_v20 = vadd.s32 19, %v19289_v18 }
 0xbfb   :  { %vm7440_vm3 = vcmp.eq.s32.totalorder %v20543_v25, %v19293_v14  ;;  %vm7441_vm4 = vcmp.eq.s32.totalorder %v20544_v62, %v19293_v14  ;;  %vm7442_vm6 = vcmp.eq.s32.totalorder %v15675_v36, %v19293_v14  ;;  %vm7443_vm8 = vcmp.eq.s32.totalorder %v15678_v37, %v19293_v14 }
 0xbfc   :  { %6615 = vmatmul.mubr.f32.vlgmr.msra.gmra.mrb[104].mxu0 %v20671_v54  ;;  %vm14610_vm7 = vmpackc.low %vm7441_vm4, %vm7440_vm3  ;;  %vm7444_vm10 = vcmp.eq.s32.totalorder %v15737_v48, %v19293_v14  ;;  %vm7445_vm14 = vcmp.eq.s32.totalorder %v15740_v49, %v19293_v14  ;;  %vm7446_vm12 = vcmp.eq.s32.totalorder %v20719_v1, %v19293_v14  ;;  %vm7447_vm13 = vcmp.eq.s32.totalorder %v20767_v56, %v19293_v14  ;;  %v20812_v54 = vld [vmem:[#allocation75_spill] sm:$0xff] }
 0xbfd   :  { %10905 = vmatprep.mubr.msk.f32.mxu0 %vm20805_vm0, %v20672_v58  ;;  %14611 = vmatprep.subr.msk.bf16.mxu1 %vm14610_vm7, %v20511_v33  ;;  %vm14614_vm9 = vmpackc.low %vm7443_vm8, %vm7442_vm6  ;;  %vm7271_vm0 = vcmp.eq.s32.totalorder %v20543_v25, %v19325_v51  ;;  %vm7273_vm3 = vcmp.eq.s32.totalorder %v15675_v36, %v19325_v51  ;;  %vm7274_vm4 = vcmp.eq.s32.totalorder %v15678_v37, %v19325_v51 }
 0xbfe   :  { %14613 = vmatpush3.bf16.msk.msra.mxu1 %vm14610_vm7, %v20511_v33  ;;  %vm14618_vm11 = vmpackc.low %vm7445_vm14, %vm7444_vm10  ;;  %vm7275_vm8 = vcmp.eq.s32.totalorder %v15737_v48, %v19325_v51  ;;  %vm7276_vm7 = vcmp.eq.s32.totalorder %v15740_v49, %v19325_v51  ;;  %vm7277_vm10 = vcmp.eq.s32.totalorder %v20719_v1, %v19325_v51  ;;  %vm7278_vm14 = vcmp.eq.s32.totalorder %v20767_v56, %v19325_v51 }
 0xbff   :  { %14615 = vmatprep.subr.msk.bf16.mxu1 %vm14614_vm9, %v20511_v33  ;;  %vm14622_vm15 = vmpackc.low %vm7447_vm13, %vm7446_vm12  ;;  %vm7448_vm12 = vcmp.eq.s32.totalorder %v20770_v16, %v19293_v14  ;;  %vm7449_vm13 = vcmp.eq.s32.totalorder %v20771_v35, %v19293_v14 }
 0xc00   :  { %6620 = vmatmul.mubr.f32.gmra.mrb[106].mxu0 %v20674_v52  ;;  %vm14594_vm6 = vmpackc.low %vm7274_vm4, %vm7273_vm3  ;;  %vm7318_vm3 = vcmask 1040384   ;;  %vm7281_vm4 = vcmp.eq.s32.totalorder %v20775_v60, %v19325_v51 }
 0xc01   :  { %10906 = vmatprep.mubr.msk.f32.mxu0 %vm20806_vm1, %v20675_v30  ;;  %vm7272_vm1 = vcmp.eq.s32.totalorder %v20544_v62, %v19325_v51  ;;  %v7292_v39 = vsel %vm7281_vm4, 1.0, %v15119_v17  ;;  %vm7852_vm4 = vcmp.eq.s32.totalorder %v20771_v35, %v19439_v43 }
 0xc02   :  { %14617 = vmatpush3.bf16.msk.msra.mxu1 %vm14614_vm9, %v20511_v33  ;;  %vm14598_vm9 = vmpackc.low %vm7276_vm7, %vm7275_vm8  ;;  %vm7844_vm8 = vcmp.eq.s32.totalorder %v20544_v62, %v19439_v43 }
 0xc03   :  { %14619 = vmatprep.subr.msk.bf16.mxu1 %vm14618_vm11, %v20511_v33 }
 0xc04   :  { %6625 = vmatmul.mubr.f32.gmra.mrb[108].mxu0 %v20677_v3  ;;  %v20810_v3 = vld [vmem:[#allocation73_spill] sm:$0xff] }
 0xc05   :  { %10907 = vmatprep.mubr.msk.f32.mxu0 %vm20807_vm2, %v20678_v22  ;;  %vm19348_vm2 = vmpackc.low %vm7272_vm1, %vm7271_vm0  ;;  %vm7279_vm0 = vcmp.eq.s32.totalorder %v20770_v16, %v19325_v51  ;;  %vm7280_vm1 = vcmp.eq.s32.totalorder %v20771_v35, %v19325_v51 }
 0xc06   :  { %14621 = vmatpush3.bf16.msk.msra.mxu1 %vm14618_vm11, %v20511_v33  ;;  %vm14602_vm11 = vmpackc.low %vm7278_vm14, %vm7277_vm10  ;;  %vm7845_vm10 = vcmp.eq.s32.totalorder %v15675_v36, %v19439_v43  ;;  %vm7846_vm14 = vcmp.eq.s32.totalorder %v15678_v37, %v19439_v43 }
 0xc07   :  { %14623 = vmatprep.subr.msk.bf16.mxu1 %vm14622_vm15, %v20511_v33 }
 0xc08   :  { %6630 = vmatmul.mubr.f32.gmra.mrb[110].mxu0 %v20680_v46 }
 0xc09   :  { %12800 = vmatprep.mubr.msk.f32.mxu0 %vm1049_vm5, %v10908_v15  ;;  %v7223_v15 = vpop.permute.xlu0 %7222 }
 0xc0a   :  { %14625 = vmatpush3.bf16.msk.msra.mxu1 %vm14622_vm15, %v20511_v33  ;;  %vm14626_vm15 = vmpackc.low %vm7449_vm13, %vm7448_vm12  ;;  %vm7847_vm12 = vcmp.eq.s32.totalorder %v15737_v48, %v19439_v43  ;;  %vm7848_vm13 = vcmp.eq.s32.totalorder %v15740_v49, %v19439_v43 }
 0xc0b   :  { %14627 = vmatprep.subr.msk.bf16.mxu1 %vm14626_vm15, %v20511_v33 }
 0xc0e   :  { %14629 = vmatpush3.bf16.msk.msra.mxu1 %vm14626_vm15, %v20511_v33  ;;  %vm19498_vm15 = vmpackc.low %vm7848_vm13, %vm7847_vm12 }
 0xccf   :  { %v6616_v46 = vpop.f32.mrb[104].mxu0 }
 0xcd0   :  { %v6617_v50 = vadd.f32 %v20809_v45, %v6616_v46  ;;  %v6618_v28 = vpop.f32.mrb[105].mxu0 }
 0xcd3   :  { %v6621_v22 = vpop.f32.mrb[106].mxu0 }
 0xcd4   :  { %v6622_v53 = vadd.f32 %v20810_v3, %v6621_v22  ;;  %v6623_v23 = vpop.f32.mrb[107].mxu0 }
 0xcd6   :  { %v14515_v21 = vpack.c.bf16 %v6622_v53, %v6617_v50  ;;  %v7238_v53 = vpop.permute.xlu1 %7237 }
 0xcd7   :  { %v6626_v19 = vpop.f32.mrb[108].mxu0 }
 0xcd8   :  { %v6627_v13 = vadd.f32 %v20811_v11, %v6626_v19  ;;  %v6628_v30 = vpop.f32.mrb[109].mxu0  ;;  %14516 = vmatprep.subr.bf16.mxu0 %v14515_v21  ;;  %v7233_v19 = vpop.permute.xlu0 %7232 }
 0xcd9   :  { %14518 = vmatpush3.bf16.msra.mxu0 %v14515_v21 }
 0xcdb   :  { %v6631_v63 = vpop.f32.mrb[110].mxu0 }
 0xcdc   :  { %v6632_v58 = vadd.f32 %v20812_v54, %v6631_v63  ;;  %v6633_v52 = vpop.f32.mrb[111].mxu0 }
 0xcde   :  { %v14519_v57 = vpack.c.bf16 %v6632_v58, %v6627_v13 }
 0xce0   :  { %14520 = vmatprep.subr.bf16.mxu0 %v14519_v57 }
 0xce1   :  { %14522 = vmatpush3.bf16.msra.mxu0 %v14519_v57  ;;  %v7248_v57 = vpop.permute.xlu1 %7247 }
 0xce2   :  { %14583 = vmatprep.subr.bf16.mxu0 %v20813_v24 }
 0xce4   :  { %12801 = vmatmul.mubr.msk.f32.vlgmr.msra.gmra.mrb[24].mxu0 %vm1049_vm5, %v10909_v32 }
 0xce5   :  { %14585 = vmatpush3.bf16.msra.mxu0 %v20813_v24  ;;  %12803 = vmatprep.mubr.msk.f32.mxu0 %vm1049_vm5, %v10910_v0  ;;  %v7243_v24 = vpop.permute.xlu0 %7242 }
 0xce6   :  { %14587 = vmatprep.subr.bf16.mxu0 %v20814_v34 }
 0xce8   :  { %12804 = vmatmul.mubr.msk.f32.gmra.mrb[26].mxu0 %vm1049_vm5, %v10911_v42 }
 0xce9   :  { %14589 = vmatpush3.bf16.msra.mxu0 %v20814_v34  ;;  %12806 = vmatprep.mubr.msk.f32.mxu0 %vm1049_vm5, %v10912_v61 }
 0xcea   :  { %14591 = vmatprep.subr.msk.bf16.mxu0 %vm19348_vm2, %v20511_v33 }
 0xcec   :  { %12807 = vmatmul.mubr.msk.f32.gmra.mrb[28].mxu0 %vm1049_vm5, %v10913_v2  ;;  %v8119_v2 = vadd.s32 9, %v19289_v18 }
 0xced   :  { %12809 = vmatprep.mubr.msk.f32.mxu0 %vm1049_vm5, %v10914_v38 }
 0xcf0   :  { %12810 = vmatmul.mubr.msk.f32.gmra.mrb[30].mxu0 %vm1049_vm5, %v10915_v40 }
 0xcf1   :  { %12820 = vmatprep.mubr.msk.f32.mxu0 %vm1049_vm5, %v10978_v8  ;;  %v8123_v8 = vrot.slane %v8119_v2, %v20808_v27  ;;  %v11034_v2 = vld [vmem:[%s20231_s5 + $0x50] sm:$0xff] }
 0xcf4   :  { %12821 = vmatmul.mubr.msk.f32.vlgmr.msra.gmra.mrb[24].mxu0 %vm1049_vm5, %v10979_v31 }
 0xcf5   :  { %12823 = vmatprep.mubr.msk.f32.mxu0 %vm1049_vm5, %v10980_v12  ;;  %14593 = vmatpush3.bf16.msk.msra.mxu0 %vm19348_vm2, %v20511_v33  ;;  %vm14606_vm2 = vmpackc.low %vm7280_vm1, %vm7279_vm0  ;;  %vm7849_vm0 = vcmp.eq.s32.totalorder %v20719_v1, %v19439_v43  ;;  %vm7850_vm1 = vcmp.eq.s32.totalorder %v20767_v56, %v19439_v43  ;;  %v8400_v12 = vadd.s32 10, %v19289_v18 }
 0xcf6   :  { %14595 = vmatprep.subr.msk.bf16.mxu0 %vm14594_vm6, %v20511_v33 }
 0xcf8   :  { %12824 = vmatmul.mubr.msk.f32.gmra.mrb[26].mxu0 %vm1049_vm5, %v10981_v59  ;;  %v8404_v59 = vrot.slane %v8400_v12, %v20808_v27  ;;  %v11036_v12 = vld [vmem:[%s20231_s5 + $0x60] sm:$0xff] }
 0xcf9   :  { %12826 = vmatprep.mubr.msk.f32.mxu0 %vm1049_vm5, %v10982_v5  ;;  %14597 = vmatpush3.bf16.msk.msra.mxu0 %vm14594_vm6, %v20511_v33  ;;  %vm7843_vm6 = vcmp.eq.s32.totalorder %v20543_v25, %v19439_v43 }
 0xcfa   :  { %14599 = vmatprep.subr.msk.bf16.mxu0 %vm14598_vm9, %v20511_v33  ;;  %vm19452_vm7 = vmpackc.low %vm7844_vm8, %vm7843_vm6  ;;  %vm7853_vm8 = vcmp.eq.s32.totalorder %v20775_v60, %v19439_v43 }
 0xcfb   :  { %v7864_v31 = vsel %vm7853_vm8, 1.0, %v15119_v17  ;;  %vm8133_vm8 = vcmp.eq.s32.totalorder %v20771_v35, %v8123_v8 }
 0xcfc   :  { %12827 = vmatmul.mubr.msk.f32.gmra.mrb[28].mxu0 %vm1049_vm5, %v10983_v7  ;;  %v8681_v7 = vadd.s32 11, %v19289_v18 }
 0xcfd   :  { %12829 = vmatprep.mubr.msk.f32.mxu0 %vm1049_vm5, %v10984_v10  ;;  %14601 = vmatpush3.bf16.msk.msra.mxu0 %vm14598_vm9, %v20511_v33  ;;  %vm7293_vm9 = vcmask 662528  }
 0xcfe   :  { %14603 = vmatprep.subr.msk.bf16.mxu0 %vm14602_vm11, %v20511_v33  ;;  %v8685_v10 = vrot.slane %v8681_v7, %v20808_v27  ;;  %v11037_v7 = vld [vmem:[%s20231_s5 + $0x68] sm:$0xff] }
 0xd00   :  { %12830 = vmatmul.mubr.msk.f32.gmra.mrb[30].mxu0 %vm1049_vm5, %v10985_v6  ;;  %vm7450_vm5 = vcmp.eq.s32.totalorder %v20775_v60, %v19293_v14 }
 0xd01   :  { %14605 = vmatpush3.bf16.msk.msra.mxu0 %vm14602_vm11, %v20511_v33  ;;  %v7461_v44 = vsel %vm7450_vm5, 1.0, %v15119_v17  ;;  %vm19472_vm11 = vmpackc.low %vm7846_vm14, %vm7845_vm10  ;;  %vm7851_vm5 = vcmp.eq.s32.totalorder %v20770_v16, %v19439_v43  ;;  %vm8125_vm10 = vcmp.eq.s32.totalorder %v20544_v62, %v8123_v8  ;;  %vm8126_vm14 = vcmp.eq.s32.totalorder %v15675_v36, %v8123_v8 }
 0xd02   :  { %14607 = vmatprep.subr.msk.bf16.mxu0 %vm14606_vm2, %v20511_v33  ;;  %12886 = vmatprep.subr.msk.mxu1 %vm7318_vm3, %v7461_v44  ;;  %vm14678_vm6 = vmpackc.low %vm7852_vm4, %vm7851_vm5  ;;  %vm8131_vm5 = vcmp.eq.s32.totalorder %v20767_v56, %v8123_v8  ;;  %v9247_v43 = vrot.slane %v9243_v20, %v20808_v27 }
 0xd03   :  { %12887 = vmatpush3.msk.msra.mxu1 %vm7318_vm3, %v7461_v44 }
 0xd04   :  { %14663 = vmatprep.subr.msk.bf16.mxu1 %vm19452_vm7, %v20511_v33 }
 0xd05   :  { %14609 = vmatpush3.bf16.msk.msra.mxu0 %vm14606_vm2, %v20511_v33  ;;  %vm19524_vm2 = vmpackc.low %vm7850_vm1, %vm7849_vm0  ;;  %vm8129_vm0 = vcmp.eq.s32.totalorder %v15740_v49, %v8123_v8 }
 0xd06   :  { %12852 = vmatprep.subr.msk.mxu0 %vm7318_vm3, %v7292_v39 }
 0xd09   :  { %12853 = vmatpush3.msk.msra.mxu0 %vm7318_vm3, %v7292_v39  ;;  %v9524_v39 = vadd.s32 20, %v19289_v18  ;;  %v11032_v18 = vld [vmem:[%s20231_s5 + $0x40] sm:$0xff] }
 0xd0b   :  { %v9528_v55 = vrot.slane %v9524_v39, %v20808_v27 }
 0xdc7   :  { %v12822_v4 = vpop.f32.mrb[24].mxu0 }
 0xdc8   :  { %v7251_v29 = vadd.f32 %v12822_v4, %v7218_v47  ;;  %v7155_v14 = vpop.f32.mrb[25].mxu0 }
 0xdc9   :  { %v7250_v46 = vadd.f32 %v7213_v26, %v7155_v14 }
 0xdca   :  { %v19466_v28 = vmax.f32 %v7251_v29, 0.0 }
 0xdcb   :  { %v19464_v45 = vmax.f32 %v7250_v46, 0.0  ;;  %v12825_v50 = vpop.f32.mrb[26].mxu0 }
 0xdcc   :  { %v7253_v22 = vadd.f32 %v12825_v50, %v7228_v41  ;;  %v7165_v3 = vpop.f32.mrb[27].mxu0 }
 0xdcd   :  { %v7252_v23 = vadd.f32 %v7223_v15, %v7165_v3  ;;  %12854 = vmatprep.mubr.msk.f32.mxu0 %vm7293_vm9, %v19464_v45  ;;  %12888 = vmatprep.mubr.msk.f32.mxu1 %vm7293_vm9, %v19464_v45 }
 0xdce   :  { %12855 = vmatmul.mubr.msk.f32.vlgmr.msra.gmra.mrb[112].mxu0 %vm7293_vm9, %v19466_v28  ;;  %12889 = vmatmul.mubr.msk.f32.vlgmr.msra.gmra.mrb[168].mxu1 %vm7293_vm9, %v19466_v28  ;;  %v19489_v30 = vmax.f32 %v7253_v22, 0.0 }
 0xdcf   :  { %v19484_v11 = vmax.f32 %v7252_v23, 0.0  ;;  %14665 = vmatpush3.bf16.msk.msra.mxu1 %vm19452_vm7, %v20511_v33  ;;  %v12828_v13 = vpop.f32.mrb[28].mxu0  ;;  %vm8124_vm7 = vcmp.eq.s32.totalorder %v20543_v25, %v8123_v8 }
 0xdd0   :  { %v7255_v63 = vadd.f32 %v12828_v13, %v7238_v53  ;;  %v7175_v54 = vpop.f32.mrb[29].mxu0  ;;  %14667 = vmatprep.subr.msk.bf16.mxu1 %vm19472_vm11, %v20511_v33  ;;  %vm14698_vm12 = vmpackc.low %vm8125_vm10, %vm8124_vm7  ;;  %vm8134_vm10 = vcmp.eq.s32.totalorder %v20775_v60, %v8123_v8 }
 0xdd1   :  { %v7254_v58 = vadd.f32 %v7233_v19, %v7175_v54  ;;  %12857 = vmatprep.mubr.msk.f32.mxu0 %vm7293_vm9, %v19484_v11  ;;  %12891 = vmatprep.mubr.msk.f32.mxu1 %vm7293_vm9, %v19484_v11  ;;  %v8145_v5 = vsel %vm8134_vm10, 1.0, %v15119_v17  ;;  %vm8414_vm10 = vcmp.eq.s32.totalorder %v20771_v35, %v8404_v59 }
 0xdd2   :  { %12858 = vmatmul.mubr.msk.f32.gmra.mrb[114].mxu0 %vm7293_vm9, %v19489_v30  ;;  %12892 = vmatmul.mubr.msk.f32.gmra.mrb[170].mxu1 %vm7293_vm9, %v19489_v30  ;;  %v19515_v0 = vmax.f32 %v7255_v63, 0.0 }
 0xdd3   :  { %v19510_v51 = vmax.f32 %v7254_v58, 0.0  ;;  %14669 = vmatpush3.bf16.msk.msra.mxu1 %vm19472_vm11, %v20511_v33  ;;  %v12831_v32 = vpop.f32.mrb[30].mxu0  ;;  %vm8127_vm11 = vcmp.eq.s32.totalorder %v15678_v37, %v8123_v8 }
 0xdd4   :  { %v7257_v42 = vadd.f32 %v12831_v32, %v7248_v57  ;;  %v7185_v34 = vpop.f32.mrb[31].mxu0  ;;  %14671 = vmatprep.subr.msk.bf16.mxu1 %vm19498_vm15, %v20511_v33  ;;  %vm14702_vm13 = vmpackc.low %vm8127_vm11, %vm8126_vm14  ;;  %vm8405_vm14 = vcmp.eq.s32.totalorder %v20543_v25, %v8404_v59  ;;  %vm8406_vm11 = vcmp.eq.s32.totalorder %v20544_v62, %v8404_v59 }
 0xdd5   :  { %v7256_v61 = vadd.f32 %v7243_v24, %v7185_v34  ;;  %12860 = vmatprep.mubr.msk.f32.mxu0 %vm7293_vm9, %v19510_v51  ;;  %12894 = vmatprep.mubr.msk.f32.mxu1 %vm7293_vm9, %v19510_v51 }
 0xdd6   :  { %12861 = vmatmul.mubr.msk.f32.gmra.mrb[116].mxu0 %vm7293_vm9, %v19515_v0  ;;  %12895 = vmatmul.mubr.msk.f32.gmra.mrb[172].mxu1 %vm7293_vm9, %v19515_v0  ;;  %v19542_v40 = vmax.f32 %v7257_v42, 0.0 }
 0xdd7   :  { %v19537_v38 = vmax.f32 %v7256_v61, 0.0  ;;  %14673 = vmatpush3.bf16.msk.msra.mxu1 %vm19498_vm15, %v20511_v33  ;;  %vm8128_vm15 = vcmp.eq.s32.totalorder %v15737_v48, %v8123_v8 }
 0xdd8   :  { %14675 = vmatprep.subr.msk.bf16.mxu1 %vm19524_vm2, %v20511_v33  ;;  %vm14706_vm1 = vmpackc.low %vm8129_vm0, %vm8128_vm15 }
 0xdd9   :  { %12863 = vmatprep.mubr.msk.f32.mxu0 %vm7293_vm9, %v19537_v38  ;;  %12897 = vmatprep.mubr.msk.f32.mxu1 %vm7293_vm9, %v19537_v38  ;;  %vm14734_vm15 = vmpackc.low %vm8406_vm11, %vm8405_vm14  ;;  %vm8415_vm11 = vcmp.eq.s32.totalorder %v20775_v60, %v8404_v59 }
 0xdda   :  { %12864 = vmatmul.mubr.msk.f32.gmra.mrb[118].mxu0 %vm7293_vm9, %v19542_v40  ;;  %12898 = vmatmul.mubr.msk.f32.gmra.mrb[174].mxu1 %vm7293_vm9, %v19542_v40  ;;  %v8426_v6 = vsel %vm8415_vm11, 1.0, %v15119_v17  ;;  %vm8695_vm11 = vcmp.eq.s32.totalorder %v20771_v35, %v8685_v10 }
 0xddb   :  { %14677 = vmatpush3.bf16.msk.msra.mxu1 %vm19524_vm2, %v20511_v33  ;;  %12978 = vmatprep.mubr.msk.f32.mxu1 %vm7293_vm9, %v19464_v45  ;;  %vm8130_vm2 = vcmp.eq.s32.totalorder %v20719_v1, %v8123_v8 }
 0xddc   :  { %14679 = vmatprep.subr.msk.bf16.mxu1 %vm14678_vm6, %v20511_v33  ;;  %vm14710_vm4 = vmpackc.low %vm8131_vm5, %vm8130_vm2  ;;  %vm8410_vm2 = vcmp.eq.s32.totalorder %v15740_v49, %v8404_v59 }
 0xddf   :  { %14681 = vmatpush3.bf16.msk.msra.mxu1 %vm14678_vm6, %v20511_v33  ;;  %vm8132_vm6 = vcmp.eq.s32.totalorder %v20770_v16, %v8123_v8  ;;  %v11035_v8 = vld [vmem:[%s20231_s5 + $0x58] sm:$0xff] }
 0xde0   :  { %12976 = vmatprep.subr.msk.mxu1 %vm7318_vm3, %v7864_v31  ;;  %vm14714_vm7 = vmpackc.low %vm8133_vm8, %vm8132_vm6  ;;  %vm8412_vm6 = vcmp.eq.s32.totalorder %v20767_v56, %v8404_v59 }
 0xde3   :  { %12977 = vmatpush3.msk.msra.mxu1 %vm7318_vm3, %v7864_v31 }
 0xde4   :  { %12979 = vmatmul.mubr.msk.f32.vlgmr.msra.gmra.mrb[176].mxu1 %vm7293_vm9, %v19466_v28  ;;  %14699 = vmatprep.subr.msk.bf16.mxu1 %vm14698_vm12, %v20511_v33 }
 0xde5   :  { %12981 = vmatprep.mubr.msk.f32.mxu1 %vm7293_vm9, %v19484_v11  ;;  %14701 = vmatpush3.bf16.msk.msra.mxu1 %vm14698_vm12, %v20511_v33  ;;  %vm8407_vm12 = vcmp.eq.s32.totalorder %v15675_v36, %v8404_v59 }
 0xde6   :  { %14703 = vmatprep.subr.msk.bf16.mxu1 %vm14702_vm13, %v20511_v33 }
 0xde8   :  { %12982 = vmatmul.mubr.msk.f32.gmra.mrb[178].mxu1 %vm7293_vm9, %v19489_v30 }
 0xde9   :  { %12984 = vmatprep.mubr.msk.f32.mxu1 %vm7293_vm9, %v19510_v51  ;;  %14705 = vmatpush3.bf16.msk.msra.mxu1 %vm14702_vm13, %v20511_v33  ;;  %vm8408_vm13 = vcmp.eq.s32.totalorder %v15678_v37, %v8404_v59 }
 0xdea   :  { %14707 = vmatprep.subr.msk.bf16.mxu1 %vm14706_vm1, %v20511_v33  ;;  %vm14738_vm0 = vmpackc.low %vm8408_vm13, %vm8407_vm12  ;;  %vm8686_vm12 = vcmp.eq.s32.totalorder %v20543_v25, %v8685_v10  ;;  %vm8687_vm13 = vcmp.eq.s32.totalorder %v20544_v62, %v8685_v10 }
 0xdec   :  { %12985 = vmatmul.mubr.msk.f32.gmra.mrb[180].mxu1 %vm7293_vm9, %v19515_v0 }
 0xded   :  { %12987 = vmatprep.mubr.msk.f32.mxu1 %vm7293_vm9, %v19537_v38  ;;  %14709 = vmatpush3.bf16.msk.msra.mxu1 %vm14706_vm1, %v20511_v33  ;;  %vm8409_vm1 = vcmp.eq.s32.totalorder %v15737_v48, %v8404_v59 }
 0xdee   :  { %14711 = vmatprep.subr.msk.bf16.mxu1 %vm14710_vm4, %v20511_v33  ;;  %vm14742_vm5 = vmpackc.low %vm8410_vm2, %vm8409_vm1 }
 0xdef   :  { %vm14770_vm1 = vmpackc.low %vm8687_vm13, %vm8686_vm12  ;;  %vm8696_vm13 = vcmp.eq.s32.totalorder %v20775_v60, %v8685_v10 }
 0xdf0   :  { %12988 = vmatmul.mubr.msk.f32.gmra.mrb[182].mxu1 %vm7293_vm9, %v19542_v40  ;;  %v8707_v44 = vsel %vm8696_vm13, 1.0, %v15119_v17  ;;  %vm9257_vm13 = vcmp.eq.s32.totalorder %v20771_v35, %v9247_v43 }
 0xdf1   :  { %14713 = vmatpush3.bf16.msk.msra.mxu1 %vm14710_vm4, %v20511_v33  ;;  %13040 = vmatprep.mubr.msk.f32.mxu1 %vm7293_vm9, %v19464_v45  ;;  %vm8411_vm4 = vcmp.eq.s32.totalorder %v20719_v1, %v8404_v59 }
 0xdf2   :  { %14715 = vmatprep.subr.msk.bf16.mxu1 %vm14714_vm7, %v20511_v33  ;;  %vm14746_vm8 = vmpackc.low %vm8412_vm6, %vm8411_vm4  ;;  %vm8691_vm4 = vcmp.eq.s32.totalorder %v15740_v49, %v8685_v10 }
 0xdf5   :  { %14717 = vmatpush3.bf16.msk.msra.mxu1 %vm14714_vm7, %v20511_v33  ;;  %vm8413_vm7 = vcmp.eq.s32.totalorder %v20770_v16, %v8404_v59 }
 0xdf6   :  { %13038 = vmatprep.subr.msk.mxu1 %vm7318_vm3, %v8145_v5  ;;  %vm14750_vm14 = vmpackc.low %vm8414_vm10, %vm8413_vm7  ;;  %vm8693_vm7 = vcmp.eq.s32.totalorder %v20767_v56, %v8685_v10 }
 0xdf9   :  { %13039 = vmatpush3.msk.msra.mxu1 %vm7318_vm3, %v8145_v5 }
 0xdfa   :  { %13041 = vmatmul.mubr.msk.f32.vlgmr.msra.gmra.mrb[184].mxu1 %vm7293_vm9, %v19466_v28  ;;  %14735 = vmatprep.subr.msk.bf16.mxu1 %vm14734_vm15, %v20511_v33 }
 0xdfb   :  { %13043 = vmatprep.mubr.msk.f32.mxu1 %vm7293_vm9, %v19484_v11  ;;  %14737 = vmatpush3.bf16.msk.msra.mxu1 %vm14734_vm15, %v20511_v33  ;;  %vm8688_vm15 = vcmp.eq.s32.totalorder %v15675_v36, %v8685_v10 }
 0xdfc   :  { %14739 = vmatprep.subr.msk.bf16.mxu1 %vm14738_vm0, %v20511_v33 }
 0xdfe   :  { %13044 = vmatmul.mubr.msk.f32.gmra.mrb[186].mxu1 %vm7293_vm9, %v19489_v30 }
 0xdff   :  { %13046 = vmatprep.mubr.msk.f32.mxu1 %vm7293_vm9, %v19510_v51  ;;  %14741 = vmatpush3.bf16.msk.msra.mxu1 %vm14738_vm0, %v20511_v33  ;;  %vm8689_vm0 = vcmp.eq.s32.totalorder %v15678_v37, %v8685_v10 }
 0xe00   :  { %14743 = vmatprep.subr.msk.bf16.mxu1 %vm14742_vm5, %v20511_v33  ;;  %vm14774_vm2 = vmpackc.low %vm8689_vm0, %vm8688_vm15  ;;  %vm9248_vm15 = vcmp.eq.s32.totalorder %v20543_v25, %v9247_v43  ;;  %vm9249_vm0 = vcmp.eq.s32.totalorder %v20544_v62, %v9247_v43 }
 0xe02   :  { %13047 = vmatmul.mubr.msk.f32.gmra.mrb[188].mxu1 %vm7293_vm9, %v19515_v0 }
 0xe03   :  { %13049 = vmatprep.mubr.msk.f32.mxu1 %vm7293_vm9, %v19537_v38  ;;  %14745 = vmatpush3.bf16.msk.msra.mxu1 %vm14742_vm5, %v20511_v33  ;;  %vm8690_vm5 = vcmp.eq.s32.totalorder %v15737_v48, %v8685_v10 }
 0xe04   :  { %14747 = vmatprep.subr.msk.bf16.mxu1 %vm14746_vm8, %v20511_v33  ;;  %vm14778_vm6 = vmpackc.low %vm8691_vm4, %vm8690_vm5 }
 0xe05   :  { %vm14842_vm5 = vmpackc.low %vm9249_vm0, %vm9248_vm15  ;;  %vm9258_vm0 = vcmp.eq.s32.totalorder %v20775_v60, %v9247_v43 }
 0xe06   :  { %13050 = vmatmul.mubr.msk.f32.gmra.mrb[190].mxu1 %vm7293_vm9, %v19542_v40  ;;  %v9269_v47 = vsel %vm9258_vm0, 1.0, %v15119_v17  ;;  %vm9537_vm0 = vcmp.eq.s32.totalorder %v20770_v16, %v9528_v55 }
 0xe07   :  { %14749 = vmatpush3.bf16.msk.msra.mxu1 %vm14746_vm8, %v20511_v33  ;;  %13102 = vmatprep.mubr.msk.f32.mxu1 %vm7293_vm9, %v19464_v45  ;;  %vm8692_vm8 = vcmp.eq.s32.totalorder %v20719_v1, %v8685_v10 }
 0xe08   :  { %14751 = vmatprep.subr.msk.bf16.mxu1 %vm14750_vm14, %v20511_v33  ;;  %vm14782_vm10 = vmpackc.low %vm8693_vm7, %vm8692_vm8  ;;  %vm9253_vm8 = vcmp.eq.s32.totalorder %v15740_v49, %v9247_v43 }
 0xe0b   :  { %14753 = vmatpush3.bf16.msk.msra.mxu1 %vm14750_vm14, %v20511_v33  ;;  %vm8694_vm14 = vcmp.eq.s32.totalorder %v20770_v16, %v8685_v10 }
 0xe0c   :  { %13100 = vmatprep.subr.msk.mxu1 %vm7318_vm3, %v8426_v6  ;;  %vm14786_vm12 = vmpackc.low %vm8695_vm11, %vm8694_vm14  ;;  %vm9255_vm14 = vcmp.eq.s32.totalorder %v20767_v56, %v9247_v43 }
 0xe0f   :  { %13101 = vmatpush3.msk.msra.mxu1 %vm7318_vm3, %v8426_v6  ;;  %v11038_v6 = vld [vmem:[%s20231_s5 + $0x70] sm:$0xff] }
 0xe10   :  { %13103 = vmatmul.mubr.msk.f32.vlgmr.msra.gmra.mrb[192].mxu1 %vm7293_vm9, %v19466_v28  ;;  %14771 = vmatprep.subr.msk.bf16.mxu1 %vm14770_vm1, %v20511_v33 }
 0xe11   :  { %13105 = vmatprep.mubr.msk.f32.mxu1 %vm7293_vm9, %v19484_v11  ;;  %14773 = vmatpush3.bf16.msk.msra.mxu1 %vm14770_vm1, %v20511_v33  ;;  %vm9250_vm1 = vcmp.eq.s32.totalorder %v15675_v36, %v9247_v43 }
 0xe12   :  { %14775 = vmatprep.subr.msk.bf16.mxu1 %vm14774_vm2, %v20511_v33 }
 0xe14   :  { %13106 = vmatmul.mubr.msk.f32.gmra.mrb[194].mxu1 %vm7293_vm9, %v19489_v30 }
 0xe15   :  { %13108 = vmatprep.mubr.msk.f32.mxu1 %vm7293_vm9, %v19510_v51  ;;  %14777 = vmatpush3.bf16.msk.msra.mxu1 %vm14774_vm2, %v20511_v33  ;;  %vm9251_vm2 = vcmp.eq.s32.totalorder %v15678_v37, %v9247_v43 }
 0xe16   :  { %14779 = vmatprep.subr.msk.bf16.mxu1 %vm14778_vm6, %v20511_v33  ;;  %vm14846_vm4 = vmpackc.low %vm9251_vm2, %vm9250_vm1  ;;  %vm7579_vm1 = vcmask 523264   ;;  %vm9529_vm2 = vcmp.eq.s32.totalorder %v20543_v25, %v9528_v55 }
 0xe17   :  { %12916 = vmatprep.mubr.msk.f32.mxu0 %vm7579_vm1, %v11032_v18 }
 0xe18   :  { %13109 = vmatmul.mubr.msk.f32.gmra.mrb[196].mxu1 %vm7293_vm9, %v19515_v0 }
 0xe19   :  { %13111 = vmatprep.mubr.msk.f32.mxu1 %vm7293_vm9, %v19537_v38  ;;  %14781 = vmatpush3.bf16.msk.msra.mxu1 %vm14778_vm6, %v20511_v33  ;;  %vm9252_vm6 = vcmp.eq.s32.totalorder %v15737_v48, %v9247_v43 }
 0xe1a   :  { %14783 = vmatprep.subr.msk.bf16.mxu1 %vm14782_vm10, %v20511_v33  ;;  %vm14850_vm7 = vmpackc.low %vm9253_vm8, %vm9252_vm6  ;;  %vm9532_vm6 = vcmp.eq.s32.totalorder %v15678_v37, %v9528_v55 }
 0xe1c   :  { %13112 = vmatmul.mubr.msk.f32.gmra.mrb[198].mxu1 %vm7293_vm9, %v19542_v40 }
 0xe1d   :  { %14785 = vmatpush3.bf16.msk.msra.mxu1 %vm14782_vm10, %v20511_v33  ;;  %13164 = vmatprep.mubr.msk.f32.mxu1 %vm7293_vm9, %v19464_v45  ;;  %vm9254_vm10 = vcmp.eq.s32.totalorder %v20719_v1, %v9247_v43 }
 0xe1e   :  { %14787 = vmatprep.subr.msk.bf16.mxu1 %vm14786_vm12, %v20511_v33  ;;  %vm14854_vm11 = vmpackc.low %vm9255_vm14, %vm9254_vm10  ;;  %vm9533_vm10 = vcmp.eq.s32.totalorder %v15737_v48, %v9528_v55  ;;  %vm9534_vm14 = vcmp.eq.s32.totalorder %v15740_v49, %v9528_v55 }
 0xe21   :  { %14789 = vmatpush3.bf16.msk.msra.mxu1 %vm14786_vm12, %v20511_v33  ;;  %vm9256_vm12 = vcmp.eq.s32.totalorder %v20770_v16, %v9247_v43 }
 0xe22   :  { %13162 = vmatprep.subr.msk.mxu1 %vm7318_vm3, %v8707_v44  ;;  %vm14858_vm15 = vmpackc.low %vm9257_vm13, %vm9256_vm12  ;;  %vm9535_vm12 = vcmp.eq.s32.totalorder %v20719_v1, %v9528_v55  ;;  %vm9536_vm13 = vcmp.eq.s32.totalorder %v20767_v56, %v9528_v55 }
 0xe25   :  { %13163 = vmatpush3.msk.msra.mxu1 %vm7318_vm3, %v8707_v44  ;;  %v11039_v44 = vld [vmem:[%s20231_s5 + $0x78] sm:$0xff] }
 0xe26   :  { %13165 = vmatmul.mubr.msk.f32.vlgmr.msra.gmra.mrb[200].mxu1 %vm7293_vm9, %v19466_v28  ;;  %14843 = vmatprep.subr.msk.bf16.mxu1 %vm14842_vm5, %v20511_v33 }
 0xe27   :  { %13167 = vmatprep.mubr.msk.f32.mxu1 %vm7293_vm9, %v19484_v11  ;;  %14845 = vmatpush3.bf16.msk.msra.mxu1 %vm14842_vm5, %v20511_v33  ;;  %vm9530_vm5 = vcmp.eq.s32.totalorder %v20544_v62, %v9528_v55 }
 0xe28   :  { %14847 = vmatprep.subr.msk.bf16.mxu1 %vm14846_vm4, %v20511_v33  ;;  %vm14878_vm8 = vmpackc.low %vm9530_vm5, %vm9529_vm2  ;;  %vm9538_vm2 = vcmp.eq.s32.totalorder %v20771_v35, %v9528_v55 }
 0xe29   :  { %vm14894_vm5 = vmpackc.low %vm9538_vm2, %vm9537_vm0 }
 0xe2a   :  { %13168 = vmatmul.mubr.msk.f32.gmra.mrb[202].mxu1 %vm7293_vm9, %v19489_v30 }
 0xe2b   :  { %13170 = vmatprep.mubr.msk.f32.mxu1 %vm7293_vm9, %v19510_v51  ;;  %14849 = vmatpush3.bf16.msk.msra.mxu1 %vm14846_vm4, %v20511_v33  ;;  %vm9531_vm4 = vcmp.eq.s32.totalorder %v15675_v36, %v9528_v55 }
 0xe2c   :  { %14851 = vmatprep.subr.msk.bf16.mxu1 %vm14850_vm7, %v20511_v33 }
 0xe2e   :  { %13171 = vmatmul.mubr.msk.f32.gmra.mrb[204].mxu1 %vm7293_vm9, %v19515_v0 }
 0xe2f   :  { %13173 = vmatprep.mubr.msk.f32.mxu1 %vm7293_vm9, %v19537_v38  ;;  %14853 = vmatpush3.bf16.msk.msra.mxu1 %vm14850_vm7, %v20511_v33  ;;  %vm14882_vm7 = vmpackc.low %vm9532_vm6, %vm9531_vm4  ;;  %vm9539_vm4 = vcmp.eq.s32.totalorder %v20775_v60, %v9528_v55  ;;  %v7427_v55 = vld [vmem:[%s20231_s5] sm:$0xff] }
 0xe30   :  { %14855 = vmatprep.subr.msk.bf16.mxu1 %vm14854_vm11, %v20511_v33  ;;  %v9550_v26 = vsel %vm9539_vm4, 1.0, %v15119_v17 }
 0xe32   :  { %13174 = vmatmul.mubr.msk.f32.gmra.mrb[206].mxu1 %vm7293_vm9, %v19542_v40 }
 0xe33   :  { %14857 = vmatpush3.bf16.msk.msra.mxu1 %vm14854_vm11, %v20511_v33  ;;  %13288 = vmatprep.mubr.msk.f32.mxu1 %vm7293_vm9, %v19464_v45  ;;  %vm14886_vm11 = vmpackc.low %vm9534_vm14, %vm9533_vm10 }
 0xe34   :  { %14859 = vmatprep.subr.msk.bf16.mxu1 %vm14858_vm15, %v20511_v33 }
 0xe37   :  { %14861 = vmatpush3.bf16.msk.msra.mxu1 %vm14858_vm15, %v20511_v33  ;;  %vm14890_vm15 = vmpackc.low %vm9536_vm13, %vm9535_vm12 }
 0xe38   :  { %13286 = vmatprep.subr.msk.mxu1 %vm7318_vm3, %v9269_v47 }
 0xe3b   :  { %13287 = vmatpush3.msk.msra.mxu1 %vm7318_vm3, %v9269_v47 }
 0xe3c   :  { %13289 = vmatmul.mubr.msk.f32.vlgmr.msra.gmra.mrb[208].mxu1 %vm7293_vm9, %v19466_v28  ;;  %14879 = vmatprep.subr.msk.bf16.mxu1 %vm14878_vm8, %v20511_v33 }
 0xe3d   :  { %13291 = vmatprep.mubr.msk.f32.mxu1 %vm7293_vm9, %v19484_v11  ;;  %14881 = vmatpush3.bf16.msk.msra.mxu1 %vm14878_vm8, %v20511_v33 }
 0xe3e   :  { %14883 = vmatprep.subr.msk.bf16.mxu1 %vm14882_vm7, %v20511_v33 }
 0xe40   :  { %13292 = vmatmul.mubr.msk.f32.gmra.mrb[210].mxu1 %vm7293_vm9, %v19489_v30 }
 0xe41   :  { %13294 = vmatprep.mubr.msk.f32.mxu1 %vm7293_vm9, %v19510_v51  ;;  %14885 = vmatpush3.bf16.msk.msra.mxu1 %vm14882_vm7, %v20511_v33 }
 0xe42   :  { %14887 = vmatprep.subr.msk.bf16.mxu1 %vm14886_vm11, %v20511_v33 }
 0xe44   :  { %13295 = vmatmul.mubr.msk.f32.gmra.mrb[212].mxu1 %vm7293_vm9, %v19515_v0 }
 0xe45   :  { %13297 = vmatprep.mubr.msk.f32.mxu1 %vm7293_vm9, %v19537_v38  ;;  %14889 = vmatpush3.bf16.msk.msra.mxu1 %vm14886_vm11, %v20511_v33 }
 0xe46   :  { %14891 = vmatprep.subr.msk.bf16.mxu1 %vm14890_vm15, %v20511_v33 }
 0xe48   :  { %13298 = vmatmul.mubr.msk.f32.gmra.mrb[214].mxu1 %vm7293_vm9, %v19542_v40 }
 0xe49   :  { %14893 = vmatpush3.bf16.msk.msra.mxu1 %vm14890_vm15, %v20511_v33  ;;  %13350 = vmatprep.mubr.msk.f32.mxu1 %vm7293_vm9, %v19464_v45 }
 0xe4a   :  { %14895 = vmatprep.subr.msk.bf16.mxu1 %vm14894_vm5, %v20511_v33 }
 0xe4d   :  { %14897 = vmatpush3.bf16.msk.msra.mxu1 %vm14894_vm5, %v20511_v33 }
 0xe4e   :  { %13348 = vmatprep.subr.msk.mxu1 %vm7318_vm3, %v9550_v26 }
 0xe51   :  { %13349 = vmatpush3.msk.msra.mxu1 %vm7318_vm3, %v9550_v26  ;;  %v7428_v26 = vld [vmem:[%s20231_s5 + $0x8] sm:$0xff] }
 0xe52   :  { %13351 = vmatmul.mubr.msk.f32.vlgmr.msra.gmra.mrb[216].mxu1 %vm7293_vm9, %v19466_v28 }
 0xe53   :  { %13353 = vmatprep.mubr.msk.f32.mxu1 %vm7293_vm9, %v19484_v11 }
 0xe56   :  { %13354 = vmatmul.mubr.msk.f32.gmra.mrb[218].mxu1 %vm7293_vm9, %v19489_v30 }
 0xe57   :  { %13356 = vmatprep.mubr.msk.f32.mxu1 %vm7293_vm9, %v19510_v51 }
 0xe5a   :  { %13357 = vmatmul.mubr.msk.f32.gmra.mrb[220].mxu1 %vm7293_vm9, %v19515_v0 }
 0xe5b   :  { %13359 = vmatprep.mubr.msk.f32.mxu1 %vm7293_vm9, %v19537_v38 }
 0xe5e   :  { %13360 = vmatmul.mubr.msk.f32.gmra.mrb[222].mxu1 %vm7293_vm9, %v19542_v40 }
 0xea1   :  { %v12856_v41 = vpop.f32.mrb[112].mxu0  ;;  %v12890_v4 = vpop.f32.mrb[168].mxu1 }
 0xea2   :  { %v7388_v15 = vpop.f32.mrb[113].mxu0  ;;  %v7531_v29 = vpop.f32.mrb[169].mxu1 }
 0xea3   :  { %v14646_v14 = vpack.c.bf16 %v12856_v41, %v7388_v15  ;;  %v14630_v46 = vpack.c.bf16 %v12890_v4, %v7531_v29  ;;  %v7429_v4 = vld [vmem:[%s20231_s5 + $0x10] sm:$0xff] }
 0xea5   :  { %v12859_v50 = vpop.f32.mrb[114].mxu0  ;;  %v12893_v22 = vpop.f32.mrb[170].mxu1  ;;  %14631 = vmatprep.subr.bf16.mxu0 %v14630_v46 }
 0xea6   :  { %v7398_v3 = vpop.f32.mrb[115].mxu0  ;;  %v7541_v53 = vpop.f32.mrb[171].mxu1  ;;  %14633 = vmatpush3.bf16.msra.mxu0 %v14630_v46  ;;  %v7431_v46 = vld [vmem:[%s20231_s5 + $0x20] sm:$0xff] }
 0xea7   :  { %v14650_v23 = vpack.c.bf16 %v12859_v50, %v7398_v3  ;;  %v14634_v21 = vpack.c.bf16 %v12893_v22, %v7541_v53  ;;  %v7432_v50 = vld [vmem:[%s20231_s5 + $0x28] sm:$0xff]  ;;  %v7433_v22 = vld [vmem:[%s20231_s5 + $0x30] sm:$0xff] }
 0xea9   :  { %v12862_v19 = vpop.f32.mrb[116].mxu0  ;;  %v12896_v13 = vpop.f32.mrb[172].mxu1  ;;  %14635 = vmatprep.subr.bf16.mxu0 %v14634_v21 }
 0xeaa   :  { %v7408_v63 = vpop.f32.mrb[117].mxu0  ;;  %v7551_v54 = vpop.f32.mrb[173].mxu1  ;;  %14637 = vmatpush3.bf16.msra.mxu0 %v14634_v21 }
 0xeab   :  { %v14654_v58 = vpack.c.bf16 %v12862_v19, %v7408_v63  ;;  %v14638_v52 = vpack.c.bf16 %v12896_v13, %v7551_v54  ;;  %v11075_v19 = vld [vmem:[%s20231_s5 + $0x80] sm:$0xff]  ;;  %v11076_v54 = vld [vmem:[%s20231_s5 + $0x88] sm:$0xff] }
 0xead   :  { %v12865_v57 = vpop.f32.mrb[118].mxu0  ;;  %v12899_v32 = vpop.f32.mrb[174].mxu1  ;;  %14639 = vmatprep.subr.bf16.mxu0 %v14638_v52 }
 0xeae   :  { %v7418_v24 = vpop.f32.mrb[119].mxu0  ;;  %v7561_v42 = vpop.f32.mrb[175].mxu1  ;;  %14641 = vmatpush3.bf16.msra.mxu0 %v14638_v52  ;;  %v11077_v52 = vld [vmem:[%s20231_s5 + $0x90] sm:$0xff] }
 0xeaf   :  { %v14658_v34 = vpack.c.bf16 %v12865_v57, %v7418_v24  ;;  %v14642_v61 = vpack.c.bf16 %v12899_v32, %v7561_v42  ;;  %v11078_v24 = vld [vmem:[%s20231_s5 + $0x98] sm:$0xff] }
 0xeb1   :  { %14643 = vmatprep.subr.bf16.mxu0 %v14642_v61 }
 0xeb2   :  { %14645 = vmatpush3.bf16.msra.mxu0 %v14642_v61 }
 0xeb3   :  { %14647 = vmatprep.subr.bf16.mxu0 %v14646_v14 }
 0xeb5   :  { %12917 = vmatmul.mubr.msk.f32.vlgmr.msra.gmra.mrb[120].mxu0 %vm7579_vm1, %v11033_v9 }
 0xeb6   :  { %14649 = vmatpush3.bf16.msra.mxu0 %v14646_v14  ;;  %12919 = vmatprep.mubr.msk.f32.mxu0 %vm7579_vm1, %v11034_v2  ;;  %v7430_v14 = vld [vmem:[%s20231_s5 + $0x18] sm:$0xff]  ;;  %v11080_v2 = vld [vmem:[%s20231_s5 + $0xa8] sm:$0xff] }
 0xeb7   :  { %v12980_v31 = vpop.f32.mrb[176].mxu1  ;;  %14651 = vmatprep.subr.bf16.mxu0 %v14650_v23 }
 0xeb8   :  { %v7934_v59 = vpop.f32.mrb[177].mxu1 }
 0xeb9   :  { %v14682_v5 = vpack.c.bf16 %v12980_v31, %v7934_v59  ;;  %12920 = vmatmul.mubr.msk.f32.gmra.mrb[122].mxu0 %vm7579_vm1, %v11035_v8  ;;  %v11081_v31 = vld [vmem:[%s20231_s5 + $0xb0] sm:$0xff]  ;;  %v11110_v59 = vld [vmem:[%s20231_s5 + $0xc0] sm:$0xff] }
 0xeba   :  { %14653 = vmatpush3.bf16.msra.mxu0 %v14650_v23  ;;  %12922 = vmatprep.mubr.msk.f32.mxu0 %vm7579_vm1, %v11036_v12  ;;  %v7434_v23 = vld [vmem:[%s20231_s5 + $0x38] sm:$0xff] }
 0xebb   :  { %v12983_v10 = vpop.f32.mrb[178].mxu1  ;;  %14655 = vmatprep.subr.bf16.mxu0 %v14654_v58  ;;  %v11082_v12 = vld [vmem:[%s20231_s5 + $0xb8] sm:$0xff] }
 0xebc   :  { %v7944_v20 = vpop.f32.mrb[179].mxu1 }
 0xebd   :  { %v14686_v43 = vpack.c.bf16 %v12983_v10, %v7944_v20  ;;  %12923 = vmatmul.mubr.msk.f32.gmra.mrb[124].mxu0 %vm7579_vm1, %v11037_v7  ;;  %v11112_v10 = vld [vmem:[%s20231_s5 + $0xd0] sm:$0xff] }
 0xebe   :  { %14657 = vmatpush3.bf16.msra.mxu0 %v14654_v58  ;;  %12925 = vmatprep.mubr.msk.f32.mxu0 %vm7579_vm1, %v11038_v6 }
 0xebf   :  { %v12986_v39 = vpop.f32.mrb[180].mxu1  ;;  %14659 = vmatprep.subr.bf16.mxu0 %v14658_v34 }
 0xec0   :  { %v7954_v18 = vpop.f32.mrb[181].mxu1 }
 0xec1   :  { %v14690_v47 = vpack.c.bf16 %v12986_v39, %v7954_v18  ;;  %12926 = vmatmul.mubr.msk.f32.gmra.mrb[126].mxu0 %vm7579_vm1, %v11039_v44  ;;  %v11114_v39 = vld [vmem:[%s20231_s5 + $0xe0] sm:$0xff] }
 0xec2   :  { %14661 = vmatpush3.bf16.msra.mxu0 %v14658_v34  ;;  %12944 = vmatprep.mubr.msk.f32.mxu0 %vm7579_vm1, %v7427_v55  ;;  %v11079_v34 = vld [vmem:[%s20231_s5 + $0xa0] sm:$0xff] }
 0xec3   :  { %v12989_v41 = vpop.f32.mrb[182].mxu1  ;;  %14683 = vmatprep.subr.bf16.mxu0 %v14682_v5 }
 0xec4   :  { %v7964_v15 = vpop.f32.mrb[183].mxu1 }
 0xec5   :  { %v14694_v29 = vpack.c.bf16 %v12989_v41, %v7964_v15  ;;  %12945 = vmatmul.mubr.msk.f32.vlgmr.msra.gmra.mrb[120].mxu0 %vm7579_vm1, %v7428_v26  ;;  %v11116_v41 = vld [vmem:[%s20231_s5 + $0xf0] sm:$0xff] }
 0xec6   :  { %14685 = vmatpush3.bf16.msra.mxu0 %v14682_v5  ;;  %12947 = vmatprep.mubr.msk.f32.mxu0 %vm7579_vm1, %v7429_v4  ;;  %v11111_v5 = vld [vmem:[%s20231_s5 + $0xc8] sm:$0xff] }
 0xec7   :  { %14687 = vmatprep.subr.bf16.mxu0 %v14686_v43 }
 0xec9   :  { %12948 = vmatmul.mubr.msk.f32.gmra.mrb[122].mxu0 %vm7579_vm1, %v7430_v14 }
 0xeca   :  { %14689 = vmatpush3.bf16.msra.mxu0 %v14686_v43  ;;  %12950 = vmatprep.mubr.msk.f32.mxu0 %vm7579_vm1, %v7431_v46  ;;  %v11113_v43 = vld [vmem:[%s20231_s5 + $0xd8] sm:$0xff]  ;;  %v11145_v46 = vld [vmem:[%s20231_s5 + $0x100] sm:$0xff] }
 0xecb   :  { %14691 = vmatprep.subr.bf16.mxu0 %v14690_v47 }
 0xecd   :  { %v13042_v3 = vpop.f32.mrb[184].mxu1  ;;  %12951 = vmatmul.mubr.msk.f32.gmra.mrb[124].mxu0 %vm7579_vm1, %v7432_v50 }
 0xece   :  { %v8215_v53 = vpop.f32.mrb[185].mxu1  ;;  %14693 = vmatpush3.bf16.msra.mxu0 %v14690_v47  ;;  %12953 = vmatprep.mubr.msk.f32.mxu0 %vm7579_vm1, %v7433_v22  ;;  %v11115_v47 = vld [vmem:[%s20231_s5 + $0xe8] sm:$0xff] }
 0xecf   :  { %v14718_v21 = vpack.c.bf16 %v13042_v3, %v8215_v53  ;;  %14695 = vmatprep.subr.bf16.mxu0 %v14694_v29  ;;  %v11146_v3 = vld [vmem:[%s20231_s5 + $0x108] sm:$0xff]  ;;  %v11147_v53 = vld [vmem:[%s20231_s5 + $0x110] sm:$0xff] }
 0xed1   :  { %v13045_v13 = vpop.f32.mrb[186].mxu1  ;;  %12954 = vmatmul.mubr.msk.f32.gmra.mrb[126].mxu0 %vm7579_vm1, %v7434_v23  ;;  %v11148_v23 = vld [vmem:[%s20231_s5 + $0x118] sm:$0xff] }
 0xed2   :  { %v8225_v63 = vpop.f32.mrb[187].mxu1  ;;  %14697 = vmatpush3.bf16.msra.mxu0 %v14694_v29  ;;  %13006 = vmatprep.mubr.msk.f32.mxu0 %vm7579_vm1, %v11075_v19  ;;  %v11117_v29 = vld [vmem:[%s20231_s5 + $0xf8] sm:$0xff]  ;;  %v11149_v19 = vld [vmem:[%s20231_s5 + $0x120] sm:$0xff] }
 0xed3   :  { %v14722_v58 = vpack.c.bf16 %v13045_v13, %v8225_v63  ;;  %14719 = vmatprep.subr.bf16.mxu0 %v14718_v21 }
 0xed5   :  { %v13048_v57 = vpop.f32.mrb[188].mxu1  ;;  %13007 = vmatmul.mubr.msk.f32.vlgmr.msra.gmra.mrb[120].mxu0 %vm7579_vm1, %v11076_v54  ;;  %v11150_v54 = vld [vmem:[%s20231_s5 + $0x128] sm:$0xff] }
 0xed6   :  { %v8235_v32 = vpop.f32.mrb[189].mxu1  ;;  %14721 = vmatpush3.bf16.msra.mxu0 %v14718_v21  ;;  %13009 = vmatprep.mubr.msk.f32.mxu0 %vm7579_vm1, %v11077_v52  ;;  %v11151_v52 = vld [vmem:[%s20231_s5 + $0x130] sm:$0xff] }
 0xed7   :  { %v14726_v42 = vpack.c.bf16 %v13048_v57, %v8235_v32  ;;  %14723 = vmatprep.subr.bf16.mxu0 %v14722_v58  ;;  %v15115_v57 = vld [vmem:[%s20230_s8] sm:$0x1] }
 0xed8   :  { %v8962_v32 = vadd.s32 18, %v15115_v57 }
 0xed9   :  { %v13051_v61 = vpop.f32.mrb[190].mxu1  ;;  %13010 = vmatmul.mubr.msk.f32.gmra.mrb[122].mxu0 %vm7579_vm1, %v11078_v24 }
 0xeda   :  { %v8245_v9 = vpop.f32.mrb[191].mxu1  ;;  %14725 = vmatpush3.bf16.msra.mxu0 %v14722_v58  ;;  %13012 = vmatprep.mubr.msk.f32.mxu0 %vm7579_vm1, %v11079_v34  ;;  %v11152_v34 = vld [vmem:[%s20231_s5 + $0x138] sm:$0xff] }
 0xedb   :  { %v14730_v8 = vpack.c.bf16 %v13051_v61, %v8245_v9  ;;  %14727 = vmatprep.subr.bf16.mxu0 %v14726_v42  ;;  %v11180_v9 = vld [vmem:[%s20231_s5 + $0x140] sm:$0xff] }
 0xedd   :  { %13013 = vmatmul.mubr.msk.f32.gmra.mrb[124].mxu0 %vm7579_vm1, %v11080_v2  ;;  %v19956_v2 = vrot.slane %v8962_v32, %v20808_v27  ;;  %v11181_v27 = vld [vmem:[%s20231_s5 + $0x148] sm:$0xff] }
 0xede   :  { %14729 = vmatpush3.bf16.msra.mxu0 %v14726_v42  ;;  %13015 = vmatprep.mubr.msk.f32.mxu0 %vm7579_vm1, %v11081_v31 }
 0xedf   :  { %14731 = vmatprep.subr.bf16.mxu0 %v14730_v8  ;;  %vm8967_vm6 = vcmp.eq.s32.totalorder %v20543_v25, %v19956_v2  ;;  %vm8968_vm8 = vcmp.eq.s32.totalorder %v20544_v62, %v19956_v2  ;;  %vm8969_vm10 = vcmp.eq.s32.totalorder %v15675_v36, %v19956_v2  ;;  %vm8970_vm14 = vcmp.eq.s32.totalorder %v15678_v37, %v19956_v2  ;;  %v11182_v25 = vld [vmem:[%s20231_s5 + $0x150] sm:$0xff]  ;;  %v11183_v36 = vld [vmem:[%s20231_s5 + $0x158] sm:$0xff] }
 0xee0   :  { %vm14806_vm7 = vmpackc.low %vm8968_vm8, %vm8967_vm6  ;;  %vm8971_vm12 = vcmp.eq.s32.totalorder %v15737_v48, %v19956_v2  ;;  %vm8972_vm13 = vcmp.eq.s32.totalorder %v15740_v49, %v19956_v2  ;;  %v11184_v48 = vld [vmem:[%s20231_s5 + $0x160] sm:$0xff]  ;;  %vm8973_vm0 = vcmp.eq.s32.totalorder %v20719_v1, %v19956_v2  ;;  %vm8974_vm2 = vcmp.eq.s32.totalorder %v20767_v56, %v19956_v2  ;;  %v11186_v1 = vld [vmem:[%s20231_s5 + $0x170] sm:$0xff] }
 0xee1   :  { %13016 = vmatmul.mubr.msk.f32.gmra.mrb[126].mxu0 %vm7579_vm1, %v11082_v12  ;;  %vm19975_vm11 = vmpackc.low %vm8970_vm14, %vm8969_vm10  ;;  %vm8975_vm4 = vcmp.eq.s32.totalorder %v20770_v16, %v19956_v2  ;;  %vm8976_vm6 = vcmp.eq.s32.totalorder %v20771_v35, %v19956_v2  ;;  %v11256_v62 = vld [vmem:[%s20231_s5 + $0x1f0] sm:$0xff] }
 0xee2   :  { %14733 = vmatpush3.bf16.msra.mxu0 %v14730_v8  ;;  %13068 = vmatprep.mubr.msk.f32.mxu0 %vm7579_vm1, %v11110_v59  ;;  %vm19995_vm15 = vmpackc.low %vm8972_vm13, %vm8971_vm12 }
 0xee3   :  { %v13104_v7 = vpop.f32.mrb[192].mxu1  ;;  %vm14818_vm5 = vmpackc.low %vm8974_vm2, %vm8973_vm0 }
 0xee4   :  { %v8496_v6 = vpop.f32.mrb[193].mxu1  ;;  %vm14822_vm8 = vmpackc.low %vm8976_vm6, %vm8975_vm4 }
 0xee5   :  { %v14754_v20 = vpack.c.bf16 %v13104_v7, %v8496_v6  ;;  %13069 = vmatmul.mubr.msk.f32.vlgmr.msra.gmra.mrb[120].mxu0 %vm7579_vm1, %v11111_v5  ;;  %v11185_v6 = vld [vmem:[%s20231_s5 + $0x168] sm:$0xff] }
 0xee6   :  { %13071 = vmatprep.mubr.msk.f32.mxu0 %vm7579_vm1, %v11112_v10 }
 0xee7   :  { %v13107_v44 = vpop.f32.mrb[194].mxu1  ;;  %14755 = vmatprep.subr.bf16.mxu0 %v14754_v20 }
 0xee8   :  { %v8506_v55 = vpop.f32.mrb[195].mxu1  ;;  %14757 = vmatpush3.bf16.msra.mxu0 %v14754_v20 }
 0xee9   :  { %v14758_v18 = vpack.c.bf16 %v13107_v44, %v8506_v55  ;;  %13072 = vmatmul.mubr.msk.f32.gmra.mrb[122].mxu0 %vm7579_vm1, %v11113_v43  ;;  %v11187_v44 = vld [vmem:[%s20231_s5 + $0x178] sm:$0xff] }
 0xeea   :  { %13074 = vmatprep.mubr.msk.f32.mxu0 %vm7579_vm1, %v11114_v39 }
 0xeeb   :  { %v13110_v26 = vpop.f32.mrb[196].mxu1  ;;  %14759 = vmatprep.subr.bf16.mxu0 %v14758_v18 }
 0xeec   :  { %v8516_v4 = vpop.f32.mrb[197].mxu1  ;;  %14761 = vmatpush3.bf16.msra.mxu0 %v14758_v18 }
 0xeed   :  { %v14762_v15 = vpack.c.bf16 %v13110_v26, %v8516_v4  ;;  %13075 = vmatmul.mubr.msk.f32.gmra.mrb[124].mxu0 %vm7579_vm1, %v11115_v47 }
 0xeee   :  { %13077 = vmatprep.mubr.msk.f32.mxu0 %vm7579_vm1, %v11116_v41 }
 0xeef   :  { %v13113_v14 = vpop.f32.mrb[198].mxu1  ;;  %14763 = vmatprep.subr.bf16.mxu0 %v14762_v15 }
 0xef0   :  { %v8526_v50 = vpop.f32.mrb[199].mxu1  ;;  %14765 = vmatpush3.bf16.msra.mxu0 %v14762_v15 }
 0xef1   :  { %v14766_v22 = vpack.c.bf16 %v13113_v14, %v8526_v50  ;;  %13078 = vmatmul.mubr.msk.f32.gmra.mrb[126].mxu0 %vm7579_vm1, %v11117_v29  ;;  %v11288_v29 = vld [vmem:[%s20231_s5 + $0x218] sm:$0xff]  ;;  %v11289_v14 = vld [vmem:[%s20231_s5 + $0x220] sm:$0xff]  ;;  %v11291_v50 = vld [vmem:[%s20231_s5 + $0x230] sm:$0xff] }
 0xef2   :  { %13130 = vmatprep.mubr.msk.f32.mxu0 %vm7579_vm1, %v11145_v46  ;;  %v11290_v46 = vld [vmem:[%s20231_s5 + $0x228] sm:$0xff] }
 0xef3   :  { %14767 = vmatprep.subr.bf16.mxu0 %v14766_v22 }
 0xef4   :  { %14769 = vmatpush3.bf16.msra.mxu0 %v14766_v22  ;;  %v11292_v22 = vld [vmem:[%s20231_s5 + $0x238] sm:$0xff] }
 0xef7   :  { %13131 = vmatmul.mubr.msk.f32.vlgmr.msra.gmra.mrb[120].mxu0 %vm7579_vm1, %v11146_v3 }
 0xef8   :  { %13133 = vmatprep.mubr.msk.f32.mxu0 %vm7579_vm1, %v11147_v53 }
 0xef9   :  { %v13166_v21 = vpop.f32.mrb[200].mxu1 }
 0xefa   :  { %v8777_v13 = vpop.f32.mrb[201].mxu1 }
 0xefb   :  { %v14790_v63 = vpack.c.bf16 %v13166_v21, %v8777_v13  ;;  %13134 = vmatmul.mubr.msk.f32.gmra.mrb[122].mxu0 %vm7579_vm1, %v11148_v23 }
 0xefc   :  { %13136 = vmatprep.mubr.msk.f32.mxu0 %vm7579_vm1, %v11149_v19 }
 0xefd   :  { %v13169_v58 = vpop.f32.mrb[202].mxu1  ;;  %14791 = vmatprep.subr.bf16.mxu0 %v14790_v63 }
 0xefe   :  { %v8787_v24 = vpop.f32.mrb[203].mxu1  ;;  %14793 = vmatpush3.bf16.msra.mxu0 %v14790_v63 }
 0xeff   :  { %v14794_v42 = vpack.c.bf16 %v13169_v58, %v8787_v24  ;;  %13137 = vmatmul.mubr.msk.f32.gmra.mrb[124].mxu0 %vm7579_vm1, %v11150_v54  ;;  %v11216_v24 = vld [vmem:[%s20231_s5 + $0x188] sm:$0xff] }
 0xf00   :  { %13139 = vmatprep.mubr.msk.f32.mxu0 %vm7579_vm1, %v11151_v52 }
 0xf01   :  { %v13172_v61 = vpop.f32.mrb[204].mxu1  ;;  %14795 = vmatprep.subr.bf16.mxu0 %v14794_v42 }
 0xf02   :  { %v8797_v8 = vpop.f32.mrb[205].mxu1  ;;  %14797 = vmatpush3.bf16.msra.mxu0 %v14794_v42  ;;  %v11217_v42 = vld [vmem:[%s20231_s5 + $0x190] sm:$0xff] }
 0xf03   :  { %v14798_v31 = vpack.c.bf16 %v13172_v61, %v8797_v8  ;;  %13140 = vmatmul.mubr.msk.f32.gmra.mrb[126].mxu0 %vm7579_vm1, %v11152_v34  ;;  %v11218_v34 = vld [vmem:[%s20231_s5 + $0x198] sm:$0xff]  ;;  %v11219_v61 = vld [vmem:[%s20231_s5 + $0x1a0] sm:$0xff] }
 0xf04   :  { %13192 = vmatprep.mubr.msk.f32.mxu0 %vm7579_vm1, %v11180_v9  ;;  %v11220_v9 = vld [vmem:[%s20231_s5 + $0x1a8] sm:$0xff]  ;;  %v11222_v8 = vld [vmem:[%s20231_s5 + $0x1b8] sm:$0xff] }
 0xf05   :  { %v13175_v12 = vpop.f32.mrb[206].mxu1  ;;  %14799 = vmatprep.subr.bf16.mxu0 %v14798_v31 }
 0xf06   :  { %v8807_v59 = vpop.f32.mrb[207].mxu1  ;;  %14801 = vmatpush3.bf16.msra.mxu0 %v14798_v31  ;;  %v11250_v31 = vld [vmem:[%s20231_s5 + $0x1c0] sm:$0xff] }
 0xf07   :  { %v14802_v5 = vpack.c.bf16 %v13175_v12, %v8807_v59  ;;  %v11251_v12 = vld [vmem:[%s20231_s5 + $0x1c8] sm:$0xff]  ;;  %v11252_v59 = vld [vmem:[%s20231_s5 + $0x1d0] sm:$0xff] }
 0xf09   :  { %14803 = vmatprep.subr.bf16.mxu0 %v14802_v5 }
 0xf0a   :  { %14805 = vmatpush3.bf16.msra.mxu0 %v14802_v5  ;;  %v11253_v5 = vld [vmem:[%s20231_s5 + $0x1d8] sm:$0xff] }
 0xf0b   :  { %14807 = vmatprep.subr.msk.bf16.mxu0 %vm14806_vm7, %v20511_v33 }
 0xf0d   :  { %13193 = vmatmul.mubr.msk.f32.vlgmr.msra.gmra.mrb[120].mxu0 %vm7579_vm1, %v11181_v27  ;;  %v11254_v27 = vld [vmem:[%s20231_s5 + $0x1e0] sm:$0xff] }
 0xf0e   :  { %14809 = vmatpush3.bf16.msk.msra.mxu0 %vm14806_vm7, %v20511_v33  ;;  %13195 = vmatprep.mubr.msk.f32.mxu0 %vm7579_vm1, %v11182_v25  ;;  %vm8977_vm7 = vcmp.eq.s32.totalorder %v20775_v60, %v19956_v2  ;;  %v11221_v2 = vld [vmem:[%s20231_s5 + $0x1b0] sm:$0xff]  ;;  %v11255_v25 = vld [vmem:[%s20231_s5 + $0x1e8] sm:$0xff] }
 0xf0f   :  { %v13290_v37 = vpop.f32.mrb[208].mxu1  ;;  %14811 = vmatprep.subr.msk.bf16.mxu0 %vm19975_vm11, %v20511_v33  ;;  %v8988_v47 = vsel %vm8977_vm7, 1.0, %v15119_v17 }
 0xf10   :  { %v9339_v7 = vpop.f32.mrb[209].mxu1 }
 0xf11   :  { %v19999_v10 = vpack.c.bf16 %v13290_v37, %v9339_v7  ;;  %13196 = vmatmul.mubr.msk.f32.gmra.mrb[122].mxu0 %vm7579_vm1, %v11183_v36  ;;  %v11257_v36 = vld [vmem:[%s20231_s5 + $0x1f8] sm:$0xff]  ;;  %v11285_v37 = vld [vmem:[%s20231_s5 + $0x200] sm:$0xff] }
 0xf12   :  { %14813 = vmatpush3.bf16.msk.msra.mxu0 %vm19975_vm11, %v20511_v33  ;;  %13198 = vmatprep.mubr.msk.f32.mxu0 %vm7579_vm1, %v11184_v48  ;;  %v11286_v48 = vld [vmem:[%s20231_s5 + $0x208] sm:$0xff] }
 0xf13   :  { %v13293_v20 = vpop.f32.mrb[210].mxu1  ;;  %14815 = vmatprep.subr.msk.bf16.mxu0 %vm19995_vm15, %v20511_v33 }
 0xf14   :  { %v9349_v56 = vpop.f32.mrb[211].mxu1 }
 0xf15   :  { %v20019_v43 = vpack.c.bf16 %v13293_v20, %v9349_v56  ;;  %13199 = vmatmul.mubr.msk.f32.gmra.mrb[124].mxu0 %vm7579_vm1, %v11185_v6  ;;  %v9821_v56 = vpop.permute.xlu1 %9820 }
 0xf16   :  { %14817 = vmatpush3.bf16.msk.msra.mxu0 %vm19995_vm15, %v20511_v33  ;;  %13201 = vmatprep.mubr.msk.f32.mxu0 %vm7579_vm1, %v11186_v1 }
 0xf17   :  { %v13296_v39 = vpop.f32.mrb[212].mxu1  ;;  %14819 = vmatprep.subr.msk.bf16.mxu0 %vm14818_vm5, %v20511_v33 }
 0xf18   :  { %v9359_v55 = vpop.f32.mrb[213].mxu1 }
 0xf19   :  { %v20034_v18 = vpack.c.bf16 %v13296_v39, %v9359_v55  ;;  %13202 = vmatmul.mubr.msk.f32.gmra.mrb[126].mxu0 %vm7579_vm1, %v11187_v44  ;;  %v9831_v44 = vpop.permute.xlu1 %9830 }
 0xf1a   :  { %14821 = vmatpush3.bf16.msk.msra.mxu0 %vm14818_vm5, %v20511_v33  ;;  %13226 = vmatprep.mubr.msk.f32.mxu0 %vm7293_vm9, %v19464_v45 }
 0xf1b   :  { %v13299_v16 = vpop.f32.mrb[214].mxu1  ;;  %14823 = vmatprep.subr.msk.bf16.mxu0 %vm14822_vm8, %v20511_v33 }
 0xf1c   :  { %v9369_v35 = vpop.f32.mrb[215].mxu1 }
 0xf1d   :  { %v20044_v26 = vpack.c.bf16 %v13299_v16, %v9369_v35 }
 0xf1e   :  { %14825 = vmatpush3.bf16.msk.msra.mxu0 %vm14822_vm8, %v20511_v33 }
 0xf1f   :  { %13224 = vmatprep.subr.msk.mxu0 %vm7318_vm3, %v8988_v47 }
 0xf22   :  { %13225 = vmatpush3.msk.msra.mxu0 %vm7318_vm3, %v8988_v47  ;;  %vm9869_vm3 = vcmask 400384  }
 0xf23   :  { %13227 = vmatmul.mubr.msk.f32.vlgmr.msra.gmra.mrb[128].mxu0 %vm7293_vm9, %v19466_v28 }
 0xf24   :  { %13229 = vmatprep.mubr.msk.f32.mxu0 %vm7293_vm9, %v19484_v11 }
 0xf25   :  { %v13352_v60 = vpop.f32.mrb[216].mxu1 }
 0xf26   :  { %v9620_v45 = vpop.f32.mrb[217].mxu1 }
 0xf27   :  { %v20053_v41 = vpack.c.bf16 %v13352_v60, %v9620_v45  ;;  %13230 = vmatmul.mubr.msk.f32.gmra.mrb[130].mxu0 %vm7293_vm9, %v19489_v30 }
 0xf28   :  { %13232 = vmatprep.mubr.msk.f32.mxu0 %vm7293_vm9, %v19510_v51 }
 0xf29   :  { %v13355_v33 = vpop.f32.mrb[218].mxu1  ;;  %14914 = vmatprep.subr.bf16.mxu1 %v20053_v41 }
 0xf2a   :  { %v9630_v17 = vpop.f32.mrb[219].mxu1  ;;  %14918 = vmatpush3.bf16.msra.mxu1 %v20053_v41 }
 0xf2b   :  { %v20061_v28 = vpack.c.bf16 %v13355_v33, %v9630_v17  ;;  %13233 = vmatmul.mubr.msk.f32.gmra.mrb[132].mxu0 %vm7293_vm9, %v19515_v0 }
 0xf2c   :  { %13235 = vmatprep.mubr.msk.f32.mxu0 %vm7293_vm9, %v19537_v38  ;;  %v11215_v38 = vld [vmem:[%s20231_s5 + $0x180] sm:$0xff] }
 0xf2d   :  { %v13358_v11 = vpop.f32.mrb[220].mxu1  ;;  %14915 = vmatprep.subr.bf16.mxu1 %v20061_v28 }
 0xf2e   :  { %v9640_v30 = vpop.f32.mrb[221].mxu1  ;;  %14919 = vmatpush3.bf16.msra.mxu1 %v20061_v28 }
 0xf2f   :  { %v20069_v51 = vpack.c.bf16 %v13358_v11, %v9640_v30  ;;  %13236 = vmatmul.mubr.msk.f32.gmra.mrb[134].mxu0 %vm7293_vm9, %v19542_v40  ;;  %v11287_v40 = vld [vmem:[%s20231_s5 + $0x210] sm:$0xff] }
 0xf30   :  { %13254 = vmatprep.mubr.msk.f32.mxu0 %vm7579_vm1, %v11215_v38  ;;  %13381 = vmatprep.mubr.msk.f32.mxu1 %vm7579_vm1, %v11287_v40 }
 0xf31   :  { %v13361_v4 = vpop.f32.mrb[222].mxu1  ;;  %14916 = vmatprep.subr.bf16.mxu1 %v20069_v51 }
 0xf32   :  { %v9650_v15 = vpop.f32.mrb[223].mxu1  ;;  %14920 = vmatpush3.bf16.msra.mxu1 %v20069_v51 }
 0xf33   :  { %v20075_v0 = vpack.c.bf16 %v13361_v4, %v9650_v15 }
 0xf35   :  { %14917 = vmatprep.subr.bf16.mxu1 %v20075_v0 }
 0xf36   :  { %14921 = vmatpush3.bf16.msra.mxu1 %v20075_v0 }
 0xf39   :  { %13382 = vmatmul.mubr.msk.f32.vlgmr.msra.gmra.mrb[224].mxu1 %vm7579_vm1, %v11288_v29 }
 0xf3a   :  { %13384 = vmatprep.mubr.msk.f32.mxu1 %vm7579_vm1, %v11289_v14 }
 0xf3d   :  { %13385 = vmatmul.mubr.msk.f32.gmra.mrb[226].mxu1 %vm7579_vm1, %v11290_v46 }
 0xf3e   :  { %13387 = vmatprep.mubr.msk.f32.mxu1 %vm7579_vm1, %v11291_v50 }
 0xf41   :  { %13388 = vmatmul.mubr.msk.f32.gmra.mrb[228].mxu1 %vm7579_vm1, %v11292_v22 }
 0xff6   :  { %v13228_v3 = vpop.f32.mrb[128].mxu0 }
 0xff7   :  { %v9058_v53 = vpop.f32.mrb[129].mxu0 }
 0xff8   :  { %v14826_v23 = vpack.c.bf16 %v13228_v3, %v9058_v53 }
 0xffa   :  { %v13231_v21 = vpop.f32.mrb[130].mxu0  ;;  %14827 = vmatprep.subr.bf16.mxu0 %v14826_v23 }
 0xffb   :  { %v9068_v19 = vpop.f32.mrb[131].mxu0  ;;  %14829 = vmatpush3.bf16.msra.mxu0 %v14826_v23 }
 0xffc   :  { %v14830_v13 = vpack.c.bf16 %v13231_v21, %v9068_v19 }
 0xffe   :  { %v13234_v63 = vpop.f32.mrb[132].mxu0  ;;  %14831 = vmatprep.subr.bf16.mxu0 %v14830_v13 }
 0xfff   :  { %v9078_v54 = vpop.f32.mrb[133].mxu0  ;;  %14833 = vmatpush3.bf16.msra.mxu0 %v14830_v13 }
0x1000   :  { %v14834_v58 = vpack.c.bf16 %v13234_v63, %v9078_v54 }
0x1002   :  { %v13237_v52 = vpop.f32.mrb[134].mxu0  ;;  %14835 = vmatprep.subr.bf16.mxu0 %v14834_v58 }
0x1003   :  { %v9088_v57 = vpop.f32.mrb[135].mxu0  ;;  %14837 = vmatpush3.bf16.msra.mxu0 %v14834_v58 }
0x1004   :  { %v14838_v32 = vpack.c.bf16 %v13237_v52, %v9088_v57 }
0x1006   :  { %14839 = vmatprep.subr.bf16.mxu0 %v14838_v32 }
0x1007   :  { %14841 = vmatpush3.bf16.msra.mxu0 %v14838_v32 }
0x1008   :  { %14863 = vmatprep.subr.bf16.mxu0 %v19999_v10 }
0x100a   :  { %13255 = vmatmul.mubr.msk.f32.vlgmr.msra.gmra.mrb[120].mxu0 %vm7579_vm1, %v11216_v24 }
0x100b   :  { %14865 = vmatpush3.bf16.msra.mxu0 %v19999_v10  ;;  %13257 = vmatprep.mubr.msk.f32.mxu0 %vm7579_vm1, %v11217_v42 }
0x100c   :  { %14867 = vmatprep.subr.bf16.mxu0 %v20019_v43  ;;  %v13383_v7 = vpop.f32.mrb[224].mxu1 }
0x100d   :  { %v9768_v49 = vpop.f32.mrb[225].mxu1 }
0x100e   :  { %13258 = vmatmul.mubr.msk.f32.gmra.mrb[122].mxu0 %vm7579_vm1, %v11218_v34 }
0x100f   :  { %14869 = vmatpush3.bf16.msra.mxu0 %v20019_v43  ;;  %13260 = vmatprep.mubr.msk.f32.mxu0 %vm7579_vm1, %v11219_v61  ;;  %v9816_v43 = vpop.permute.xlu0 %9815 }
0x1010   :  { %14871 = vmatprep.subr.bf16.mxu0 %v20034_v18  ;;  %v13386_v10 = vpop.f32.mrb[226].mxu1 }
0x1011   :  { %v9778_v6 = vpop.f32.mrb[227].mxu1 }
0x1012   :  { %13261 = vmatmul.mubr.msk.f32.gmra.mrb[124].mxu0 %vm7579_vm1, %v11220_v9 }
0x1013   :  { %14873 = vmatpush3.bf16.msra.mxu0 %v20034_v18  ;;  %13263 = vmatprep.mubr.msk.f32.mxu0 %vm7579_vm1, %v11221_v2  ;;  %v9826_v39 = vpop.permute.xlu0 %9825 }
0x1014   :  { %14875 = vmatprep.subr.bf16.mxu0 %v20044_v26  ;;  %v13389_v20 = vpop.f32.mrb[228].mxu1 }
0x1015   :  { %v9788_v1 = vpop.f32.mrb[229].mxu1 }
0x1016   :  { %13264 = vmatmul.mubr.msk.f32.gmra.mrb[126].mxu0 %vm7579_vm1, %v11222_v8 }
0x1017   :  { %14877 = vmatpush3.bf16.msra.mxu0 %v20044_v26  ;;  %13316 = vmatprep.mubr.msk.f32.mxu0 %vm7579_vm1, %v11250_v31  ;;  %v9841_v26 = vpop.permute.xlu1 %9840 }
0x1018   :  { %14899 = vmatprep.subr.bf16.mxu0 %v20053_v41 }
0x101a   :  { %13317 = vmatmul.mubr.msk.f32.vlgmr.msra.gmra.mrb[120].mxu0 %vm7579_vm1, %v11251_v12 }
0x101b   :  { %14901 = vmatpush3.bf16.msra.mxu0 %v20053_v41  ;;  %13319 = vmatprep.mubr.msk.f32.mxu0 %vm7579_vm1, %v11252_v59  ;;  %v9836_v41 = vpop.permute.xlu0 %9835  ;;  %v9851_v29 = vpop.permute.xlu1 %9850 }
0x101c   :  { %14903 = vmatprep.subr.bf16.mxu0 %v20061_v28 }
0x101e   :  { %13320 = vmatmul.mubr.msk.f32.gmra.mrb[122].mxu0 %vm7579_vm1, %v11253_v5 }
0x101f   :  { %14905 = vmatpush3.bf16.msra.mxu0 %v20061_v28  ;;  %13322 = vmatprep.mubr.msk.f32.mxu0 %vm7579_vm1, %v11254_v27  ;;  %v9846_v50 = vpop.permute.xlu0 %9845 }
0x1020   :  { %14907 = vmatprep.subr.bf16.mxu0 %v20069_v51 }
0x1022   :  { %13323 = vmatmul.mubr.msk.f32.gmra.mrb[124].mxu0 %vm7579_vm1, %v11255_v25 }
0x1023   :  { %14909 = vmatpush3.bf16.msra.mxu0 %v20069_v51  ;;  %13325 = vmatprep.mubr.msk.f32.mxu0 %vm7579_vm1, %v11256_v62 }
0x1024   :  { %14911 = vmatprep.subr.bf16.mxu0 %v20075_v0 }
0x1026   :  { %13326 = vmatmul.mubr.msk.f32.gmra.mrb[126].mxu0 %vm7579_vm1, %v11257_v36 }
0x1027   :  { %14913 = vmatpush3.bf16.msra.mxu0 %v20075_v0  ;;  %13378 = vmatprep.mubr.msk.f32.mxu0 %vm7579_vm1, %v11285_v37 }
0x102a   :  { %13379 = vmatmul.mubr.msk.f32.vlgmr.msra.gmra.mrb[120].mxu0 %vm7579_vm1, %v11286_v48 }
0x10f1   :  { %v13321_v55 = vpop.f32.mrb[122].mxu0 }
0x10f2   :  { %v14922_v18 = vadd.f32 %v13383_v7, %v13321_v55  ;;  %v9487_v16 = vpop.f32.mrb[123].mxu0 }
0x10f3   :  { %v14923_v35 = vadd.f32 %v9768_v49, %v9487_v16 }
0x10f4   :  { %v9856_v47 = vadd.f32 %v14922_v18, %v9831_v44 }
0x10f5   :  { %v9855_v60 = vadd.f32 %v14923_v35, %v9826_v39  ;;  %v13324_v45 = vpop.f32.mrb[124].mxu0 }
0x10f6   :  { %v9864_v33 = vmax.f32 %v9856_v47, 0.0  ;;  %v14924_v17 = vadd.f32 %v13386_v10, %v13324_v45  ;;  %v9497_v28 = vpop.f32.mrb[125].mxu0 }
0x10f7   :  { %v9863_v11 = vmax.f32 %v9855_v60, 0.0  ;;  %v14925_v30 = vadd.f32 %v9778_v6, %v9497_v28 }
0x10f8   :  { %9873 = vst.msk [vmem:[%s20232_s9 + $0x18] sm:$0xff] %vm9869_vm3, %v9864_v33  ;;  %v9858_v51 = vadd.f32 %v14924_v17, %v9841_v26 }
0x10f9   :  { %9872 = vst.msk [vmem:[%s20232_s9 + $0x10] sm:$0xff] %vm9869_vm3, %v9863_v11  ;;  %v9857_v4 = vadd.f32 %v14925_v30, %v9836_v41  ;;  %v13327_v15 = vpop.f32.mrb[126].mxu0 }
0x10fa   :  { %v9866_v0 = vmax.f32 %v9858_v51, 0.0  ;;  %v14926_v38 = vadd.f32 %v13389_v20, %v13327_v15  ;;  %v9507_v40 = vpop.f32.mrb[127].mxu0 }
0x10fb   :  { %v9865_v14 = vmax.f32 %v9857_v4, 0.0  ;;  %v14927_v46 = vadd.f32 %v9788_v1, %v9507_v40 }
0x10fc   :  { %9875 = vst.msk [vmem:[%s20232_s9 + $0x28] sm:$0xff] %vm9869_vm3, %v9866_v0  ;;  %v9860_v22 = vadd.f32 %v14926_v38, %v9851_v29 }
0x10fd   :  { %9874 = vst.msk [vmem:[%s20232_s9 + $0x20] sm:$0xff] %vm9869_vm3, %v9865_v14  ;;  %v9859_v3 = vadd.f32 %v14927_v46, %v9846_v50  ;;  %v13380_v53 = vpop.f32.mrb[120].mxu0 }
0x10fe   :  { %v9868_v23 = vmax.f32 %v9860_v22, 0.0  ;;  %v9854_v21 = vadd.f32 %v13380_v53, %v9821_v56  ;;  %v9758_v19 = vpop.f32.mrb[121].mxu0 }
0x10ff   :  { %v9867_v13 = vmax.f32 %v9859_v3, 0.0  ;;  %v9853_v63 = vadd.f32 %v9816_v43, %v9758_v19 }
0x1100   :  { %9877 = vst.msk [vmem:[%s20232_s9 + $0x38] sm:$0xff] %vm9869_vm3, %v9868_v23  ;;  %v9862_v54 = vmax.f32 %v9854_v21, 0.0 }
0x1101   :  { %9876 = vst.msk [vmem:[%s20232_s9 + $0x30] sm:$0xff] %vm9869_vm3, %v9867_v13  ;;  %v9861_v58 = vmax.f32 %v9853_v63, 0.0 }
0x1102   :  { %9871 = vst.msk [vmem:[%s20232_s9 + $0x8] sm:$0xff] %vm9869_vm3, %v9862_v54 }
0x1103   :  { %9870 = vst.msk [vmem:[%s20232_s9] sm:$0xff] %vm9869_vm3, %v9861_v58 }

</bundles_post_ra>
